<compile_context>
chip_gen: v7x
topology: tpu7x:2x2x1
jax: 0.10.0
libtpu: 0.0.40
codegen_flags: <defaults>
</compile_context>

<pallas_src>
import functools

import jax
import jax.numpy as jnp
import numpy as np
from jax.experimental import pallas as pl
from jax.experimental.pallas import tpu as pltpu

_LANE = 128
_OFF = 8  # sublane-aligned column offset of the interior inside the halo scratches


def _round_up(x, m):
    return ((x + m - 1) // m) * m


# ----------------------------------------------------------------------------
# Parameter init (deterministic, mirrors the PyTorch __init__)
# ----------------------------------------------------------------------------
def _l2norm(v, eps=1e-12):
    return v / (jnp.linalg.norm(v) + eps)


def _xavier_uniform(key, shape, gain):
    receptive = shape[2] * shape[3]
    fan_in = shape[1] * receptive
    fan_out = shape[0] * receptive
    a = gain * np.sqrt(6.0 / (fan_in + fan_out))
    return jax.random.uniform(key, shape, jnp.float32, -a, a)


def _conv_bias(key, fan_in, cout):
    bound = 1.0 / np.sqrt(fan_in)
    return jax.random.uniform(key, (cout,), jnp.float32, -bound, bound)


def init_params(key, cin, cout, stride):
    ks = jax.random.split(key, 9)
    p = {
        "w1": _xavier_uniform(ks[0], (cout, cin, 3, 3), 1.0),
        "b1": _conv_bias(ks[1], cin * 9, cout),
        "w2": _xavier_uniform(ks[2], (cout, cout, 3, 3), 1.0),
        "b2": _conv_bias(ks[3], cout * 9, cout),
        "u1": _l2norm(jax.random.normal(ks[4], (cout,))),
        "u2": _l2norm(jax.random.normal(ks[5], (cout,))),
    }
    if stride != 1:
        p["wb"] = _xavier_uniform(ks[6], (cout, cin, 1, 1), float(np.sqrt(2.0)))
        p["bb"] = _conv_bias(ks[7], cin, cout)
        p["ub"] = _l2norm(jax.random.normal(ks[8], (cout,)))
    return p


def _spectral_norm(w, u, n_iter=1):
    h = w.shape[0]
    wm = w.reshape(h, -1)
    v = None
    for _ in range(n_iter):
        v = _l2norm(wm.T @ u)
        u = _l2norm(wm @ v)
    sigma = u @ (wm @ v)
    return w / sigma


def _normalized_weights(params, stride):
    w1 = _spectral_norm(params["w1"], params["u1"])
    w2 = _spectral_norm(params["w2"], params["u2"])
    wb = _spectral_norm(params["wb"], params["ub"]) if stride != 1 else None
    return w1, w2, wb


# ----------------------------------------------------------------------------
# Pallas kernel
# ----------------------------------------------------------------------------
def _make_kernel(B, H, W, WXP, Cp, Cop, stride):
    M = B * H * W
    Ho, Wo = (H, W) if stride == 1 else (H // 2, W // 2)

    def zero_halo(ref, C):
        # Zero the halo ring plus the alignment columns. All strips start/end at
        # 8-multiple sublane offsets -> unmasked stores; also guarantees no stale
        # data in the never-read columns [0, _OFF-1) and [_OFF+W+1, WXP).
        ref[:, 0:1, :, :] = jnp.zeros((B, 1, WXP, C), jnp.bfloat16)
        ref[:, H + 1:H + 2, :, :] = jnp.zeros((B, 1, WXP, C), jnp.bfloat16)
        ref[:, :, 0:_OFF, :] = jnp.zeros((B, H + 2, _OFF, C), jnp.bfloat16)
        ref[:, :, _OFF + W:WXP, :] = jnp.zeros(
            (B, H + 2, WXP - _OFF - W, C), jnp.bfloat16)

    def im2col(src_ref, C, patch_ref):
        # src_ref: (B, H+2, WXP, C) bf16 halo scratch; interior rows [1, 1+H),
        # cols [_OFF, _OFF+W).  Scatter the 9 shifted tap slabs (read directly from
        # the ref, no whole-block value load) into lane-aligned columns of the bf16
        # patch scratch; return the (M, 9*C) im2col matrix for one MXU matmul.
        for kh in range(3):
            for kw in range(3):
                k = kh * 3 + kw
                c0 = _OFF - 1 + kw
                slab = src_ref[:, kh:kh + H, c0:c0 + W, :]
                patch_ref[:, k * C:(k + 1) * C] = slab.reshape(M, C)
        return patch_ref[:, :9 * C]

    def pool2x2(s):
        # 2x2 average pool of rows ordered (b, h, w) -> (B, Ho, Wo, Cop).
        # Pure value compute (VPU/XLU); no staging scratch, no strided reloads.
        sw = jnp.sum(s.reshape(B * H * Wo, 2, Cop), axis=1)      # pool adjacent w
        sh = jnp.sum(sw.reshape(B * Ho, 2, Wo * Cop), axis=1)    # pool adjacent h
        return (sh * 0.25).reshape(B, Ho, Wo, Cop)

    def body(x_ref, w1_ref, b1_ref, w2_ref, b2_ref, o_ref,
             xh_ref, yh_ref, patch_ref, wb_ref=None, bb_ref=None):
        # ---- stage relu(x) (bf16) into the x halo scratch; the 1px spatial zero pad
        #      is realised here (relu(0) == 0, so relu on the padded tensor is exact).
        zero_halo(xh_ref, Cp)
        xh_ref[:, 1:H + 1, _OFF:_OFF + W, :] = (
            jnp.maximum(x_ref[...], 0.0).astype(jnp.bfloat16))

        # ---- conv1(relu(x)): one bf16 im2col matmul, f32 accumulation.
        p1 = im2col(xh_ref, Cp, patch_ref)
        y1 = jnp.dot(p1, w1_ref[...],
                     preferred_element_type=jnp.float32) + b1_ref[...]

        # ---- relu(y1) (bf16) into the second halo scratch (aligned interior store).
        zero_halo(yh_ref, Cop)
        yh_ref[:, 1:H + 1, _OFF:_OFF + W, :] = (
            jnp.maximum(y1, 0.0).astype(jnp.bfloat16).reshape(B, H, W, Cop))

        # ---- conv2(relu(y1))
        p2 = im2col(yh_ref, Cop, patch_ref)
        y2 = jnp.dot(p2, w2_ref[...],
                     preferred_element_type=jnp.float32) + b2_ref[...]

        if stride == 1:
            # identity bypass in f32 (exact; requires Cp == Cop)
            o_ref[...] = (y2 + x_ref[...].reshape(M, Cp)).reshape(B, H, W, Cop)
        else:
            # bypass = avgpool(conv1x1(x)) on x (NO relu); pooling is linear, so the
            # sum (y2 + yb) is pooled once.
            xb = x_ref[...].reshape(M, Cp).astype(jnp.bfloat16)
            yb = jnp.dot(xb, wb_ref[...],
                         preferred_element_type=jnp.float32) + bb_ref[...]
            o_ref[...] = pool2x2(y2 + yb)

    if stride == 1:
        def kernel(x_ref, w1_ref, b1_ref, w2_ref, b2_ref, o_ref,
                   xh_ref, yh_ref, patch_ref):
            body(x_ref, w1_ref, b1_ref, w2_ref, b2_ref, o_ref,
                 xh_ref, yh_ref, patch_ref)
    else:
        def kernel(x_ref, w1_ref, b1_ref, w2_ref, b2_ref, wb_ref, bb_ref, o_ref,
                   xh_ref, yh_ref, patch_ref):
            body(x_ref, w1_ref, b1_ref, w2_ref, b2_ref, o_ref,
                 xh_ref, yh_ref, patch_ref, wb_ref, bb_ref)
    return kernel


# ----------------------------------------------------------------------------
# Wrapper
# ----------------------------------------------------------------------------
@functools.partial(jax.jit, static_argnames=("stride", "batch_block"))
def res_block_discriminator(x_nchw, params, stride, batch_block=8):
    """Forward pass of ResBlockDiscriminator. x_nchw: (N, Cin, H, W) float32."""
    N, Cin, H, W = x_nchw.shape
    Cout = params["w1"].shape[0]
    assert stride in (1, 2)
    if stride == 1:
        assert Cin == Cout, "identity bypass needs Cin == Cout"
    else:
        assert H % 2 == 0 and W % 2 == 0

    Cp = _round_up(Cin, _LANE)       # lane-padded input channels
    Cop = _round_up(Cout, _LANE)     # lane-padded output channels
    Cmax = max(Cp, Cop)
    Ho, Wo = (H, W) if stride == 1 else (H // 2, W // 2)
    WXP = _round_up(_OFF + W + 1, 8)  # sublane-aligned halo-scratch row width

    # Per-core VMEM capacity; conservative fallback if the query is unavailable.
    try:
        vmem_cap = int(pltpu.get_tpu_info().vmem_capacity_bytes)
    except Exception:
        vmem_cap = 64 * 1024 * 1024

    def vmem_need(b):
        m = b * H * W
        scr = (b * (H + 2) * WXP * (Cp + Cop) + m * 9 * Cmax) * 2        # bf16 scratch
        io = 2 * (b * H * W * Cp + b * Ho * Wo * Cop) * 4                # dbl-buf f32 I/O
        wts = ((9 * Cp * Cop + 9 * Cop * Cop + Cp * Cop) * 2) * 2 + 3 * Cop * 4
        return scr + io + wts

    # Batch block: largest divisor of N that (a) keeps >= 2 grid steps so the parallel
    # axis can shard across both v7x TensorCores, and (b) fits ~half of VMEM.
    budget = vmem_cap // 2
    max_b = min(batch_block, max(1, N // 2))
    B = 1
    for cand in range(1, max_b + 1):
        if N % cand == 0 and vmem_need(cand) <= budget:
            B = cand

    w1, w2, wb = _normalized_weights(params, stride)

    # NCHW -> NHWC; only the channel pad to a lane multiple is materialised here
    # (no-op once Cin % 128 == 0); the 1px spatial pad happens inside the kernel.
    x = jnp.transpose(x_nchw, (0, 2, 3, 1)).astype(jnp.float32)
    x = jnp.pad(x, ((0, 0), (0, 0), (0, 0), (0, Cp - Cin)))

    def conv3x3_weight(w, cin, cin_p):
        # (Cout, cin, 3, 3) -> (9*cin_p, Cop) bf16, contraction ordered (kh, kw, cin)
        wt = jnp.transpose(w, (2, 3, 1, 0))
        wt = jnp.pad(wt, ((0, 0), (0, 0), (0, cin_p - cin), (0, Cop - Cout)))
        return wt.reshape(9 * cin_p, Cop).astype(jnp.bfloat16)

    def pad_bias(b):
        return jnp.pad(b, (0, Cop - Cout)).reshape(1, Cop).astype(jnp.float32)

    w1k = conv3x3_weight(w1, Cin, Cp)
    w2k = conv3x3_weight(w2, Cout, Cop)
    b1 = pad_bias(params["b1"])
    b2 = pad_bias(params["b2"])

    in_specs = [
        pl.BlockSpec((B, H, W, Cp), lambda n: (n, 0, 0, 0)),
        pl.BlockSpec((9 * Cp, Cop), lambda n: (0, 0)),
        pl.BlockSpec((1, Cop), lambda n: (0, 0)),
        pl.BlockSpec((9 * Cop, Cop), lambda n: (0, 0)),
        pl.BlockSpec((1, Cop), lambda n: (0, 0)),
    ]
    args = [x, w1k, b1, w2k, b2]
    if stride != 1:
        wbk = jnp.pad(wb[:, :, 0, 0].T,
                      ((0, Cp - Cin), (0, Cop - Cout))).astype(jnp.bfloat16)
        bb = pad_bias(params["bb"])
        in_specs += [pl.BlockSpec((Cp, Cop), lambda n: (0, 0)),
                     pl.BlockSpec((1, Cop), lambda n: (0, 0))]
        args += [wbk, bb]

    vmem_limit = int(min(vmem_cap,
                         max(32 * 1024 * 1024, 2 * vmem_need(B) + (8 << 20))))

    out = pl.pallas_call(
        _make_kernel(B, H, W, WXP, Cp, Cop, stride),
        out_shape=jax.ShapeDtypeStruct((N, Ho, Wo, Cop), jnp.float32),
        grid_spec=pltpu.PrefetchScalarGridSpec(
            num_scalar_prefetch=0,
            grid=(N // B,),
            in_specs=in_specs,
            out_specs=pl.BlockSpec((B, Ho, Wo, Cop), lambda n: (n, 0, 0, 0)),
            scratch_shapes=[
                pltpu.VMEM((B, H + 2, WXP, Cp), jnp.bfloat16),    # relu(x), halo'd
                pltpu.VMEM((B, H + 2, WXP, Cop), jnp.bfloat16),   # relu(y1), halo'd
                pltpu.VMEM((B * H * W, 9 * Cmax), jnp.bfloat16),  # im2col patches
            ],
        ),
        compiler_params=pltpu.CompilerParams(
            dimension_semantics=("parallel",),
            vmem_limit_bytes=vmem_limit,
        ),
    )(*args)

    # strip channel padding; NHWC -> NCHW (PyTorch convention)
    return jnp.transpose(out[..., :Cout], (0, 3, 1, 2))


# ----------------------------------------------------------------------------
# Pure-JAX reference (for correctness check only)
# ----------------------------------------------------------------------------
def ref_forward(x, params, stride):
    w1, w2, wb = _normalized_weights(params, stride)

    def conv(z, w, b, pad):
        y = jax.lax.conv_general_dilated(
            z, w, (1, 1), [(pad, pad), (pad, pad)],
            dimension_numbers=("NCHW", "OIHW", "NCHW"))
        return y + b[None, :, None, None]

    def pool(z):
        return jax.lax.reduce_window(
            z, 0.0, jax.lax.add, (1, 1, 2, 2), (1, 1, 2, 2), "VALID") * 0.25

    h = conv(jax.nn.relu(x), w1, params["b1"], 1)
    h = conv(jax.nn.relu(h), w2, params["b2"], 1)
    if stride != 1:
        return pool(h) + pool(conv(x, wb, params["bb"], 0))
    return h + x


# ----------------------------------------------------------------------------
if __name__ == "__main__":
    key = jax.random.PRNGKey(0)
    kx, kp, kx2, kp2 = jax.random.split(key, 4)

    # bf16 matmul operands with f32 accumulation -> looser tolerance vs f32 reference.
    RTOL = ATOL = 3e-2

    # stride=2 path (spectral-norm 1x1 conv bypass + 2x2 avg-pool): 4 -> 8 ch, 16x16
    x = jax.random.normal(kx, (2, 4, 16, 16), jnp.float32)
    params = init_params(kp, 4, 8, stride=2)
    out = jax.block_until_ready(res_block_discriminator(x, params, stride=2))
    ref = ref_forward(x, params, 2)
    assert out.shape == (2, 8, 8, 8)
    np.testing.assert_allclose(np.asarray(out), np.asarray(ref), rtol=RTOL, atol=ATOL)

    # stride=1 path (identity bypass): in = out = 4 channels
    x1 = jax.random.normal(kx2, (2, 4, 16, 16), jnp.float32)
    params1 = init_params(kp2, 4, 4, stride=1)
    out1 = jax.block_until_ready(res_block_discriminator(x1, params1, stride=1))
    ref1 = ref_forward(x1, params1, 1)
    assert out1.shape == (2, 4, 16, 16)
    np.testing.assert_allclose(np.asarray(out1), np.asarray(ref1), rtol=RTOL, atol=ATOL)

    print("KERNEL_OK")
</pallas_src>

<mosaic_0001>
module attributes {stable_mosaic.version = 11 : i64} {
  func.func @kernel(%arg0: i32, %arg1: memref<1x16x16x128xf32, #tpu.memory_space<vmem>>, %arg2: memref<1152x128xbf16, #tpu.memory_space<vmem>>, %arg3: memref<1x128xf32, #tpu.memory_space<vmem>>, %arg4: memref<1152x128xbf16, #tpu.memory_space<vmem>>, %arg5: memref<1x128xf32, #tpu.memory_space<vmem>>, %arg6: memref<128x128xbf16, #tpu.memory_space<vmem>>, %arg7: memref<1x128xf32, #tpu.memory_space<vmem>>, %arg8: memref<1x8x8x128xf32, #tpu.memory_space<vmem>>, %arg9: memref<1x18x32x128xbf16, #tpu.memory_space<vmem>>, %arg10: memref<1x18x32x128xbf16, #tpu.memory_space<vmem>>, %arg11: memref<256x1152xbf16, #tpu.memory_space<vmem>>) attributes {dimension_semantics = [#tpu.dimension_semantics<parallel>], iteration_bounds = array<i64: 2>, scalar_prefetch = 0 : i64, scratch_operands = 3 : i64, tpu.core_type = #tpu.core_type<tc>, window_params = [{transform_indices = @transform_0, window_bounds = array<i64: 1, 16, 16, 128>}, {pipeline_mode = #tpu.pipeline_mode<synchronous>, transform_indices = @transform_1, window_bounds = array<i64: 1152, 128>}, {pipeline_mode = #tpu.pipeline_mode<synchronous>, transform_indices = @transform_2, window_bounds = array<i64: 1, 128>}, {pipeline_mode = #tpu.pipeline_mode<synchronous>, transform_indices = @transform_3, window_bounds = array<i64: 1152, 128>}, {pipeline_mode = #tpu.pipeline_mode<synchronous>, transform_indices = @transform_4, window_bounds = array<i64: 1, 128>}, {pipeline_mode = #tpu.pipeline_mode<synchronous>, transform_indices = @transform_5, window_bounds = array<i64: 128, 128>}, {pipeline_mode = #tpu.pipeline_mode<synchronous>, transform_indices = @transform_6, window_bounds = array<i64: 1, 128>}, {transform_indices = @transform_7, window_bounds = array<i64: 1, 8, 8, 128>}]} {
    %cst = arith.constant 0.000000e+00 : bf16
    %0 = vector.broadcast %cst : bf16 to vector<1x1x32x128xbf16>
    %c0 = arith.constant 0 : index
    %c0_0 = arith.constant 0 : index
    %c0_1 = arith.constant 0 : index
    %c0_2 = arith.constant 0 : index
    %1 = vector.load %arg9[%c0, %c0_0, %c0_1, %c0_2] : memref<1x18x32x128xbf16, #tpu.memory_space<vmem>>, vector<1x1x32x128xbf16>
    tpu.vector_store %arg9[%c0, %c0_0, %c0_1, %c0_2], %0 {strides = array<i32>} : memref<1x18x32x128xbf16, #tpu.memory_space<vmem>>, vector<1x1x32x128xbf16>,
    %cst_3 = arith.constant 0.000000e+00 : bf16
    %2 = vector.broadcast %cst_3 : bf16 to vector<1x1x32x128xbf16>
    %c0_4 = arith.constant 0 : index
    %c17 = arith.constant 17 : index
    %c0_5 = arith.constant 0 : index
    %c0_6 = arith.constant 0 : index
    %3 = vector.load %arg9[%c0_4, %c17, %c0_5, %c0_6] : memref<1x18x32x128xbf16, #tpu.memory_space<vmem>>, vector<1x1x32x128xbf16>
    tpu.vector_store %arg9[%c0_4, %c17, %c0_5, %c0_6], %2 {strides = array<i32>} : memref<1x18x32x128xbf16, #tpu.memory_space<vmem>>, vector<1x1x32x128xbf16>,
    %cst_7 = arith.constant 0.000000e+00 : bf16
    %4 = vector.broadcast %cst_7 : bf16 to vector<1x18x8x128xbf16>
    %c0_8 = arith.constant 0 : index
    %c0_9 = arith.constant 0 : index
    %c0_10 = arith.constant 0 : index
    %c0_11 = arith.constant 0 : index
    %5 = vector.load %arg9[%c0_8, %c0_9, %c0_10, %c0_11] : memref<1x18x32x128xbf16, #tpu.memory_space<vmem>>, vector<1x18x8x128xbf16>
    tpu.vector_store %arg9[%c0_8, %c0_9, %c0_10, %c0_11], %4 {strides = array<i32>} : memref<1x18x32x128xbf16, #tpu.memory_space<vmem>>, vector<1x18x8x128xbf16>,
    %cst_12 = arith.constant 0.000000e+00 : bf16
    %6 = vector.broadcast %cst_12 : bf16 to vector<1x18x8x128xbf16>
    %c0_13 = arith.constant 0 : index
    %c0_14 = arith.constant 0 : index
    %c24 = arith.constant 24 : index
    %c0_15 = arith.constant 0 : index
    %7 = vector.load %arg9[%c0_13, %c0_14, %c24, %c0_15] : memref<1x18x32x128xbf16, #tpu.memory_space<vmem>>, vector<1x18x8x128xbf16>
    tpu.vector_store %arg9[%c0_13, %c0_14, %c24, %c0_15], %6 {strides = array<i32>} : memref<1x18x32x128xbf16, #tpu.memory_space<vmem>>, vector<1x18x8x128xbf16>,
    %c0_16 = arith.constant 0 : index
    %c0_17 = arith.constant 0 : index
    %c0_18 = arith.constant 0 : index
    %c0_19 = arith.constant 0 : index
    %8 = vector.load %arg1[%c0_16, %c0_17, %c0_18, %c0_19] : memref<1x16x16x128xf32, #tpu.memory_space<vmem>>, vector<1x16x16x128xf32>
    %cst_20 = arith.constant 0.000000e+00 : f32
    %9 = vector.broadcast %cst_20 : f32 to vector<1x16x16x128xf32>
    %10 = arith.maximumf %8, %9 : vector<1x16x16x128xf32>
    %11 = arith.truncf %10 : vector<1x16x16x128xf32> to vector<1x16x16x128xbf16>
    %c0_21 = arith.constant 0 : index
    %c1 = arith.constant 1 : index
    %c8 = arith.constant 8 : index
    %c0_22 = arith.constant 0 : index
    %12 = vector.load %arg9[%c0_21, %c1, %c8, %c0_22] : memref<1x18x32x128xbf16, #tpu.memory_space<vmem>>, vector<1x16x16x128xbf16>
    tpu.vector_store %arg9[%c0_21, %c1, %c8, %c0_22], %11 {strides = array<i32>} : memref<1x18x32x128xbf16, #tpu.memory_space<vmem>>, vector<1x16x16x128xbf16>,
    %c0_23 = arith.constant 0 : index
    %c0_24 = arith.constant 0 : index
    %c7 = arith.constant 7 : index
    %c0_25 = arith.constant 0 : index
    %13 = vector.load %arg9[%c0_23, %c0_24, %c7, %c0_25] : memref<1x18x32x128xbf16, #tpu.memory_space<vmem>>, vector<1x16x16x128xbf16>
    %14 = vector.shape_cast %13 : vector<1x16x16x128xbf16> to vector<256x128xbf16>
    %c0_26 = arith.constant 0 : index
    %c0_27 = arith.constant 0 : index
    %15 = vector.load %arg11[%c0_26, %c0_27] : memref<256x1152xbf16, #tpu.memory_space<vmem>>, vector<256x128xbf16>
    tpu.vector_store %arg11[%c0_26, %c0_27], %14 {strides = array<i32>} : memref<256x1152xbf16, #tpu.memory_space<vmem>>, vector<256x128xbf16>,
    %c0_28 = arith.constant 0 : index
    %c0_29 = arith.constant 0 : index
    %c8_30 = arith.constant 8 : index
    %c0_31 = arith.constant 0 : index
    %16 = vector.load %arg9[%c0_28, %c0_29, %c8_30, %c0_31] : memref<1x18x32x128xbf16, #tpu.memory_space<vmem>>, vector<1x16x16x128xbf16>
    %17 = vector.shape_cast %16 : vector<1x16x16x128xbf16> to vector<256x128xbf16>
    %c0_32 = arith.constant 0 : index
    %c128 = arith.constant 128 : index
    %18 = vector.load %arg11[%c0_32, %c128] : memref<256x1152xbf16, #tpu.memory_space<vmem>>, vector<256x128xbf16>
    tpu.vector_store %arg11[%c0_32, %c128], %17 {strides = array<i32>} : memref<256x1152xbf16, #tpu.memory_space<vmem>>, vector<256x128xbf16>,
    %c0_33 = arith.constant 0 : index
    %c0_34 = arith.constant 0 : index
    %c9 = arith.constant 9 : index
    %c0_35 = arith.constant 0 : index
    %19 = vector.load %arg9[%c0_33, %c0_34, %c9, %c0_35] : memref<1x18x32x128xbf16, #tpu.memory_space<vmem>>, vector<1x16x16x128xbf16>
    %20 = vector.shape_cast %19 : vector<1x16x16x128xbf16> to vector<256x128xbf16>
    %c0_36 = arith.constant 0 : index
    %c256 = arith.constant 256 : index
    %21 = vector.load %arg11[%c0_36, %c256] : memref<256x1152xbf16, #tpu.memory_space<vmem>>, vector<256x128xbf16>
    tpu.vector_store %arg11[%c0_36, %c256], %20 {strides = array<i32>} : memref<256x1152xbf16, #tpu.memory_space<vmem>>, vector<256x128xbf16>,
    %c0_37 = arith.constant 0 : index
    %c1_38 = arith.constant 1 : index
    %c7_39 = arith.constant 7 : index
    %c0_40 = arith.constant 0 : index
    %22 = vector.load %arg9[%c0_37, %c1_38, %c7_39, %c0_40] : memref<1x18x32x128xbf16, #tpu.memory_space<vmem>>, vector<1x16x16x128xbf16>
    %23 = vector.shape_cast %22 : vector<1x16x16x128xbf16> to vector<256x128xbf16>
    %c0_41 = arith.constant 0 : index
    %c384 = arith.constant 384 : index
    %24 = vector.load %arg11[%c0_41, %c384] : memref<256x1152xbf16, #tpu.memory_space<vmem>>, vector<256x128xbf16>
    tpu.vector_store %arg11[%c0_41, %c384], %23 {strides = array<i32>} : memref<256x1152xbf16, #tpu.memory_space<vmem>>, vector<256x128xbf16>,
    %c0_42 = arith.constant 0 : index
    %c1_43 = arith.constant 1 : index
    %c8_44 = arith.constant 8 : index
    %c0_45 = arith.constant 0 : index
    %25 = vector.load %arg9[%c0_42, %c1_43, %c8_44, %c0_45] : memref<1x18x32x128xbf16, #tpu.memory_space<vmem>>, vector<1x16x16x128xbf16>
    %26 = vector.shape_cast %25 : vector<1x16x16x128xbf16> to vector<256x128xbf16>
    %c0_46 = arith.constant 0 : index
    %c512 = arith.constant 512 : index
    %27 = vector.load %arg11[%c0_46, %c512] : memref<256x1152xbf16, #tpu.memory_space<vmem>>, vector<256x128xbf16>
    tpu.vector_store %arg11[%c0_46, %c512], %26 {strides = array<i32>} : memref<256x1152xbf16, #tpu.memory_space<vmem>>, vector<256x128xbf16>,
    %c0_47 = arith.constant 0 : index
    %c1_48 = arith.constant 1 : index
    %c9_49 = arith.constant 9 : index
    %c0_50 = arith.constant 0 : index
    %28 = vector.load %arg9[%c0_47, %c1_48, %c9_49, %c0_50] : memref<1x18x32x128xbf16, #tpu.memory_space<vmem>>, vector<1x16x16x128xbf16>
    %29 = vector.shape_cast %28 : vector<1x16x16x128xbf16> to vector<256x128xbf16>
    %c0_51 = arith.constant 0 : index
    %c640 = arith.constant 640 : index
    %30 = vector.load %arg11[%c0_51, %c640] : memref<256x1152xbf16, #tpu.memory_space<vmem>>, vector<256x128xbf16>
    tpu.vector_store %arg11[%c0_51, %c640], %29 {strides = array<i32>} : memref<256x1152xbf16, #tpu.memory_space<vmem>>, vector<256x128xbf16>,
    %c0_52 = arith.constant 0 : index
    %c2 = arith.constant 2 : index
    %c7_53 = arith.constant 7 : index
    %c0_54 = arith.constant 0 : index
    %31 = vector.load %arg9[%c0_52, %c2, %c7_53, %c0_54] : memref<1x18x32x128xbf16, #tpu.memory_space<vmem>>, vector<1x16x16x128xbf16>
    %32 = vector.shape_cast %31 : vector<1x16x16x128xbf16> to vector<256x128xbf16>
    %c0_55 = arith.constant 0 : index
    %c768 = arith.constant 768 : index
    %33 = vector.load %arg11[%c0_55, %c768] : memref<256x1152xbf16, #tpu.memory_space<vmem>>, vector<256x128xbf16>
    tpu.vector_store %arg11[%c0_55, %c768], %32 {strides = array<i32>} : memref<256x1152xbf16, #tpu.memory_space<vmem>>, vector<256x128xbf16>,
    %c0_56 = arith.constant 0 : index
    %c2_57 = arith.constant 2 : index
    %c8_58 = arith.constant 8 : index
    %c0_59 = arith.constant 0 : index
    %34 = vector.load %arg9[%c0_56, %c2_57, %c8_58, %c0_59] : memref<1x18x32x128xbf16, #tpu.memory_space<vmem>>, vector<1x16x16x128xbf16>
    %35 = vector.shape_cast %34 : vector<1x16x16x128xbf16> to vector<256x128xbf16>
    %c0_60 = arith.constant 0 : index
    %c896 = arith.constant 896 : index
    %36 = vector.load %arg11[%c0_60, %c896] : memref<256x1152xbf16, #tpu.memory_space<vmem>>, vector<256x128xbf16>
    tpu.vector_store %arg11[%c0_60, %c896], %35 {strides = array<i32>} : memref<256x1152xbf16, #tpu.memory_space<vmem>>, vector<256x128xbf16>,
    %c0_61 = arith.constant 0 : index
    %c2_62 = arith.constant 2 : index
    %c9_63 = arith.constant 9 : index
    %c0_64 = arith.constant 0 : index
    %37 = vector.load %arg9[%c0_61, %c2_62, %c9_63, %c0_64] : memref<1x18x32x128xbf16, #tpu.memory_space<vmem>>, vector<1x16x16x128xbf16>
    %38 = vector.shape_cast %37 : vector<1x16x16x128xbf16> to vector<256x128xbf16>
    %c0_65 = arith.constant 0 : index
    %c1024 = arith.constant 1024 : index
    %39 = vector.load %arg11[%c0_65, %c1024] : memref<256x1152xbf16, #tpu.memory_space<vmem>>, vector<256x128xbf16>
    tpu.vector_store %arg11[%c0_65, %c1024], %38 {strides = array<i32>} : memref<256x1152xbf16, #tpu.memory_space<vmem>>, vector<256x128xbf16>,
    %c0_66 = arith.constant 0 : index
    %c0_67 = arith.constant 0 : index
    %40 = vector.load %arg11[%c0_66, %c0_67] : memref<256x1152xbf16, #tpu.memory_space<vmem>>, vector<256x1152xbf16>
    %c0_68 = arith.constant 0 : index
    %c0_69 = arith.constant 0 : index
    %41 = vector.load %arg2[%c0_68, %c0_69] : memref<1152x128xbf16, #tpu.memory_space<vmem>>, vector<1152x128xbf16>
    %cst_70 = arith.constant dense<0.000000e+00> : vector<256x128xf32>
    %42 = tpu.matmul %40, %41, %cst_70 {dimension_numbers = #tpu.dot_dimension_numbers<[1], [0], [0], [1], [0, 0, 1, 1], [], []>} : vector<256x1152xbf16>, vector<1152x128xbf16>, vector<256x128xf32> -> vector<256x128xf32>
    %c0_71 = arith.constant 0 : index
    %c0_72 = arith.constant 0 : index
    %43 = vector.load %arg3[%c0_71, %c0_72] : memref<1x128xf32, #tpu.memory_space<vmem>>, vector<1x128xf32>
    %44 = vector.broadcast %43 : vector<1x128xf32> to vector<256x128xf32>
    %45 = arith.addf %42, %44 : vector<256x128xf32>
    %cst_73 = arith.constant 0.000000e+00 : bf16
    %46 = vector.broadcast %cst_73 : bf16 to vector<1x1x32x128xbf16>
    %c0_74 = arith.constant 0 : index
    %c0_75 = arith.constant 0 : index
    %c0_76 = arith.constant 0 : index
    %c0_77 = arith.constant 0 : index
    %47 = vector.load %arg10[%c0_74, %c0_75, %c0_76, %c0_77] : memref<1x18x32x128xbf16, #tpu.memory_space<vmem>>, vector<1x1x32x128xbf16>
    tpu.vector_store %arg10[%c0_74, %c0_75, %c0_76, %c0_77], %46 {strides = array<i32>} : memref<1x18x32x128xbf16, #tpu.memory_space<vmem>>, vector<1x1x32x128xbf16>,
    %cst_78 = arith.constant 0.000000e+00 : bf16
    %48 = vector.broadcast %cst_78 : bf16 to vector<1x1x32x128xbf16>
    %c0_79 = arith.constant 0 : index
    %c17_80 = arith.constant 17 : index
    %c0_81 = arith.constant 0 : index
    %c0_82 = arith.constant 0 : index
    %49 = vector.load %arg10[%c0_79, %c17_80, %c0_81, %c0_82] : memref<1x18x32x128xbf16, #tpu.memory_space<vmem>>, vector<1x1x32x128xbf16>
    tpu.vector_store %arg10[%c0_79, %c17_80, %c0_81, %c0_82], %48 {strides = array<i32>} : memref<1x18x32x128xbf16, #tpu.memory_space<vmem>>, vector<1x1x32x128xbf16>,
    %cst_83 = arith.constant 0.000000e+00 : bf16
    %50 = vector.broadcast %cst_83 : bf16 to vector<1x18x8x128xbf16>
    %c0_84 = arith.constant 0 : index
    %c0_85 = arith.constant 0 : index
    %c0_86 = arith.constant 0 : index
    %c0_87 = arith.constant 0 : index
    %51 = vector.load %arg10[%c0_84, %c0_85, %c0_86, %c0_87] : memref<1x18x32x128xbf16, #tpu.memory_space<vmem>>, vector<1x18x8x128xbf16>
    tpu.vector_store %arg10[%c0_84, %c0_85, %c0_86, %c0_87], %50 {strides = array<i32>} : memref<1x18x32x128xbf16, #tpu.memory_space<vmem>>, vector<1x18x8x128xbf16>,
    %cst_88 = arith.constant 0.000000e+00 : bf16
    %52 = vector.broadcast %cst_88 : bf16 to vector<1x18x8x128xbf16>
    %c0_89 = arith.constant 0 : index
    %c0_90 = arith.constant 0 : index
    %c24_91 = arith.constant 24 : index
    %c0_92 = arith.constant 0 : index
    %53 = vector.load %arg10[%c0_89, %c0_90, %c24_91, %c0_92] : memref<1x18x32x128xbf16, #tpu.memory_space<vmem>>, vector<1x18x8x128xbf16>
    tpu.vector_store %arg10[%c0_89, %c0_90, %c24_91, %c0_92], %52 {strides = array<i32>} : memref<1x18x32x128xbf16, #tpu.memory_space<vmem>>, vector<1x18x8x128xbf16>,
    %cst_93 = arith.constant 0.000000e+00 : f32
    %54 = vector.broadcast %cst_93 : f32 to vector<256x128xf32>
    %55 = arith.maximumf %45, %54 : vector<256x128xf32>
    %56 = arith.truncf %55 : vector<256x128xf32> to vector<256x128xbf16>
    %57 = vector.shape_cast %56 : vector<256x128xbf16> to vector<1x16x16x128xbf16>
    %c0_94 = arith.constant 0 : index
    %c1_95 = arith.constant 1 : index
    %c8_96 = arith.constant 8 : index
    %c0_97 = arith.constant 0 : index
    %58 = vector.load %arg10[%c0_94, %c1_95, %c8_96, %c0_97] : memref<1x18x32x128xbf16, #tpu.memory_space<vmem>>, vector<1x16x16x128xbf16>
    tpu.vector_store %arg10[%c0_94, %c1_95, %c8_96, %c0_97], %57 {strides = array<i32>} : memref<1x18x32x128xbf16, #tpu.memory_space<vmem>>, vector<1x16x16x128xbf16>,
    %c0_98 = arith.constant 0 : index
    %c0_99 = arith.constant 0 : index
    %c7_100 = arith.constant 7 : index
    %c0_101 = arith.constant 0 : index
    %59 = vector.load %arg10[%c0_98, %c0_99, %c7_100, %c0_101] : memref<1x18x32x128xbf16, #tpu.memory_space<vmem>>, vector<1x16x16x128xbf16>
    %60 = vector.shape_cast %59 : vector<1x16x16x128xbf16> to vector<256x128xbf16>
    %c0_102 = arith.constant 0 : index
    %c0_103 = arith.constant 0 : index
    %61 = vector.load %arg11[%c0_102, %c0_103] : memref<256x1152xbf16, #tpu.memory_space<vmem>>, vector<256x128xbf16>
    tpu.vector_store %arg11[%c0_102, %c0_103], %60 {strides = array<i32>} : memref<256x1152xbf16, #tpu.memory_space<vmem>>, vector<256x128xbf16>,
    %c0_104 = arith.constant 0 : index
    %c0_105 = arith.constant 0 : index
    %c8_106 = arith.constant 8 : index
    %c0_107 = arith.constant 0 : index
    %62 = vector.load %arg10[%c0_104, %c0_105, %c8_106, %c0_107] : memref<1x18x32x128xbf16, #tpu.memory_space<vmem>>, vector<1x16x16x128xbf16>
    %63 = vector.shape_cast %62 : vector<1x16x16x128xbf16> to vector<256x128xbf16>
    %c0_108 = arith.constant 0 : index
    %c128_109 = arith.constant 128 : index
    %64 = vector.load %arg11[%c0_108, %c128_109] : memref<256x1152xbf16, #tpu.memory_space<vmem>>, vector<256x128xbf16>
    tpu.vector_store %arg11[%c0_108, %c128_109], %63 {strides = array<i32>} : memref<256x1152xbf16, #tpu.memory_space<vmem>>, vector<256x128xbf16>,
    %c0_110 = arith.constant 0 : index
    %c0_111 = arith.constant 0 : index
    %c9_112 = arith.constant 9 : index
    %c0_113 = arith.constant 0 : index
    %65 = vector.load %arg10[%c0_110, %c0_111, %c9_112, %c0_113] : memref<1x18x32x128xbf16, #tpu.memory_space<vmem>>, vector<1x16x16x128xbf16>
    %66 = vector.shape_cast %65 : vector<1x16x16x128xbf16> to vector<256x128xbf16>
    %c0_114 = arith.constant 0 : index
    %c256_115 = arith.constant 256 : index
    %67 = vector.load %arg11[%c0_114, %c256_115] : memref<256x1152xbf16, #tpu.memory_space<vmem>>, vector<256x128xbf16>
    tpu.vector_store %arg11[%c0_114, %c256_115], %66 {strides = array<i32>} : memref<256x1152xbf16, #tpu.memory_space<vmem>>, vector<256x128xbf16>,
    %c0_116 = arith.constant 0 : index
    %c1_117 = arith.constant 1 : index
    %c7_118 = arith.constant 7 : index
    %c0_119 = arith.constant 0 : index
    %68 = vector.load %arg10[%c0_116, %c1_117, %c7_118, %c0_119] : memref<1x18x32x128xbf16, #tpu.memory_space<vmem>>, vector<1x16x16x128xbf16>
    %69 = vector.shape_cast %68 : vector<1x16x16x128xbf16> to vector<256x128xbf16>
    %c0_120 = arith.constant 0 : index
    %c384_121 = arith.constant 384 : index
    %70 = vector.load %arg11[%c0_120, %c384_121] : memref<256x1152xbf16, #tpu.memory_space<vmem>>, vector<256x128xbf16>
    tpu.vector_store %arg11[%c0_120, %c384_121], %69 {strides = array<i32>} : memref<256x1152xbf16, #tpu.memory_space<vmem>>, vector<256x128xbf16>,
    %c0_122 = arith.constant 0 : index
    %c1_123 = arith.constant 1 : index
    %c8_124 = arith.constant 8 : index
    %c0_125 = arith.constant 0 : index
    %71 = vector.load %arg10[%c0_122, %c1_123, %c8_124, %c0_125] : memref<1x18x32x128xbf16, #tpu.memory_space<vmem>>, vector<1x16x16x128xbf16>
    %72 = vector.shape_cast %71 : vector<1x16x16x128xbf16> to vector<256x128xbf16>
    %c0_126 = arith.constant 0 : index
    %c512_127 = arith.constant 512 : index
    %73 = vector.load %arg11[%c0_126, %c512_127] : memref<256x1152xbf16, #tpu.memory_space<vmem>>, vector<256x128xbf16>
    tpu.vector_store %arg11[%c0_126, %c512_127], %72 {strides = array<i32>} : memref<256x1152xbf16, #tpu.memory_space<vmem>>, vector<256x128xbf16>,
    %c0_128 = arith.constant 0 : index
    %c1_129 = arith.constant 1 : index
    %c9_130 = arith.constant 9 : index
    %c0_131 = arith.constant 0 : index
    %74 = vector.load %arg10[%c0_128, %c1_129, %c9_130, %c0_131] : memref<1x18x32x128xbf16, #tpu.memory_space<vmem>>, vector<1x16x16x128xbf16>
    %75 = vector.shape_cast %74 : vector<1x16x16x128xbf16> to vector<256x128xbf16>
    %c0_132 = arith.constant 0 : index
    %c640_133 = arith.constant 640 : index
    %76 = vector.load %arg11[%c0_132, %c640_133] : memref<256x1152xbf16, #tpu.memory_space<vmem>>, vector<256x128xbf16>
    tpu.vector_store %arg11[%c0_132, %c640_133], %75 {strides = array<i32>} : memref<256x1152xbf16, #tpu.memory_space<vmem>>, vector<256x128xbf16>,
    %c0_134 = arith.constant 0 : index
    %c2_135 = arith.constant 2 : index
    %c7_136 = arith.constant 7 : index
    %c0_137 = arith.constant 0 : index
    %77 = vector.load %arg10[%c0_134, %c2_135, %c7_136, %c0_137] : memref<1x18x32x128xbf16, #tpu.memory_space<vmem>>, vector<1x16x16x128xbf16>
    %78 = vector.shape_cast %77 : vector<1x16x16x128xbf16> to vector<256x128xbf16>
    %c0_138 = arith.constant 0 : index
    %c768_139 = arith.constant 768 : index
    %79 = vector.load %arg11[%c0_138, %c768_139] : memref<256x1152xbf16, #tpu.memory_space<vmem>>, vector<256x128xbf16>
    tpu.vector_store %arg11[%c0_138, %c768_139], %78 {strides = array<i32>} : memref<256x1152xbf16, #tpu.memory_space<vmem>>, vector<256x128xbf16>,
    %c0_140 = arith.constant 0 : index
    %c2_141 = arith.constant 2 : index
    %c8_142 = arith.constant 8 : index
    %c0_143 = arith.constant 0 : index
    %80 = vector.load %arg10[%c0_140, %c2_141, %c8_142, %c0_143] : memref<1x18x32x128xbf16, #tpu.memory_space<vmem>>, vector<1x16x16x128xbf16>
    %81 = vector.shape_cast %80 : vector<1x16x16x128xbf16> to vector<256x128xbf16>
    %c0_144 = arith.constant 0 : index
    %c896_145 = arith.constant 896 : index
    %82 = vector.load %arg11[%c0_144, %c896_145] : memref<256x1152xbf16, #tpu.memory_space<vmem>>, vector<256x128xbf16>
    tpu.vector_store %arg11[%c0_144, %c896_145], %81 {strides = array<i32>} : memref<256x1152xbf16, #tpu.memory_space<vmem>>, vector<256x128xbf16>,
    %c0_146 = arith.constant 0 : index
    %c2_147 = arith.constant 2 : index
    %c9_148 = arith.constant 9 : index
    %c0_149 = arith.constant 0 : index
    %83 = vector.load %arg10[%c0_146, %c2_147, %c9_148, %c0_149] : memref<1x18x32x128xbf16, #tpu.memory_space<vmem>>, vector<1x16x16x128xbf16>
    %84 = vector.shape_cast %83 : vector<1x16x16x128xbf16> to vector<256x128xbf16>
    %c0_150 = arith.constant 0 : index
    %c1024_151 = arith.constant 1024 : index
    %85 = vector.load %arg11[%c0_150, %c1024_151] : memref<256x1152xbf16, #tpu.memory_space<vmem>>, vector<256x128xbf16>
    tpu.vector_store %arg11[%c0_150, %c1024_151], %84 {strides = array<i32>} : memref<256x1152xbf16, #tpu.memory_space<vmem>>, vector<256x128xbf16>,
    %c0_152 = arith.constant 0 : index
    %c0_153 = arith.constant 0 : index
    %86 = vector.load %arg11[%c0_152, %c0_153] : memref<256x1152xbf16, #tpu.memory_space<vmem>>, vector<256x1152xbf16>
    %c0_154 = arith.constant 0 : index
    %c0_155 = arith.constant 0 : index
    %87 = vector.load %arg4[%c0_154, %c0_155] : memref<1152x128xbf16, #tpu.memory_space<vmem>>, vector<1152x128xbf16>
    %cst_156 = arith.constant dense<0.000000e+00> : vector<256x128xf32>
    %88 = tpu.matmul %86, %87, %cst_156 {dimension_numbers = #tpu.dot_dimension_numbers<[1], [0], [0], [1], [0, 0, 1, 1], [], []>} : vector<256x1152xbf16>, vector<1152x128xbf16>, vector<256x128xf32> -> vector<256x128xf32>
    %c0_157 = arith.constant 0 : index
    %c0_158 = arith.constant 0 : index
    %89 = vector.load %arg5[%c0_157, %c0_158] : memref<1x128xf32, #tpu.memory_space<vmem>>, vector<1x128xf32>
    %90 = vector.broadcast %89 : vector<1x128xf32> to vector<256x128xf32>
    %91 = arith.addf %88, %90 : vector<256x128xf32>
    %c0_159 = arith.constant 0 : index
    %c0_160 = arith.constant 0 : index
    %c0_161 = arith.constant 0 : index
    %c0_162 = arith.constant 0 : index
    %92 = vector.load %arg1[%c0_159, %c0_160, %c0_161, %c0_162] : memref<1x16x16x128xf32, #tpu.memory_space<vmem>>, vector<1x16x16x128xf32>
    %93 = vector.shape_cast %92 : vector<1x16x16x128xf32> to vector<256x128xf32>
    %94 = arith.truncf %93 : vector<256x128xf32> to vector<256x128xbf16>
    %c0_163 = arith.constant 0 : index
    %c0_164 = arith.constant 0 : index
    %95 = vector.load %arg6[%c0_163, %c0_164] : memref<128x128xbf16, #tpu.memory_space<vmem>>, vector<128x128xbf16>
    %cst_165 = arith.constant dense<0.000000e+00> : vector<256x128xf32>
    %96 = tpu.matmul %94, %95, %cst_165 {dimension_numbers = #tpu.dot_dimension_numbers<[1], [0], [0], [1], [0, 0, 1, 1], [], []>} : vector<256x128xbf16>, vector<128x128xbf16>, vector<256x128xf32> -> vector<256x128xf32>
    %c0_166 = arith.constant 0 : index
    %c0_167 = arith.constant 0 : index
    %97 = vector.load %arg7[%c0_166, %c0_167] : memref<1x128xf32, #tpu.memory_space<vmem>>, vector<1x128xf32>
    %98 = vector.broadcast %97 : vector<1x128xf32> to vector<256x128xf32>
    %99 = arith.addf %96, %98 : vector<256x128xf32>
    %100 = arith.addf %91, %99 : vector<256x128xf32>
    %101 = vector.shape_cast %100 : vector<256x128xf32> to vector<128x2x128xf32>
    %cst_168 = arith.constant dense<0.000000e+00> : vector<128x128xf32>
    %102 = vector.multi_reduction <add>, %101, %cst_168 [1] : vector<128x2x128xf32> to vector<128x128xf32>
    %103 = vector.shape_cast %102 : vector<128x128xf32> to vector<8x2x1024xf32>
    %cst_169 = arith.constant dense<0.000000e+00> : vector<8x1024xf32>
    %104 = vector.multi_reduction <add>, %103, %cst_169 [1] : vector<8x2x1024xf32> to vector<8x1024xf32>
    %cst_170 = arith.constant 2.500000e-01 : f32
    %105 = vector.broadcast %cst_170 : f32 to vector<8x1024xf32>
    %106 = arith.mulf %104, %105 : vector<8x1024xf32>
    %107 = vector.shape_cast %106 : vector<8x1024xf32> to vector<1x8x8x128xf32>
    %c0_171 = arith.constant 0 : index
    %c0_172 = arith.constant 0 : index
    %c0_173 = arith.constant 0 : index
    %c0_174 = arith.constant 0 : index
    %108 = vector.load %arg8[%c0_171, %c0_172, %c0_173, %c0_174] : memref<1x8x8x128xf32, #tpu.memory_space<vmem>>, vector<1x8x8x128xf32>
    tpu.vector_store %arg8[%c0_171, %c0_172, %c0_173, %c0_174], %107 {strides = array<i32>} : memref<1x8x8x128xf32, #tpu.memory_space<vmem>>, vector<1x8x8x128xf32>,
    return
  }
  func.func @transform_0(%arg0: i32) -> (i32, i32, i32, i32) {
    %c0_i32 = arith.constant 0 : i32
    %c0_i32_0 = arith.constant 0 : i32
    %c0_i32_1 = arith.constant 0 : i32
    %c0_i32_2 = arith.constant 0 : i32
    return %arg0, %c0_i32, %c0_i32_0, %c0_i32_1 : i32, i32, i32, i32
  }
  func.func @transform_1(%arg0: i32) -> (i32, i32) {
    %c0_i32 = arith.constant 0 : i32
    %c0_i32_0 = arith.constant 0 : i32
    %c0_i32_1 = arith.constant 0 : i32
    return %c0_i32, %c0_i32_0 : i32, i32
  }
  func.func @transform_2(%arg0: i32) -> (i32, i32) {
    %c0_i32 = arith.constant 0 : i32
    %c0_i32_0 = arith.constant 0 : i32
    %c0_i32_1 = arith.constant 0 : i32
    return %c0_i32, %c0_i32_0 : i32, i32
  }
  func.func @transform_3(%arg0: i32) -> (i32, i32) {
    %c0_i32 = arith.constant 0 : i32
    %c0_i32_0 = arith.constant 0 : i32
    %c0_i32_1 = arith.constant 0 : i32
    return %c0_i32, %c0_i32_0 : i32, i32
  }
  func.func @transform_4(%arg0: i32) -> (i32, i32) {
    %c0_i32 = arith.constant 0 : i32
    %c0_i32_0 = arith.constant 0 : i32
    %c0_i32_1 = arith.constant 0 : i32
    return %c0_i32, %c0_i32_0 : i32, i32
  }
  func.func @transform_5(%arg0: i32) -> (i32, i32) {
    %c0_i32 = arith.constant 0 : i32
    %c0_i32_0 = arith.constant 0 : i32
    %c0_i32_1 = arith.constant 0 : i32
    return %c0_i32, %c0_i32_0 : i32, i32
  }
  func.func @transform_6(%arg0: i32) -> (i32, i32) {
    %c0_i32 = arith.constant 0 : i32
    %c0_i32_0 = arith.constant 0 : i32
    %c0_i32_1 = arith.constant 0 : i32
    return %c0_i32, %c0_i32_0 : i32, i32
  }
  func.func @transform_7(%arg0: i32) -> (i32, i32, i32, i32) {
    %c0_i32 = arith.constant 0 : i32
    %c0_i32_0 = arith.constant 0 : i32
    %c0_i32_1 = arith.constant 0 : i32
    %c0_i32_2 = arith.constant 0 : i32
    return %arg0, %c0_i32, %c0_i32_0, %c0_i32_1 : i32, i32, i32, i32
  }
}

</mosaic_0001>

<bundles_post_ra>
// kernel: res_block_discriminator.1
= control target key start
LH: loop header
LB: loop body
LE: loop exit
PB: predicated region body
PF: predicated region fallthrough
CT: control target
= control target key end

     0   :  { %s13577_s24 = smov 0   ;;  %s16718_s0 = inlined_call_operand.vmem [shape: f32[2,16,16,128], index: 0, kind: input, shape index: {}]   ;;  %s16719_s1 = inlined_call_operand.vmem [shape: bf16[1152,128], index: 1, kind: input, shape index: {}]   ;;  %s16720_s2 = inlined_call_operand.vmem [shape: f32[1,128], index: 2, kind: input, shape index: {}]   ;;  %s16721_s3 = inlined_call_operand.vmem [shape: bf16[1152,128], index: 3, kind: input, shape index: {}]   ;;  %s16722_s4 = inlined_call_operand.vmem [shape: f32[1,128], index: 4, kind: input, shape index: {}]   ;;  %s16723_s5 = inlined_call_operand.vmem [shape: bf16[128,128], index: 5, kind: input, shape index: {}]   ;;  %s16724_s6 = inlined_call_operand.vmem [shape: f32[1,128], index: 6, kind: input, shape index: {}]   ;;  %s16725_s7 = inlined_call_operand.vmem [shape: f32[2,8,8,128], index: 7, kind: output, shape index: {}]  }
   0x1 LB: > { %s11951_s25 = sadd.s32 4294967295, %s13532_s24   ;;  %p11955_p0 = scmp.ge.s32.totalorder %s13532_s24, 1  ;;  %s13532_s24 = sphi %s13577_s24, %s17_s24  }
   0x2   : > { %p237_p1 = scmp.lt.s32.totalorder %s13532_s24, 3 }
   0x4   : > { %p238_p2 = pnand %p11955_p0, %p237_p1 }
   0x6   : > { %241 = sbr.rel (%p238_p2) target bundleno = 1664 (0x680), region = 48 }
   0xd   : > { %v13588_v0 = vld [vmem:[%s16719_s1 + $0x40] sm:$0xff]   ;;  %v13534_v2 = vmov 0   ;;  %v13370_v3 = vld [vmem:[%s16719_s1 + $0x48] sm:$0xff]   ;;  %v13372_v5 = vld [vmem:[%s16719_s1 + $0x50] sm:$0xff]   ;;  %p269_p3 = scmp.lt.s32.totalorder %s11951_s25, 1  ;;  %vm883_vm0 = vcmask 1043456  }
   0xe   : > { %v13593_v1 = vld [vmem:[%s16719_s1] sm:$0xff]   ;;  %280 = vst [vmem:[#allocation2] sm:$0xff] %v13534_v2  ;;  %281 = vst [vmem:[#allocation2 + $0x8] sm:$0xff] %v13534_v2  ;;  %12133 = vmatprep.subr.bf16.mxu0 %v13588_v0  ;;  %v13371_v4 = vld [vmem:[%s16719_s1 + $0x8] sm:$0xff]   ;;  %vm514_vm1 = vsmask.f32 4352 }
   0xf   : > { %283 = vst [vmem:[#allocation2 + $0x110] sm:$0xff] %v13534_v2  ;;  %284 = vst [vmem:[#allocation2 + $0x118] sm:$0xff] %v13534_v2  ;;  %12134 = vmatpush3.bf16.msra.mxu0 %v13593_v1  ;;  %v13373_v6 = vld [vmem:[%s16719_s1 + $0x10] sm:$0xff]   ;;  %v13374_v7 = vld [vmem:[%s16719_s1 + $0x58] sm:$0xff]   ;;  %s16793_s25 = smov (!%p269_p3, %s11951_s25), 1  ;;  %vm9633_vm3 = vcmask 1041408  }
  0x10   : > { %286 = vst [vmem:[#allocation2 + $0x10] sm:$0xf] %v13534_v2  ;;  %287 = vst [vmem:[#allocation2 + $0x20] sm:$0xf] %v13534_v2  ;;  %12135 = vmatprep.subr.bf16.mxu0 %v13370_v3  ;;  %v13375_v8 = vld [vmem:[%s16719_s1 + $0x18] sm:$0xff]   ;;  %v13376_v9 = vld [vmem:[%s16719_s1 + $0x60] sm:$0xff]  }
  0x11   : > { %288 = vst [vmem:[#allocation2 + $0x30] sm:$0xf] %v13534_v2  ;;  %289 = vst [vmem:[#allocation2 + $0x40] sm:$0xf] %v13534_v2  ;;  %v13377_v10 = vld [vmem:[%s16719_s1 + $0x20] sm:$0xff]   ;;  %v13378_v11 = vld [vmem:[%s16719_s1 + $0x68] sm:$0xff]  }
  0x12   : > { %290 = vst [vmem:[#allocation2 + $0x50] sm:$0xf] %v13534_v2  ;;  %291 = vst [vmem:[#allocation2 + $0x60] sm:$0xf] %v13534_v2  ;;  %s12131_s27 = sshll.u32 %s16793_s25, 8  ;;  %v13379_v15 = vld [vmem:[%s16719_s1 + $0x28] sm:$0xff]  }
  0x13   : > { %292 = vst [vmem:[#allocation2 + $0x70] sm:$0xf] %v13534_v2  ;;  %293 = vst [vmem:[#allocation2 + $0x80] sm:$0xf] %v13534_v2  ;;  %12136 = vmatpush3.bf16.msra.mxu0 %v13371_v4  ;;  %v13384_v24 = vld [vmem:[%s16719_s1 + $0xc0] sm:$0xff]   ;;  %s13721_s11 = scalar_lea.vmem %s16718_s0, %s12131_s27  ;;  %v13380_v25 = vld [vmem:[%s16719_s1 + $0x70] sm:$0xff]  }
  0x14   : > { %294 = vst [vmem:[#allocation2 + $0x90] sm:$0xf] %v13534_v2  ;;  %295 = vst [vmem:[#allocation2 + $0xa0] sm:$0xf] %v13534_v2  ;;  %12137 = vmatprep.subr.bf16.mxu0 %v13372_v5  ;;  %v13381_v26 = vld [vmem:[%s16719_s1 + $0x30] sm:$0xff]   ;;  %v13385_v28 = vld [vmem:[%s16719_s1 + $0x80] sm:$0xff]   ;;  %13245 = vmatprep.subr.bf16.mxu1 %v13384_v24 }
  0x15   : > { %296 = vst [vmem:[#allocation2 + $0xb0] sm:$0xf] %v13534_v2  ;;  %297 = vst [vmem:[#allocation2 + $0xc0] sm:$0xf] %v13534_v2  ;;  %v819_v12 = vld [vmem:[#allocation2] sm:$0xf0]  ;;  %13253 = vmatpush3.bf16.msra.mxu1 %v13385_v28 }
  0x16   : > { %298 = vst [vmem:[#allocation2 + $0xd0] sm:$0xf] %v13534_v2  ;;  %299 = vst [vmem:[#allocation2 + $0xe0] sm:$0xf] %v13534_v2  ;;  %v820_v13 = vld [vmem:[#allocation2 + $0x8] sm:$0xf] }
  0x17   : > { %300 = vst [vmem:[#allocation2 + $0xf0] sm:$0xf] %v13534_v2  ;;  %301 = vst [vmem:[#allocation2 + $0x100] sm:$0xf] %v13534_v2  ;;  %12138 = vmatpush3.bf16.msra.mxu0 %v13373_v6  ;;  %v884_v16 = vrot.slane %v819_v12, 4  ;;  %v885_v17 = vrot.slane %v820_v13, 4 }
  0x18   : > { %304 = vst [vmem:[#allocation2 + $0x18] sm:$0xf0] %v13534_v2  ;;  %305 = vst [vmem:[#allocation2 + $0x28] sm:$0xf0] %v13534_v2  ;;  %12139 = vmatprep.subr.bf16.mxu0 %v13374_v7  ;;  %v483_v18 = vld [vmem:[#allocation2 + $0x8] sm:$0xf] }
  0x19   : > { %306 = vst [vmem:[#allocation2 + $0x38] sm:$0xf0] %v13534_v2  ;;  %307 = vst [vmem:[#allocation2 + $0x48] sm:$0xf0] %v13534_v2  ;;  %v524_v21 = vshrl.u32 %v483_v18, 16  ;;  %v527_v22 = vshll.u32 %v483_v18, 16  ;;  %v886_v23 = vsel %vm883_vm0, %v884_v16, %v885_v17 }
  0x1a   : > { %308 = vst [vmem:[#allocation2 + $0x58] sm:$0xf0] %v13534_v2  ;;  %309 = vst [vmem:[#allocation2 + $0x68] sm:$0xf0] %v13534_v2  ;;  %3693 = vmatprep.mubr.bf16.mxu0 %v886_v23  ;;  %v13382_v29 = vld [vmem:[%s16719_s1 + $0x78] sm:$0xff]   ;;  %v13386_v33 = vld [vmem:[%s16719_s1 + $0xc8] sm:$0xff]  }
  0x1b   : > { %310 = vst [vmem:[#allocation2 + $0x78] sm:$0xf0] %v13534_v2  ;;  %311 = vst [vmem:[#allocation2 + $0x88] sm:$0xf0] %v13534_v2  ;;  %12140 = vmatpush3.bf16.msra.mxu0 %v13375_v8  ;;  %v526_v31 = vrot.slane %v524_v21, 3  ;;  %v529_v32 = vrot.slane %v527_v22, 4  ;;  %13246 = vmatprep.subr.bf16.mxu1 %v13386_v33 }
  0x1c   : > { %312 = vst [vmem:[#allocation2 + $0x98] sm:$0xf0] %v13534_v2  ;;  %313 = vst [vmem:[#allocation2 + $0xa8] sm:$0xf0] %v13534_v2  ;;  %12141 = vmatprep.subr.bf16.mxu0 %v13376_v9  ;;  %v321_v34 = vld [vmem:[%s13721_s11] sm:$0xff]  ;;  %v322_v35 = vld [vmem:[%s13721_s11 + $0x8] sm:$0xff] }
  0x1d   : > { %314 = vst [vmem:[#allocation2 + $0xb8] sm:$0xf0] %v13534_v2  ;;  %315 = vst [vmem:[#allocation2 + $0xc8] sm:$0xf0] %v13534_v2  ;;  %v353_v36 = vmax.f32 %v321_v34, 0.0  ;;  %v354_v37 = vmax.f32 %v322_v35, 0.0  ;;  %v530_v44 = vor.u32 %v529_v32, %v526_v31 }
  0x1e   : > { %316 = vst [vmem:[#allocation2 + $0xd8] sm:$0xf0] %v13534_v2  ;;  %317 = vst [vmem:[#allocation2 + $0xe8] sm:$0xf0] %v13534_v2  ;;  %v13387_v38 = vld [vmem:[%s16719_s1 + $0x88] sm:$0xff]   ;;  %v13383_v39 = vld [vmem:[%s16719_s1 + $0x38] sm:$0xff]  }
  0x1f   : > { %318 = vst [vmem:[#allocation2 + $0xf8] sm:$0xf0] %v13534_v2  ;;  %319 = vst [vmem:[#allocation2 + $0x108] sm:$0xf0] %v13534_v2  ;;  %12142 = vmatpush3.bf16.msra.mxu0 %v13377_v10  ;;  %v385_v40 = vpack.c.bf16 %v354_v37, %v353_v36  ;;  %v13749_v41 = vld [vmem:[%s16719_s1 + $0xd0] sm:$0xff]   ;;  %13254 = vmatpush3.bf16.msra.mxu1 %v13387_v38  ;;  %v13759_v46 = vld [vmem:[%s16719_s1 + $0xd8] sm:$0xff]  }
  0x20   : > { %4466 = vst [vmem:[#allocation3] sm:$0xff] %v13534_v2  ;;  %4467 = vst [vmem:[#allocation3 + $0x8] sm:$0xff] %v13534_v2  ;;  %12143 = vmatprep.subr.bf16.mxu0 %v13378_v11  ;;  %v13754_v42 = vld [vmem:[%s16719_s1 + $0x90] sm:$0xff]   ;;  %v324_v48 = vld [vmem:[%s13721_s11 + $0x18] sm:$0xff]  ;;  %13247 = vmatprep.subr.bf16.mxu1 %v13749_v41  ;;  %vm996_vm2 = vsmask.f32 3328 }
  0x21   : > { %4469 = vst [vmem:[#allocation3 + $0x110] sm:$0xff] %v13534_v2  ;;  %4470 = vst [vmem:[#allocation3 + $0x118] sm:$0xff] %v13534_v2  ;;  %v417_v45 = vrot.slane %v385_v40, 4  ;;  %v323_v47 = vld [vmem:[%s13721_s11 + $0x10] sm:$0xff]  ;;  %v356_v50 = vmax.f32 %v324_v48, 0.0  ;;  %v13769_v53 = vld [vmem:[%s16719_s1 + $0x98] sm:$0xff]  }
  0x22   : > { %4472 = vst [vmem:[#allocation3 + $0x10] sm:$0xf] %v13534_v2  ;;  %4473 = vst [vmem:[#allocation3 + $0x20] sm:$0xf] %v13534_v2  ;;  %v355_v49 = vmax.f32 %v323_v47, 0.0  ;;  %v13775_v55 = vld [vmem:[%s16719_s1 + $0xe0] sm:$0xff]  }
  0x23   : > { %4474 = vst [vmem:[#allocation3 + $0x30] sm:$0xf] %v13534_v2  ;;  %4475 = vst [vmem:[#allocation3 + $0x40] sm:$0xf] %v13534_v2  ;;  %12144 = vmatpush3.bf16.msra.mxu0 %v13379_v15  ;;  %13255 = vmatpush3.bf16.msra.mxu1 %v13754_v42  ;;  %v325_v56 = vld [vmem:[%s13721_s11 + $0x20] sm:$0xff]  ;;  %v326_v57 = vld [vmem:[%s13721_s11 + $0x28] sm:$0xff] }
  0x24   : > { %4476 = vst [vmem:[#allocation3 + $0x50] sm:$0xf] %v13534_v2  ;;  %4477 = vst [vmem:[#allocation3 + $0x60] sm:$0xf] %v13534_v2  ;;  %12145 = vmatprep.subr.bf16.mxu0 %v13380_v25  ;;  %v386_v51 = vpack.c.bf16 %v356_v50, %v355_v49  ;;  %13248 = vmatprep.subr.bf16.mxu1 %v13759_v46  ;;  %v357_v58 = vmax.f32 %v325_v56, 0.0  ;;  %v358_v59 = vmax.f32 %v326_v57, 0.0 }
  0x25   : > { %4478 = vst [vmem:[#allocation3 + $0x70] sm:$0xf] %v13534_v2  ;;  %4479 = vst [vmem:[#allocation3 + $0x80] sm:$0xf] %v13534_v2  ;;  %v13782_v60 = vld [vmem:[%s16719_s1 + $0xa0] sm:$0xff]   ;;  %v13788_v61 = vld [vmem:[%s16719_s1 + $0xe8] sm:$0xff]  }
  0x26   : > { %4480 = vst [vmem:[#allocation3 + $0x90] sm:$0xf] %v13534_v2  ;;  %4481 = vst [vmem:[#allocation3 + $0xa0] sm:$0xf] %v13534_v2  ;;  %v418_v54 = vrot.slane %v386_v51, 4  ;;  %v387_v62 = vpack.c.bf16 %v358_v59, %v357_v58  ;;  %v13794_v10 = vld [vmem:[%s16719_s1 + $0xa8] sm:$0xff]  }
  0x27   : > { %4482 = vst [vmem:[#allocation3 + $0xb0] sm:$0xf] %v13534_v2  ;;  %4483 = vst [vmem:[#allocation3 + $0xc0] sm:$0xf] %v13534_v2  ;;  %12146 = vmatpush3.bf16.msra.mxu0 %v13381_v26  ;;  %13256 = vmatpush3.bf16.msra.mxu1 %v13769_v53  ;;  %v327_v15 = vld [vmem:[%s13721_s11 + $0x30] sm:$0xff]  ;;  %v328_v18 = vld [vmem:[%s13721_s11 + $0x38] sm:$0xff] }
  0x28   : > { %4484 = vst [vmem:[#allocation3 + $0xd0] sm:$0xf] %v13534_v2  ;;  %4485 = vst [vmem:[#allocation3 + $0xe0] sm:$0xf] %v13534_v2  ;;  %12147 = vmatprep.subr.bf16.mxu0 %v13382_v29  ;;  %13249 = vmatprep.subr.bf16.mxu1 %v13775_v55  ;;  %v419_v9 = vrot.slane %v387_v62, 4  ;;  %v360_v34 = vmax.f32 %v328_v18, 0.0 }
  0x29   : > { %4486 = vst [vmem:[#allocation3 + $0xf0] sm:$0xf] %v13534_v2  ;;  %4487 = vst [vmem:[#allocation3 + $0x100] sm:$0xf] %v13534_v2  ;;  %v331_v40 = vld [vmem:[%s13721_s11 + $0x50] sm:$0xff]  ;;  %v332_v47 = vld [vmem:[%s13721_s11 + $0x58] sm:$0xff] }
  0x2a   : > { %4490 = vst [vmem:[#allocation3 + $0x18] sm:$0xf0] %v13534_v2  ;;  %4491 = vst [vmem:[#allocation3 + $0x28] sm:$0xf0] %v13534_v2  ;;  %v363_v50 = vmax.f32 %v331_v40, 0.0  ;;  %v364_v51 = vmax.f32 %v332_v47, 0.0 }
  0x2b   : > { %4492 = vst [vmem:[#allocation3 + $0x38] sm:$0xf0] %v13534_v2  ;;  %4493 = vst [vmem:[#allocation3 + $0x48] sm:$0xf0] %v13534_v2  ;;  %12148 = vmatpush3.bf16.msra.mxu0 %v13383_v39  ;;  %13257 = vmatpush3.bf16.msra.mxu1 %v13782_v60  ;;  %v330_v39 = vld [vmem:[%s13721_s11 + $0x48] sm:$0xff]  ;;  %vm10658_vm4 = vcmask 1041409  }
  0x2c   : > { %4494 = vst [vmem:[#allocation3 + $0x58] sm:$0xf0] %v13534_v2  ;;  %4495 = vst [vmem:[#allocation3 + $0x68] sm:$0xf0] %v13534_v2  ;;  %12245 = vmatprep.subr.bf16.mxu0 %v13384_v24  ;;  %13250 = vmatprep.subr.bf16.mxu1 %v13788_v61  ;;  %v13809_v24 = vld [vmem:[%s16719_s1 + $0xb0] sm:$0xff]   ;;  %v362_v49 = vmax.f32 %v330_v39, 0.0 }
  0x2d   : > { %4496 = vst [vmem:[#allocation3 + $0x78] sm:$0xf0] %v13534_v2  ;;  %4497 = vst [vmem:[#allocation3 + $0x88] sm:$0xf0] %v13534_v2  ;;  %v338_v18 = vld [vmem:[%s13721_s11 + $0x88] sm:$0xff]  ;;  %vm10660_vm5 = vcmask 1042434  }
  0x2e   : > { %4498 = vst [vmem:[#allocation3 + $0x98] sm:$0xf0] %v13534_v2  ;;  %4499 = vst [vmem:[#allocation3 + $0xa8] sm:$0xf0] %v13534_v2  ;;  %vm10662_vm6 = vcmask 1043459   ;;  %vm10664_vm7 = vcmask 1044484  }
  0x2f   : > { %4500 = vst [vmem:[#allocation3 + $0xb8] sm:$0xf0] %v13534_v2  ;;  %4501 = vst [vmem:[#allocation3 + $0xc8] sm:$0xf0] %v13534_v2  ;;  %13258 = vmatpush3.bf16.msra.mxu1 %v13794_v10  ;;  %vm10666_vm8 = vcmask 1045509   ;;  %vm10668_vm9 = vcmask 1046534  }
  0x30   : > { %4502 = vst [vmem:[#allocation3 + $0xd8] sm:$0xf0] %v13534_v2  ;;  %4503 = vst [vmem:[#allocation3 + $0xe8] sm:$0xf0] %v13534_v2  ;;  %vm10670_vm10 = vcmask 1047559   ;;  %s12132_s29 = sshll.u32 %s16793_s25, 6 }
  0x31   : > { %4504 = vst [vmem:[#allocation3 + $0xf8] sm:$0xf0] %v13534_v2  ;;  %4505 = vst [vmem:[#allocation3 + $0x108] sm:$0xf0] %v13534_v2  ;;  %s16681_s9 = scalar_lea.vmem %s16725_s7, %s12132_s29 }
  0x32   : > { %285 = vst [vmem:[#allocation2] sm:$0xf] %v13534_v2  ;;  %303 = vst [vmem:[#allocation2 + $0x8] sm:$0xf0] %v13534_v2 }
  0x33   : > { %302 = vst [vmem:[#allocation2 + $0x110] sm:$0xf] %v13534_v2  ;;  %320 = vst [vmem:[#allocation2 + $0x118] sm:$0xf0] %v13534_v2 }
  0x34   : > { %4471 = vst [vmem:[#allocation3] sm:$0xf] %v13534_v2  ;;  %4488 = vst [vmem:[#allocation3 + $0x110] sm:$0xf] %v13534_v2 }
  0x35   : > { %4489 = vst [vmem:[#allocation3 + $0x8] sm:$0xf0] %v13534_v2  ;;  %4506 = vst [vmem:[#allocation3 + $0x118] sm:$0xf0] %v13534_v2 }
  0x36   : > { %450 = vst [vmem:[#allocation2 + $0x18] ss:$-4 sps:$4 sm:$0xff] %v417_v45   ;;  %452 = vst [vmem:[#allocation2 + $0x28] ss:$-4 sps:$4 sm:$0xff] %v418_v54  }
  0x37   : > { %454 = vst [vmem:[#allocation2 + $0x38] ss:$-4 sps:$4 sm:$0xff] %v419_v9  }
  0x39   : > { %v482_v14 = vld [vmem:[#allocation2] sm:$0xf8] }
  0x3a   : > { %v516_v19 = vshrl.u32 %v482_v14, 16  ;;  %v519_v20 = vshll.u32 %v482_v14, 16  ;;  %v13801_v14 = vld [vmem:[%s16719_s1 + $0xf0] sm:$0xff]  }
  0x3b   : > { %13251 = vmatprep.subr.bf16.mxu1 %v13801_v14 }
  0x3c   : > { %v518_v27 = vrot.slane %v516_v19, 3  ;;  %v521_v30 = vrot.slane %v519_v20, 4  ;;  %v359_v19 = vmax.f32 %v327_v15, 0.0  ;;  %13259 = vmatpush3.bf16.msra.mxu1 %v13809_v24 }
  0x3d   : > { %v821_v63 = vld [vmem:[#allocation2 + $0x10] sm:$0xf0]  ;;  %v822_v0 = vld [vmem:[#allocation2 + $0x18] sm:$0xf]  ;;  %v823_v21 = vld [vmem:[#allocation2 + $0x20] sm:$0xf0] }
  0x3e   : > { %v522_v43 = vor.u32 %v521_v30, %v518_v27  ;;  %v484_v1 = vld [vmem:[#allocation2 + $0x10] sm:$0xf8]  ;;  %v887_v2 = vrot.slane %v821_v63, 4  ;;  %v888_v3 = vrot.slane %v822_v0, 4  ;;  %v485_v4 = vld [vmem:[#allocation2 + $0x18] sm:$0xf]  ;;  %v388_v45 = vpack.c.bf16 %v360_v34, %v359_v19 }
  0x3f   : > { %v533_v5 = vshrl.u32 %v484_v1, 16  ;;  %v536_v6 = vshll.u32 %v484_v1, 16  ;;  %v541_v7 = vshrl.u32 %v485_v4, 16  ;;  %v544_v8 = vshll.u32 %v485_v4, 16  ;;  %v824_v22 = vld [vmem:[#allocation2 + $0x28] sm:$0xf] }
  0x40   : > { %v531_v52 = vsel %vm514_vm1, %v522_v43, %v530_v44  ;;  %v889_v11 = vsel %vm883_vm0, %v887_v2, %v888_v3  ;;  %v486_v23 = vld [vmem:[#allocation2 + $0x20] sm:$0xf8]  ;;  %v890_v26 = vrot.slane %v823_v21, 4  ;;  %v891_v27 = vrot.slane %v824_v22, 4  ;;  %v13815_v30 = vld [vmem:[%s16719_s1 + $0xf8] sm:$0xff]   ;;  %v339_v19 = vld [vmem:[%s13721_s11 + $0x90] sm:$0xff] }
  0x41   : > { %3694 = vmatmul.mubr.bf16.vlgmr.msra.gmra.mrb[0].mxu0 %v531_v52  ;;  %v535_v12 = vrot.slane %v533_v5, 3  ;;  %v538_v13 = vrot.slane %v536_v6, 4  ;;  %v543_v16 = vrot.slane %v541_v7, 3  ;;  %v546_v17 = vrot.slane %v544_v8, 4  ;;  %v333_v52 = vld [vmem:[%s13721_s11 + $0x60] sm:$0xff]  ;;  %13252 = vmatprep.subr.bf16.mxu1 %v13815_v30  ;;  %v334_v6 = vld [vmem:[%s13721_s11 + $0x68] sm:$0xff] }
  0x42   : > { %12246 = vmatpush3.bf16.msra.mxu0 %v13385_v28  ;;  %3701 = vmatprep.mubr.bf16.mxu0 %v889_v11  ;;  %v487_v28 = vld [vmem:[#allocation2 + $0x28] sm:$0xf]  ;;  %v550_v29 = vshrl.u32 %v486_v23, 16  ;;  %v553_v31 = vshll.u32 %v486_v23, 16  ;;  %v892_v36 = vsel %vm883_vm0, %v890_v26, %v891_v27  ;;  %v826_v57 = vld [vmem:[#allocation2 + $0x38] sm:$0xf] }
  0x43   : > { %12247 = vmatprep.subr.bf16.mxu0 %v13386_v33  ;;  %v539_v20 = vor.u32 %v538_v13, %v535_v12  ;;  %v547_v25 = vor.u32 %v546_v17, %v543_v16  ;;  %v558_v32 = vshrl.u32 %v487_v28, 16  ;;  %v561_v33 = vshll.u32 %v487_v28, 16  ;;  %v488_v58 = vld [vmem:[#allocation2 + $0x30] sm:$0xf8]  ;;  %v489_v63 = vld [vmem:[#allocation2 + $0x38] sm:$0xf] }
  0x44   : > { %v552_v37 = vrot.slane %v550_v29, 3  ;;  %v894_v62 = vrot.slane %v826_v57, 4  ;;  %v567_v0 = vshrl.u32 %v488_v58, 16  ;;  %v570_v1 = vshll.u32 %v488_v58, 16  ;;  %v336_v12 = vld [vmem:[%s13721_s11 + $0x78] sm:$0xff]  ;;  %v337_v13 = vld [vmem:[%s13721_s11 + $0x80] sm:$0xff] }
  0x45   : > { %v548_v35 = vsel %vm514_vm1, %v539_v20, %v547_v25  ;;  %v560_v43 = vrot.slane %v558_v32, 3  ;;  %v563_v44 = vrot.slane %v561_v33, 4  ;;  %v575_v3 = vshrl.u32 %v489_v63, 16  ;;  %v340_v20 = vld [vmem:[%s13721_s11 + $0x98] sm:$0xff]  ;;  %v342_v32 = vld [vmem:[%s13721_s11 + $0xa8] sm:$0xff] }
  0x46   : > { %12248 = vmatpush3.bf16.msra.mxu0 %v13387_v38  ;;  %v329_v38 = vld [vmem:[%s13721_s11 + $0x40] sm:$0xff]  ;;  %v578_v4 = vshll.u32 %v489_v63, 16  ;;  %v420_v5 = vrot.slane %v388_v45, 4  ;;  %v569_v8 = vrot.slane %v567_v0, 3  ;;  %v572_v9 = vrot.slane %v570_v1, 4 }
  0x47   : > { %12249 = vmatprep.subr.bf16.mxu0 %v13749_v41  ;;  %v555_v41 = vrot.slane %v553_v31, 4  ;;  %v361_v48 = vmax.f32 %v329_v38, 0.0  ;;  %v564_v56 = vor.u32 %v563_v44, %v560_v43  ;;  %v577_v15 = vrot.slane %v575_v3, 3  ;;  %v341_v31 = vld [vmem:[%s13721_s11 + $0xa0] sm:$0xff] }
  0x48   : > { %v580_v16 = vrot.slane %v578_v4, 4  ;;  %456 = vst [vmem:[#allocation2 + $0x48] ss:$-4 sps:$4 sm:$0xff] %v420_v5   ;;  %v365_v17 = vmax.f32 %v333_v52, 0.0  ;;  %v573_v21 = vor.u32 %v572_v9, %v569_v8  ;;  %v366_v23 = vmax.f32 %v334_v6, 0.0  ;;  %v13856_v45 = vld [vmem:[%s13721_s11 + $0xc0] sm:$0xff] }
  0x49   : > { %3702 = vmatmul.mubr.bf16.gmra.mrb[4].mxu0 %v548_v35  ;;  %v556_v54 = vor.u32 %v555_v41, %v552_v37  ;;  %v389_v11 = vpack.c.bf16 %v362_v49, %v361_v48  ;;  %v368_v28 = vmax.f32 %v336_v12, 0.0  ;;  %v369_v29 = vmax.f32 %v337_v13, 0.0  ;;  %v344_v37 = vld [vmem:[%s13721_s11 + $0xb8] sm:$0xff] }
  0x4a   : > { %12250 = vmatpush3.bf16.msra.mxu0 %v13754_v42  ;;  %3709 = vmatprep.mubr.bf16.mxu0 %v892_v36  ;;  %v13830_v42 = vld [vmem:[%s16719_s1 + $0xb8] sm:$0xff]   ;;  %v581_v26 = vor.u32 %v580_v16, %v577_v15  ;;  %v370_v33 = vmax.f32 %v338_v18, 0.0  ;;  %v371_v34 = vmax.f32 %v339_v19, 0.0  ;;  %v372_v35 = vmax.f32 %v340_v20, 0.0  ;;  %v343_v36 = vld [vmem:[%s13721_s11 + $0xb0] sm:$0xff]  ;;  %v13400_v15 = vld [vmem:[%s16719_s1 + $0x140] sm:$0xff]  }
  0x4b   : > { %12251 = vmatprep.subr.bf16.mxu0 %v13759_v46  ;;  %v825_v46 = vld [vmem:[#allocation2 + $0x30] sm:$0xf0]  ;;  %v565_v2 = vsel %vm514_vm1, %v556_v54, %v564_v56  ;;  %13260 = vmatpush3.bf16.msra.mxu1 %v13830_v42  ;;  %v421_v22 = vrot.slane %v389_v11, 4  ;;  %v373_v39 = vmax.f32 %v341_v31, 0.0  ;;  %v374_v40 = vmax.f32 %v342_v32, 0.0 }
  0x4c   : > { %v893_v59 = vrot.slane %v825_v46, 4  ;;  %v375_v43 = vmax.f32 %v343_v36, 0.0  ;;  %v376_v44 = vmax.f32 %v344_v37, 0.0  ;;  %v582_v47 = vsel %vm514_vm1, %v573_v21, %v581_v26 }
  0x4d   : > { %458 = vst [vmem:[#allocation2 + $0x58] ss:$-4 sps:$4 sm:$0xff] %v421_v22   ;;  %v13861_v52 = vpack.c.bf16 %v372_v35, %v371_v34  ;;  %v377_v63 = vmax.f32 %v13856_v45, 0.0  ;;  %v13402_v35 = vld [vmem:[%s16719_s1 + $0x1c0] sm:$0xff]  }
  0x4e   : > { %12252 = vmatpush3.bf16.msra.mxu0 %v13769_v53  ;;  %v335_v53 = vld [vmem:[%s13721_s11 + $0x70] sm:$0xff]  ;;  %v895_v7 = vsel %vm883_vm0, %v893_v59, %v894_v62  ;;  %v13864_v62 = vpack.c.bf16 %v374_v40, %v373_v39  ;;  %v13869_v5 = vpack.c.bf16 %v376_v44, %v375_v43  ;;  %12469 = vmatprep.subr.bf16.mxu1 %v13402_v35 }
  0x4f   : > { %12253 = vmatprep.subr.bf16.mxu0 %v13775_v55  ;;  %v390_v55 = vpack.c.bf16 %v364_v51, %v363_v50  ;;  %v367_v25 = vmax.f32 %v335_v53, 0.0  ;;  %v827_v48 = vld [vmem:[#allocation2 + $0x40] sm:$0xf0]  ;;  %v828_v49 = vld [vmem:[#allocation2 + $0x48] sm:$0xf]  ;;  %v13859_v51 = vpack.c.bf16 %v370_v33, %v369_v29 }
  0x50   : > { %v490_v50 = vld [vmem:[#allocation2 + $0x40] sm:$0xf8]  ;;  %v897_v54 = vrot.slane %v828_v49, 4  ;;  %v491_v56 = vld [vmem:[#allocation2 + $0x48] sm:$0xf] }
  0x51   : > { %3710 = vmatmul.mubr.bf16.gmra.mrb[8].mxu0 %v565_v2  ;;  %v422_v27 = vrot.slane %v390_v55, 4  ;;  %v392_v38 = vpack.c.bf16 %v368_v28, %v367_v25  ;;  %v584_v46 = vshrl.u32 %v490_v50, 16  ;;  %v592_v57 = vshrl.u32 %v491_v56, 16  ;;  %v972_v59 = vld [vmem:[#allocation2 + $0x40] sm:$0xf0] }
  0x52   : > { %12254 = vmatpush3.bf16.msra.mxu0 %v13782_v60  ;;  %3717 = vmatprep.mubr.bf16.mxu0 %v895_v7  ;;  %v391_v60 = vpack.c.bf16 %v366_v23, %v365_v17  ;;  %v595_v58 = vshll.u32 %v491_v56, 16  ;;  %v973_v8 = vld [vmem:[#allocation2 + $0x48] sm:$0x1f]  ;;  %v1069_v18 = vshll.u32 %v972_v59, 16 }
  0x53   : > { %12255 = vmatprep.subr.bf16.mxu0 %v13788_v61  ;;  %460 = vst [vmem:[#allocation2 + $0x68] ss:$-4 sps:$4 sm:$0xff] %v422_v27   ;;  %v424_v41 = vrot.slane %v392_v38, 4  ;;  %v586_v1 = vrot.slane %v584_v46, 3  ;;  %v1074_v23 = vshrl.u32 %v973_v8, 16 }
  0x54   : > { %v423_v61 = vrot.slane %v391_v60, 4  ;;  %v1309_v3 = vld [vmem:[#allocation2 + $0x50] sm:$0xf8]  ;;  %v1310_v4 = vld [vmem:[#allocation2 + $0x58] sm:$0xf]  ;;  %v597_v6 = vrot.slane %v595_v58, 4 }
  0x55   : > { %464 = vst [vmem:[#allocation2 + $0x88] ss:$-4 sps:$4 sm:$0xff] %v424_v41   ;;  %v1402_v53 = vshrl.u32 %v1309_v3, 16  ;;  %v1405_v7 = vshll.u32 %v1309_v3, 16  ;;  %v1410_v11 = vshrl.u32 %v1310_v4, 16  ;;  %v1413_v12 = vshll.u32 %v1310_v4, 16 }
  0x56   : > { %12256 = vmatpush3.bf16.msra.mxu0 %v13794_v10  ;;  %462 = vst [vmem:[#allocation2 + $0x78] ss:$-4 sps:$4 sm:$0xff] %v423_v61   ;;  %v896_v10 = vrot.slane %v827_v48, 4  ;;  %v829_v13 = vld [vmem:[#allocation2 + $0x50] sm:$0xf0]  ;;  %v1071_v28 = vrot.slane %v1069_v18, 5 }
  0x57   : > { %12257 = vmatprep.subr.bf16.mxu0 %v13801_v14  ;;  %v587_v14 = vshll.u32 %v490_v50, 16  ;;  %v1404_v55 = vrot.slane %v1402_v53, 3  ;;  %v1407_v17 = vrot.slane %v1405_v7, 4  ;;  %v830_v19 = vld [vmem:[#allocation2 + $0x58] sm:$0xf]  ;;  %v1412_v20 = vrot.slane %v1410_v11, 3 }
  0x58   : > { %v898_v0 = vsel %vm883_vm0, %v896_v10, %v897_v54  ;;  %v1415_v21 = vrot.slane %v1413_v12, 4  ;;  %v492_v25 = vld [vmem:[#allocation2 + $0x50] sm:$0xf8]  ;;  %v493_v29 = vld [vmem:[#allocation2 + $0x58] sm:$0xf]  ;;  %v1076_v32 = vrot.slane %v1074_v23, 4 }
  0x59   : > { %3718 = vmatmul.mubr.bf16.gmra.mrb[12].mxu0 %v582_v47  ;;  %v589_v2 = vrot.slane %v587_v14, 4  ;;  %v1408_v27 = vor.u32 %v1407_v17, %v1404_v55  ;;  %v899_v60 = vrot.slane %v829_v13, 4  ;;  %v900_v33 = vrot.slane %v830_v19, 4  ;;  %v974_v10 = vld [vmem:[#allocation2 + $0x50] sm:$0xf0]  ;;  %v13403_v54 = vld [vmem:[%s16719_s1 + $0x180] sm:$0xff]  }
  0x5a   : > { %12258 = vmatpush3.bf16.msra.mxu0 %v13809_v24  ;;  %3725 = vmatprep.mubr.bf16.mxu0 %v898_v0  ;;  %v594_v24 = vrot.slane %v592_v57, 3  ;;  %v1416_v31 = vor.u32 %v1415_v21, %v1412_v20  ;;  %v1311_v34 = vld [vmem:[#allocation2 + $0x60] sm:$0xf8]  ;;  %v601_v38 = vshrl.u32 %v492_v25, 16  ;;  %v604_v61 = vshll.u32 %v492_v25, 16 }
  0x5b   : > { %12259 = vmatprep.subr.bf16.mxu0 %v13815_v30  ;;  %v590_v9 = vor.u32 %v589_v2, %v586_v1  ;;  %v1066_v30 = vshrl.u32 %v972_v59, 16  ;;  %v1312_v39 = vld [vmem:[#allocation2 + $0x68] sm:$0xf]  ;;  %v901_v41 = vsel %vm883_vm0, %v899_v60, %v900_v33  ;;  %v609_v43 = vshrl.u32 %v493_v29, 16  ;;  %v975_v58 = vld [vmem:[#allocation2 + $0x58] sm:$0x1f] }
  0x5c   : > { %v598_v16 = vor.u32 %v597_v6, %v594_v24  ;;  %v1417_v40 = vsel %vm514_vm1, %v1408_v27, %v1416_v31  ;;  %v612_v44 = vshll.u32 %v493_v29, 16  ;;  %v603_v48 = vrot.slane %v601_v38, 3  ;;  %v831_v3 = vld [vmem:[#allocation2 + $0x60] sm:$0xf0]  ;;  %v832_v4 = vld [vmem:[#allocation2 + $0x68] sm:$0xf] }
  0x5d   : > { %v1068_v22 = vrot.slane %v1066_v30, 4  ;;  %3886 = vmatprep.mubr.bf16.mxu1 %v1417_v40  ;;  %v606_v49 = vrot.slane %v604_v61, 4  ;;  %v1419_v50 = vshrl.u32 %v1311_v34, 16  ;;  %v611_v56 = vrot.slane %v609_v43, 3  ;;  %v495_v13 = vld [vmem:[#allocation2 + $0x68] sm:$0xf] }
  0x5e   : > { %12260 = vmatpush3.bf16.msra.mxu0 %v13830_v42  ;;  %v599_v26 = vsel %vm514_vm1, %v590_v9, %v598_v16  ;;  %v1077_v42 = vshll.u32 %v973_v8, 16  ;;  %v614_v46 = vrot.slane %v612_v44, 4  ;;  %v1422_v14 = vshll.u32 %v1311_v34, 16  ;;  %v494_v8 = vld [vmem:[#allocation2 + $0x60] sm:$0xf8]  ;;  %v13407_v34 = vld [vmem:[%s16719_s1 + $0x188] sm:$0xff]  }
  0x5f   : > { %12357 = vmatprep.subr.bf16.mxu0 %v13400_v15  ;;  %v1072_v36 = vor.u32 %v1071_v28, %v1068_v22  ;;  %v1427_v57 = vshrl.u32 %v1312_v39, 16  ;;  %v607_v0 = vor.u32 %v606_v49, %v603_v48  ;;  %v1421_v1 = vrot.slane %v1419_v50, 3  ;;  %v13406_v22 = vld [vmem:[%s16719_s1 + $0x1c8] sm:$0xff]   ;;  %v1313_v28 = vld [vmem:[#allocation2 + $0x70] sm:$0xf8] }
  0x60   : > { %v1079_v37 = vrot.slane %v1077_v42, 5  ;;  %v1430_v2 = vshll.u32 %v1312_v39, 16  ;;  %v615_v24 = vor.u32 %v614_v46, %v611_v56  ;;  %v1424_v6 = vrot.slane %v1422_v14, 4  ;;  %v1314_v60 = vld [vmem:[#allocation2 + $0x78] sm:$0xf] }
  0x61   : > { %3726 = vmatmul.mubr.bf16.gmra.mrb[16].mxu0 %v599_v26  ;;  %v1429_v53 = vrot.slane %v1427_v57, 3  ;;  %v1083_v7 = vshrl.u32 %v974_v10, 16  ;;  %v1086_v11 = vshll.u32 %v974_v10, 16  ;;  %v1091_v12 = vshrl.u32 %v975_v58, 16  ;;  %v976_v33 = vld [vmem:[#allocation2 + $0x60] sm:$0xf0] }
  0x62   : > { %v1080_v47 = vor.u32 %v1079_v37, %v1076_v32  ;;  %3733 = vmatprep.mubr.bf16.mxu0 %v901_v41  ;;  %v1432_v9 = vrot.slane %v1430_v2, 4  ;;  %v1094_v30 = vshll.u32 %v975_v58, 16  ;;  %v616_v15 = vsel %vm514_vm1, %v607_v0, %v615_v24  ;;  %v977_v43 = vld [vmem:[#allocation2 + $0x68] sm:$0x1f]  ;;  %v833_v50 = vld [vmem:[#allocation2 + $0x70] sm:$0xf0] }
  0x63   : > { %v1425_v16 = vor.u32 %v1424_v6, %v1421_v1  ;;  %v1085_v55 = vrot.slane %v1083_v7, 4  ;;  %v902_v17 = vrot.slane %v831_v3, 4  ;;  %v1088_v19 = vrot.slane %v1086_v11, 5  ;;  %v13410_v10 = vld [vmem:[%s16719_s1 + $0x1d0] sm:$0xff]   ;;  %v834_v57 = vld [vmem:[#allocation2 + $0x78] sm:$0xf] }
  0x64   : > { %v1081_v59 = vsel %vm996_vm2, %v1072_v36, %v1080_v47  ;;  %v1433_v18 = vor.u32 %v1432_v9, %v1429_v53  ;;  %v1093_v20 = vrot.slane %v1091_v12, 4  ;;  %v1096_v21 = vrot.slane %v1094_v30, 5  ;;  %v13411_v58 = vld [vmem:[%s16719_s1 + $0x190] sm:$0xff]   ;;  %v497_v7 = vld [vmem:[#allocation2 + $0x78] sm:$0xf] }
  0x65   : > { %3887 = vmatmul.mubr.bf16.vlgmr.msra.gmra.mrb[0].mxu1 %v1081_v59  ;;  %v903_v23 = vrot.slane %v832_v4, 4  ;;  %v618_v25 = vshrl.u32 %v494_v8, 16  ;;  %v621_v26 = vshll.u32 %v494_v8, 16  ;;  %v626_v27 = vshrl.u32 %v495_v13, 16  ;;  %v496_v3 = vld [vmem:[#allocation2 + $0x70] sm:$0xf8] }
  0x66   : > { %12470 = vmatpush3.bf16.msra.mxu1 %v13403_v54  ;;  %v1434_v42 = vsel %vm514_vm1, %v1425_v16, %v1433_v18  ;;  %v1089_v29 = vor.u32 %v1088_v19, %v1085_v55  ;;  %v1097_v31 = vor.u32 %v1096_v21, %v1093_v20  ;;  %v629_v32 = vshll.u32 %v495_v13, 16  ;;  %v1315_v8 = vld [vmem:[#allocation2 + $0x80] sm:$0xf8]  ;;  %v1316_v13 = vld [vmem:[#allocation2 + $0x88] sm:$0xf] }
  0x67   : > { %12471 = vmatprep.subr.bf16.mxu1 %v13406_v22  ;;  %3894 = vmatprep.mubr.bf16.mxu1 %v1434_v42  ;;  %v904_v35 = vsel %vm883_vm0, %v902_v17, %v903_v23  ;;  %v620_v36 = vrot.slane %v618_v25, 3  ;;  %v623_v37 = vrot.slane %v621_v26, 4  ;;  %v628_v38 = vrot.slane %v626_v27, 3  ;;  %v978_v18 = vld [vmem:[#allocation2 + $0x70] sm:$0xf0] }
  0x68   : > { %v1098_v61 = vsel %vm996_vm2, %v1089_v29, %v1097_v31  ;;  %v631_v39 = vrot.slane %v629_v32, 4  ;;  %v1436_v40 = vshrl.u32 %v1313_v28, 16  ;;  %v1439_v41 = vshll.u32 %v1313_v28, 16  ;;  %v979_v23 = vld [vmem:[#allocation2 + $0x78] sm:$0x1f] }
  0x69   : > { %3734 = vmatmul.mubr.bf16.gmra.mrb[20].mxu0 %v616_v15  ;;  %v624_v44 = vor.u32 %v623_v37, %v620_v36  ;;  %v1444_v47 = vshrl.u32 %v1314_v60, 16  ;;  %v1447_v48 = vshll.u32 %v1314_v60, 16  ;;  %v1100_v49 = vshrl.u32 %v976_v33, 16  ;;  %v835_v42 = vld [vmem:[#allocation2 + $0x80] sm:$0xf0]  ;;  %v13414_v29 = vld [vmem:[%s16719_s1 + $0x1d8] sm:$0xff]  }
  0x6a   : > { %3741 = vmatprep.mubr.bf16.mxu0 %v904_v35  ;;  %12472 = vmatpush3.bf16.msra.mxu1 %v13407_v34  ;;  %v632_v54 = vor.u32 %v631_v39, %v628_v38  ;;  %v1438_v56 = vrot.slane %v1436_v40, 3  ;;  %v1441_v46 = vrot.slane %v1439_v41, 4  ;;  %v1103_v14 = vshll.u32 %v976_v33, 16  ;;  %v836_v38 = vld [vmem:[#allocation2 + $0x88] sm:$0xf] }
  0x6b   : > { %v1446_v59 = vrot.slane %v1444_v47, 3  ;;  %v1449_v0 = vrot.slane %v1447_v48, 4  ;;  %v1102_v1 = vrot.slane %v1100_v49, 4  ;;  %v1108_v2 = vshrl.u32 %v977_v43, 16  ;;  %12473 = vmatprep.subr.bf16.mxu1 %v13410_v10  ;;  %v499_v39 = vld [vmem:[#allocation2 + $0x88] sm:$0xf] }
  0x6c   : > { %v633_v4 = vsel %vm514_vm1, %v624_v44, %v632_v54  ;;  %v1442_v24 = vor.u32 %v1441_v46, %v1438_v56  ;;  %v1105_v6 = vrot.slane %v1103_v14, 5  ;;  %v1111_v53 = vshll.u32 %v977_v43, 16  ;;  %v13415_v47 = vld [vmem:[%s16719_s1 + $0x198] sm:$0xff]  }
  0x6d   : > { %3895 = vmatmul.mubr.bf16.gmra.mrb[4].mxu1 %v1098_v61  ;;  %v1450_v9 = vor.u32 %v1449_v0, %v1446_v59  ;;  %v1110_v11 = vrot.slane %v1108_v2, 4  ;;  %v905_v12 = vrot.slane %v833_v50, 4  ;;  %v906_v30 = vrot.slane %v834_v57, 4  ;;  %v498_v61 = vld [vmem:[#allocation2 + $0x80] sm:$0xf8] }
  0x6e   : > { %12474 = vmatpush3.bf16.msra.mxu1 %v13411_v58  ;;  %v1106_v15 = vor.u32 %v1105_v6, %v1102_v1  ;;  %v1113_v16 = vrot.slane %v1111_v53, 5  ;;  %v635_v55 = vshrl.u32 %v496_v3, 16  ;;  %v638_v17 = vshll.u32 %v496_v3, 16 }
  0x6f   : > { %v1451_v19 = vsel %vm514_vm1, %v1442_v24, %v1450_v9  ;;  %v907_v20 = vsel %vm883_vm0, %v905_v12, %v906_v30  ;;  %v643_v21 = vshrl.u32 %v497_v7, 16  ;;  %v646_v22 = vshll.u32 %v497_v7, 16  ;;  %12475 = vmatprep.subr.bf16.mxu1 %v13414_v29  ;;  %v980_v24 = vld [vmem:[#allocation2 + $0x80] sm:$0xf0]  ;;  %v981_v9 = vld [vmem:[#allocation2 + $0x88] sm:$0x1f] }
  0x70   : > { %3902 = vmatprep.mubr.bf16.mxu1 %v1451_v19  ;;  %v1114_v25 = vor.u32 %v1113_v16, %v1110_v11  ;;  %v637_v26 = vrot.slane %v635_v55, 3  ;;  %v640_v27 = vrot.slane %v638_v17, 4  ;;  %v1453_v28 = vshrl.u32 %v1315_v8, 16  ;;  %v13418_v16 = vld [vmem:[%s16719_s1 + $0x1e0] sm:$0xff]   ;;  %v351_v29 = vld [vmem:[%s13721_s11 + $0xf0] sm:$0xff] }
  0x71   : > { %3742 = vmatmul.mubr.bf16.gmra.mrb[24].mxu0 %v633_v4  ;;  %v645_v31 = vrot.slane %v643_v21, 3  ;;  %v648_v32 = vrot.slane %v646_v22, 4  ;;  %v1456_v60 = vshll.u32 %v1315_v8, 16  ;;  %v1461_v33 = vshrl.u32 %v1316_v13, 16  ;;  %v348_v21 = vld [vmem:[%s13721_s11 + $0xd8] sm:$0xff]  ;;  %v13419_v22 = vld [vmem:[%s16719_s1 + $0x1a0] sm:$0xff]  }
  0x72   : > { %3749 = vmatprep.mubr.bf16.mxu0 %v907_v20  ;;  %v1115_v34 = vsel %vm996_vm2, %v1106_v15, %v1114_v25  ;;  %v641_v35 = vor.u32 %v640_v27, %v637_v26  ;;  %v1455_v36 = vrot.slane %v1453_v28, 3  ;;  %v1464_v37 = vshll.u32 %v1316_v13, 16  ;;  %12476 = vmatpush3.bf16.msra.mxu1 %v13415_v47  ;;  %v346_v15 = vld [vmem:[%s13721_s11 + $0xc8] sm:$0xff]  ;;  %v347_v20 = vld [vmem:[%s13721_s11 + $0xd0] sm:$0xff]  ;;  %v349_v28 = vld [vmem:[%s13721_s11 + $0xe0] sm:$0xff] }
  0x73   : > { %v649_v40 = vor.u32 %v648_v32, %v645_v31  ;;  %v1458_v41 = vrot.slane %v1456_v60, 4  ;;  %v1463_v43 = vrot.slane %v1461_v33, 3  ;;  %v1117_v44 = vshrl.u32 %v978_v18, 16  ;;  %12477 = vmatprep.subr.bf16.mxu1 %v13418_v16  ;;  %v352_v33 = vld [vmem:[%s13721_s11 + $0xf8] sm:$0xff] }
  0x74   : > { %v1466_v48 = vrot.slane %v1464_v37, 4  ;;  %v1120_v49 = vshll.u32 %v978_v18, 16  ;;  %v1125_v50 = vshrl.u32 %v979_v23, 16  ;;  %v1128_v10 = vshll.u32 %v979_v23, 16 }
  0x75   : > { %3903 = vmatmul.mubr.bf16.gmra.mrb[8].mxu1 %v1115_v34  ;;  %v650_v54 = vsel %vm514_vm1, %v641_v35, %v649_v40  ;;  %v1459_v56 = vor.u32 %v1458_v41, %v1455_v36  ;;  %v1119_v46 = vrot.slane %v1117_v44, 4  ;;  %v908_v14 = vrot.slane %v835_v42, 4  ;;  %v350_v42 = vld [vmem:[%s13721_s11 + $0xe8] sm:$0xff]  ;;  %v13931_v34 = vld [vmem:[#allocation2 + $0x10] sm:$0xf8] }
  0x76   : > { %v1467_v57 = vor.u32 %v1466_v48, %v1463_v43  ;;  %v1122_v58 = vrot.slane %v1120_v49, 5  ;;  %v1127_v59 = vrot.slane %v1125_v50, 4  ;;  %v1130_v0 = vrot.slane %v1128_v10, 5  ;;  %12478 = vmatpush3.bf16.msra.mxu1 %v13419_v22 }
  0x77   : > { %v909_v1 = vrot.slane %v836_v38, 4  ;;  %v652_v2 = vshrl.u32 %v498_v61, 16  ;;  %v655_v3 = vshll.u32 %v498_v61, 16  ;;  %v660_v4 = vshrl.u32 %v499_v39, 16  ;;  %v13934_v61 = vld [vmem:[#allocation2 + $0x18] sm:$0xf] }
  0x78   : > { %v1468_v6 = vsel %vm514_vm1, %v1459_v56, %v1467_v57  ;;  %v1123_v53 = vor.u32 %v1122_v58, %v1119_v46  ;;  %v1131_v7 = vor.u32 %v1130_v0, %v1127_v59  ;;  %v663_v8 = vshll.u32 %v499_v39, 16  ;;  %v13423_v58 = vld [vmem:[%s16719_s1 + $0x1a8] sm:$0xff]  }
  0x79   : > { %3750 = vmatmul.mubr.bf16.gmra.mrb[28].mxu0 %v650_v54  ;;  %3910 = vmatprep.mubr.bf16.mxu1 %v1468_v6  ;;  %v910_v11 = vsel %vm883_vm0, %v908_v14, %v909_v1  ;;  %v654_v12 = vrot.slane %v652_v2, 3  ;;  %v657_v30 = vrot.slane %v655_v3, 4  ;;  %v662_v13 = vrot.slane %v660_v4, 3 }
  0x7a   : > { %v1132_v55 = vsel %vm996_vm2, %v1123_v53, %v1131_v7  ;;  %3757 = vmatprep.mubr.bf16.mxu0 %v910_v11  ;;  %v665_v17 = vrot.slane %v663_v8, 4  ;;  %v425_v18 = vrot.slane %v13859_v51, 4  ;;  %v1134_v19 = vshrl.u32 %v980_v24, 16 }
  0x7b   : > { %v658_v23 = vor.u32 %v657_v30, %v654_v12  ;;  %v1137_v25 = vshll.u32 %v980_v24, 16  ;;  %v1142_v26 = vshrl.u32 %v981_v9, 16  ;;  %v1145_v27 = vshll.u32 %v981_v9, 16 }
  0x7c   : > { %v666_v31 = vor.u32 %v665_v17, %v662_v13  ;;  %466 = vst [vmem:[#allocation2 + $0x98] ss:$-4 sps:$4 sm:$0xff] %v425_v18   ;;  %v1136_v51 = vrot.slane %v1134_v19, 4  ;;  %v426_v32 = vrot.slane %v13861_v52, 4  ;;  %v427_v60 = vrot.slane %v13864_v62, 4  ;;  %v13422_v62 = vld [vmem:[%s16719_s1 + $0x1e8] sm:$0xff]  }
  0x7d   : > { %3911 = vmatmul.mubr.bf16.gmra.mrb[12].mxu1 %v1132_v55  ;;  %v1139_v35 = vrot.slane %v1137_v25, 5  ;;  %v1144_v36 = vrot.slane %v1142_v26, 4  ;;  %v1147_v37 = vrot.slane %v1145_v27, 5  ;;  %v428_v38 = vrot.slane %v13869_v5, 4  ;;  %12479 = vmatprep.subr.bf16.mxu1 %v13422_v62 }
  0x7e   : > { %v667_v39 = vsel %vm514_vm1, %v658_v23, %v666_v31  ;;  %468 = vst [vmem:[#allocation2 + $0xa8] ss:$-4 sps:$4 sm:$0xff] %v426_v32   ;;  %470 = vst [vmem:[#allocation2 + $0xb8] ss:$-4 sps:$4 sm:$0xff] %v427_v60   ;;  %v378_v40 = vmax.f32 %v346_v15, 0.0  ;;  %v379_v41 = vmax.f32 %v347_v20, 0.0  ;;  %12480 = vmatpush3.bf16.msra.mxu1 %v13423_v58 }
  0x7f   : > { %v380_v52 = vmax.f32 %v348_v21, 0.0  ;;  %v1140_v43 = vor.u32 %v1139_v35, %v1136_v51  ;;  %v1148_v44 = vor.u32 %v1147_v37, %v1144_v36  ;;  %472 = vst [vmem:[#allocation2 + $0xc8] ss:$-4 sps:$4 sm:$0xff] %v428_v38   ;;  %v381_v47 = vmax.f32 %v349_v28, 0.0 }
  0x80   : > { %v382_v48 = vmax.f32 %v350_v42, 0.0  ;;  %v397_v5 = vpack.c.bf16 %v378_v40, %v377_v63  ;;  %v383_v50 = vmax.f32 %v351_v29, 0.0  ;;  %v384_v10 = vmax.f32 %v352_v33, 0.0 }
  0x81   : > { %3758 = vmatmul.mubr.bf16.gmra.mrb[32].mxu0 %v667_v39  ;;  %v398_v49 = vpack.c.bf16 %v380_v52, %v379_v41  ;;  %v1334_v54 = vshrl.u32 %v13931_v34, 16  ;;  %v1337_v56 = vshll.u32 %v13931_v34, 16  ;;  %v1342_v57 = vshrl.u32 %v13934_v61, 16  ;;  %v13426_v41 = vld [vmem:[%s16719_s1 + $0x1f0] sm:$0xff]  }
  0x82   : > { %v429_v46 = vrot.slane %v397_v5, 4  ;;  %v1149_v45 = vsel %vm996_vm2, %v1140_v43, %v1148_v44  ;;  %v13949_v9 = vpack.c.bf16 %v382_v48, %v381_v47  ;;  %v13951_v11 = vpack.c.bf16 %v384_v10, %v383_v50  ;;  %v13427_v48 = vld [vmem:[%s16719_s1 + $0x1b0] sm:$0xff]   ;;  %12481 = vmatprep.subr.bf16.mxu1 %v13426_v41 }
  0x83   : > { %v430_v14 = vrot.slane %v398_v49, 4  ;;  %v1317_v59 = vld [vmem:[#allocation2 + $0x90] sm:$0xf8]  ;;  %v1318_v0 = vld [vmem:[#allocation2 + $0x98] sm:$0xf]  ;;  %12482 = vmatpush3.bf16.msra.mxu1 %v13427_v48 }
  0x84   : > { %v837_v63 = vld [vmem:[#allocation2 + $0x90] sm:$0xf0]  ;;  %v1470_v1 = vshrl.u32 %v1317_v59, 16  ;;  %v1473_v2 = vshll.u32 %v1317_v59, 16  ;;  %v1478_v3 = vshrl.u32 %v1318_v0, 16  ;;  %v1481_v4 = vshll.u32 %v1318_v0, 16 }
  0x85   : > { %v838_v24 = vld [vmem:[#allocation2 + $0x98] sm:$0xf]  ;;  %474 = vst [vmem:[#allocation2 + $0xd8] ss:$-4 sps:$4 sm:$0xff] %v429_v46   ;;  %476 = vst [vmem:[#allocation2 + $0xe8] ss:$-4 sps:$4 sm:$0xff] %v430_v14  }
  0x86   : > { %v911_v6 = vrot.slane %v837_v63, 4  ;;  %v912_v53 = vrot.slane %v838_v24, 4  ;;  %v500_v7 = vld [vmem:[#allocation2 + $0x90] sm:$0xf8]  ;;  %v501_v8 = vld [vmem:[#allocation2 + $0x98] sm:$0xf] }
  0x87   : > { %v1472_v12 = vrot.slane %v1470_v1, 3  ;;  %v1475_v30 = vrot.slane %v1473_v2, 4  ;;  %v1480_v13 = vrot.slane %v1478_v3, 3  ;;  %v1483_v15 = vrot.slane %v1481_v4, 4  ;;  %v1319_v16 = vld [vmem:[#allocation2 + $0xa0] sm:$0xf8] }
  0x88   : > { %v913_v55 = vsel %vm883_vm0, %v911_v6, %v912_v53  ;;  %v669_v17 = vshrl.u32 %v500_v7, 16  ;;  %v672_v18 = vshll.u32 %v500_v7, 16  ;;  %v677_v19 = vshrl.u32 %v501_v8, 16  ;;  %v1320_v20 = vld [vmem:[#allocation2 + $0xa8] sm:$0xf]  ;;  %v13430_v4 = vld [vmem:[%s16719_s1 + $0x1f8] sm:$0xff]  }
  0x89   : > { %v1476_v21 = vor.u32 %v1475_v30, %v1472_v12  ;;  %v1484_v22 = vor.u32 %v1483_v15, %v1480_v13  ;;  %3765 = vmatprep.mubr.bf16.mxu0 %v913_v55  ;;  %v680_v23 = vshll.u32 %v501_v8, 16  ;;  %v1487_v25 = vshrl.u32 %v1319_v16, 16  ;;  %v982_v26 = vld [vmem:[#allocation2 + $0x90] sm:$0xf0]  ;;  %v983_v31 = vld [vmem:[#allocation2 + $0x98] sm:$0x1f]  ;;  %12483 = vmatprep.subr.bf16.mxu1 %v13430_v4 }
  0x8a   : > { %v671_v27 = vrot.slane %v669_v17, 3  ;;  %v674_v28 = vrot.slane %v672_v18, 4  ;;  %v679_v42 = vrot.slane %v677_v19, 3  ;;  %v1490_v29 = vshll.u32 %v1319_v16, 16  ;;  %v839_v35 = vld [vmem:[#allocation2 + $0xa0] sm:$0xf0] }
  0x8b   : > { %v1485_v51 = vsel %vm514_vm1, %v1476_v21, %v1484_v22  ;;  %v682_v32 = vrot.slane %v680_v23, 4  ;;  %v1489_v60 = vrot.slane %v1487_v25, 3  ;;  %v1495_v33 = vshrl.u32 %v1320_v20, 16  ;;  %v840_v40 = vld [vmem:[#allocation2 + $0xa8] sm:$0xf]  ;;  %v13431_v12 = vld [vmem:[%s16719_s1 + $0x1b8] sm:$0xff]  }
  0x8c   : > { %3918 = vmatprep.mubr.bf16.mxu1 %v1485_v51  ;;  %v675_v36 = vor.u32 %v674_v28, %v671_v27  ;;  %v1492_v37 = vrot.slane %v1490_v29, 4  ;;  %v1498_v38 = vshll.u32 %v1320_v20, 16  ;;  %v1151_v39 = vshrl.u32 %v982_v26, 16  ;;  %v502_v47 = vld [vmem:[#allocation2 + $0xa0] sm:$0xf8]  ;;  %12484 = vmatpush3.bf16.msra.mxu1 %v13431_v12 }
  0x8d   : > { %3919 = vmatmul.mubr.bf16.gmra.mrb[16].mxu1 %v1149_v45  ;;  %v683_v52 = vor.u32 %v682_v32, %v679_v42  ;;  %v1497_v62 = vrot.slane %v1495_v33, 3  ;;  %v1154_v43 = vshll.u32 %v982_v26, 16  ;;  %v1159_v44 = vshrl.u32 %v983_v31, 16  ;;  %v503_v46 = vld [vmem:[#allocation2 + $0xa8] sm:$0xf] }
  0x8e   : > { %v1493_v5 = vor.u32 %v1492_v37, %v1489_v60  ;;  %v1500_v49 = vrot.slane %v1498_v38, 4  ;;  %v1153_v50 = vrot.slane %v1151_v39, 4  ;;  %v1162_v10 = vshll.u32 %v983_v31, 16  ;;  %v1321_v3 = vld [vmem:[#allocation2 + $0xb0] sm:$0xf8] }
  0x8f   : > { %v684_v14 = vsel %vm514_vm1, %v675_v36, %v683_v52  ;;  %v1156_v58 = vrot.slane %v1154_v43, 5  ;;  %v1161_v59 = vrot.slane %v1159_v44, 4  ;;  %v914_v0 = vrot.slane %v839_v35, 4  ;;  %v1322_v8 = vld [vmem:[#allocation2 + $0xb8] sm:$0xf] }
  0x90   : > { %3766 = vmatmul.mubr.bf16.gmra.mrb[36].mxu0 %v684_v14  ;;  %v1501_v45 = vor.u32 %v1500_v49, %v1497_v62  ;;  %v1164_v63 = vrot.slane %v1162_v10, 5  ;;  %v915_v1 = vrot.slane %v840_v40, 4  ;;  %v686_v2 = vshrl.u32 %v502_v47, 16  ;;  %v984_v55 = vld [vmem:[#allocation2 + $0xa0] sm:$0xf0] }
  0x91   : > { %v1157_v24 = vor.u32 %v1156_v58, %v1153_v50  ;;  %v689_v6 = vshll.u32 %v502_v47, 16  ;;  %v694_v53 = vshrl.u32 %v503_v46, 16  ;;  %v697_v7 = vshll.u32 %v503_v46, 16  ;;  %v985_v26 = vld [vmem:[#allocation2 + $0xa8] sm:$0x1f] }
  0x92   : > { %v1502_v30 = vsel %vm514_vm1, %v1493_v5, %v1501_v45  ;;  %v1165_v13 = vor.u32 %v1164_v63, %v1161_v59  ;;  %v916_v15 = vsel %vm883_vm0, %v914_v0, %v915_v1  ;;  %v688_v16 = vrot.slane %v686_v2, 3  ;;  %v841_v31 = vld [vmem:[#allocation2 + $0xb0] sm:$0xf0]  ;;  %v842_v51 = vld [vmem:[#allocation2 + $0xb8] sm:$0xf] }
  0x93   : > { %3926 = vmatprep.mubr.bf16.mxu1 %v1502_v30  ;;  %3773 = vmatprep.mubr.bf16.mxu0 %v916_v15  ;;  %v691_v17 = vrot.slane %v689_v6, 4  ;;  %v696_v18 = vrot.slane %v694_v53, 3  ;;  %v699_v19 = vrot.slane %v697_v7, 4  ;;  %v1504_v20 = vshrl.u32 %v1321_v3, 16  ;;  %v504_v36 = vld [vmem:[#allocation2 + $0xb0] sm:$0xf8] }
  0x94   : > { %v1166_v21 = vsel %vm996_vm2, %v1157_v24, %v1165_v13  ;;  %v1507_v22 = vshll.u32 %v1321_v3, 16  ;;  %v1512_v23 = vshrl.u32 %v1322_v8, 16  ;;  %v1515_v25 = vshll.u32 %v1322_v8, 16  ;;  %v505_v41 = vld [vmem:[#allocation2 + $0xb8] sm:$0xf] }
  0x95   : > { %3927 = vmatmul.mubr.bf16.gmra.mrb[20].mxu1 %v1166_v21  ;;  %v692_v27 = vor.u32 %v691_v17, %v688_v16  ;;  %v700_v28 = vor.u32 %v699_v19, %v696_v18  ;;  %v1506_v42 = vrot.slane %v1504_v20, 3  ;;  %v1168_v29 = vshrl.u32 %v984_v55, 16  ;;  %v1323_v50 = vld [vmem:[#allocation2 + $0xc0] sm:$0xf8]  ;;  %v1324_v59 = vld [vmem:[#allocation2 + $0xc8] sm:$0xf] }
  0x96   : > { %v1509_v32 = vrot.slane %v1507_v22, 4  ;;  %v1514_v60 = vrot.slane %v1512_v23, 3  ;;  %v1517_v33 = vrot.slane %v1515_v25, 4  ;;  %v1171_v35 = vshll.u32 %v984_v55, 16  ;;  %v986_v2 = vld [vmem:[#allocation2 + $0xb0] sm:$0xf0] }
  0x97   : > { %v701_v37 = vsel %vm514_vm1, %v692_v27, %v700_v28  ;;  %v1170_v38 = vrot.slane %v1168_v29, 4  ;;  %v1176_v39 = vshrl.u32 %v985_v26, 16  ;;  %v1179_v40 = vshll.u32 %v985_v26, 16  ;;  %v987_v53 = vld [vmem:[#allocation2 + $0xb8] sm:$0x1f] }
  0x98   : > { %3774 = vmatmul.mubr.bf16.gmra.mrb[40].mxu0 %v701_v37  ;;  %v1510_v52 = vor.u32 %v1509_v32, %v1506_v42  ;;  %v1518_v62 = vor.u32 %v1517_v33, %v1514_v60  ;;  %v1173_v43 = vrot.slane %v1171_v35, 5  ;;  %v917_v44 = vrot.slane %v841_v31, 4  ;;  %v843_v13 = vld [vmem:[#allocation2 + $0xc0] sm:$0xf0]  ;;  %v844_v18 = vld [vmem:[#allocation2 + $0xc8] sm:$0xf] }
  0x99   : > { %v1178_v47 = vrot.slane %v1176_v39, 4  ;;  %v1181_v48 = vrot.slane %v1179_v40, 5  ;;  %v918_v5 = vrot.slane %v842_v51, 4  ;;  %v703_v49 = vshrl.u32 %v504_v36, 16  ;;  %v506_v23 = vld [vmem:[#allocation2 + $0xc0] sm:$0xf8] }
  0x9a   : > { %v1519_v10 = vsel %vm514_vm1, %v1510_v52, %v1518_v62  ;;  %v1174_v46 = vor.u32 %v1173_v43, %v1170_v38  ;;  %v706_v14 = vshll.u32 %v504_v36, 16  ;;  %v711_v58 = vshrl.u32 %v505_v41, 16  ;;  %v507_v42 = vld [vmem:[#allocation2 + $0xc8] sm:$0xf]  ;;  %v1325_v37 = vld [vmem:[#allocation2 + $0xd0] sm:$0xf8] }
  0x9b   : > { %3934 = vmatprep.mubr.bf16.mxu1 %v1519_v10  ;;  %v1182_v0 = vor.u32 %v1181_v48, %v1178_v47  ;;  %v919_v45 = vsel %vm883_vm0, %v917_v44, %v918_v5  ;;  %v705_v63 = vrot.slane %v703_v49, 3  ;;  %v714_v1 = vshll.u32 %v505_v41, 16  ;;  %v1326_v52 = vld [vmem:[#allocation2 + $0xd8] sm:$0xf]  ;;  %v988_v48 = vld [vmem:[#allocation2 + $0xc0] sm:$0xf0] }
  0x9c   : > { %3781 = vmatprep.mubr.bf16.mxu0 %v919_v45  ;;  %v708_v3 = vrot.slane %v706_v14, 4  ;;  %v713_v4 = vrot.slane %v711_v58, 3  ;;  %v1521_v24 = vshrl.u32 %v1323_v50, 16  ;;  %v1524_v6 = vshll.u32 %v1323_v50, 16  ;;  %v989_v5 = vld [vmem:[#allocation2 + $0xc8] sm:$0x1f] }
  0x9d   : > { %v1183_v7 = vsel %vm996_vm2, %v1174_v46, %v1182_v0  ;;  %v716_v8 = vrot.slane %v714_v1, 4  ;;  %v1529_v12 = vshrl.u32 %v1324_v59, 16  ;;  %v1532_v30 = vshll.u32 %v1324_v59, 16  ;;  %v845_v14 = vld [vmem:[#allocation2 + $0xd0] sm:$0xf0] }
  0x9e   : > { %3935 = vmatmul.mubr.bf16.gmra.mrb[24].mxu1 %v1183_v7  ;;  %v709_v15 = vor.u32 %v708_v3, %v705_v63  ;;  %v1523_v16 = vrot.slane %v1521_v24, 3  ;;  %v1526_v55 = vrot.slane %v1524_v6, 4  ;;  %v1185_v17 = vshrl.u32 %v986_v2, 16  ;;  %v846_v63 = vld [vmem:[#allocation2 + $0xd8] sm:$0xf] }
  0x9f   : > { %v717_v19 = vor.u32 %v716_v8, %v713_v4  ;;  %v1531_v20 = vrot.slane %v1529_v12, 3  ;;  %v1534_v21 = vrot.slane %v1532_v30, 4  ;;  %v1188_v22 = vshll.u32 %v986_v2, 16  ;;  %v508_v1 = vld [vmem:[#allocation2 + $0xd0] sm:$0xf8] }
  0xa0   : > { %v1527_v25 = vor.u32 %v1526_v55, %v1523_v16  ;;  %v1187_v26 = vrot.slane %v1185_v17, 4  ;;  %v1193_v27 = vshrl.u32 %v987_v53, 16  ;;  %v1196_v28 = vshll.u32 %v987_v53, 16  ;;  %v509_v6 = vld [vmem:[#allocation2 + $0xd8] sm:$0xf] }
  0xa1   : > { %v718_v29 = vsel %vm514_vm1, %v709_v15, %v717_v19  ;;  %v1535_v31 = vor.u32 %v1534_v21, %v1531_v20  ;;  %v1190_v51 = vrot.slane %v1188_v22, 5  ;;  %v920_v32 = vrot.slane %v843_v13, 4  ;;  %v1327_v55 = vld [vmem:[#allocation2 + $0xe0] sm:$0xf8] }
  0xa2   : > { %3782 = vmatmul.mubr.bf16.gmra.mrb[44].mxu0 %v718_v29  ;;  %v1195_v60 = vrot.slane %v1193_v27, 4  ;;  %v1198_v33 = vrot.slane %v1196_v28, 5  ;;  %v921_v35 = vrot.slane %v844_v18, 4  ;;  %v720_v36 = vshrl.u32 %v506_v23, 16 }
  0xa3   : > { %v1536_v38 = vsel %vm514_vm1, %v1527_v25, %v1535_v31  ;;  %v1191_v39 = vor.u32 %v1190_v51, %v1187_v26  ;;  %v723_v40 = vshll.u32 %v506_v23, 16  ;;  %v728_v41 = vshrl.u32 %v507_v42, 16  ;;  %v1328_v26 = vld [vmem:[#allocation2 + $0xe8] sm:$0xf]  ;;  %v990_v31 = vld [vmem:[#allocation2 + $0xd0] sm:$0xf0] }
  0xa4   : > { %3942 = vmatprep.mubr.bf16.mxu1 %v1536_v38  ;;  %v1199_v62 = vor.u32 %v1198_v33, %v1195_v60  ;;  %v922_v43 = vsel %vm883_vm0, %v920_v32, %v921_v35  ;;  %v722_v44 = vrot.slane %v720_v36, 3  ;;  %v731_v47 = vshll.u32 %v507_v42, 16  ;;  %v991_v35 = vld [vmem:[#allocation2 + $0xd8] sm:$0x1f] }
  0xa5   : > { %3789 = vmatprep.mubr.bf16.mxu0 %v922_v43  ;;  %v725_v49 = vrot.slane %v723_v40, 4  ;;  %v730_v50 = vrot.slane %v728_v41, 3  ;;  %v1538_v10 = vshrl.u32 %v1325_v37, 16  ;;  %v1541_v46 = vshll.u32 %v1325_v37, 16  ;;  %v847_v40 = vld [vmem:[#allocation2 + $0xe0] sm:$0xf0] }
  0xa6   : > { %v1200_v58 = vsel %vm996_vm2, %v1191_v39, %v1199_v62  ;;  %v733_v59 = vrot.slane %v731_v47, 4  ;;  %v1546_v0 = vshrl.u32 %v1326_v52, 16  ;;  %v1549_v45 = vshll.u32 %v1326_v52, 16  ;;  %v510_v47 = vld [vmem:[#allocation2 + $0xe0] sm:$0xf8] }
  0xa7   : > { %3943 = vmatmul.mubr.bf16.gmra.mrb[28].mxu1 %v1200_v58  ;;  %v726_v2 = vor.u32 %v725_v49, %v722_v44  ;;  %v1540_v3 = vrot.slane %v1538_v10, 3  ;;  %v1543_v4 = vrot.slane %v1541_v46, 4  ;;  %v1202_v24 = vshrl.u32 %v988_v48, 16  ;;  %v848_v44 = vld [vmem:[#allocation2 + $0xe8] sm:$0xf] }
  0xa8   : > { %v734_v53 = vor.u32 %v733_v59, %v730_v50  ;;  %v1548_v7 = vrot.slane %v1546_v0, 3  ;;  %v1551_v8 = vrot.slane %v1549_v45, 4  ;;  %v1205_v12 = vshll.u32 %v988_v48, 16  ;;  %v511_v10 = vld [vmem:[#allocation2 + $0xe8] sm:$0xf] }
  0xa9   : > { %v1544_v30 = vor.u32 %v1543_v4, %v1540_v3  ;;  %v1204_v13 = vrot.slane %v1202_v24, 4  ;;  %v1210_v15 = vshrl.u32 %v989_v5, 16  ;;  %v1213_v16 = vshll.u32 %v989_v5, 16 }
  0xaa   : > { %v735_v17 = vsel %vm514_vm1, %v726_v2, %v734_v53  ;;  %v1552_v18 = vor.u32 %v1551_v8, %v1548_v7  ;;  %v1207_v19 = vrot.slane %v1205_v12, 5  ;;  %v923_v20 = vrot.slane %v845_v14, 4  ;;  %v992_v2 = vld [vmem:[#allocation2 + $0xe0] sm:$0xf0]  ;;  %v993_v53 = vld [vmem:[#allocation2 + $0xe8] sm:$0x1f] }
  0xab   : > { %3790 = vmatmul.mubr.bf16.gmra.mrb[48].mxu0 %v735_v17  ;;  %v1212_v21 = vrot.slane %v1210_v15, 4  ;;  %v1215_v22 = vrot.slane %v1213_v16, 5  ;;  %v924_v23 = vrot.slane %v846_v63, 4  ;;  %v737_v25 = vshrl.u32 %v508_v1, 16 }
  0xac   : > { %v1553_v27 = vsel %vm514_vm1, %v1544_v30, %v1552_v18  ;;  %v1208_v28 = vor.u32 %v1207_v19, %v1204_v13  ;;  %v740_v42 = vshll.u32 %v508_v1, 16  ;;  %v745_v29 = vshrl.u32 %v509_v6, 16 }
  0xad   : > { %3950 = vmatprep.mubr.bf16.mxu1 %v1553_v27  ;;  %v1216_v51 = vor.u32 %v1215_v22, %v1212_v21  ;;  %v925_v32 = vsel %vm883_vm0, %v923_v20, %v924_v23  ;;  %v739_v60 = vrot.slane %v737_v25, 3  ;;  %v748_v33 = vshll.u32 %v509_v6, 16 }
  0xae   : > { %3797 = vmatprep.mubr.bf16.mxu0 %v925_v32  ;;  %v742_v36 = vrot.slane %v740_v42, 4  ;;  %v747_v37 = vrot.slane %v745_v29, 3  ;;  %v1555_v38 = vshrl.u32 %v1327_v55, 16  ;;  %v1558_v39 = vshll.u32 %v1327_v55, 16 }
  0xaf   : > { %v1217_v41 = vsel %vm996_vm2, %v1208_v28, %v1216_v51  ;;  %v750_v52 = vrot.slane %v748_v33, 4  ;;  %v1563_v62 = vshrl.u32 %v1328_v26, 16  ;;  %v1566_v43 = vshll.u32 %v1328_v26, 16  ;;  %v964_v26 = vld [vmem:[#allocation2] sm:$0xf0] }
  0xb0   : > { %3951 = vmatmul.mubr.bf16.gmra.mrb[32].mxu1 %v1217_v41  ;;  %v743_v48 = vor.u32 %v742_v36, %v739_v60  ;;  %v1557_v5 = vrot.slane %v1555_v38, 3  ;;  %v1560_v49 = vrot.slane %v1558_v39, 4  ;;  %v1219_v50 = vshrl.u32 %v990_v31, 16 }
  0xb1   : > { %v751_v46 = vor.u32 %v750_v52, %v747_v37  ;;  %v1565_v14 = vrot.slane %v1563_v62, 3  ;;  %v1568_v58 = vrot.slane %v1566_v43, 4  ;;  %v1222_v59 = vshll.u32 %v990_v31, 16  ;;  %v13991_v37 = vld [vmem:[#allocation2 + $0x8] sm:$0x1f] }
  0xb2   : > { %v1561_v0 = vor.u32 %v1560_v49, %v1557_v5  ;;  %v1221_v45 = vrot.slane %v1219_v50, 4  ;;  %v1227_v63 = vshrl.u32 %v991_v35, 16  ;;  %v1230_v1 = vshll.u32 %v991_v35, 16  ;;  %v13998_v52 = vld [vmem:[#allocation2 + $0x20] sm:$0xf8] }
  0xb3   : > { %v752_v3 = vsel %vm514_vm1, %v743_v48, %v751_v46  ;;  %v1569_v4 = vor.u32 %v1568_v58, %v1565_v14  ;;  %v1224_v24 = vrot.slane %v1222_v59, 5  ;;  %v926_v6 = vrot.slane %v847_v40, 4 }
  0xb4   : > { %3798 = vmatmul.mubr.bf16.gmra.mrb[52].mxu0 %v752_v3  ;;  %v1229_v7 = vrot.slane %v1227_v63, 4  ;;  %v1232_v8 = vrot.slane %v1230_v1, 5  ;;  %v927_v12 = vrot.slane %v848_v44, 4  ;;  %v754_v30 = vshrl.u32 %v510_v47, 16 }
  0xb5   : > { %v1570_v13 = vsel %vm514_vm1, %v1561_v0, %v1569_v4  ;;  %v1225_v15 = vor.u32 %v1224_v24, %v1221_v45  ;;  %v757_v16 = vshll.u32 %v510_v47, 16  ;;  %v762_v55 = vshrl.u32 %v511_v10, 16 }
  0xb6   : > { %3958 = vmatprep.mubr.bf16.mxu1 %v1570_v13  ;;  %v1233_v17 = vor.u32 %v1232_v8, %v1229_v7  ;;  %v928_v18 = vsel %vm883_vm0, %v926_v6, %v927_v12  ;;  %v756_v19 = vrot.slane %v754_v30, 3  ;;  %v765_v20 = vshll.u32 %v511_v10, 16 }
  0xb7   : > { %3805 = vmatprep.mubr.bf16.mxu0 %v928_v18  ;;  %v759_v21 = vrot.slane %v757_v16, 4  ;;  %v764_v22 = vrot.slane %v762_v55, 3  ;;  %v431_v23 = vrot.slane %v13949_v9, 4  ;;  %v1236_v25 = vshrl.u32 %v992_v2, 16 }
  0xb8   : > { %v1234_v27 = vsel %vm996_vm2, %v1225_v15, %v1233_v17  ;;  %v767_v28 = vrot.slane %v765_v20, 4  ;;  %v1239_v42 = vshll.u32 %v992_v2, 16  ;;  %v1244_v29 = vshrl.u32 %v993_v53, 16 }
  0xb9   : > { %3959 = vmatmul.mubr.bf16.gmra.mrb[36].mxu1 %v1234_v27  ;;  %v760_v31 = vor.u32 %v759_v21, %v756_v19  ;;  %478 = vst [vmem:[#allocation2 + $0xf8] ss:$-4 sps:$4 sm:$0xff] %v431_v23   ;;  %v1238_v51 = vrot.slane %v1236_v25, 4  ;;  %v1247_v32 = vshll.u32 %v993_v53, 16  ;;  %v432_v60 = vrot.slane %v13951_v11, 4 }
  0xba   : > { %v768_v33 = vor.u32 %v767_v28, %v764_v22  ;;  %v1241_v35 = vrot.slane %v1239_v42, 5  ;;  %v1246_v36 = vrot.slane %v1244_v29, 4  ;;  %v1336_v9 = vrot.slane %v1334_v54, 3 }
  0xbb   : > { %v1249_v38 = vrot.slane %v1247_v32, 5  ;;  %480 = vst [vmem:[#allocation2 + $0x108] ss:$-4 sps:$4 sm:$0xff] %v432_v60   ;;  %v1339_v39 = vrot.slane %v1337_v56, 4  ;;  %v1344_v40 = vrot.slane %v1342_v57, 3  ;;  %v1345_v41 = vshll.u32 %v13934_v61, 16 }
  0xbc   : > { %v769_v11 = vsel %vm514_vm1, %v760_v31, %v768_v33  ;;  %v1242_v62 = vor.u32 %v1241_v35, %v1238_v51  ;;  %v998_v43 = vshrl.u32 %v964_v26, 16  ;;  %v1001_v44 = vshll.u32 %v964_v26, 16 }
  0xbd   : > { %3806 = vmatmul.mubr.bf16.gmra.mrb[56].mxu0 %v769_v11  ;;  %v1250_v54 = vor.u32 %v1249_v38, %v1246_v36  ;;  %v1340_v47 = vor.u32 %v1339_v39, %v1336_v9  ;;  %v1347_v48 = vrot.slane %v1345_v41, 4  ;;  %v1006_v5 = vshrl.u32 %v13991_v37, 16  ;;  %v1304_v38 = vld [vmem:[#allocation2 + $0x28] sm:$0xf] }
  0xbe   : > { %v14002_v34 = vrot.slane %v998_v43, 4  ;;  %v14004_v56 = vrot.slane %v1001_v44, 5  ;;  %v1009_v57 = vshll.u32 %v13991_v37, 16  ;;  %v1351_v61 = vshrl.u32 %v13998_v52, 16 }
  0xbf   : > { %v1348_v49 = vor.u32 %v1347_v48, %v1344_v40  ;;  %v14008_v50 = vrot.slane %v1006_v5, 4  ;;  %v1354_v10 = vshll.u32 %v13998_v52, 16  ;;  %v1251_v58 = vsel %vm996_vm2, %v1242_v62, %v1250_v54  ;;  %v966_v62 = vld [vmem:[#allocation2 + $0x10] sm:$0xf0] }
  0xc0   : > { %v1329_v46 = vld [vmem:[#allocation2 + $0xf0] sm:$0xf8]  ;;  %v1330_v14 = vld [vmem:[#allocation2 + $0xf8] sm:$0xf]  ;;  %v1004_v7 = vor.u32 %v14004_v56, %v14002_v34  ;;  %v13404_v34 = vld [vmem:[%s16719_s1 + $0x148] sm:$0xff]  }
  0xc1   : > { %v849_v59 = vld [vmem:[#allocation2 + $0xf0] sm:$0xf0]  ;;  %v1572_v0 = vshrl.u32 %v1329_v46, 16  ;;  %v1575_v45 = vshll.u32 %v1329_v46, 16  ;;  %v1580_v63 = vshrl.u32 %v1330_v14, 16  ;;  %v1583_v1 = vshll.u32 %v1330_v14, 16 }
  0xc2   : > { %v850_v2 = vld [vmem:[#allocation2 + $0xf8] sm:$0xf]  ;;  %v929_v3 = vrot.slane %v849_v59, 4  ;;  %v512_v24 = vld [vmem:[#allocation2 + $0xf0] sm:$0xf8]  ;;  %v1349_v53 = vsel %vm514_vm1, %v1340_v47, %v1348_v49  ;;  %v1011_v46 = vrot.slane %v1009_v57, 5 }
  0xc3   : > { %v930_v4 = vrot.slane %v850_v2, 4  ;;  %v513_v6 = vld [vmem:[#allocation2 + $0xf8] sm:$0xf]  ;;  %v1574_v8 = vrot.slane %v1572_v0, 3  ;;  %v1577_v12 = vrot.slane %v1575_v45, 4  ;;  %v1582_v30 = vrot.slane %v1580_v63, 3 }
  0xc4   : > { %v1585_v13 = vrot.slane %v1583_v1, 4  ;;  %v1331_v15 = vld [vmem:[#allocation2 + $0x100] sm:$0xf8]  ;;  %v771_v55 = vshrl.u32 %v512_v24, 16  ;;  %v774_v17 = vshll.u32 %v512_v24, 16  ;;  %v779_v18 = vshrl.u32 %v513_v6, 16 }
  0xc5   : > { %v931_v16 = vsel %vm883_vm0, %v929_v3, %v930_v4  ;;  %v1332_v19 = vld [vmem:[#allocation2 + $0x108] sm:$0xf]  ;;  %v1578_v20 = vor.u32 %v1577_v12, %v1574_v8  ;;  %v782_v22 = vshll.u32 %v513_v6, 16  ;;  %v1589_v23 = vshrl.u32 %v1331_v15, 16  ;;  %v994_v25 = vld [vmem:[#allocation2 + $0xf0] sm:$0xf0] }
  0xc6   : > { %v1586_v21 = vor.u32 %v1585_v13, %v1582_v30  ;;  %3813 = vmatprep.mubr.bf16.mxu0 %v931_v16  ;;  %v995_v26 = vld [vmem:[#allocation2 + $0xf8] sm:$0x1f]  ;;  %v773_v27 = vrot.slane %v771_v55, 3  ;;  %v776_v28 = vrot.slane %v774_v17, 4  ;;  %v781_v42 = vrot.slane %v779_v18, 3  ;;  %v13401_v30 = vld [vmem:[%s16719_s1 + $0x100] sm:$0xff]  }
  0xc7   : > { %v1592_v29 = vshll.u32 %v1331_v15, 16  ;;  %v784_v51 = vrot.slane %v782_v22, 4  ;;  %v1591_v32 = vrot.slane %v1589_v23, 3  ;;  %v1597_v60 = vshrl.u32 %v1332_v19, 16  ;;  %v967_v14 = vld [vmem:[#allocation2 + $0x18] sm:$0x1f] }
  0xc8   : > { %v1587_v31 = vsel %vm514_vm1, %v1578_v20, %v1586_v21  ;;  %v777_v33 = vor.u32 %v776_v28, %v773_v27  ;;  %v1600_v36 = vshll.u32 %v1332_v19, 16  ;;  %v1253_v9 = vshrl.u32 %v994_v25, 16  ;;  %v1305_v63 = vld [vmem:[#allocation2 + $0x30] sm:$0xf8]  ;;  %v1306_v24 = vld [vmem:[#allocation2 + $0x38] sm:$0xf] }
  0xc9   : > { %3966 = vmatprep.mubr.bf16.mxu1 %v1587_v31  ;;  %v1594_v35 = vrot.slane %v1592_v29, 4  ;;  %v785_v39 = vor.u32 %v784_v51, %v781_v42  ;;  %v1599_v40 = vrot.slane %v1597_v60, 3  ;;  %v1256_v41 = vshll.u32 %v994_v25, 16  ;;  %v969_v55 = vld [vmem:[#allocation2 + $0x28] sm:$0x1f] }
  0xca   : > { %3967 = vmatmul.mubr.bf16.gmra.mrb[40].mxu1 %v1251_v58  ;;  %v1261_v11 = vshrl.u32 %v995_v26, 16  ;;  %v1602_v44 = vrot.slane %v1600_v36, 4  ;;  %v1255_v54 = vrot.slane %v1253_v9, 4  ;;  %v1264_v47 = vshll.u32 %v995_v26, 16  ;;  %v1307_v28 = vld [vmem:[#allocation2 + $0x40] sm:$0xf8] }
  0xcb   : > { %v1595_v43 = vor.u32 %v1594_v35, %v1591_v32  ;;  %v786_v48 = vsel %vm514_vm1, %v777_v33, %v785_v39  ;;  %v1258_v5 = vrot.slane %v1256_v41, 5  ;;  %v1353_v0 = vrot.slane %v1351_v61, 3  ;;  %v1308_v42 = vld [vmem:[#allocation2 + $0x48] sm:$0xf] }
  0xcc   : > { %v1263_v49 = vrot.slane %v1261_v11, 4  ;;  %3814 = vmatmul.mubr.bf16.gmra.mrb[60].mxu0 %v786_v48  ;;  %v1603_v59 = vor.u32 %v1602_v44, %v1599_v40  ;;  %v1266_v58 = vrot.slane %v1264_v47, 5  ;;  %v1356_v45 = vrot.slane %v1354_v10, 4  ;;  %v13405_v60 = vld [vmem:[%s16719_s1 + $0x108] sm:$0xff]   ;;  %v970_v11 = vld [vmem:[#allocation2 + $0x30] sm:$0xf0] }
  0xcd   : > { %v1259_v1 = vor.u32 %v1258_v5, %v1255_v54  ;;  %3854 = vmatprep.mubr.bf16.mxu0 %v1349_v53  ;;  %v1012_v2 = vor.u32 %v1011_v46, %v14008_v50  ;;  %v1359_v3 = vshrl.u32 %v1304_v38, 16  ;;  %v1362_v4 = vshll.u32 %v1304_v38, 16  ;;  %v968_v53 = vld [vmem:[#allocation2 + $0x20] sm:$0xf0]  ;;  %v13408_v38 = vld [vmem:[%s16719_s1 + $0x150] sm:$0xff]  }
  0xce   : > { %v1604_v37 = vsel %vm514_vm1, %v1595_v43, %v1603_v59  ;;  %v1267_v57 = vor.u32 %v1266_v58, %v1263_v49  ;;  %v1357_v6 = vor.u32 %v1356_v45, %v1353_v0  ;;  %v1015_v8 = vshrl.u32 %v966_v62, 16  ;;  %v971_v47 = vld [vmem:[#allocation2 + $0x38] sm:$0x1f] }
  0xcf   : > { %3974 = vmatprep.mubr.bf16.mxu1 %v1604_v37  ;;  %v1013_v52 = vsel %vm996_vm2, %v1004_v7, %v1012_v2  ;;  %v1361_v61 = vrot.slane %v1359_v3, 3  ;;  %v1364_v10 = vrot.slane %v1362_v4, 4  ;;  %v1018_v12 = vshll.u32 %v966_v62, 16  ;;  %v13412_v59 = vld [vmem:[%s16719_s1 + $0x158] sm:$0xff]  }
  0xd0   : > { %v1268_v50 = vsel %vm996_vm2, %v1259_v1, %v1267_v57  ;;  %v1017_v13 = vrot.slane %v1015_v8, 4  ;;  %v1023_v15 = vshrl.u32 %v967_v14, 16  ;;  %v1026_v16 = vshll.u32 %v967_v14, 16  ;;  %v13409_v14 = vld [vmem:[%s16719_s1 + $0x110] sm:$0xff]   ;;  %v1782_v37 = vld [vmem:[#allocation2 + $0x18] sm:$0x1f] }
  0xd1   : > { %v1365_v56 = vor.u32 %v1364_v10, %v1361_v61  ;;  %v1020_v7 = vrot.slane %v1018_v12, 5  ;;  %v1368_v17 = vshrl.u32 %v1305_v63, 16  ;;  %v1371_v18 = vshll.u32 %v1305_v63, 16  ;;  %v1781_v1 = vld [vmem:[#allocation2 + $0x10] sm:$0xf0]  ;;  %v13413_v57 = vld [vmem:[%s16719_s1 + $0x118] sm:$0xff]  }
  0xd2   : > { %3975 = vmatmul.mubr.bf16.gmra.mrb[44].mxu1 %v1268_v50  ;;  %v1025_v19 = vrot.slane %v1023_v15, 4  ;;  %v1028_v20 = vrot.slane %v1026_v16, 5  ;;  %v1376_v21 = vshrl.u32 %v1306_v24, 16  ;;  %v1379_v22 = vshll.u32 %v1306_v24, 16  ;;  %v2454_v50 = vld [vmem:[#allocation2 + $0x20] sm:$0xf0] }
  0xd3   : > { %v1366_v23 = vsel %vm514_vm1, %v1357_v6, %v1365_v56  ;;  %v1021_v25 = vor.u32 %v1020_v7, %v1017_v13  ;;  %v1370_v26 = vrot.slane %v1368_v17, 3  ;;  %v1373_v27 = vrot.slane %v1371_v18, 4  ;;  %v13416_v56 = vld [vmem:[%s16719_s1 + $0x160] sm:$0xff]  }
  0xd4   : > { %3855 = vmatmul.mubr.bf16.vlgmr.msra.gmra.mrb[64].mxu0 %v1013_v52  ;;  %v1029_v29 = vor.u32 %v1028_v20, %v1025_v19  ;;  %v1378_v31 = vrot.slane %v1376_v21, 3  ;;  %v1381_v51 = vrot.slane %v1379_v22, 4  ;;  %v1032_v32 = vshrl.u32 %v968_v53, 16  ;;  %v2119_v20 = vld [vmem:[#allocation2 + $0x28] sm:$0xf] }
  0xd5   : > { %12358 = vmatpush3.bf16.msra.mxu0 %v13401_v30  ;;  %3862 = vmatprep.mubr.bf16.mxu0 %v1366_v23  ;;  %v1374_v33 = vor.u32 %v1373_v27, %v1370_v26  ;;  %v1035_v35 = vshll.u32 %v968_v53, 16  ;;  %v1040_v36 = vshrl.u32 %v969_v55, 16  ;;  %v1043_v9 = vshll.u32 %v969_v55, 16  ;;  %v2455_v30 = vld [vmem:[#allocation2 + $0x28] sm:$0xf] }
  0xd6   : > { %12359 = vmatprep.subr.bf16.mxu0 %v13404_v34  ;;  %v1382_v39 = vor.u32 %v1381_v51, %v1378_v31  ;;  %v1034_v40 = vrot.slane %v1032_v32, 4  ;;  %v1385_v41 = vshrl.u32 %v1307_v28, 16  ;;  %v1388_v54 = vshll.u32 %v1307_v28, 16  ;;  %v2118_v34 = vld [vmem:[#allocation2 + $0x20] sm:$0xf8]  ;;  %v13420_v32 = vld [vmem:[%s16719_s1 + $0x168] sm:$0xff]  }
  0xd7   : > { %v1037_v62 = vrot.slane %v1035_v35, 5  ;;  %v1042_v43 = vrot.slane %v1040_v36, 4  ;;  %v1045_v44 = vrot.slane %v1043_v9, 5  ;;  %v1030_v48 = vsel %vm996_vm2, %v1021_v25, %v1029_v29  ;;  %v1783_v21 = vld [vmem:[#allocation2 + $0x20] sm:$0xf0] }
  0xd8   : > { %v1387_v5 = vrot.slane %v1385_v41, 3  ;;  %v1393_v49 = vshrl.u32 %v1308_v42, 16  ;;  %v1396_v46 = vshll.u32 %v1308_v42, 16  ;;  %v1383_v58 = vsel %vm514_vm1, %v1374_v33, %v1382_v39  ;;  %v1784_v27 = vld [vmem:[#allocation2 + $0x28] sm:$0x1f]  ;;  %v13417_v28 = vld [vmem:[%s16719_s1 + $0x120] sm:$0xff]  }
  0xd9   : > { %12360 = vmatpush3.bf16.msra.mxu0 %v13405_v60  ;;  %v1038_v0 = vor.u32 %v1037_v62, %v1034_v40  ;;  %v1390_v45 = vrot.slane %v1388_v54, 4  ;;  %v1049_v63 = vshrl.u32 %v970_v11, 16  ;;  %v1052_v4 = vshll.u32 %v970_v11, 16  ;;  %v2456_v9 = vld [vmem:[#allocation2 + $0x30] sm:$0xf0] }
  0xda   : > { %12361 = vmatprep.subr.bf16.mxu0 %v13408_v38  ;;  %v1395_v2 = vrot.slane %v1393_v49, 3  ;;  %v1398_v3 = vrot.slane %v1396_v46, 4  ;;  %v1057_v24 = vshrl.u32 %v971_v47, 16  ;;  %v1046_v6 = vor.u32 %v1045_v44, %v1042_v43  ;;  %v2457_v41 = vld [vmem:[#allocation2 + $0x38] sm:$0xf]  ;;  %v13424_v46 = vld [vmem:[%s16719_s1 + $0x170] sm:$0xff]  }
  0xdb   : > { %v1391_v8 = vor.u32 %v1390_v45, %v1387_v5  ;;  %v1051_v52 = vrot.slane %v1049_v63, 4  ;;  %v1060_v61 = vshll.u32 %v971_v47, 16  ;;  %v1054_v12 = vrot.slane %v1052_v4, 5  ;;  %v2120_v54 = vld [vmem:[#allocation2 + $0x30] sm:$0xf8]  ;;  %v13421_v47 = vld [vmem:[%s16719_s1 + $0x128] sm:$0xff]  }
  0xdc   : > { %3863 = vmatmul.mubr.bf16.gmra.mrb[68].mxu0 %v1030_v48  ;;  %v1399_v10 = vor.u32 %v1398_v3, %v1395_v2  ;;  %v1814_v53 = vshrl.u32 %v1781_v1, 16  ;;  %v1059_v13 = vrot.slane %v1057_v24, 4  ;;  %v1817_v16 = vshll.u32 %v1781_v1, 16  ;;  %v13425_v45 = vld [vmem:[%s16719_s1 + $0x130] sm:$0xff]  }
  0xdd   : > { %12362 = vmatpush3.bf16.msra.mxu0 %v13409_v14  ;;  %3870 = vmatprep.mubr.bf16.mxu0 %v1383_v58  ;;  %v1062_v15 = vrot.slane %v1060_v61, 5  ;;  %v1822_v55 = vshrl.u32 %v1782_v37, 16  ;;  %v1825_v7 = vshll.u32 %v1782_v37, 16  ;;  %v1047_v17 = vsel %vm996_vm2, %v1038_v0, %v1046_v6  ;;  %v2121_v0 = vld [vmem:[#allocation2 + $0x38] sm:$0xf] }
  0xde   : > { %12363 = vmatprep.subr.bf16.mxu0 %v13412_v59  ;;  %v1400_v18 = vsel %vm514_vm1, %v1391_v8, %v1399_v10  ;;  %v1055_v19 = vor.u32 %v1054_v12, %v1051_v52  ;;  %v14060_v22 = vrot.slane %v1814_v53, 4  ;;  %v2518_v23 = vrot.slane %v2454_v50, 4  ;;  %v14082_v63 = vld [vmem:[#allocation2 + $0x10] sm:$0xf0]  ;;  %v1786_v52 = vld [vmem:[#allocation2 + $0x38] sm:$0x1f] }
  0xdf   : > { %v2519_v25 = vrot.slane %v2455_v30, 4  ;;  %v2151_v26 = vshrl.u32 %v2118_v34, 16  ;;  %v1063_v42 = vor.u32 %v1062_v15, %v1059_v13  ;;  %v1819_v29 = vrot.slane %v1817_v16, 5  ;;  %v1785_v24 = vld [vmem:[#allocation2 + $0x30] sm:$0xf0]  ;;  %v13428_v13 = vld [vmem:[%s16719_s1 + $0x178] sm:$0xff]  }
  0xe0   : > { %v1824_v31 = vrot.slane %v1822_v55, 4  ;;  %v2154_v51 = vshll.u32 %v2118_v34, 16  ;;  %v1827_v60 = vrot.slane %v1825_v7, 5  ;;  %v2159_v36 = vshrl.u32 %v2119_v20, 16  ;;  %v1638_v61 = vld [vmem:[#allocation2 + $0x18] sm:$0xf] }
  0xe1   : > { %12364 = vmatpush3.bf16.msra.mxu0 %v13413_v57  ;;  %v2520_v33 = vsel %vm883_vm0, %v2518_v23, %v2519_v25  ;;  %v2153_v35 = vrot.slane %v2151_v26, 3  ;;  %v2162_v39 = vshll.u32 %v2119_v20, 16  ;;  %v1831_v40 = vshrl.u32 %v1783_v21, 16  ;;  %v2458_v30 = vld [vmem:[#allocation2 + $0x40] sm:$0xf0]  ;;  %v13429_v25 = vld [vmem:[%s16719_s1 + $0x138] sm:$0xff]  }
  0xe2   : > { %12365 = vmatprep.subr.bf16.mxu0 %v13416_v56  ;;  %4176 = vmatprep.mubr.bf16.mxu1 %v2520_v33  ;;  %v2156_v38 = vrot.slane %v2154_v51, 4  ;;  %v2161_v11 = vrot.slane %v2159_v36, 3  ;;  %v1834_v62 = vshll.u32 %v1783_v21, 16  ;;  %v1839_v43 = vshrl.u32 %v1784_v27, 16  ;;  %v2459_v56 = vld [vmem:[#allocation2 + $0x48] sm:$0xf] }
  0xe3   : > { %v1842_v44 = vshll.u32 %v1784_v27, 16  ;;  %v2164_v5 = vrot.slane %v2162_v39, 4  ;;  %v1064_v49 = vsel %vm996_vm2, %v1055_v19, %v1063_v42  ;;  %v1820_v14 = vor.u32 %v1819_v29, %v14060_v22  ;;  %v2122_v20 = vld [vmem:[#allocation2 + $0x40] sm:$0xf8]  ;;  %v2123_v29 = vld [vmem:[#allocation2 + $0x48] sm:$0xf] }
  0xe4   : > { %3871 = vmatmul.mubr.bf16.gmra.mrb[72].mxu0 %v1047_v17  ;;  %v2157_v48 = vor.u32 %v2156_v38, %v2153_v35  ;;  %v1828_v59 = vor.u32 %v1827_v60, %v1824_v31  ;;  %v14077_v58 = vrot.slane %v1831_v40, 4  ;;  %v2521_v2 = vrot.slane %v2456_v9, 4  ;;  %v13432_v31 = vld [vmem:[%s16719_s1 + $0x200] sm:$0xff]   ;;  %v1640_v40 = vld [vmem:[#allocation2 + $0x28] sm:$0xf] }
  0xe5   : > { %12366 = vmatpush3.bf16.msra.mxu0 %v13417_v28  ;;  %3878 = vmatprep.mubr.bf16.mxu0 %v1400_v18  ;;  %v2165_v1 = vor.u32 %v2164_v5, %v2161_v11  ;;  %v2522_v3 = vrot.slane %v2457_v41, 4  ;;  %v2168_v4 = vshrl.u32 %v2120_v54, 16  ;;  %v14084_v37 = vrot.slane %v1834_v62, 5  ;;  %v14103_v51 = vld [vmem:[#allocation2 + $0x20] sm:$0xf0] }
  0xe6   : > { %12367 = vmatprep.subr.bf16.mxu0 %v13420_v32  ;;  %v1841_v57 = vrot.slane %v1839_v43, 4  ;;  %v1844_v6 = vrot.slane %v1842_v44, 5  ;;  %v2171_v8 = vshll.u32 %v2120_v54, 16  ;;  %v2176_v50 = vshrl.u32 %v2121_v0, 16  ;;  %v2460_v5 = vld [vmem:[#allocation2 + $0x50] sm:$0xf0] }
  0xe7   : > { %v2166_v10 = vsel %vm514_vm1, %v2157_v48, %v2165_v1  ;;  %v2523_v12 = vsel %vm883_vm0, %v2521_v2, %v2522_v3  ;;  %v2170_v53 = vrot.slane %v2168_v4, 3  ;;  %v1829_v15 = vsel %vm996_vm2, %v1820_v14, %v1828_v59  ;;  %v1787_v48 = vld [vmem:[#allocation2 + $0x40] sm:$0xf0]  ;;  %v2461_v59 = vld [vmem:[#allocation2 + $0x58] sm:$0xf] }
  0xe8   : > { %4177 = vmatmul.mubr.bf16.vlgmr.msra.gmra.mrb[48].mxu1 %v2166_v10  ;;  %v2173_v16 = vrot.slane %v2171_v8, 4  ;;  %v2179_v55 = vshll.u32 %v2121_v0, 16  ;;  %v1848_v34 = vshrl.u32 %v1785_v24, 16  ;;  %v2178_v7 = vrot.slane %v2176_v50, 3  ;;  %v1788_v1 = vld [vmem:[#allocation2 + $0x48] sm:$0x1f] }
  0xe9   : > { %12368 = vmatpush3.bf16.msra.mxu0 %v13421_v47  ;;  %4184 = vmatprep.mubr.bf16.mxu1 %v2523_v12  ;;  %v1851_v17 = vshll.u32 %v1785_v24, 16  ;;  %v1856_v18 = vshrl.u32 %v1786_v52, 16  ;;  %v1859_v19 = vshll.u32 %v1786_v52, 16  ;;  %v1701_v21 = vrot.slane %v14082_v63, 4  ;;  %v1641_v24 = vld [vmem:[#allocation2 + $0x30] sm:$0xf0] }
  0xea   : > { %12369 = vmatprep.subr.bf16.mxu0 %v13424_v46  ;;  %v2174_v22 = vor.u32 %v2173_v16, %v2170_v53  ;;  %v2181_v23 = vrot.slane %v2179_v55, 4  ;;  %v1702_v26 = vrot.slane %v1638_v61, 4  ;;  %v1837_v27 = vor.u32 %v14084_v37, %v14077_v58  ;;  %v13433_v46 = vld [vmem:[%s16719_s1 + $0x208] sm:$0xff]   ;;  %v2124_v58 = vld [vmem:[#allocation2 + $0x50] sm:$0xf8] }
  0xeb   : > { %v1845_v28 = vor.u32 %v1844_v6, %v1841_v57  ;;  %v14098_v42 = vrot.slane %v1848_v34, 4  ;;  %v2524_v60 = vrot.slane %v2458_v30, 4  ;;  %v2525_v33 = vrot.slane %v2459_v56, 4  ;;  %v2125_v57 = vld [vmem:[#allocation2 + $0x58] sm:$0xf] }
  0xec   : > { %3879 = vmatmul.mubr.bf16.gmra.mrb[76].mxu0 %v1064_v49  ;;  %v2182_v32 = vor.u32 %v2181_v23, %v2178_v7  ;;  %v2185_v35 = vshrl.u32 %v2122_v20, 16  ;;  %v1853_v36 = vrot.slane %v1851_v17, 5  ;;  %v1858_v9 = vrot.slane %v1856_v18, 4  ;;  %v1642_v6 = vld [vmem:[#allocation2 + $0x38] sm:$0xf] }
  0xed   : > { %12370 = vmatpush3.bf16.msra.mxu0 %v13425_v45  ;;  %4015 = vmatprep.mubr.bf16.mxu0 %v1829_v15  ;;  %v1861_v38 = vrot.slane %v1859_v19, 5  ;;  %v2188_v39 = vshll.u32 %v2122_v20, 16  ;;  %v2526_v11 = vsel %vm883_vm0, %v2524_v60, %v2525_v33  ;;  %v2193_v43 = vshrl.u32 %v2123_v29, 16  ;;  %v1789_v56 = vld [vmem:[#allocation2 + $0x50] sm:$0xf0] }
  0xee   : > { %12371 = vmatprep.subr.bf16.mxu0 %v13428_v13  ;;  %v2183_v41 = vsel %vm514_vm1, %v2174_v22, %v2182_v32  ;;  %v2187_v62 = vrot.slane %v2185_v35, 3  ;;  %v1703_v44 = vsel %vm883_vm0, %v1701_v21, %v1702_v26  ;;  %v2196_v47 = vshll.u32 %v2123_v29, 16  ;;  %v13434_v13 = vld [vmem:[%s16719_s1 + $0x210] sm:$0xff]   ;;  %v2462_v20 = vld [vmem:[#allocation2 + $0x60] sm:$0xf0]  ;;  %v13435_v21 = vld [vmem:[%s16719_s1 + $0x218] sm:$0xff]  }
  0xef   : > { %v2190_v54 = vrot.slane %v2188_v39, 4  ;;  %v1846_v49 = vsel %vm996_vm2, %v1837_v27, %v1845_v28  ;;  %v2195_v14 = vrot.slane %v2193_v43, 3  ;;  %v1704_v0 = vrot.slane %v14103_v51, 4  ;;  %v2463_v27 = vld [vmem:[#allocation2 + $0x68] sm:$0xf] }
  0xf0   : > { %4185 = vmatmul.mubr.bf16.gmra.mrb[52].mxu1 %v2183_v41  ;;  %v2198_v63 = vrot.slane %v2196_v47, 4  ;;  %v1705_v2 = vrot.slane %v1640_v40, 4  ;;  %v1854_v3 = vor.u32 %v1853_v36, %v14098_v42  ;;  %v1862_v4 = vor.u32 %v1861_v38, %v1858_v9  ;;  %v2126_v28 = vld [vmem:[#allocation2 + $0x60] sm:$0xf8]  ;;  %v1790_v32 = vld [vmem:[#allocation2 + $0x58] sm:$0x1f] }
  0xf1   : > { %12372 = vmatpush3.bf16.msra.mxu0 %v13429_v25  ;;  %4192 = vmatprep.mubr.bf16.mxu1 %v2526_v11  ;;  %v2191_v45 = vor.u32 %v2190_v54, %v2187_v62  ;;  %v1865_v37 = vshrl.u32 %v1787_v48, 16  ;;  %v2527_v52 = vrot.slane %v2460_v5, 4  ;;  %v2528_v61 = vrot.slane %v2461_v59, 4  ;;  %v2127_v36 = vld [vmem:[#allocation2 + $0x68] sm:$0xf] }
  0xf2   : > { %13101 = vmatprep.subr.bf16.mxu0 %v13432_v31  ;;  %v2199_v8 = vor.u32 %v2198_v63, %v2195_v14  ;;  %v2202_v10 = vshrl.u32 %v2124_v58, 16  ;;  %v1868_v12 = vshll.u32 %v1787_v48, 16  ;;  %v1873_v53 = vshrl.u32 %v1788_v1, 16  ;;  %v1791_v41 = vld [vmem:[#allocation2 + $0x60] sm:$0xf0] }
  0xf3   : > { %v1876_v50 = vshll.u32 %v1788_v1, 16  ;;  %v2205_v30 = vshll.u32 %v2124_v58, 16  ;;  %v1707_v15 = vrot.slane %v1641_v24, 4  ;;  %v2210_v34 = vshrl.u32 %v2125_v57, 16  ;;  %v14125_v48 = vld [vmem:[#allocation2 + $0x40] sm:$0xf0] }
  0xf4   : > { %4016 = vmatmul.mubr.bf16.vlgmr.msra.gmra.mrb[80].mxu0 %v1703_v44  ;;  %v2200_v16 = vsel %vm514_vm1, %v2191_v45, %v2199_v8  ;;  %v2204_v55 = vrot.slane %v2202_v10, 3  ;;  %v1708_v7 = vrot.slane %v1642_v6, 4  ;;  %v2529_v17 = vsel %vm883_vm0, %v2527_v52, %v2528_v61  ;;  %v1644_v14 = vld [vmem:[#allocation2 + $0x48] sm:$0xf]  ;;  %v2464_v63 = vld [vmem:[#allocation2 + $0x70] sm:$0xf0] }
  0xf5   : > { %13102 = vmatpush3.bf16.msra.mxu0 %v13432_v31  ;;  %4023 = vmatprep.mubr.bf16.mxu0 %v1846_v49  ;;  %v2207_v18 = vrot.slane %v2205_v30, 4  ;;  %v2213_v19 = vshll.u32 %v2125_v57, 16  ;;  %v1706_v22 = vsel %vm883_vm0, %v1704_v0, %v1705_v2  ;;  %v1863_v23 = vsel %vm996_vm2, %v1854_v3, %v1862_v4  ;;  %v1792_v49 = vld [vmem:[#allocation2 + $0x68] sm:$0x1f]  ;;  %v2128_v24 = vld [vmem:[#allocation2 + $0x70] sm:$0xf8] }
  0xf6   : > { %13103 = vmatprep.subr.bf16.mxu0 %v13433_v46  ;;  %v1867_v25 = vrot.slane %v1865_v37, 4  ;;  %v2212_v26 = vrot.slane %v2210_v34, 3  ;;  %v1870_v42 = vrot.slane %v1868_v12, 5  ;;  %v1875_v29 = vrot.slane %v1873_v53, 4  ;;  %v2465_v52 = vld [vmem:[#allocation2 + $0x78] sm:$0xf] }
  0xf7   : > { %v1878_v31 = vrot.slane %v1876_v50, 5  ;;  %v2215_v51 = vrot.slane %v2213_v19, 4  ;;  %v2208_v60 = vor.u32 %v2207_v18, %v2204_v55  ;;  %v1882_v33 = vshrl.u32 %v1789_v56, 16  ;;  %v2129_v50 = vld [vmem:[#allocation2 + $0x78] sm:$0xf]  ;;  %v13437_v30 = vld [vmem:[%s16719_s1 + $0x228] sm:$0xff]  }
  0xf8   : > { %4193 = vmatmul.mubr.bf16.gmra.mrb[56].mxu1 %v2200_v16  ;;  %v1885_v35 = vshll.u32 %v1789_v56, 16  ;;  %v2530_v38 = vrot.slane %v2462_v20, 4  ;;  %v2531_v39 = vrot.slane %v2463_v27, 4  ;;  %v2219_v40 = vshrl.u32 %v2126_v28, 16  ;;  %v13438_v18 = vld [vmem:[%s16719_s1 + $0x230] sm:$0xff]  }
  0xf9   : > { %13104 = vmatpush3.bf16.msra.mxu0 %v13433_v46  ;;  %4200 = vmatprep.mubr.bf16.mxu1 %v2529_v17  ;;  %v2216_v9 = vor.u32 %v2215_v51, %v2212_v26  ;;  %v1890_v11 = vshrl.u32 %v1790_v32, 16  ;;  %v1893_v62 = vshll.u32 %v1790_v32, 16  ;;  %v2222_v43 = vshll.u32 %v2126_v28, 16  ;;  %v13436_v46 = vld [vmem:[%s16719_s1 + $0x220] sm:$0xff]  }
  0xfa   : > { %13105 = vmatprep.subr.bf16.mxu0 %v13434_v13  ;;  %v1709_v44 = vsel %vm883_vm0, %v1707_v15, %v1708_v7  ;;  %v1871_v54 = vor.u32 %v1870_v42, %v1867_v25  ;;  %v1879_v47 = vor.u32 %v1878_v31, %v1875_v29  ;;  %v2227_v5 = vshrl.u32 %v2127_v36, 16  ;;  %v1793_v29 = vld [vmem:[#allocation2 + $0x70] sm:$0xf0] }
  0xfb   : > { %v2217_v59 = vsel %vm514_vm1, %v2208_v60, %v2216_v9  ;;  %v2221_v58 = vrot.slane %v2219_v40, 3  ;;  %v2224_v0 = vrot.slane %v2222_v43, 4  ;;  %v2230_v45 = vshll.u32 %v2127_v36, 16  ;;  %v2131_v43 = vld [vmem:[#allocation2 + $0x88] sm:$0xf] }
  0xfc   : > { %4024 = vmatmul.mubr.bf16.gmra.mrb[84].mxu0 %v1706_v22  ;;  %v1884_v1 = vrot.slane %v1882_v33, 4  ;;  %v1887_v2 = vrot.slane %v1885_v35, 5  ;;  %v2532_v3 = vsel %vm883_vm0, %v2530_v38, %v2531_v39  ;;  %v2229_v4 = vrot.slane %v2227_v5, 3  ;;  %v1646_v22 = vld [vmem:[#allocation2 + $0x58] sm:$0xf] }
  0xfd   : > { %4031 = vmatprep.mubr.bf16.mxu0 %v1863_v23  ;;  %13106 = vmatpush3.bf16.msra.mxu0 %v13434_v13  ;;  %v1892_v37 = vrot.slane %v1890_v11, 4  ;;  %v1895_v57 = vrot.slane %v1893_v62, 5  ;;  %v2232_v6 = vrot.slane %v2230_v45, 4  ;;  %v1899_v8 = vshrl.u32 %v1791_v41, 16  ;;  %v2130_v33 = vld [vmem:[#allocation2 + $0x80] sm:$0xf8] }
  0xfe   : > { %13107 = vmatprep.subr.bf16.mxu0 %v13435_v21  ;;  %v1880_v61 = vsel %vm996_vm2, %v1871_v54, %v1879_v47  ;;  %v1902_v10 = vshll.u32 %v1791_v41, 16  ;;  %v1907_v12 = vshrl.u32 %v1792_v49, 16  ;;  %v1910_v53 = vshll.u32 %v1792_v49, 16  ;;  %v1794_v39 = vld [vmem:[#allocation2 + $0x78] sm:$0x1f] }
  0xff   : > { %v1710_v13 = vrot.slane %v14125_v48, 4  ;;  %v2225_v15 = vor.u32 %v2224_v0, %v2221_v58  ;;  %v2233_v16 = vor.u32 %v2232_v6, %v2229_v4  ;;  %v2236_v55 = vshrl.u32 %v2128_v24, 16  ;;  %v2466_v11 = vld [vmem:[#allocation2 + $0x80] sm:$0xf0]  ;;  %v2467_v62 = vld [vmem:[#allocation2 + $0x88] sm:$0xf] }
 0x100   : > { %4201 = vmatmul.mubr.bf16.gmra.mrb[60].mxu1 %v2217_v59  ;;  %v1711_v34 = vrot.slane %v1644_v14, 4  ;;  %v2533_v56 = vrot.slane %v2464_v63, 4  ;;  %v2534_v7 = vrot.slane %v2465_v52, 4  ;;  %v2239_v17 = vshll.u32 %v2128_v24, 16  ;;  %v13439_v5 = vld [vmem:[%s16719_s1 + $0x238] sm:$0xff]  }
 0x101   : > { %13108 = vmatpush3.bf16.msra.mxu0 %v13435_v21  ;;  %4208 = vmatprep.mubr.bf16.mxu1 %v2532_v3  ;;  %v1888_v19 = vor.u32 %v1887_v2, %v1884_v1  ;;  %v1896_v20 = vor.u32 %v1895_v57, %v1892_v37  ;;  %v1645_v21 = vld [vmem:[#allocation2 + $0x50] sm:$0xf0]  ;;  %v1901_v23 = vrot.slane %v1899_v8, 4  ;;  %v2244_v25 = vshrl.u32 %v2129_v50, 16  ;;  %v1795_v3 = vld [vmem:[#allocation2 + $0x80] sm:$0xf0] }
 0x102   : > { %13109 = vmatprep.subr.bf16.mxu0 %v13436_v46  ;;  %v1904_v26 = vrot.slane %v1902_v10, 5  ;;  %v1909_v27 = vrot.slane %v1907_v12, 4  ;;  %v1912_v28 = vrot.slane %v1910_v53, 5  ;;  %v2247_v42 = vshll.u32 %v2129_v50, 16  ;;  %v1647_v24 = vld [vmem:[#allocation2 + $0x60] sm:$0xf0] }
 0x103   : > { %v2234_v31 = vsel %vm514_vm1, %v2225_v15, %v2233_v16  ;;  %v2238_v51 = vrot.slane %v2236_v55, 3  ;;  %v2241_v32 = vrot.slane %v2239_v17, 4  ;;  %v2246_v60 = vrot.slane %v2244_v25, 3  ;;  %v1648_v37 = vld [vmem:[#allocation2 + $0x68] sm:$0xf] }
 0x104   : > { %4032 = vmatmul.mubr.bf16.gmra.mrb[88].mxu0 %v1709_v44  ;;  %v1713_v35 = vrot.slane %v1645_v21, 4  ;;  %v1714_v36 = vrot.slane %v1646_v22, 4  ;;  %v2535_v9 = vsel %vm883_vm0, %v2533_v56, %v2534_v7  ;;  %v2249_v38 = vrot.slane %v2247_v42, 4  ;;  %v2469_v15 = vld [vmem:[#allocation2 + $0x98] sm:$0xf] }
 0x105   : > { %4039 = vmatprep.mubr.bf16.mxu0 %v1880_v61  ;;  %13110 = vmatpush3.bf16.msra.mxu0 %v13436_v46  ;;  %v1712_v40 = vsel %vm883_vm0, %v1710_v13, %v1711_v34  ;;  %v1897_v41 = vsel %vm996_vm2, %v1888_v19, %v1896_v20  ;;  %v1905_v44 = vor.u32 %v1904_v26, %v1901_v23  ;;  %v1916_v47 = vshrl.u32 %v1793_v29, 16  ;;  %v1796_v61 = vld [vmem:[#allocation2 + $0x88] sm:$0x1f]  ;;  %v2468_v13 = vld [vmem:[#allocation2 + $0x90] sm:$0xf0] }
 0x106   : > { %13111 = vmatprep.subr.bf16.mxu0 %v13437_v30  ;;  %v1913_v54 = vor.u32 %v1912_v28, %v1909_v27  ;;  %v2253_v48 = vshrl.u32 %v2130_v33, 16  ;;  %v2242_v49 = vor.u32 %v2241_v32, %v2238_v51  ;;  %v2250_v46 = vor.u32 %v2249_v38, %v2246_v60  ;;  %v2132_v16 = vld [vmem:[#allocation2 + $0x90] sm:$0xf8] }
 0x107   : > { %v1919_v14 = vshll.u32 %v1793_v29, 16  ;;  %v2256_v59 = vshll.u32 %v2130_v33, 16  ;;  %v1924_v58 = vshrl.u32 %v1794_v39, 16  ;;  %v2536_v0 = vrot.slane %v2466_v11, 4  ;;  %v1649_v32 = vld [vmem:[#allocation2 + $0x70] sm:$0xf0] }
 0x108   : > { %4209 = vmatmul.mubr.bf16.gmra.mrb[64].mxu1 %v2234_v31  ;;  %v2537_v45 = vrot.slane %v2467_v62, 4  ;;  %v2261_v63 = vshrl.u32 %v2131_v43, 16  ;;  %v1927_v1 = vshll.u32 %v1794_v39, 16  ;;  %v2264_v2 = vshll.u32 %v2131_v43, 16  ;;  %v1650_v39 = vld [vmem:[#allocation2 + $0x78] sm:$0xf] }
 0x109   : > { %13112 = vmatpush3.bf16.msra.mxu0 %v13437_v30  ;;  %4216 = vmatprep.mubr.bf16.mxu1 %v2535_v9  ;;  %v1715_v4 = vsel %vm883_vm0, %v1713_v35, %v1714_v36  ;;  %v2255_v57 = vrot.slane %v2253_v48, 3  ;;  %v2258_v6 = vrot.slane %v2256_v59, 4  ;;  %v1914_v10 = vsel %vm996_vm2, %v1905_v44, %v1913_v54  ;;  %v2134_v54 = vld [vmem:[#allocation2 + $0xa0] sm:$0xf8] }
 0x10a   : > { %13113 = vmatprep.subr.bf16.mxu0 %v13438_v18  ;;  %v2263_v8 = vrot.slane %v2261_v63, 3  ;;  %v2251_v12 = vsel %vm514_vm1, %v2242_v49, %v2250_v46  ;;  %v1918_v53 = vrot.slane %v1916_v47, 4  ;;  %v2266_v50 = vrot.slane %v2264_v2, 4  ;;  %v2135_v46 = vld [vmem:[#allocation2 + $0xa8] sm:$0xf] }
 0x10b   : > { %v1921_v55 = vrot.slane %v1919_v14, 5  ;;  %v1926_v34 = vrot.slane %v1924_v58, 4  ;;  %v2538_v56 = vsel %vm883_vm0, %v2536_v0, %v2537_v45  ;;  %v1929_v19 = vrot.slane %v1927_v1, 5  ;;  %v1798_v0 = vld [vmem:[#allocation2 + $0x98] sm:$0x1f] }
 0x10c   : > { %4040 = vmatmul.mubr.bf16.gmra.mrb[92].mxu0 %v1712_v40  ;;  %v1933_v21 = vshrl.u32 %v1795_v3, 16  ;;  %v1936_v22 = vshll.u32 %v1795_v3, 16  ;;  %v1941_v23 = vshrl.u32 %v1796_v61, 16  ;;  %v2259_v25 = vor.u32 %v2258_v6, %v2255_v57  ;;  %v2470_v45 = vld [vmem:[#allocation2 + $0xa0] sm:$0xf0] }
 0x10d   : > { %4047 = vmatprep.mubr.bf16.mxu0 %v1897_v41  ;;  %13114 = vmatpush3.bf16.msra.mxu0 %v13438_v18  ;;  %v2133_v18 = vld [vmem:[#allocation2 + $0x98] sm:$0xf]  ;;  %v2267_v26 = vor.u32 %v2266_v50, %v2263_v8  ;;  %v1944_v28 = vshll.u32 %v1796_v61, 16  ;;  %v1716_v42 = vrot.slane %v1647_v24, 4  ;;  %v1717_v29 = vrot.slane %v1648_v37, 4 }
 0x10e   : > { %13115 = vmatprep.subr.bf16.mxu0 %v13439_v5  ;;  %v2270_v31 = vshrl.u32 %v2132_v16, 16  ;;  %v2273_v51 = vshll.u32 %v2132_v16, 16  ;;  %v2539_v60 = vrot.slane %v2468_v13, 4  ;;  %v2540_v33 = vrot.slane %v2469_v15, 4  ;;  %v1797_v41 = vld [vmem:[#allocation2 + $0x90] sm:$0xf0] }
 0x10f   : > { %v2278_v35 = vshrl.u32 %v2133_v18, 16  ;;  %v2281_v36 = vshll.u32 %v2133_v18, 16  ;;  %v1922_v9 = vor.u32 %v1921_v55, %v1918_v53  ;;  %v1930_v38 = vor.u32 %v1929_v19, %v1926_v34  ;;  %v2471_v3 = vld [vmem:[#allocation2 + $0xa8] sm:$0xf]  ;;  %v14159_v61 = vld [vmem:[#allocation2 + $0x80] sm:$0xf0] }
 0x110   : > { %4217 = vmatmul.mubr.bf16.gmra.mrb[68].mxu1 %v2251_v12  ;;  %v1935_v40 = vrot.slane %v1933_v21, 4  ;;  %v2268_v11 = vsel %vm514_vm1, %v2259_v25, %v2267_v26  ;;  %v1938_v62 = vrot.slane %v1936_v22, 5  ;;  %v1943_v43 = vrot.slane %v1941_v23, 4  ;;  %v1799_v23 = vld [vmem:[#allocation2 + $0xa0] sm:$0xf0] }
 0x111   : > { %13116 = vmatpush3.bf16.msra.mxu0 %v13439_v5  ;;  %4224 = vmatprep.mubr.bf16.mxu1 %v2538_v56  ;;  %v1946_v44 = vrot.slane %v1944_v28, 5  ;;  %v2272_v47 = vrot.slane %v2270_v31, 3  ;;  %v2275_v48 = vrot.slane %v2273_v51, 4  ;;  %v2280_v5 = vrot.slane %v2278_v35, 3  ;;  %v1652_v28 = vld [vmem:[#allocation2 + $0x88] sm:$0xf] }
 0x112   : > { %v2283_v49 = vrot.slane %v2281_v36, 4  ;;  %v1718_v14 = vsel %vm883_vm0, %v1716_v42, %v1717_v29  ;;  %v1719_v59 = vrot.slane %v1649_v32, 4  ;;  %v2541_v58 = vsel %vm883_vm0, %v2539_v60, %v2540_v33  ;;  %v14169_v29 = vld [vmem:[#allocation2 + $0x90] sm:$0xf0]  ;;  %v1800_v31 = vld [vmem:[#allocation2 + $0xa8] sm:$0x1f] }
 0x113   : > { %v1931_v63 = vsel %vm996_vm2, %v1922_v9, %v1930_v38  ;;  %v1720_v1 = vrot.slane %v1650_v39, 4  ;;  %v2290_v24 = vshll.u32 %v2134_v54, 16  ;;  %v1939_v37 = vor.u32 %v1938_v62, %v1935_v40  ;;  %v2472_v51 = vld [vmem:[#allocation2 + $0xb0] sm:$0xf0]  ;;  %v2137_v9 = vld [vmem:[#allocation2 + $0xb8] sm:$0xf] }
 0x114   : > { %v12149_v52 = vpop.f32.mrb[0].mxu0  ;;  %4048 = vmatmul.mubr.bf16.gmra.mrb[96].mxu0 %v1715_v4  ;;  %v2287_v4 = vshrl.u32 %v2134_v54, 16  ;;  %v1947_v57 = vor.u32 %v1946_v44, %v1943_v43  ;;  %v1950_v8 = vshrl.u32 %v1797_v41, 16  ;;  %v2284_v12 = vor.u32 %v2283_v49, %v2280_v5  ;;  %v2136_v32 = vld [vmem:[#allocation2 + $0xb0] sm:$0xf8] }
 0x115   : > { %v12150_v30 = vpop.f32.mrb[1].mxu0  ;;  %4055 = vmatprep.mubr.bf16.mxu0 %v1914_v10  ;;  %v2276_v10 = vor.u32 %v2275_v48, %v2272_v47  ;;  %v1958_v15 = vshrl.u32 %v1798_v0, 16  ;;  %v2542_v16 = vrot.slane %v2470_v45, 4  ;;  %v2543_v55 = vrot.slane %v2471_v3, 4  ;;  %v2473_v62 = vld [vmem:[#allocation2 + $0xb8] sm:$0xf] }
 0x116   : > { %v14151_v7 = vadd.f32 %v12150_v30, %v12149_v52  ;;  %v12152_v17 = vpop.f32.mrb[2].mxu0  ;;  %v2295_v52 = vshrl.u32 %v2135_v46, 16  ;;  %v1953_v30 = vshll.u32 %v1797_v41, 16  ;;  %v2298_v34 = vshll.u32 %v2135_v46, 16  ;;  %v14172_v5 = vld [vmem:[#allocation2 + $0x98] sm:$0xf] }
 0x117   : > { %v12153_v20 = vpop.f32.mrb[3].mxu0  ;;  %v2289_v18 = vrot.slane %v2287_v4, 3  ;;  %v2292_v19 = vrot.slane %v2290_v24, 4  ;;  %v1721_v25 = vsel %vm883_vm0, %v1719_v59, %v1720_v1  ;;  %v1948_v26 = vsel %vm996_vm2, %v1939_v37, %v1947_v57  ;;  %v14179_v57 = vld [vmem:[#allocation2 + $0xa0] sm:$0xf0] }
 0x118   : > { %v14153_v27 = vadd.f32 %v12153_v20, %v12152_v17  ;;  %4225 = vmatmul.mubr.bf16.gmra.mrb[72].mxu1 %v2268_v11  ;;  %v1961_v17 = vshll.u32 %v1798_v0, 16  ;;  %v1722_v20 = vrot.slane %v14159_v61, 4  ;;  %v2297_v21 = vrot.slane %v2295_v52, 3 }
 0x119   : > { %4232 = vmatprep.mubr.bf16.mxu1 %v2541_v58  ;;  %v2300_v22 = vrot.slane %v2298_v34, 4  ;;  %v2285_v42 = vsel %vm514_vm1, %v2276_v10, %v2284_v12  ;;  %v1952_v60 = vrot.slane %v1950_v8, 4  ;;  %v1955_v33 = vrot.slane %v1953_v30, 5  ;;  %v2138_v12 = vld [vmem:[#allocation2 + $0xc0] sm:$0xf8] }
 0x11a   : > { %v1960_v35 = vrot.slane %v1958_v15, 4  ;;  %v2544_v36 = vsel %vm883_vm0, %v2542_v16, %v2543_v55  ;;  %v1963_v38 = vrot.slane %v1961_v17, 5  ;;  %v2293_v39 = vor.u32 %v2292_v19, %v2289_v18  ;;  %v1802_v16 = vld [vmem:[#allocation2 + $0xb8] sm:$0x1f]  ;;  %v2139_v55 = vld [vmem:[#allocation2 + $0xc8] sm:$0xf] }
 0x11b   : > { %v1967_v41 = vshrl.u32 %v1799_v23, 16  ;;  %v1970_v11 = vshll.u32 %v1799_v23, 16  ;;  %v2301_v43 = vor.u32 %v2300_v22, %v2297_v21  ;;  %v1975_v54 = vshrl.u32 %v1800_v31, 16  ;;  %v14184_v18 = vld [vmem:[#allocation2 + $0xa8] sm:$0xf] }
 0x11c   : > { %v12155_v2 = vpop.f32.mrb[4].mxu0  ;;  %4056 = vmatmul.mubr.bf16.gmra.mrb[100].mxu0 %v1718_v14  ;;  %v1978_v47 = vshll.u32 %v1800_v31, 16  ;;  %v2304_v48 = vshrl.u32 %v2136_v32, 16  ;;  %v2307_v14 = vshll.u32 %v2136_v32, 16  ;;  %v2312_v59 = vshrl.u32 %v2137_v9, 16 }
 0x11d   : > { %v12156_v6 = vpop.f32.mrb[5].mxu0  ;;  %4063 = vmatprep.mubr.bf16.mxu0 %v1931_v63  ;;  %v2315_v58 = vshll.u32 %v2137_v9, 16  ;;  %v1723_v0 = vrot.slane %v1652_v28, 4  ;;  %v1725_v45 = vrot.slane %v14169_v29, 4  ;;  %v2545_v1 = vrot.slane %v2472_v51, 4 }
 0x11e   : > { %v14161_v53 = vadd.f32 %v12156_v6, %v12155_v2  ;;  %v12158_v50 = vpop.f32.mrb[6].mxu0  ;;  %v2546_v2 = vrot.slane %v2473_v62, 4  ;;  %v1956_v3 = vor.u32 %v1955_v33, %v1952_v60  ;;  %v1964_v4 = vor.u32 %v1963_v38, %v1960_v35  ;;  %v1801_v6 = vld [vmem:[#allocation2 + $0xb0] sm:$0xf0]  ;;  %v2474_v22 = vld [vmem:[#allocation2 + $0xc0] sm:$0xf0] }
 0x11f   : > { %v12159_v13 = vpop.f32.mrb[7].mxu0  ;;  %v1969_v37 = vrot.slane %v1967_v41, 4  ;;  %v2302_v8 = vsel %vm514_vm1, %v2293_v39, %v2301_v43  ;;  %v1972_v52 = vrot.slane %v1970_v11, 5  ;;  %v1977_v61 = vrot.slane %v1975_v54, 4  ;;  %v2475_v23 = vld [vmem:[#allocation2 + $0xc8] sm:$0xf] }
 0x120   : > { %16726 = vst [vmem:[#allocation5_spill] sm:$0xff] %v14161_v53  ;;  %v14163_v56 = vadd.f32 %v12159_v13, %v12158_v50  ;;  %4233 = vmatmul.mubr.bf16.gmra.mrb[76].mxu1 %v2285_v42  ;;  %v1980_v10 = vrot.slane %v1978_v47, 5  ;;  %v2306_v50 = vrot.slane %v2304_v48, 3  ;;  %v2309_v30 = vrot.slane %v2307_v14, 4  ;;  %v14191_v62 = vld [vmem:[#allocation2 + $0xb0] sm:$0xf0] }
 0x121   : > { %4240 = vmatprep.mubr.bf16.mxu1 %v2544_v36  ;;  %v2314_v13 = vrot.slane %v2312_v59, 3  ;;  %v2317_v15 = vrot.slane %v2315_v58, 4  ;;  %v1724_v34 = vsel %vm883_vm0, %v1722_v20, %v1723_v0  ;;  %v1726_v17 = vrot.slane %v14172_v5, 4 }
 0x122   : > { %16727 = vst [vmem:[#allocation6_spill] sm:$0xff] %v14163_v56  ;;  %v1728_v19 = vrot.slane %v14179_v57, 4  ;;  %v2547_v21 = vsel %vm883_vm0, %v2545_v1, %v2546_v2  ;;  %v1984_v28 = vshrl.u32 %v1801_v6, 16  ;;  %v1987_v42 = vshll.u32 %v1801_v6, 16  ;;  %v2140_v6 = vld [vmem:[#allocation2 + $0xd0] sm:$0xf8] }
 0x123   : > { %v2321_v31 = vshrl.u32 %v2138_v12, 16  ;;  %v1973_v51 = vor.u32 %v1972_v52, %v1969_v37  ;;  %v2324_v20 = vshll.u32 %v2138_v12, 16  ;;  %v2329_v60 = vshrl.u32 %v2139_v55, 16  ;;  %v2477_v37 = vld [vmem:[#allocation2 + $0xd8] sm:$0xf] }
 0x124   : > { %v12161_v40 = vpop.f32.mrb[8].mxu0  ;;  %4064 = vmatmul.mubr.bf16.gmra.mrb[104].mxu0 %v1721_v25  ;;  %v1965_v25 = vsel %vm996_vm2, %v1956_v3, %v1964_v4  ;;  %v2332_v33 = vshll.u32 %v2139_v55, 16  ;;  %v1981_v35 = vor.u32 %v1980_v10, %v1977_v61  ;;  %v2310_v36 = vor.u32 %v2309_v30, %v2306_v50  ;;  %v2476_v4 = vld [vmem:[#allocation2 + $0xd0] sm:$0xf0]  ;;  %v2141_v12 = vld [vmem:[#allocation2 + $0xd8] sm:$0xf] }
 0x125   : > { %v12162_v44 = vpop.f32.mrb[9].mxu0  ;;  %4071 = vmatprep.mubr.bf16.mxu0 %v1948_v26  ;;  %v2318_v9 = vor.u32 %v2317_v15, %v2314_v13  ;;  %v1992_v41 = vshrl.u32 %v1802_v16, 16  ;;  %v1995_v11 = vshll.u32 %v1802_v16, 16  ;;  %v2548_v43 = vrot.slane %v2474_v22, 4  ;;  %v14224_v57 = vld [vmem:[#allocation2 + $0xc8] sm:$0xf] }
 0x126   : > { %v14174_v49 = vadd.f32 %v12162_v44, %v12161_v40  ;;  %v12164_v46 = vpop.f32.mrb[10].mxu0  ;;  %v2549_v44 = vrot.slane %v2475_v23, 4  ;;  %v1729_v54 = vrot.slane %v14184_v18, 4  ;;  %v14196_v48 = vrot.slane %v1984_v28, 4  ;;  %v1658_v28 = vld [vmem:[#allocation2 + $0xb8] sm:$0xf] }
 0x127   : > { %v12165_v63 = vpop.f32.mrb[11].mxu0  ;;  %v14198_v5 = vrot.slane %v1987_v42, 5  ;;  %v2323_v14 = vrot.slane %v2321_v31, 3  ;;  %v2326_v59 = vrot.slane %v2324_v20, 4  ;;  %v2331_v58 = vrot.slane %v2329_v60, 3 }
 0x128   : > { %16728 = vst [vmem:[#allocation7_spill] sm:$0xff] %v14174_v49  ;;  %v14177_v24 = vadd.f32 %v12165_v63, %v12164_v46  ;;  %4241 = vmatmul.mubr.bf16.gmra.mrb[80].mxu1 %v2302_v8  ;;  %v1803_v46 = vld [vmem:[#allocation2 + $0xc0] sm:$0xf0]  ;;  %v2334_v0 = vrot.slane %v2332_v33, 4  ;;  %v1804_v63 = vld [vmem:[#allocation2 + $0xc8] sm:$0x1f]  ;;  %v1727_v1 = vsel %vm883_vm0, %v1725_v45, %v1726_v17  ;;  %v1982_v2 = vsel %vm996_vm2, %v1973_v51, %v1981_v35 }
 0x129   : > { %4248 = vmatprep.mubr.bf16.mxu1 %v2547_v21  ;;  %v2319_v3 = vsel %vm514_vm1, %v2310_v36, %v2318_v9  ;;  %v1994_v8 = vrot.slane %v1992_v41, 4  ;;  %v1997_v52 = vrot.slane %v1995_v11, 5  ;;  %v2550_v61 = vsel %vm883_vm0, %v2548_v43, %v2549_v44  ;;  %v14215_v9 = vld [vmem:[#allocation2 + $0xc0] sm:$0xf0]  ;;  %v1805_v43 = vld [vmem:[#allocation2 + $0xd0] sm:$0xf0] }
 0x12a   : > { %16729 = vst [vmem:[#allocation8_spill] sm:$0xff] %v14177_v24  ;;  %v2001_v10 = vshrl.u32 %v1803_v46, 16  ;;  %v1731_v50 = vrot.slane %v14191_v62, 4  ;;  %v2004_v13 = vshll.u32 %v1803_v46, 16  ;;  %v2009_v29 = vshrl.u32 %v1804_v63, 16 }
 0x12b   : > { %v2012_v15 = vshll.u32 %v1804_v63, 16  ;;  %v1990_v45 = vor.u32 %v14198_v5, %v14196_v48  ;;  %v2327_v16 = vor.u32 %v2326_v59, %v2323_v14  ;;  %v2335_v55 = vor.u32 %v2334_v0, %v2331_v58  ;;  %v2142_v44 = vld [vmem:[#allocation2 + $0xe0] sm:$0xf8]  ;;  %v2143_v58 = vld [vmem:[#allocation2 + $0xe8] sm:$0xf] }
 0x12c   : > { %v12167_v26 = vpop.f32.mrb[12].mxu0  ;;  %4072 = vmatmul.mubr.bf16.gmra.mrb[108].mxu0 %v1724_v34  ;;  %v2338_v17 = vshrl.u32 %v2140_v6, 16  ;;  %v2341_v22 = vshll.u32 %v2140_v6, 16  ;;  %v2346_v23 = vshrl.u32 %v2141_v12, 16  ;;  %v14211_v31 = vrot.slane %v2001_v10, 4 }
 0x12d   : > { %v12168_v32 = vpop.f32.mrb[13].mxu0  ;;  %4079 = vmatprep.mubr.bf16.mxu0 %v1965_v25  ;;  %v2349_v25 = vshll.u32 %v2141_v12, 16  ;;  %v2551_v51 = vrot.slane %v2476_v4, 4  ;;  %v2006_v33 = vrot.slane %v2004_v13, 5  ;;  %v2011_v35 = vrot.slane %v2009_v29, 4 }
 0x12e   : > { %v14189_v38 = vadd.f32 %v12168_v32, %v12167_v26  ;;  %v12170_v39 = vpop.f32.mrb[14].mxu0  ;;  %v1998_v26 = vor.u32 %v1997_v52, %v1994_v8  ;;  %v2552_v32 = vrot.slane %v2477_v37, 4  ;;  %v2014_v36 = vrot.slane %v2012_v15, 5  ;;  %v2478_v52 = vld [vmem:[#allocation2 + $0xe0] sm:$0xf0] }
 0x12f   : > { %v12171_v40 = vpop.f32.mrb[15].mxu0  ;;  %v2340_v11 = vrot.slane %v2338_v17, 3  ;;  %v2343_v46 = vrot.slane %v2341_v22, 4  ;;  %v2348_v14 = vrot.slane %v2346_v23, 3  ;;  %v2351_v59 = vrot.slane %v2349_v25, 4 }
 0x130   : > { %16730 = vst [vmem:[#allocation9_spill] sm:$0xff] %v14189_v38  ;;  %v14194_v47 = vadd.f32 %v12171_v40, %v12170_v39  ;;  %4249 = vmatmul.mubr.bf16.gmra.mrb[84].mxu1 %v2319_v3  ;;  %v1730_v39 = vsel %vm883_vm0, %v1728_v19, %v1729_v54  ;;  %v2336_v40 = vsel %vm514_vm1, %v2327_v16, %v2335_v55  ;;  %v1732_v63 = vrot.slane %v1658_v28, 4  ;;  %v2625_v56 = vld [vmem:[#allocation2 + $0xf8] sm:$0x1f] }
 0x131   : > { %4256 = vmatprep.mubr.bf16.mxu1 %v2550_v61  ;;  %v1999_v0 = vsel %vm996_vm2, %v1990_v45, %v1998_v26  ;;  %v1734_v19 = vrot.slane %v14215_v9, 4  ;;  %v2553_v54 = vsel %vm883_vm0, %v2551_v51, %v2552_v32  ;;  %v2007_v3 = vor.u32 %v2006_v33, %v14211_v31  ;;  %v2479_v61 = vld [vmem:[#allocation2 + $0xe8] sm:$0xf]  ;;  %v1807_v26 = vld [vmem:[#allocation2 + $0xe0] sm:$0xf0] }
 0x132   : > { %16731 = vst [vmem:[#allocation10_spill] sm:$0xff] %v14194_v47  ;;  %v2015_v4 = vor.u32 %v2014_v36, %v2011_v35  ;;  %v2018_v8 = vshrl.u32 %v1805_v43, 16  ;;  %v2355_v12 = vshrl.u32 %v2142_v44, 16  ;;  %v2363_v13 = vshrl.u32 %v2143_v58, 16  ;;  %v1808_v32 = vld [vmem:[#allocation2 + $0xe8] sm:$0x1f] }
 0x133   : > { %v2366_v29 = vshll.u32 %v2143_v58, 16  ;;  %v2344_v15 = vor.u32 %v2343_v46, %v2340_v11  ;;  %v2352_v45 = vor.u32 %v2351_v59, %v2348_v14  ;;  %v2554_v23 = vrot.slane %v2478_v52, 4 }
 0x134   : > { %v12173_v30 = vpop.f32.mrb[16].mxu0  ;;  %4080 = vmatmul.mubr.bf16.gmra.mrb[112].mxu0 %v1727_v1  ;;  %v2555_v25 = vrot.slane %v2479_v61, 4  ;;  %v1733_v28 = vsel %vm883_vm0, %v1731_v50, %v1732_v63  ;;  %v2357_v33 = vrot.slane %v2355_v12, 3  ;;  %v2365_v36 = vrot.slane %v2363_v13, 3  ;;  %v2480_v50 = vld [vmem:[#allocation2 + $0xf0] sm:$0xf0] }
 0x135   : > { %v12174_v34 = vpop.f32.mrb[17].mxu0  ;;  %4087 = vmatprep.mubr.bf16.mxu0 %v1982_v2  ;;  %v1806_v2 = vld [vmem:[#allocation2 + $0xd8] sm:$0x1f] }
 0x136   : > { %v14209_v18 = vadd.f32 %v12174_v34, %v12173_v30  ;;  %v12176_v21 = vpop.f32.mrb[18].mxu0  ;;  %v2358_v30 = vshll.u32 %v2142_v44, 16  ;;  %v2021_v34 = vshll.u32 %v1805_v43, 16  ;;  %v2029_v22 = vshll.u32 %v1806_v2, 16  ;;  %v2144_v44 = vld [vmem:[#allocation2 + $0xf0] sm:$0xf8] }
 0x137   : > { %v12177_v42 = vpop.f32.mrb[19].mxu0  ;;  %v2020_v43 = vrot.slane %v2018_v8, 4  ;;  %v2556_v58 = vsel %vm883_vm0, %v2554_v23, %v2555_v25  ;;  %v2372_v12 = vshrl.u32 %v2144_v44, 16 }
 0x138   : > { %v12285_v20 = vpop.f32.mrb[0].mxu1  ;;  %v14213_v60 = vadd.f32 %v12177_v42, %v12176_v21  ;;  %4257 = vmatmul.mubr.bf16.gmra.mrb[88].mxu1 %v2336_v40  ;;  %v2026_v21 = vshrl.u32 %v1806_v2, 16  ;;  %v1735_v42 = vrot.slane %v14224_v57, 4  ;;  %v2360_v35 = vrot.slane %v2358_v30, 4 }
 0x139   : > { %v12286_v41 = vpop.f32.mrb[1].mxu1  ;;  %4264 = vmatprep.mubr.bf16.mxu1 %v2553_v54  ;;  %v2016_v40 = vsel %vm996_vm2, %v2007_v3, %v2015_v4  ;;  %v2031_v14 = vrot.slane %v2029_v22, 5  ;;  %v2035_v54 = vshrl.u32 %v1807_v26, 16  ;;  %v2038_v2 = vshll.u32 %v1807_v26, 16  ;;  %v2481_v4 = vld [vmem:[#allocation2 + $0xf8] sm:$0xf] }
 0x13a   : > { %v14221_v48 = vadd.f32 %v12286_v41, %v12285_v20  ;;  %v12288_v5 = vpop.f32.mrb[2].mxu1  ;;  %v2353_v41 = vsel %vm514_vm1, %v2344_v15, %v2352_v45  ;;  %v2028_v46 = vrot.slane %v2026_v21, 4  ;;  %v2043_v3 = vshrl.u32 %v1808_v32, 16 }
 0x13b   : > { %v12289_v1 = vpop.f32.mrb[3].mxu1  ;;  %v2361_v8 = vor.u32 %v2360_v35, %v2357_v33  ;;  %v2557_v22 = vrot.slane %v2480_v50, 4  ;;  %v2558_v23 = vrot.slane %v2481_v4, 4 }
 0x13c   : > { %v14229_v37 = vadd.f32 %v12289_v1, %v12288_v5  ;;  %v12179_v6 = vpop.f32.mrb[20].mxu0  ;;  %4088 = vmatmul.mubr.bf16.gmra.mrb[116].mxu0 %v1730_v39  ;;  %v2368_v39 = vrot.slane %v2366_v29, 4  ;;  %v2023_v5 = vrot.slane %v2021_v34, 5  ;;  %v2375_v29 = vshll.u32 %v2144_v44, 16 }
 0x13d   : > { %v12180_v10 = vpop.f32.mrb[21].mxu0  ;;  %4095 = vmatprep.mubr.bf16.mxu0 %v1999_v0  ;;  %v2145_v0 = vld [vmem:[#allocation2 + $0xf8] sm:$0xf]  ;;  %v2032_v34 = vor.u32 %v2031_v14, %v2028_v46  ;;  %v2045_v33 = vrot.slane %v2043_v3, 4 }
 0x13e   : > { %v14231_v16 = vadd.f32 %v12180_v10, %v12179_v6  ;;  %v12182_v55 = vpop.f32.mrb[22].mxu0  ;;  %v14246_v6 = vld [vmem:[#allocation2 + $0xd0] sm:$0xf0]  ;;  %v2369_v52 = vor.u32 %v2368_v39, %v2365_v36  ;;  %v2046_v10 = vshll.u32 %v1808_v32, 16  ;;  %v2380_v15 = vshrl.u32 %v2145_v0, 16 }
 0x13f   : > { %v12183_v17 = vpop.f32.mrb[23].mxu0  ;;  %v2383_v45 = vshll.u32 %v2145_v0, 16  ;;  %v1737_v25 = vrot.slane %v14246_v6, 4  ;;  %v14257_v32 = vrot.slane %v2038_v2, 5  ;;  %v1809_v36 = vld [vmem:[#allocation2 + $0xf0] sm:$0xf0]  ;;  %v2559_v0 = vsel %vm883_vm0, %v2557_v22, %v2558_v23 }
 0x140   : > { %v12291_v31 = vpop.f32.mrb[4].mxu1  ;;  %v14237_v51 = vadd.f32 %v12183_v17, %v12182_v55  ;;  %4265 = vmatmul.mubr.bf16.gmra.mrb[92].mxu1 %v2353_v41  ;;  %v2024_v55 = vor.u32 %v2023_v5, %v2020_v43  ;;  %v14250_v17 = vld [vmem:[#allocation2 + $0xd8] sm:$0xf]  ;;  %v2048_v35 = vrot.slane %v2046_v10, 5  ;;  %v2146_v39 = vld [vmem:[#allocation2 + $0x100] sm:$0xf8]  ;;  %v1736_v5 = vsel %vm883_vm0, %v1734_v19, %v1735_v42 }
 0x141   : > { %v12292_v20 = vpop.f32.mrb[5].mxu1  ;;  %4272 = vmatprep.mubr.bf16.mxu1 %v2556_v58  ;;  %v2147_v41 = vld [vmem:[#allocation2 + $0x108] sm:$0xf]  ;;  %v2374_v43 = vrot.slane %v2372_v12, 3  ;;  %v2382_v50 = vrot.slane %v2380_v15, 3  ;;  %v2385_v44 = vrot.slane %v2383_v45, 4 }
 0x142   : > { %v14241_v11 = vadd.f32 %v12292_v20, %v12291_v31  ;;  %v12294_v62 = vpop.f32.mrb[6].mxu1  ;;  %v14255_v31 = vrot.slane %v2035_v54, 4  ;;  %v14259_v20 = vld [vmem:[#allocation2 + $0xe0] sm:$0xf0]  ;;  %v2033_v46 = vsel %vm996_vm2, %v2024_v55, %v2032_v34  ;;  %v1738_v14 = vrot.slane %v14250_v17, 4 }
 0x143   : > { %v12295_v59 = vpop.f32.mrb[7].mxu1  ;;  %v14269_v58 = vld [vmem:[#allocation2 + $0xe8] sm:$0xf]  ;;  %v2482_v54 = vld [vmem:[#allocation2 + $0x100] sm:$0xf0]  ;;  %v2389_v42 = vshrl.u32 %v2146_v39, 16  ;;  %v2049_v4 = vor.u32 %v2048_v35, %v2045_v33  ;;  %v2386_v15 = vor.u32 %v2385_v44, %v2382_v50 }
 0x144   : > { %v14244_v63 = vadd.f32 %v12295_v59, %v12294_v62  ;;  %v12185_v1 = vpop.f32.mrb[24].mxu0  ;;  %4096 = vmatmul.mubr.bf16.gmra.mrb[120].mxu0 %v1733_v28  ;;  %v2370_v28 = vsel %vm514_vm1, %v2361_v8, %v2369_v52  ;;  %v2041_v57 = vor.u32 %v14257_v32, %v14255_v31  ;;  %v2483_v19 = vld [vmem:[#allocation2 + $0x108] sm:$0xf]  ;;  %v2397_v10 = vshrl.u32 %v2147_v41, 16 }
 0x145   : > { %v12186_v61 = vpop.f32.mrb[25].mxu0  ;;  %4103 = vmatprep.mubr.bf16.mxu0 %v2016_v40  ;;  %v2377_v40 = vrot.slane %v2375_v29, 4  ;;  %v2400_v12 = vshll.u32 %v2147_v41, 16  ;;  %v2052_v55 = vshrl.u32 %v1809_v36, 16  ;;  %v2560_v22 = vrot.slane %v2482_v54, 4 }
 0x146   : > { %v14248_v30 = vadd.f32 %v12186_v61, %v12185_v1  ;;  %v12188_v13 = vpop.f32.mrb[26].mxu0  ;;  %v1810_v1 = vld [vmem:[#allocation2 + $0xf8] sm:$0x1f]  ;;  %v2392_v61 = vshll.u32 %v2146_v39, 16  ;;  %v2561_v23 = vrot.slane %v2483_v19, 4  ;;  %v2391_v35 = vrot.slane %v2389_v42, 3 }
 0x147   : > { %v12189_v21 = vpop.f32.mrb[27].mxu0  ;;  %v2378_v29 = vor.u32 %v2377_v40, %v2374_v43  ;;  %v2063_v33 = vshll.u32 %v1810_v1, 16  ;;  %v2402_v43 = vrot.slane %v2400_v12, 4  ;;  %v1811_v40 = vld [vmem:[#allocation2 + $0x100] sm:$0xf0] }
 0x148   : > { %v14253_v26 = vadd.f32 %v12189_v21, %v12188_v13  ;;  %v12297_v62 = vpop.f32.mrb[8].mxu1  ;;  %4273 = vmatmul.mubr.bf16.gmra.mrb[96].mxu1 %v2370_v28  ;;  %v2055_v21 = vshll.u32 %v1809_v36, 16  ;;  %v2060_v28 = vshrl.u32 %v1810_v1, 16  ;;  %v2394_v41 = vrot.slane %v2392_v61, 4  ;;  %v1812_v36 = vld [vmem:[#allocation2 + $0x108] sm:$0x1f] }
 0x149   : > { %v12298_v59 = vpop.f32.mrb[9].mxu1  ;;  %4280 = vmatprep.mubr.bf16.mxu1 %v2559_v0  ;;  %v2387_v50 = vsel %vm514_vm1, %v2378_v29, %v2386_v15  ;;  %v2050_v0 = vsel %vm996_vm2, %v2041_v57, %v2049_v4  ;;  %v2562_v19 = vsel %vm883_vm0, %v2560_v22, %v2561_v23  ;;  %v2484_v42 = vld [vmem:[#allocation2 + $0x110] sm:$0xf0]  ;;  %v2065_v12 = vrot.slane %v2063_v33, 5  ;;  %v2485_v15 = vld [vmem:[#allocation2 + $0x118] sm:$0xf] }
 0x14a   : > { %v14272_v2 = vadd.f32 %v12298_v59, %v12297_v62  ;;  %v12300_v3 = vpop.f32.mrb[10].mxu1  ;;  %v2399_v62 = vrot.slane %v2397_v10, 3  ;;  %v2148_v59 = vld [vmem:[#allocation2 + $0x110] sm:$0xf8]  ;;  %v2057_v54 = vrot.slane %v2055_v21, 5  ;;  %v2062_v10 = vrot.slane %v2060_v28, 4 }
 0x14b   : > { %v12301_v8 = vpop.f32.mrb[11].mxu1  ;;  %v2069_v29 = vshrl.u32 %v1811_v40, 16  ;;  %v2072_v57 = vshll.u32 %v1811_v40, 16  ;;  %v2406_v4 = vshrl.u32 %v2148_v59, 16  ;;  %v2409_v21 = vshll.u32 %v2148_v59, 16 }
 0x14c   : > { %v12191_v52 = vpop.f32.mrb[28].mxu0  ;;  %v14277_v13 = vadd.f32 %v12301_v8, %v12300_v3  ;;  %4104 = vmatmul.mubr.bf16.gmra.mrb[124].mxu0 %v1736_v5  ;;  %v14285_v5 = vrot.slane %v2052_v55, 4  ;;  %v1665_v3 = vld [vmem:[#allocation2 + $0xf0] sm:$0xf0]  ;;  %v2149_v8 = vld [vmem:[#allocation2 + $0x118] sm:$0xf]  ;;  %v2066_v40 = vor.u32 %v2065_v12, %v2062_v10 }
 0x14d   : > { %v12192_v45 = vpop.f32.mrb[29].mxu0  ;;  %4111 = vmatprep.mubr.bf16.mxu0 %v2033_v46  ;;  %v1739_v46 = vsel %vm883_vm0, %v1737_v25, %v1738_v14  ;;  %v2395_v25 = vor.u32 %v2394_v41, %v2391_v35  ;;  %v2403_v14 = vor.u32 %v2402_v43, %v2399_v62  ;;  %v2414_v22 = vshrl.u32 %v2149_v8, 16 }
 0x14e   : > { %v14279_v34 = vadd.f32 %v12192_v45, %v12191_v52  ;;  %v12194_v17 = vpop.f32.mrb[30].mxu0  ;;  %v1666_v45 = vld [vmem:[#allocation2 + $0xf8] sm:$0xf]  ;;  %v2417_v23 = vshll.u32 %v2149_v8, 16  ;;  %v2077_v28 = vshrl.u32 %v1812_v36, 16  ;;  %v2080_v33 = vshll.u32 %v1812_v36, 16 }
 0x14f   : > { %v12195_v32 = vpop.f32.mrb[31].mxu0  ;;  %v1743_v35 = vrot.slane %v1665_v3, 4  ;;  %v1744_v41 = vrot.slane %v1666_v45, 4  ;;  %v2071_v59 = vrot.slane %v2069_v29, 4  ;;  %v2411_v9 = vrot.slane %v2409_v21, 4 }
 0x150   : > { %v14282_v39 = vadd.f32 %v12195_v32, %v12194_v17  ;;  %v12303_v44 = vpop.f32.mrb[12].mxu1  ;;  %4281 = vmatmul.mubr.bf16.gmra.mrb[100].mxu1 %v2387_v50  ;;  %v2058_v50 = vor.u32 %v2057_v54, %v14285_v5  ;;  %v2416_v36 = vrot.slane %v2414_v22, 3  ;;  %v2079_v31 = vrot.slane %v2077_v28, 4  ;;  %v2599_v3 = vld [vmem:[#allocation2 + $0x28] sm:$0x1f] }
 0x151   : > { %v12304_v1 = vpop.f32.mrb[13].mxu1  ;;  %4288 = vmatprep.mubr.bf16.mxu1 %v2562_v19  ;;  %v2404_v19 = vsel %vm514_vm1, %v2395_v25, %v2403_v14  ;;  %v2082_v5 = vrot.slane %v2080_v33, 5  ;;  %v16732_v10 = vrot.slane %v14269_v58, 4  ;;  %v16733_v12 = vrot.slane %v14259_v20, 4  ;;  %v14309_v25 = vld [vmem:[#allocation2 + $0x108] sm:$0xf] }
 0x152   : > { %v14292_v52 = vadd.f32 %v12304_v1, %v12303_v44  ;;  %v12306_v61 = vpop.f32.mrb[14].mxu1  ;;  %v2563_v44 = vrot.slane %v2484_v42, 4  ;;  %v2564_v1 = vrot.slane %v2485_v15, 4  ;;  %v2419_v42 = vrot.slane %v2417_v23, 4  ;;  %v2598_v15 = vld [vmem:[#allocation2 + $0x20] sm:$0xf0] }
 0x153   : > { %v12307_v6 = vpop.f32.mrb[15].mxu1  ;;  %v1742_v29 = vsel %vm883_vm0, %v16733_v12, %v16732_v10  ;;  %v14307_v45 = vsel %vm883_vm0, %v1743_v35, %v1744_v41  ;;  %v2600_v14 = vld [vmem:[#allocation2 + $0x30] sm:$0xf0]  ;;  %v2631_v21 = vshrl.u32 %v2598_v15, 16  ;;  %v2634_v22 = vshll.u32 %v2598_v15, 16 }
 0x154   : > { %v14294_v55 = vadd.f32 %v12307_v6, %v12306_v61  ;;  %v12197_v17 = vpop.f32.mrb[32].mxu0  ;;  %4112 = vmatmul.mubr.bf16.gmra.mrb[128].mxu0 %v1739_v46  ;;  %v14298_v6 = vld [vmem:[#allocation2 + $0x100] sm:$0xf0]  ;;  %v2408_v46 = vrot.slane %v2406_v4, 3  ;;  %v2565_v54 = vsel %vm883_vm0, %v2563_v44, %v2564_v1  ;;  %v2601_v4 = vld [vmem:[#allocation2 + $0x38] sm:$0x1f]  ;;  %v2420_v20 = vor.u32 %v2419_v42, %v2416_v36 }
 0x155   : > { %v12198_v32 = vpop.f32.mrb[33].mxu0  ;;  %4119 = vmatprep.mubr.bf16.mxu0 %v2050_v0  ;;  %v2074_v0 = vrot.slane %v2072_v57, 5  ;;  %v2067_v57 = vsel %vm996_vm2, %v2058_v50, %v2066_v40  ;;  %v2602_v23 = vld [vmem:[#allocation2 + $0x40] sm:$0xf0]  ;;  %v2642_v28 = vshll.u32 %v2599_v3, 16  ;;  %v2083_v1 = vor.u32 %v2082_v5, %v2079_v31 }
 0x156   : > { %v12199_v62 = vadd.f32 %v12198_v32, %v12197_v17  ;;  %v12200_v43 = vpop.f32.mrb[34].mxu0  ;;  %v2412_v58 = vor.u32 %v2411_v9, %v2408_v46  ;;  %v2639_v32 = vshrl.u32 %v2599_v3, 16  ;;  %v2603_v33 = vld [vmem:[#allocation2 + $0x48] sm:$0x1f]  ;;  %v2648_v41 = vshrl.u32 %v2600_v14, 16  ;;  %v13440_v46 = vld [vmem:[%s16721_s3 + $0x40] sm:$0xff]  }
 0x157   : > { %v12201_v61 = vpop.f32.mrb[35].mxu0  ;;  %v2075_v44 = vor.u32 %v2074_v0, %v2071_v59  ;;  %v2651_v50 = vshll.u32 %v2600_v14, 16  ;;  %v2659_v40 = vshll.u32 %v2601_v4, 16  ;;  %v2668_v15 = vshll.u32 %v2602_v23, 16  ;;  %v14322_v31 = vld [vmem:[%s16720_s2] ss:$0 sm:$0xff]  ;;  %12605 = vmatprep.subr.bf16.mxu1 %v13440_v46 }
 0x158   : > { %v12202_v8 = vadd.f32 %v12201_v61, %v12200_v43  ;;  %4289 = vmatmul.mubr.bf16.gmra.mrb[104].mxu1 %v2404_v19  ;;  %v2656_v43 = vshrl.u32 %v2601_v4, 16  ;;  %v2665_v19 = vshrl.u32 %v2602_v23, 16  ;;  %v14314_v61 = vrot.slane %v2631_v21, 4  ;;  %v13441_v5 = vld [vmem:[%s16721_s3] sm:$0xff]   ;;  %v2604_v4 = vld [vmem:[#allocation2 + $0x50] sm:$0xf0] }
 0x159   : > { %4296 = vmatprep.mubr.bf16.mxu1 %v2565_v54  ;;  %v2673_v54 = vshrl.u32 %v2603_v33, 16  ;;  %v2676_v9 = vshll.u32 %v2603_v33, 16  ;;  %v2421_v59 = vsel %vm514_vm1, %v2412_v58, %v2420_v20  ;;  %v2636_v36 = vrot.slane %v2634_v22, 5  ;;  %12606 = vmatpush3.bf16.msra.mxu1 %v13441_v5  ;;  %v2606_v35 = vld [vmem:[#allocation2 + $0x60] sm:$0xf0] }
 0x15a   : > { %v2641_v42 = vrot.slane %v2639_v32, 4  ;;  %v2644_v0 = vrot.slane %v2642_v28, 5  ;;  %v3760_v10 = vadd.f32 %v12199_v62, %v14322_v31  ;;  %v2084_v12 = vsel %vm996_vm2, %v2075_v44, %v2083_v1 }
 0x15b   : > { %v2650_v14 = vrot.slane %v2648_v41, 4  ;;  %v2653_v23 = vrot.slane %v2651_v50, 5  ;;  %v2658_v22 = vrot.slane %v2656_v43, 4  ;;  %v2661_v58 = vrot.slane %v2659_v40, 5 }
 0x15c   : > { %4120 = vmatmul.mubr.bf16.gmra.mrb[132].mxu0 %v1742_v29  ;;  %v3763_v29 = vadd.f32 %v12202_v8, %v14322_v31  ;;  %v2667_v20 = vrot.slane %v2665_v19, 4  ;;  %v2670_v33 = vrot.slane %v2668_v15, 5  ;;  %v2675_v17 = vrot.slane %v2673_v54, 4 }
 0x15d   : > { %4127 = vmatprep.mubr.bf16.mxu0 %v2067_v57  ;;  %v2605_v57 = vld [vmem:[#allocation2 + $0x58] sm:$0x1f]  ;;  %v2678_v62 = vrot.slane %v2676_v9, 5  ;;  %v2637_v8 = vor.u32 %v2636_v36, %v14314_v61  ;;  %v2645_v41 = vor.u32 %v2644_v0, %v2641_v42  ;;  %v2682_v47 = vshrl.u32 %v2604_v4, 16 }
 0x15e   : > { %v2685_v46 = vshll.u32 %v2604_v4, 16  ;;  %v2690_v19 = vshrl.u32 %v2605_v57, 16  ;;  %v2693_v5 = vshll.u32 %v2605_v57, 16  ;;  %v2654_v9 = vor.u32 %v2653_v23, %v2650_v14 }
 0x15f   : > { %v14339_v61 = vadd.f32 %v14209_v18, %v14322_v31  ;;  %v2671_v42 = vor.u32 %v2670_v33, %v2667_v20  ;;  %v2679_v0 = vor.u32 %v2678_v62, %v2675_v17  ;;  %v16736_v14 = vrot.slane %v14309_v25, 4  ;;  %v2609_v18 = vld [vmem:[#allocation2 + $0x78] sm:$0x1f]  ;;  %v2611_v62 = vld [vmem:[#allocation2 + $0x88] sm:$0x1f] }
 0x160   : > { %v12309_v3 = vpop.f32.mrb[16].mxu1  ;;  %4297 = vmatmul.mubr.bf16.gmra.mrb[108].mxu1 %v2421_v59  ;;  %v2662_v59 = vor.u32 %v2661_v58, %v2658_v22  ;;  %v16737_v4 = vrot.slane %v14298_v6, 4  ;;  %v2702_v22 = vshll.u32 %v2606_v35, 16  ;;  %v2646_v20 = vsel %vm996_vm2, %v2637_v8, %v2645_v41 }
 0x161   : > { %v12310_v21 = vpop.f32.mrb[17].mxu1  ;;  %v14354_v17 = vrot.slane %v2682_v47, 4  ;;  %v14361_v6 = vrot.slane %v2690_v19, 4  ;;  %v14363_v33 = vrot.slane %v2693_v5, 5  ;;  %v14369_v47 = vsel %vm996_vm2, %v2671_v42, %v2679_v0 }
 0x162   : > { %v12311_v32 = vadd.f32 %v12310_v21, %v12309_v3  ;;  %v12312_v28 = vpop.f32.mrb[18].mxu1  ;;  %v14335_v3 = vld [vmem:[#allocation2 + $0x68] sm:$0x1f]  ;;  %v2699_v21 = vshrl.u32 %v2606_v35, 16  ;;  %v1748_v57 = vsel %vm883_vm0, %v16737_v4, %v16736_v14  ;;  %v14359_v25 = vsel %vm996_vm2, %v2654_v9, %v2662_v59 }
 0x163   : > { %v12313_v44 = vpop.f32.mrb[19].mxu1  ;;  %v12203_v1 = vpop.f32.mrb[36].mxu0  ;;  %v2707_v41 = vshrl.u32 %v14335_v3, 16  ;;  %v2710_v19 = vshll.u32 %v14335_v3, 16  ;;  %v2724_v42 = vshrl.u32 %v2609_v18, 16  ;;  %v2727_v4 = vshll.u32 %v2609_v18, 16 }
 0x164   : > { %4128 = vmatmul.mubr.bf16.gmra.mrb[136].mxu0 %v14307_v45  ;;  %v14333_v50 = vadd.f32 %v12311_v32, %v3760_v10  ;;  %v12314_v43 = vadd.f32 %v12313_v44, %v12312_v28  ;;  %v12204_v40 = vpop.f32.mrb[37].mxu0  ;;  %v2608_v10 = vld [vmem:[#allocation2 + $0x70] sm:$0xf0]  ;;  %v14356_v32 = vrot.slane %v2685_v46, 5  ;;  %v14365_v35 = vrot.slane %v2699_v21, 4  ;;  %v13442_v3 = vld [vmem:[%s16721_s3 + $0x48] sm:$0xff]  }
 0x165   : > { %4135 = vmatprep.mubr.bf16.mxu0 %v2084_v12  ;;  %v12205_v15 = vadd.f32 %v12204_v40, %v12203_v1  ;;  %v12206_v54 = vpop.f32.mrb[38].mxu0  ;;  %v14345_v12 = vadd.f32 %v14213_v60, %v14322_v31  ;;  %v2610_v60 = vld [vmem:[#allocation2 + $0x80] sm:$0xf0]  ;;  %v2612_v46 = vld [vmem:[#allocation2 + $0x90] sm:$0xf0]  ;;  %v2716_v5 = vshrl.u32 %v2608_v10, 16  ;;  %v2696_v18 = vor.u32 %v14363_v33, %v14361_v6  ;;  %12607 = vmatprep.subr.bf16.mxu1 %v13442_v3 }
 0x166   : > { %16734 = vst [vmem:[#allocation11_spill] sm:$0xff] %v14333_v50  ;;  %v14341_v36 = vadd.f32 %v12314_v43, %v3763_v29  ;;  %v12207_v45 = vpop.f32.mrb[39].mxu0  ;;  %v2616_v33 = vld [vmem:[#allocation2 + $0xb0] sm:$0xf0] }
 0x167   : > { %v12208_v23 = vadd.f32 %v12207_v45, %v12206_v54  ;;  %v3768_v29 = vadd.f32 %v12205_v15, %v14322_v31  ;;  %v14372_v15 = vrot.slane %v2702_v22, 5  ;;  %v2719_v54 = vshll.u32 %v2608_v10, 16  ;;  %v13443_v10 = vld [vmem:[%s16721_s3 + $0x8] sm:$0xff]  }
 0x168   : > { %16735 = vst [vmem:[#allocation12_spill] sm:$0xff] %v14341_v36  ;;  %v12315_v58 = vpop.f32.mrb[20].mxu1  ;;  %v2736_v22 = vshll.u32 %v2610_v60, 16  ;;  %v14391_v45 = vrot.slane %v2716_v5, 4  ;;  %v14395_v36 = vrot.slane %v2724_v42, 4  ;;  %12608 = vmatpush3.bf16.msra.mxu1 %v13443_v10 }
 0x169   : > { %v12316_v28 = vpop.f32.mrb[21].mxu1  ;;  %v3771_v8 = vadd.f32 %v12208_v23, %v14322_v31  ;;  %v2733_v23 = vshrl.u32 %v2610_v60, 16  ;;  %v2750_v60 = vshrl.u32 %v2612_v46, 16 }
 0x16a   : > { %v12317_v44 = vadd.f32 %v12316_v28, %v12315_v58  ;;  %v12318_v1 = vpop.f32.mrb[22].mxu1  ;;  %v14379_v58 = vld [vmem:[#allocation2 + $0x98] sm:$0x1f]  ;;  %v2709_v28 = vrot.slane %v2707_v41, 4  ;;  %v14402_v6 = vrot.slane %v2736_v22, 5 }
 0x16b   : > { %v12319_v43 = vpop.f32.mrb[23].mxu1  ;;  %v12209_v40 = vpop.f32.mrb[40].mxu0  ;;  %v2758_v42 = vshrl.u32 %v14379_v58, 16 }
 0x16c   : > { %4136 = vmatmul.mubr.bf16.gmra.mrb[140].mxu0 %v1748_v57  ;;  %v14375_v9 = vadd.f32 %v12317_v44, %v3768_v29  ;;  %v12320_v59 = vadd.f32 %v12319_v43, %v12318_v1  ;;  %v12210_v21 = vpop.f32.mrb[41].mxu0  ;;  %v2744_v44 = vshll.u32 %v2611_v62, 16  ;;  %v2753_v43 = vshll.u32 %v2612_v46, 16 }
 0x16d   : > { %13117 = vmatprep.mubr.bf16.mxu0 %v2646_v20  ;;  %v12211_v0 = vadd.f32 %v12210_v21, %v12209_v40  ;;  %v12212_v14 = vpop.f32.mrb[42].mxu0  ;;  %v2741_v20 = vshrl.u32 %v2611_v62, 16  ;;  %v2614_v40 = vld [vmem:[#allocation2 + $0xa0] sm:$0xf0]  ;;  %v2712_v21 = vrot.slane %v2710_v19, 5  ;;  %v2705_v19 = vor.u32 %v14372_v15, %v14365_v35 }
 0x16e   : > { %16738 = vst [vmem:[#allocation13_spill] sm:$0xff] %v14375_v9  ;;  %v14387_v57 = vadd.f32 %v12320_v59, %v3771_v8  ;;  %v12213_v29 = vpop.f32.mrb[43].mxu0  ;;  %v14393_v9 = vrot.slane %v2719_v54, 5  ;;  %v2615_v8 = vld [vmem:[#allocation2 + $0xa8] sm:$0x1f]  ;;  %v14398_v59 = vrot.slane %v2727_v4, 5 }
 0x16f   : > { %v12214_v1 = vadd.f32 %v12213_v29, %v12212_v14  ;;  %v3776_v62 = vadd.f32 %v12211_v0, %v14322_v31  ;;  %v14400_v14 = vrot.slane %v2733_v23, 4  ;;  %v14406_v5 = vrot.slane %v2741_v20, 4 }
 0x170   : > { %16739 = vst [vmem:[#allocation14_spill] sm:$0xff] %v14387_v57  ;;  %v14408_v54 = vrot.slane %v2744_v44, 5  ;;  %v14412_v4 = vrot.slane %v2750_v60, 4  ;;  %v14414_v23 = vrot.slane %v2753_v43, 5  ;;  %v2713_v29 = vor.u32 %v2712_v21, %v2709_v28  ;;  %v14418_v44 = vld [vmem:[#allocation2 + $0xb8] sm:$0x1f] }
 0x171   : > { %v12321_v41 = vpop.f32.mrb[24].mxu1  ;;  %v3779_v0 = vadd.f32 %v12214_v1, %v14322_v31  ;;  %v2761_v35 = vshll.u32 %v14379_v58, 16  ;;  %v2767_v15 = vshrl.u32 %v2614_v40, 16  ;;  %v2770_v20 = vshll.u32 %v2614_v40, 16  ;;  %v2618_v57 = vld [vmem:[#allocation2 + $0xc0] sm:$0xf0] }
 0x172   : > { %v12322_v46 = vpop.f32.mrb[25].mxu1  ;;  %v2775_v43 = vshrl.u32 %v2615_v8, 16  ;;  %v2778_v28 = vshll.u32 %v2615_v8, 16  ;;  %v2784_v40 = vshrl.u32 %v2616_v33, 16  ;;  %v2787_v21 = vshll.u32 %v2616_v33, 16 }
 0x173   : > { %v12323_v3 = vadd.f32 %v12322_v46, %v12321_v41  ;;  %v12324_v10 = vpop.f32.mrb[26].mxu1  ;;  %v14422_v41 = vadd.f32 %v14231_v16, %v14322_v31  ;;  %v16742_v16 = vor.u32 %v14356_v32, %v14354_v17  ;;  %v14440_v38 = vrot.slane %v2761_v35, 5 }
 0x174   : > { %13118 = vmatmul.mubr.bf16.vlgmr.msra.gmra.mrb[144].mxu0 %v14359_v25  ;;  %v12325_v22 = vpop.f32.mrb[27].mxu1  ;;  %v14429_v25 = vadd.f32 %v14237_v51, %v14322_v31  ;;  %v2714_v51 = vsel %vm996_vm2, %v2705_v19, %v2713_v29  ;;  %v14442_v8 = vrot.slane %v2767_v15, 4  ;;  %v14444_v33 = vrot.slane %v2770_v20, 5 }
 0x175   : > { %v14424_v46 = vadd.f32 %v12323_v3, %v3776_v62  ;;  %13121 = vmatprep.mubr.bf16.mxu0 %v14369_v47  ;;  %v12326_v1 = vadd.f32 %v12325_v22, %v12324_v10  ;;  %v12215_v60 = vpop.f32.mrb[44].mxu0  ;;  %v2697_v62 = vsel %vm996_vm2, %v16742_v16, %v2696_v18  ;;  %v14437_v10 = vrot.slane %v2758_v42, 4  ;;  %v2619_v22 = vld [vmem:[#allocation2 + $0xc8] sm:$0x1f] }
 0x176   : > { %v12216_v58 = vpop.f32.mrb[45].mxu0  ;;  %v2722_v32 = vor.u32 %v14393_v9, %v14391_v45  ;;  %v14450_v18 = vrot.slane %v2775_v43, 4  ;;  %v2792_v42 = vshrl.u32 %v14418_v44, 16  ;;  %v14454_v29 = vrot.slane %v2778_v28, 5 }
 0x177   : > { %16740 = vst [vmem:[#allocation15_spill] sm:$0xff] %v14424_v46  ;;  %v14431_v50 = vadd.f32 %v12326_v1, %v3779_v0  ;;  %v12217_v47 = vadd.f32 %v12216_v58, %v12215_v60  ;;  %v12218_v3 = vpop.f32.mrb[46].mxu0  ;;  %v2620_v0 = vld [vmem:[#allocation2 + $0xd0] sm:$0xf0]  ;;  %v14446_v1 = vld [vmem:[#allocation2 + $0xd8] sm:$0x1f] }
 0x178   : > { %v12219_v46 = vpop.f32.mrb[47].mxu0  ;;  %v14456_v35 = vrot.slane %v2784_v40, 4  ;;  %v14458_v15 = vrot.slane %v2787_v21, 5  ;;  %v2795_v58 = vshll.u32 %v14418_v44, 16  ;;  %v2801_v9 = vshrl.u32 %v2618_v57, 16 }
 0x179   : > { %16741 = vst [vmem:[#allocation16_spill] sm:$0xff] %v14431_v50  ;;  %v12220_v17 = vadd.f32 %v12219_v46, %v12218_v3  ;;  %v3784_v19 = vadd.f32 %v12217_v47, %v14322_v31  ;;  %v2730_v46 = vor.u32 %v14398_v59, %v14395_v36  ;;  %v2804_v45 = vshll.u32 %v2618_v57, 16  ;;  %v14464_v50 = vld [vmem:[#allocation2 + $0xe0] sm:$0xf0]  ;;  %v13444_v57 = vld [vmem:[%s16721_s3 + $0x50] sm:$0xff]  }
 0x17a   : > { %v12327_v60 = vpop.f32.mrb[28].mxu1  ;;  %v2809_v47 = vshrl.u32 %v2619_v22, 16  ;;  %v2812_v28 = vshll.u32 %v2619_v22, 16  ;;  %v14466_v21 = vrot.slane %v2792_v42, 4  ;;  %v2818_v24 = vshrl.u32 %v2620_v0, 16  ;;  %12609 = vmatprep.subr.bf16.mxu1 %v13444_v57 }
 0x17b   : > { %v12328_v20 = vpop.f32.mrb[29].mxu1  ;;  %v3787_v3 = vadd.f32 %v12220_v17, %v14322_v31  ;;  %v2821_v49 = vshll.u32 %v2620_v0, 16  ;;  %v2826_v36 = vshrl.u32 %v14446_v1, 16  ;;  %v2739_v22 = vor.u32 %v14402_v6, %v14400_v14  ;;  %v2623_v17 = vld [vmem:[#allocation2 + $0xe8] sm:$0x1f]  ;;  %v13445_v0 = vld [vmem:[%s16721_s3 + $0x10] sm:$0xff]  }
 0x17c   : > { %13122 = vmatmul.mubr.bf16.gmra.mrb[148].mxu0 %v2697_v62  ;;  %v12329_v43 = vadd.f32 %v12328_v20, %v12327_v60  ;;  %v12330_v16 = vpop.f32.mrb[30].mxu1  ;;  %v14483_v42 = vadd.f32 %v14248_v30, %v14322_v31  ;;  %v14487_v20 = vrot.slane %v2801_v9, 4  ;;  %v2624_v14 = vld [vmem:[#allocation2 + $0xf0] sm:$0xf0]  ;;  %12610 = vmatpush3.bf16.msra.mxu1 %v13445_v0  ;;  %v2731_v30 = vsel %vm996_vm2, %v2722_v32, %v2730_v46 }
 0x17d   : > { %13125 = vmatprep.mubr.bf16.mxu0 %v2714_v51  ;;  %v12331_v40 = vpop.f32.mrb[31].mxu1  ;;  %v2747_v51 = vor.u32 %v14408_v54, %v14406_v5  ;;  %v2829_v9 = vshll.u32 %v14446_v1, 16  ;;  %v2838_v32 = vshll.u32 %v14464_v50, 16  ;;  %v2846_v46 = vshll.u32 %v2623_v17, 16 }
 0x17e   : > { %v14472_v59 = vadd.f32 %v12329_v43, %v3784_v19  ;;  %v12332_v44 = vadd.f32 %v12331_v40, %v12330_v16  ;;  %v12221_v62 = vpop.f32.mrb[48].mxu0  ;;  %v14485_v19 = vrot.slane %v2795_v58, 5  ;;  %v14489_v43 = vrot.slane %v2804_v45, 5 }
 0x17f   : > { %v12222_v60 = vpop.f32.mrb[49].mxu0  ;;  %v14493_v16 = vrot.slane %v2809_v47, 4  ;;  %v14495_v40 = vrot.slane %v2812_v28, 5  ;;  %v14498_v58 = vrot.slane %v2818_v24, 4  ;;  %v2835_v45 = vshrl.u32 %v14464_v50, 16 }
 0x180   : > { %16743 = vst [vmem:[#allocation17_spill] sm:$0xff] %v14472_v59  ;;  %v14491_v6 = vadd.f32 %v12332_v44, %v3787_v3  ;;  %v12223_v5 = vadd.f32 %v12222_v60, %v12221_v62  ;;  %v12224_v54 = vpop.f32.mrb[50].mxu0  ;;  %v2748_v3 = vsel %vm996_vm2, %v2739_v22, %v2747_v51  ;;  %v14503_v44 = vrot.slane %v2821_v49, 5  ;;  %v2626_v28 = vld [vmem:[#allocation2 + $0x100] sm:$0xf0] }
 0x181   : > { %v12225_v59 = vpop.f32.mrb[51].mxu0  ;;  %v14505_v47 = vrot.slane %v2826_v36, 4  ;;  %v2843_v24 = vshrl.u32 %v2623_v17, 16  ;;  %v2756_v60 = vor.u32 %v14414_v23, %v14412_v4  ;;  %v2773_v49 = vor.u32 %v14444_v33, %v14442_v8 }
 0x182   : > { %16744 = vst [vmem:[#allocation18_spill] sm:$0xff] %v14491_v6  ;;  %v12226_v57 = vadd.f32 %v12225_v59, %v12224_v54  ;;  %v3792_v62 = vadd.f32 %v12223_v5, %v14322_v31  ;;  %v2764_v59 = vor.u32 %v14440_v38, %v14437_v10  ;;  %v2852_v36 = vshrl.u32 %v2624_v14, 16  ;;  %v14520_v54 = vld [vmem:[#allocation2 + $0x108] sm:$0x1f] }
 0x183   : > { %v12333_v0 = vpop.f32.mrb[32].mxu1  ;;  %v14516_v50 = vrot.slane %v2829_v9, 5  ;;  %v14518_v17 = vrot.slane %v2835_v45, 4  ;;  %v2781_v4 = vor.u32 %v14454_v29, %v14450_v18  ;;  %v2855_v38 = vshll.u32 %v2624_v14, 16 }
 0x184   : > { %13126 = vmatmul.mubr.bf16.gmra.mrb[152].mxu0 %v2731_v30  ;;  %v12334_v1 = vpop.f32.mrb[33].mxu1  ;;  %v3795_v22 = vadd.f32 %v12226_v57, %v14322_v31  ;;  %v2860_v23 = vshrl.u32 %v2625_v56, 16  ;;  %v2863_v10 = vshll.u32 %v2625_v56, 16  ;;  %v3747_v8 = vadd.f32 %v14253_v26, %v14322_v31 }
 0x185   : > { %v12335_v51 = vadd.f32 %v12334_v1, %v12333_v0  ;;  %v12336_v5 = vpop.f32.mrb[34].mxu1  ;;  %13129 = vmatprep.mubr.bf16.mxu0 %v2748_v3  ;;  %v2869_v9 = vshrl.u32 %v2626_v28, 16  ;;  %v14528_v45 = vrot.slane %v2838_v32, 5  ;;  %v14530_v1 = vrot.slane %v2843_v24, 4 }
 0x186   : > { %v12337_v30 = vpop.f32.mrb[35].mxu1  ;;  %v14532_v6 = vrot.slane %v2846_v46, 5  ;;  %v14534_v53 = vrot.slane %v2852_v36, 4  ;;  %v2765_v56 = vsel %vm996_vm2, %v2756_v60, %v2764_v59  ;;  %v2872_v14 = vshll.u32 %v2626_v28, 16  ;;  %v14545_v46 = vld [vmem:[#allocation2 + $0x110] sm:$0xf0] }
 0x187   : > { %v14526_v33 = vadd.f32 %v12335_v51, %v3792_v62  ;;  %v12338_v57 = vadd.f32 %v12337_v30, %v12336_v5  ;;  %v12227_v3 = vpop.f32.mrb[52].mxu0  ;;  %v2782_v51 = vsel %vm996_vm2, %v2773_v49, %v2781_v4  ;;  %v14540_v5 = vrot.slane %v2855_v38, 5 }
 0x188   : > { %v12228_v0 = vpop.f32.mrb[53].mxu0  ;;  %v14542_v32 = vrot.slane %v2860_v23, 4  ;;  %v2877_v24 = vshrl.u32 %v14520_v54, 16  ;;  %v3752_v36 = vadd.f32 %v14279_v34, %v14322_v31  ;;  %v14549_v30 = vrot.slane %v2863_v10, 5 }
 0x189   : > { %v14536_v18 = vadd.f32 %v12338_v57, %v3795_v22  ;;  %v12229_v29 = vadd.f32 %v12228_v0, %v12227_v3  ;;  %v12230_v26 = vpop.f32.mrb[54].mxu0  ;;  %v14551_v60 = vrot.slane %v2869_v9, 4  ;;  %v3755_v28 = vadd.f32 %v14282_v39, %v14322_v31  ;;  %v13446_v3 = vld [vmem:[%s16721_s3 + $0x58] sm:$0xff]  }
 0x18a   : > { %v12231_v62 = vpop.f32.mrb[55].mxu0  ;;  %v2790_v4 = vor.u32 %v14458_v15, %v14456_v35  ;;  %v2880_v38 = vshll.u32 %v14520_v54, 16  ;;  %v2798_v34 = vor.u32 %v14485_v19, %v14466_v21  ;;  %v2807_v10 = vor.u32 %v14489_v43, %v14487_v20  ;;  %v13447_v35 = vld [vmem:[%s16721_s3 + $0x18] sm:$0xff]   ;;  %12611 = vmatprep.subr.bf16.mxu1 %v13446_v3 }
 0x18b   : > { %v12232_v22 = vadd.f32 %v12231_v62, %v12230_v26  ;;  %v3800_v59 = vadd.f32 %v12229_v29, %v14322_v31  ;;  %v2815_v39 = vor.u32 %v14495_v40, %v14493_v16  ;;  %v14565_v57 = vrot.slane %v2872_v14, 5  ;;  %12612 = vmatpush3.bf16.msra.mxu1 %v13447_v35 }
 0x18c   : > { %13130 = vmatmul.mubr.bf16.gmra.mrb[156].mxu0 %v2765_v56  ;;  %v12339_v49 = vpop.f32.mrb[36].mxu1  ;;  %v14574_v19 = vrot.slane %v2877_v24, 4  ;;  %v14578_v20 = vadd.f32 %v14221_v48, %v14339_v61  ;;  %v2886_v16 = vshrl.u32 %v14545_v46, 16  ;;  %v14583_v40 = vadd.f32 %v14229_v37, %v14345_v12 }
 0x18d   : > { %v12340_v23 = vpop.f32.mrb[37].mxu1  ;;  %13133 = vmatprep.mubr.bf16.mxu0 %v2782_v51  ;;  %v3803_v15 = vadd.f32 %v12232_v22, %v14322_v31  ;;  %v14587_v9 = vadd.f32 %v14241_v11, %v14422_v41  ;;  %v14591_v0 = vadd.f32 %v14244_v63, %v14429_v25  ;;  %v14597_v29 = vadd.f32 %v14272_v2, %v14483_v42  ;;  %v2629_v22 = vld [vmem:[#allocation2 + $0x118] sm:$0x1f] }
 0x18e   : > { %v12341_v54 = vadd.f32 %v12340_v23, %v12339_v49  ;;  %v12342_v21 = vpop.f32.mrb[38].mxu1  ;;  %v14600_v37 = vadd.f32 %v14277_v13, %v3747_v8  ;;  %v2799_v11 = vsel %vm996_vm2, %v2790_v4, %v2798_v34  ;;  %v2882_v41 = vrot.slane %v2880_v38, 5 }
 0x18f   : > { %v12343_v43 = vpop.f32.mrb[39].mxu1  ;;  %v14604_v63 = vadd.f32 %v14292_v52, %v3752_v36  ;;  %v14607_v25 = vadd.f32 %v14294_v55, %v3755_v28  ;;  %v2816_v2 = vsel %vm996_vm2, %v2807_v10, %v2815_v39  ;;  %v2889_v13 = vshll.u32 %v14545_v46, 16 }
 0x190   : > { %v14593_v56 = vadd.f32 %v12341_v54, %v3800_v59  ;;  %v12344_v48 = vadd.f32 %v12343_v43, %v12342_v21  ;;  %v12233_v61 = vpop.f32.mrb[56].mxu0  ;;  %v14613_v8 = vrot.slane %v2886_v16, 4  ;;  %v2824_v52 = vor.u32 %v14503_v44, %v14498_v58 }
 0x191   : > { %v12234_v12 = vpop.f32.mrb[57].mxu0  ;;  %v2832_v55 = vor.u32 %v14516_v50, %v14505_v47  ;;  %v2841_v24 = vor.u32 %v14528_v45, %v14518_v17  ;;  %v2849_v36 = vor.u32 %v14532_v6, %v14530_v1  ;;  %v2894_v4 = vshrl.u32 %v2629_v22, 16  ;;  %v13448_v17 = vld [vmem:[%s16721_s3 + $0x60] sm:$0xff]  }
 0x192   : > { %v14609_v26 = vadd.f32 %v12344_v48, %v3803_v15  ;;  %v12235_v14 = vadd.f32 %v12234_v12, %v12233_v61  ;;  %v12236_v62 = vpop.f32.mrb[58].mxu0  ;;  %v2858_v44 = vor.u32 %v14540_v5, %v14534_v53  ;;  %v2866_v47 = vor.u32 %v14549_v30, %v14542_v32  ;;  %v13449_v45 = vld [vmem:[%s16721_s3 + $0x20] sm:$0xff]   ;;  %12613 = vmatprep.subr.bf16.mxu1 %v13448_v17 }
 0x193   : > { %v12237_v42 = vpop.f32.mrb[59].mxu0  ;;  %v2833_v46 = vsel %vm996_vm2, %v2824_v52, %v2832_v55  ;;  %v2850_v28 = vsel %vm996_vm2, %v2841_v24, %v2849_v36  ;;  %v2875_v6 = vor.u32 %v14565_v57, %v14551_v60  ;;  %v2897_v50 = vshll.u32 %v2629_v22, 16  ;;  %12614 = vmatpush3.bf16.msra.mxu1 %v13449_v45 }
 0x194   : > { %13134 = vmatmul.mubr.bf16.gmra.mrb[160].mxu0 %v2799_v11  ;;  %v12238_v51 = vadd.f32 %v12237_v42, %v12236_v62  ;;  %v3808_v59 = vadd.f32 %v12235_v14, %v14322_v31  ;;  %v2883_v53 = vor.u32 %v2882_v41, %v14574_v19  ;;  %v2891_v5 = vrot.slane %v2889_v13, 5 }
 0x195   : > { %13137 = vmatprep.mubr.bf16.mxu0 %v2816_v2  ;;  %v2896_v39 = vrot.slane %v2894_v4, 4  ;;  %v2867_v35 = vsel %vm996_vm2, %v2858_v44, %v2866_v47  ;;  %v2899_v15 = vrot.slane %v2897_v50, 5  ;;  %v3696_v55 = vadd.f32 %v14151_v7, %v14322_v31  ;;  %v13450_v7 = vld [vmem:[%s16721_s3 + $0x68] sm:$0xff]  }
 0x196   : > { %v3811_v1 = vadd.f32 %v12238_v51, %v14322_v31  ;;  %v2884_v19 = vsel %vm996_vm2, %v2875_v6, %v2883_v53  ;;  %v2892_v11 = vor.u32 %v2891_v5, %v14613_v8  ;;  %12615 = vmatprep.subr.bf16.mxu1 %v13450_v7 }
 0x197   : > { %v2900_v12 = vor.u32 %v2899_v15, %v2896_v39  ;;  %v16748_v15 = vld [vmem:[#allocation8_spill] sm:$0xff] }
 0x199   : > { %v2901_v22 = vsel %vm996_vm2, %v2892_v11, %v2900_v12 }
 0x19c   : > { %13138 = vmatmul.mubr.bf16.gmra.mrb[164].mxu0 %v2833_v46 }
 0x19d   : > { %v12345_v49 = vpop.f32.mrb[40].mxu1  ;;  %13141 = vmatprep.mubr.bf16.mxu0 %v2850_v28 }
 0x19e   : > { %v12346_v58 = vpop.f32.mrb[41].mxu1 }
 0x19f   : > { %v12347_v38 = vadd.f32 %v12346_v58, %v12345_v49  ;;  %v12348_v23 = vpop.f32.mrb[42].mxu1  ;;  %v12239_v30 = vpop.f32.mrb[60].mxu0  ;;  %v13451_v58 = vld [vmem:[%s16721_s3 + $0x28] sm:$0xff]  }
 0x1a0   : > { %v12349_v32 = vpop.f32.mrb[43].mxu1  ;;  %v12240_v10 = vpop.f32.mrb[61].mxu0  ;;  %12616 = vmatpush3.bf16.msra.mxu1 %v13451_v58 }
 0x1a1   : > { %v14640_v60 = vadd.f32 %v12347_v38, %v3808_v59  ;;  %v12350_v34 = vadd.f32 %v12349_v32, %v12348_v23  ;;  %v12241_v57 = vadd.f32 %v12240_v10, %v12239_v30  ;;  %v12242_v3 = vpop.f32.mrb[62].mxu0  ;;  %v3699_v59 = vadd.f32 %v14153_v27, %v14322_v31  ;;  %v13520_v27 = vld [vmem:[%s16720_s2] ss:$0 sm:$0xff]  ;;  %v16746_v38 = vld [vmem:[#allocation6_spill] sm:$0xff] }
 0x1a2   : > { %v12243_v21 = vpop.f32.mrb[63].mxu0  ;;  %v3707_v23 = vadd.f32 %v13520_v27, %v16746_v38 }
 0x1a3   : > { %v14643_v54 = vadd.f32 %v12350_v34, %v3811_v1  ;;  %v12244_v43 = vadd.f32 %v12243_v21, %v12242_v3  ;;  %v3816_v16 = vadd.f32 %v12241_v57, %v14322_v31  ;;  %v16747_v34 = vld [vmem:[#allocation7_spill] sm:$0xff]  ;;  %v3715_v21 = vadd.f32 %v13520_v27, %v16748_v15 }
 0x1a4   : > { %13142 = vmatmul.mubr.bf16.gmra.mrb[168].mxu0 %v2867_v35  ;;  %v3712_v10 = vadd.f32 %v13520_v27, %v16747_v34 }
 0x1a5   : > { %v12351_v48 = vpop.f32.mrb[44].mxu1  ;;  %13145 = vmatprep.mubr.bf16.mxu0 %v2884_v19  ;;  %v3819_v41 = vadd.f32 %v12244_v43, %v14322_v31  ;;  %v16745_v31 = vld [vmem:[#allocation5_spill] sm:$0xff] }
 0x1a6   : > { %v12352_v61 = vpop.f32.mrb[45].mxu1  ;;  %v3704_v6 = vadd.f32 %v13520_v27, %v16745_v31 }
 0x1a7   : > { %v12353_v14 = vadd.f32 %v12352_v61, %v12351_v48  ;;  %v12354_v62 = vpop.f32.mrb[46].mxu1  ;;  %v12261_v13 = vpop.f32.mrb[64].mxu0  ;;  %v13452_v48 = vld [vmem:[%s16721_s3 + $0x70] sm:$0xff]  }
 0x1a8   : > { %v12355_v2 = vpop.f32.mrb[47].mxu1  ;;  %v12262_v52 = vpop.f32.mrb[65].mxu0  ;;  %v13453_v61 = vld [vmem:[%s16721_s3 + $0x30] sm:$0xff]   ;;  %12617 = vmatprep.subr.bf16.mxu1 %v13452_v48 }
 0x1a9   : > { %v14649_v42 = vadd.f32 %v12353_v14, %v3816_v16  ;;  %v12356_v51 = vadd.f32 %v12355_v2, %v12354_v62  ;;  %v12263_v24 = vadd.f32 %v12262_v52, %v12261_v13  ;;  %v12264_v36 = vpop.f32.mrb[66].mxu0  ;;  %12618 = vmatpush3.bf16.msra.mxu1 %v13453_v61  ;;  %v16749_v13 = vld [vmem:[#allocation9_spill] sm:$0xff] }
 0x1aa   : > { %v12265_v8 = vpop.f32.mrb[67].mxu0 }
 0x1ab   : > { %v14654_v46 = vadd.f32 %v12356_v51, %v3819_v41  ;;  %v14656_v28 = vadd.f32 %v12263_v24, %v3696_v55  ;;  %v12266_v49 = vadd.f32 %v12265_v8, %v12264_v36  ;;  %v3720_v51 = vadd.f32 %v13520_v27, %v16749_v13  ;;  %v16750_v8 = vld [vmem:[#allocation10_spill] sm:$0xff] }
 0x1ac   : > { %13146 = vmatmul.mubr.bf16.gmra.mrb[172].mxu0 %v2901_v22 }
 0x1ad   : > { %v14660_v4 = vadd.f32 %v12266_v49, %v3699_v59  ;;  %v3723_v59 = vadd.f32 %v13520_v27, %v16750_v8 }
 0x1af   : > { %v12267_v44 = vpop.f32.mrb[68].mxu0 }
 0x1b0   : > { %v12268_v47 = vpop.f32.mrb[69].mxu0 }
 0x1b1   : > { %v12269_v50 = vadd.f32 %v12268_v47, %v12267_v44  ;;  %v12270_v17 = vpop.f32.mrb[70].mxu0  ;;  %v13454_v44 = vld [vmem:[%s16721_s3 + $0xc0] sm:$0xff]  }
 0x1b2   : > { %v12271_v45 = vpop.f32.mrb[71].mxu0  ;;  %v13455_v47 = vld [vmem:[%s16721_s3 + $0x80] sm:$0xff]   ;;  %12717 = vmatprep.subr.bf16.mxu0 %v13454_v44 }
 0x1b3   : > { %v14672_v1 = vadd.f32 %v12269_v50, %v3704_v6  ;;  %v12272_v53 = vadd.f32 %v12271_v45, %v12270_v17  ;;  %12718 = vmatpush3.bf16.msra.mxu0 %v13455_v47 }
 0x1b5   : > { %v14675_v5 = vadd.f32 %v12272_v53, %v3707_v23 }
 0x1b7   : > { %v12273_v32 = vpop.f32.mrb[72].mxu0 }
 0x1b8   : > { %v12274_v30 = vpop.f32.mrb[73].mxu0 }
 0x1b9   : > { %v12275_v39 = vadd.f32 %v12274_v30, %v12273_v32  ;;  %v12276_v57 = vpop.f32.mrb[74].mxu0  ;;  %v13456_v30 = vld [vmem:[%s16721_s3 + $0xc8] sm:$0xff]  }
 0x1ba   : > { %v12277_v3 = vpop.f32.mrb[75].mxu0  ;;  %12719 = vmatprep.subr.bf16.mxu0 %v13456_v30  ;;  %v4972_v30 = vld [vmem:[#allocation3] sm:$0xf0] }
 0x1bb   : > { %v14678_v35 = vadd.f32 %v12275_v39, %v3712_v10  ;;  %v12278_v19 = vadd.f32 %v12277_v3, %v12276_v57  ;;  %v12485_v16 = vpop.f32.mrb[48].mxu1  ;;  %v13457_v39 = vld [vmem:[%s16721_s3 + $0x88] sm:$0xff]  }
 0x1bc   : > { %v12486_v11 = vpop.f32.mrb[49].mxu1  ;;  %12720 = vmatpush3.bf16.msra.mxu0 %v13457_v39  ;;  %v13466_v39 = vld [vmem:[%s16721_s3 + $0xe8] sm:$0xff]  }
 0x1bd   : > { %v14681_v43 = vadd.f32 %v12278_v19, %v3715_v21  ;;  %v12487_v41 = vadd.f32 %v12486_v11, %v12485_v16  ;;  %v12488_v14 = vpop.f32.mrb[50].mxu1 }
 0x1be   : > { %v12489_v2 = vpop.f32.mrb[51].mxu1 }
 0x1bf   : > { %v12279_v12 = vpop.f32.mrb[76].mxu0  ;;  %v12490_v24 = vadd.f32 %v12489_v2, %v12488_v14 }
 0x1c0   : > { %v12280_v62 = vpop.f32.mrb[77].mxu0 }
 0x1c1   : > { %v12281_v52 = vadd.f32 %v12280_v62, %v12279_v12  ;;  %v12282_v55 = vpop.f32.mrb[78].mxu0 }
 0x1c2   : > { %v12283_v36 = vpop.f32.mrb[79].mxu0 }
 0x1c3   : > { %v14690_v22 = vadd.f32 %v12281_v52, %v3720_v51  ;;  %v12284_v49 = vadd.f32 %v12283_v36, %v12282_v55  ;;  %v12491_v58 = vpop.f32.mrb[52].mxu1  ;;  %v13460_v52 = vld [vmem:[%s16721_s3 + $0xd0] sm:$0xff]  }
 0x1c4   : > { %v12492_v31 = vpop.f32.mrb[53].mxu1  ;;  %v13461_v55 = vld [vmem:[%s16721_s3 + $0x90] sm:$0xff]   ;;  %12721 = vmatprep.subr.bf16.mxu0 %v13460_v52 }
 0x1c5   : > { %v14693_v7 = vadd.f32 %v12284_v49, %v3723_v59  ;;  %v12493_v50 = vadd.f32 %v12492_v31, %v12491_v58  ;;  %v12494_v17 = vpop.f32.mrb[54].mxu1  ;;  %12722 = vmatpush3.bf16.msra.mxu0 %v13461_v55  ;;  %v13463_v49 = vld [vmem:[%s16721_s3 + $0x98] sm:$0xff]  }
 0x1c6   : > { %v12495_v38 = vpop.f32.mrb[55].mxu1 }
 0x1c7   : > { %v12373_v6 = vpop.f32.mrb[80].mxu0  ;;  %v12496_v53 = vadd.f32 %v12495_v38, %v12494_v17 }
 0x1c8   : > { %v12374_v45 = vpop.f32.mrb[81].mxu0 }
 0x1c9   : > { %v12375_v27 = vadd.f32 %v12374_v45, %v12373_v6  ;;  %v12376_v23 = vpop.f32.mrb[82].mxu0 }
 0x1ca   : > { %v12377_v32 = vpop.f32.mrb[83].mxu0 }
 0x1cb   : > { %v4018_v34 = vadd.f32 %v12375_v27, %v14656_v28  ;;  %v12378_v10 = vadd.f32 %v12377_v32, %v12376_v23  ;;  %v12497_v3 = vpop.f32.mrb[56].mxu1  ;;  %v13464_v32 = vld [vmem:[%s16721_s3 + $0xe0] sm:$0xff]  }
 0x1cc   : > { %v12498_v21 = vpop.f32.mrb[57].mxu1 }
 0x1cd   : > { %v4021_v57 = vadd.f32 %v12378_v10, %v14660_v4  ;;  %v14709_v15 = vadd.f32 %v12487_v41, %v4018_v34  ;;  %v12499_v16 = vadd.f32 %v12498_v21, %v12497_v3  ;;  %v12500_v48 = vpop.f32.mrb[58].mxu1  ;;  %v13458_v4 = vld [vmem:[%s16721_s3 + $0x78] sm:$0xff]   ;;  %v4973_v34 = vld [vmem:[#allocation3 + $0x8] sm:$0xf]  ;;  %v5036_v10 = vrot.slane %v4972_v30, 4 }
 0x1ce   : > { %v12501_v28 = vpop.f32.mrb[59].mxu1  ;;  %v13459_v41 = vld [vmem:[%s16721_s3 + $0x38] sm:$0xff]   ;;  %12619 = vmatprep.subr.bf16.mxu1 %v13458_v4 }
 0x1cf   : > { %v12379_v19 = vpop.f32.mrb[84].mxu0  ;;  %v14711_v61 = vadd.f32 %v12490_v24, %v4021_v57  ;;  %v12502_v62 = vadd.f32 %v12501_v28, %v12500_v48  ;;  %12620 = vmatpush3.bf16.msra.mxu1 %v13459_v41  ;;  %v4636_v57 = vld [vmem:[#allocation3] sm:$0xf8]  ;;  %v4637_v48 = vld [vmem:[#allocation3 + $0x8] sm:$0xf] }
 0x1d0   : > { %v12380_v11 = vpop.f32.mrb[85].mxu0 }
 0x1d1   : > { %v12381_v12 = vadd.f32 %v12380_v11, %v12379_v19  ;;  %v12382_v14 = vpop.f32.mrb[86].mxu0  ;;  %v5037_v19 = vrot.slane %v4973_v34, 4  ;;  %v4669_v11 = vshrl.u32 %v4636_v57, 16 }
 0x1d2   : > { %v12383_v2 = vpop.f32.mrb[87].mxu0 }
 0x1d3   : > { %v4026_v13 = vadd.f32 %v12381_v12, %v14672_v1  ;;  %v12384_v51 = vadd.f32 %v12383_v2, %v12382_v14  ;;  %v13462_v1 = vld [vmem:[%s16721_s3 + $0xd8] sm:$0xff]   ;;  %v12503_v36 = vpop.f32.mrb[60].mxu1  ;;  %v4672_v12 = vshll.u32 %v4636_v57, 16  ;;  %v4677_v14 = vshrl.u32 %v4637_v48, 16 }
 0x1d4   : > { %v12504_v59 = vpop.f32.mrb[61].mxu1  ;;  %12723 = vmatprep.subr.bf16.mxu0 %v13462_v1  ;;  %v4680_v2 = vshll.u32 %v4637_v48, 16  ;;  %v4671_v52 = vrot.slane %v4669_v11, 3 }
 0x1d5   : > { %v4029_v24 = vadd.f32 %v12384_v51, %v14675_v5  ;;  %v14730_v8 = vadd.f32 %v12493_v50, %v4026_v13  ;;  %v14735_v44 = vadd.f32 %v12504_v59, %v12503_v36  ;;  %v12506_v47 = vpop.f32.mrb[62].mxu1  ;;  %12724 = vmatpush3.bf16.msra.mxu0 %v13463_v49  ;;  %v13467_v13 = vld [vmem:[%s16721_s3 + $0xa8] sm:$0xff]   ;;  %v4679_v36 = vrot.slane %v4677_v14, 3 }
 0x1d6   : > { %v12507_v6 = vpop.f32.mrb[63].mxu1  ;;  %12725 = vmatprep.subr.bf16.mxu0 %v13464_v32  ;;  %v4682_v59 = vrot.slane %v4680_v2, 4 }
 0x1d7   : > { %v12385_v58 = vpop.f32.mrb[88].mxu0  ;;  %v14737_v31 = vadd.f32 %v12496_v53, %v4029_v24  ;;  %v14739_v45 = vadd.f32 %v12507_v6, %v12506_v47  ;;  %v13465_v53 = vld [vmem:[%s16721_s3 + $0xa0] sm:$0xff]   ;;  %v4674_v24 = vrot.slane %v4672_v12, 4 }
 0x1d8   : > { %v12386_v5 = vpop.f32.mrb[89].mxu0 }
 0x1d9   : > { %v12387_v50 = vadd.f32 %v12386_v5, %v12385_v58  ;;  %v12388_v17 = vpop.f32.mrb[90].mxu0  ;;  %12726 = vmatpush3.bf16.msra.mxu0 %v13465_v53  ;;  %v4675_v6 = vor.u32 %v4674_v24, %v4671_v52  ;;  %v13471_v53 = vld [vmem:[%s16721_s3 + $0xb0] sm:$0xff]  }
 0x1da   : > { %v12389_v38 = vpop.f32.mrb[91].mxu0  ;;  %12727 = vmatprep.subr.bf16.mxu0 %v13466_v39 }
 0x1db   : > { %v4034_v27 = vadd.f32 %v12387_v50, %v14678_v35  ;;  %v12390_v23 = vadd.f32 %v12389_v38, %v12388_v17  ;;  %v12509_v35 = vpop.f32.mrb[64].mxu1  ;;  %v4683_v50 = vor.u32 %v4682_v59, %v4679_v36  ;;  %v13468_v38 = vld [vmem:[%s16721_s3 + $0x140] sm:$0xff]  }
 0x1dc   : > { %v12510_v28 = vpop.f32.mrb[65].mxu1  ;;  %12829 = vmatprep.subr.bf16.mxu1 %v13468_v38 }
 0x1dd   : > { %v4037_v3 = vadd.f32 %v12390_v23, %v14681_v43  ;;  %v14752_v21 = vadd.f32 %v12499_v16, %v4034_v27  ;;  %v12511_v4 = vadd.f32 %v12510_v28, %v12509_v35  ;;  %v12512_v41 = vpop.f32.mrb[66].mxu1  ;;  %v5038_v16 = vsel %vm883_vm0, %v5036_v10, %v5037_v19  ;;  %12728 = vmatpush3.bf16.msra.mxu0 %v13467_v13  ;;  %v13469_v27 = vld [vmem:[%s16721_s3 + $0xf0] sm:$0xff]   ;;  %v13470_v23 = vld [vmem:[%s16721_s3 + $0x100] sm:$0xff]  }
 0x1de   : > { %v12513_v1 = vpop.f32.mrb[67].mxu1  ;;  %7844 = vmatprep.mubr.bf16.mxu1 %v5038_v16  ;;  %v4684_v32 = vsel %vm514_vm1, %v4675_v6, %v4683_v50  ;;  %12729 = vmatprep.subr.bf16.mxu0 %v13469_v27 }
 0x1df   : > { %v12391_v51 = vpop.f32.mrb[92].mxu0  ;;  %v14757_v43 = vadd.f32 %v12502_v62, %v4037_v3  ;;  %v12514_v47 = vadd.f32 %v12513_v1, %v12512_v41  ;;  %7845 = vmatmul.mubr.bf16.vlgmr.msra.gmra.mrb[112].mxu1 %v4684_v32 }
 0x1e0   : > { %v12392_v55 = vpop.f32.mrb[93].mxu0  ;;  %12830 = vmatpush3.bf16.msra.mxu1 %v13470_v23 }
 0x1e1   : > { %v12393_v49 = vadd.f32 %v12392_v55, %v12391_v51  ;;  %v12394_v58 = vpop.f32.mrb[94].mxu0  ;;  %12730 = vmatpush3.bf16.msra.mxu0 %v13471_v53 }
 0x1e2   : > { %v12395_v5 = vpop.f32.mrb[95].mxu0 }
 0x1e3   : > { %v4042_v62 = vadd.f32 %v12393_v49, %v14690_v22  ;;  %v12396_v17 = vadd.f32 %v12395_v5, %v12394_v58  ;;  %v13472_v22 = vld [vmem:[%s16721_s3 + $0xf8] sm:$0xff]   ;;  %v12515_v34 = vpop.f32.mrb[68].mxu1 }
 0x1e4   : > { %v12516_v39 = vpop.f32.mrb[69].mxu1  ;;  %12731 = vmatprep.subr.bf16.mxu0 %v13472_v22 }
 0x1e5   : > { %v4045_v30 = vadd.f32 %v12396_v17, %v14693_v7  ;;  %v14779_v10 = vadd.f32 %v14735_v44, %v4042_v62  ;;  %v12517_v3 = vadd.f32 %v12516_v39, %v12515_v34  ;;  %v12518_v35 = vpop.f32.mrb[70].mxu1  ;;  %v13473_v7 = vld [vmem:[%s16721_s3 + $0xb8] sm:$0xff]  }
 0x1e6   : > { %v12519_v11 = vpop.f32.mrb[71].mxu1  ;;  %12732 = vmatpush3.bf16.msra.mxu0 %v13473_v7 }
 0x1e7   : > { %v12397_v57 = vpop.f32.mrb[96].mxu0  ;;  %v14782_v19 = vadd.f32 %v14739_v45, %v4045_v30  ;;  %v12520_v12 = vadd.f32 %v12519_v11, %v12518_v35 }
 0x1e8   : > { %v12398_v48 = vpop.f32.mrb[97].mxu0 }
 0x1e9   : > { %v12399_v44 = vadd.f32 %v12398_v48, %v12397_v57  ;;  %v12400_v28 = vpop.f32.mrb[98].mxu0 }
 0x1ea   : > { %v12401_v14 = vpop.f32.mrb[99].mxu0 }
 0x1eb   : > { %v4050_v2 = vadd.f32 %v12399_v44, %v14578_v20  ;;  %v12402_v13 = vadd.f32 %v12401_v14, %v12400_v28  ;;  %v12521_v45 = vpop.f32.mrb[72].mxu1 }
 0x1ec   : > { %v12522_v16 = vpop.f32.mrb[73].mxu1 }
 0x1ed   : > { %v4053_v51 = vadd.f32 %v12402_v13, %v14583_v40  ;;  %v14789_v41 = vadd.f32 %v12511_v4, %v4050_v2  ;;  %v12523_v55 = vadd.f32 %v12522_v16, %v12521_v45  ;;  %v12524_v1 = vpop.f32.mrb[74].mxu1  ;;  %v13474_v40 = vld [vmem:[%s16721_s3 + $0x148] sm:$0xff]  }
 0x1ee   : > { %v12525_v59 = vpop.f32.mrb[75].mxu1  ;;  %12831 = vmatprep.subr.bf16.mxu1 %v13474_v40 }
 0x1ef   : > { %v12403_v52 = vpop.f32.mrb[100].mxu0  ;;  %v14791_v24 = vadd.f32 %v12514_v47, %v4053_v51  ;;  %v12526_v5 = vadd.f32 %v12525_v59, %v12524_v1 }
 0x1f0   : > { %v12404_v36 = vpop.f32.mrb[101].mxu0 }
 0x1f1   : > { %v12405_v49 = vadd.f32 %v12404_v36, %v12403_v52  ;;  %v12406_v58 = vpop.f32.mrb[102].mxu0 }
 0x1f2   : > { %v12407_v6 = vpop.f32.mrb[103].mxu0 }
 0x1f3   : > { %v4058_v20 = vadd.f32 %v12405_v49, %v14587_v9  ;;  %v12408_v50 = vadd.f32 %v12407_v6, %v12406_v58  ;;  %v12527_v62 = vpop.f32.mrb[76].mxu1  ;;  %v13475_v9 = vld [vmem:[%s16721_s3 + $0x108] sm:$0xff]  }
 0x1f4   : > { %v12528_v47 = vpop.f32.mrb[77].mxu1  ;;  %12832 = vmatpush3.bf16.msra.mxu1 %v13475_v9 }
 0x1f5   : > { %v4061_v4 = vadd.f32 %v12408_v50, %v14591_v0  ;;  %v14798_v17 = vadd.f32 %v12517_v3, %v4058_v20  ;;  %v12529_v27 = vadd.f32 %v12528_v47, %v12527_v62  ;;  %v12530_v23 = vpop.f32.mrb[78].mxu1 }
 0x1f6   : > { %v12531_v22 = vpop.f32.mrb[79].mxu1 }
 0x1f7   : > { %v12409_v38 = vpop.f32.mrb[104].mxu0  ;;  %v14800_v32 = vadd.f32 %v12520_v12, %v4061_v4  ;;  %v12532_v39 = vadd.f32 %v12531_v22, %v12530_v23 }
 0x1f8   : > { %v12410_v53 = vpop.f32.mrb[105].mxu0 }
 0x1f9   : > { %v12411_v30 = vadd.f32 %v12410_v53, %v12409_v38  ;;  %v12412_v34 = vpop.f32.mrb[106].mxu0  ;;  %v16751_v38 = vld [vmem:[#allocation11_spill] sm:$0xff] }
 0x1fa   : > { %v12413_v0 = vpop.f32.mrb[107].mxu0 }
 0x1fb   : > { %v4066_v57 = vadd.f32 %v12411_v30, %v14597_v29  ;;  %v12414_v3 = vadd.f32 %v12413_v0, %v12412_v34  ;;  %v12533_v7 = vpop.f32.mrb[80].mxu1 }
 0x1fc   : > { %v12534_v11 = vpop.f32.mrb[81].mxu1 }
 0x1fd   : > { %v4069_v35 = vadd.f32 %v12414_v3, %v14600_v37  ;;  %v14807_v48 = vadd.f32 %v12523_v55, %v4066_v57  ;;  %v12535_v28 = vadd.f32 %v12534_v11, %v12533_v7  ;;  %v12536_v12 = vpop.f32.mrb[82].mxu1  ;;  %v13477_v7 = vld [vmem:[%s16721_s3 + $0x110] sm:$0xff]  }
 0x1fe   : > { %v12537_v13 = vpop.f32.mrb[83].mxu1 }
 0x1ff   : > { %v12415_v44 = vpop.f32.mrb[108].mxu0  ;;  %v14809_v14 = vadd.f32 %v12526_v5, %v4069_v35  ;;  %v12538_v16 = vadd.f32 %v12537_v13, %v12536_v12 }
 0x200   : > { %v12416_v2 = vpop.f32.mrb[109].mxu0 }
 0x201   : > { %v12417_v51 = vadd.f32 %v12416_v2, %v12415_v44  ;;  %v12418_v45 = vpop.f32.mrb[110].mxu0 }
 0x202   : > { %v12419_v52 = vpop.f32.mrb[111].mxu0 }
 0x203   : > { %v4074_v29 = vadd.f32 %v12417_v51, %v14604_v63  ;;  %v12420_v1 = vadd.f32 %v12419_v52, %v12418_v45  ;;  %v12539_v36 = vpop.f32.mrb[84].mxu1  ;;  %v16754_v45 = vld [vmem:[#allocation14_spill] sm:$0xff] }
 0x204   : > { %v12540_v59 = vpop.f32.mrb[85].mxu1 }
 0x205   : > { %v4077_v37 = vadd.f32 %v12420_v1, %v14607_v25  ;;  %v14813_v55 = vadd.f32 %v12529_v27, %v4074_v29  ;;  %v12541_v58 = vadd.f32 %v12540_v59, %v12539_v36  ;;  %v12542_v6 = vpop.f32.mrb[86].mxu1  ;;  %v13476_v25 = vld [vmem:[%s16721_s3 + $0x150] sm:$0xff]   ;;  %v16752_v27 = vld [vmem:[#allocation12_spill] sm:$0xff] }
 0x206   : > { %v12543_v50 = vpop.f32.mrb[87].mxu1  ;;  %12833 = vmatprep.subr.bf16.mxu1 %v13476_v25  ;;  %v16756_v25 = vld [vmem:[#allocation16_spill] sm:$0xff] }
 0x207   : > { %v12421_v49 = vpop.f32.mrb[112].mxu0  ;;  %v14815_v5 = vadd.f32 %v12532_v39, %v4077_v37  ;;  %v12544_v62 = vadd.f32 %v12543_v50, %v12542_v6  ;;  %12834 = vmatpush3.bf16.msra.mxu1 %v13477_v7  ;;  %v13478_v7 = vld [vmem:[%s16721_s3 + $0x158] sm:$0xff]  }
 0x208   : > { %v12422_v20 = vpop.f32.mrb[113].mxu0  ;;  %12835 = vmatprep.subr.bf16.mxu1 %v13478_v7 }
 0x209   : > { %v12423_v40 = vadd.f32 %v12422_v20, %v12421_v49  ;;  %v12424_v4 = vpop.f32.mrb[114].mxu0 }
 0x20a   : > { %v12425_v47 = vpop.f32.mrb[115].mxu0 }
 0x20b   : > { %v4082_v63 = vadd.f32 %v12423_v40, %v16751_v38  ;;  %v12426_v23 = vadd.f32 %v12425_v47, %v12424_v4  ;;  %v12545_v53 = vpop.f32.mrb[88].mxu1  ;;  %v16755_v38 = vld [vmem:[#allocation15_spill] sm:$0xff] }
 0x20c   : > { %v12546_v30 = vpop.f32.mrb[89].mxu1 }
 0x20d   : > { %v4085_v9 = vadd.f32 %v12426_v23, %v16752_v27  ;;  %v14822_v22 = vadd.f32 %v12535_v28, %v4082_v63  ;;  %v12547_v39 = vadd.f32 %v12546_v30, %v12545_v53  ;;  %v12548_v0 = vpop.f32.mrb[90].mxu1  ;;  %v16753_v28 = vld [vmem:[#allocation13_spill] sm:$0xff] }
 0x20e   : > { %v12549_v35 = vpop.f32.mrb[91].mxu1 }
 0x20f   : > { %v12427_v34 = vpop.f32.mrb[116].mxu0  ;;  %v14824_v57 = vadd.f32 %v12538_v16, %v4085_v9  ;;  %v12550_v12 = vadd.f32 %v12549_v35, %v12548_v0 }
 0x210   : > { %v12428_v3 = vpop.f32.mrb[117].mxu0 }
 0x211   : > { %v12429_v11 = vadd.f32 %v12428_v3, %v12427_v34  ;;  %v12430_v44 = vpop.f32.mrb[118].mxu0 }
 0x212   : > { %v12431_v2 = vpop.f32.mrb[119].mxu0 }
 0x213   : > { %v4090_v13 = vadd.f32 %v12429_v11, %v16753_v28  ;;  %v12432_v51 = vadd.f32 %v12431_v2, %v12430_v44  ;;  %v12551_v29 = vpop.f32.mrb[92].mxu1 }
 0x214   : > { %v12552_v16 = vpop.f32.mrb[93].mxu1 }
 0x215   : > { %v4093_v52 = vadd.f32 %v12432_v51, %v16754_v45  ;;  %v14831_v1 = vadd.f32 %v12541_v58, %v4090_v13  ;;  %v12553_v36 = vadd.f32 %v12552_v16, %v12551_v29  ;;  %v12554_v59 = vpop.f32.mrb[94].mxu1  ;;  %v16757_v13 = vld [vmem:[#allocation17_spill] sm:$0xff]  ;;  %v13479_v45 = vld [vmem:[%s16721_s3 + $0x118] sm:$0xff]  }
 0x216   : > { %v12555_v20 = vpop.f32.mrb[95].mxu1  ;;  %12836 = vmatpush3.bf16.msra.mxu1 %v13479_v45 }
 0x217   : > { %v12433_v37 = vpop.f32.mrb[120].mxu0  ;;  %v14833_v49 = vadd.f32 %v12544_v62, %v4093_v52  ;;  %v12556_v4 = vadd.f32 %v12555_v20, %v12554_v59 }
 0x218   : > { %v12434_v6 = vpop.f32.mrb[121].mxu0 }
 0x219   : > { %v12435_v50 = vadd.f32 %v12434_v6, %v12433_v37  ;;  %v12436_v40 = vpop.f32.mrb[122].mxu0 }
 0x21a   : > { %v12437_v47 = vpop.f32.mrb[123].mxu0 }
 0x21b   : > { %v4098_v63 = vadd.f32 %v12435_v50, %v16755_v38  ;;  %v12438_v23 = vadd.f32 %v12437_v47, %v12436_v40  ;;  %v12557_v9 = vpop.f32.mrb[96].mxu1 }
 0x21c   : > { %v12558_v53 = vpop.f32.mrb[97].mxu1 }
 0x21d   : > { %v4101_v27 = vadd.f32 %v12438_v23, %v16756_v25  ;;  %v14837_v58 = vadd.f32 %v12547_v39, %v4098_v63  ;;  %v12559_v34 = vadd.f32 %v12558_v53, %v12557_v9  ;;  %v12560_v0 = vpop.f32.mrb[98].mxu1 }
 0x21e   : > { %v12561_v35 = vpop.f32.mrb[99].mxu1 }
 0x21f   : > { %v12439_v30 = vpop.f32.mrb[124].mxu0  ;;  %v14839_v62 = vadd.f32 %v12550_v12, %v4101_v27  ;;  %v12562_v2 = vadd.f32 %v12561_v35, %v12560_v0  ;;  %v16758_v12 = vld [vmem:[#allocation18_spill] sm:$0xff] }
 0x220   : > { %v12440_v3 = vpop.f32.mrb[125].mxu0 }
 0x221   : > { %v12441_v11 = vadd.f32 %v12440_v3, %v12439_v30  ;;  %v12442_v44 = vpop.f32.mrb[126].mxu0 }
 0x222   : > { %v12443_v28 = vpop.f32.mrb[127].mxu0 }
 0x223   : > { %v4106_v39 = vadd.f32 %v12441_v11, %v16757_v13  ;;  %v12444_v51 = vadd.f32 %v12443_v28, %v12442_v44  ;;  %v12563_v29 = vpop.f32.mrb[100].mxu1 }
 0x224   : > { %v12564_v37 = vpop.f32.mrb[101].mxu1 }
 0x225   : > { %v4109_v52 = vadd.f32 %v12444_v51, %v16758_v12  ;;  %v14849_v16 = vadd.f32 %v12553_v36, %v4106_v39  ;;  %v12565_v6 = vadd.f32 %v12564_v37, %v12563_v29  ;;  %v12566_v20 = vpop.f32.mrb[102].mxu1  ;;  %v13481_v29 = vld [vmem:[%s16721_s3 + $0x120] sm:$0xff]  }
 0x226   : > { %v12567_v47 = vpop.f32.mrb[103].mxu1 }
 0x227   : > { %v12445_v59 = vpop.f32.mrb[128].mxu0  ;;  %v14851_v50 = vadd.f32 %v12556_v4, %v4109_v52  ;;  %v12568_v23 = vadd.f32 %v12567_v47, %v12566_v20 }
 0x228   : > { %v12446_v40 = vpop.f32.mrb[129].mxu0 }
 0x229   : > { %v12447_v38 = vadd.f32 %v12446_v40, %v12445_v59  ;;  %v12448_v63 = vpop.f32.mrb[130].mxu0 }
 0x22a   : > { %v12449_v25 = vpop.f32.mrb[131].mxu0 }
 0x22b   : > { %v4114_v27 = vadd.f32 %v12447_v38, %v14526_v33  ;;  %v12450_v9 = vadd.f32 %v12449_v25, %v12448_v63  ;;  %v12569_v36 = vpop.f32.mrb[104].mxu1  ;;  %v13480_v33 = vld [vmem:[%s16721_s3 + $0x160] sm:$0xff]  }
 0x22c   : > { %v12570_v0 = vpop.f32.mrb[105].mxu1  ;;  %12837 = vmatprep.subr.bf16.mxu1 %v13480_v33 }
 0x22d   : > { %v4117_v53 = vadd.f32 %v12450_v9, %v14536_v18  ;;  %v14855_v30 = vadd.f32 %v12559_v34, %v4114_v27  ;;  %v12571_v35 = vadd.f32 %v12570_v0, %v12569_v36  ;;  %v12572_v7 = vpop.f32.mrb[106].mxu1  ;;  %12838 = vmatpush3.bf16.msra.mxu1 %v13481_v29  ;;  %v5117_v29 = vld [vmem:[#allocation3 + $0x8] sm:$0x1f] }
 0x22e   : > { %v12573_v44 = vpop.f32.mrb[107].mxu1 }
 0x22f   : > { %v12451_v3 = vpop.f32.mrb[132].mxu0  ;;  %v14857_v4 = vadd.f32 %v12562_v2, %v4117_v53  ;;  %v12574_v39 = vadd.f32 %v12573_v44, %v12572_v7 }
 0x230   : > { %v12452_v11 = vpop.f32.mrb[133].mxu0 }
 0x231   : > { %v12453_v28 = vadd.f32 %v12452_v11, %v12451_v3  ;;  %v12454_v13 = vpop.f32.mrb[134].mxu0 }
 0x232   : > { %v12455_v51 = vpop.f32.mrb[135].mxu0 }
 0x233   : > { %v4122_v18 = vadd.f32 %v12453_v28, %v14593_v56  ;;  %v12456_v34 = vadd.f32 %v12455_v51, %v12454_v13  ;;  %v12575_v12 = vpop.f32.mrb[108].mxu1  ;;  %v13482_v13 = vld [vmem:[%s16721_s3 + $0x168] sm:$0xff]  }
 0x234   : > { %v12576_v2 = vpop.f32.mrb[109].mxu1  ;;  %12839 = vmatprep.subr.bf16.mxu1 %v13482_v13 }
 0x235   : > { %v4125_v45 = vadd.f32 %v12456_v34, %v14609_v26  ;;  %v14864_v52 = vadd.f32 %v12565_v6, %v4122_v18  ;;  %v12577_v59 = vadd.f32 %v12576_v2, %v12575_v12  ;;  %v12578_v20 = vpop.f32.mrb[110].mxu1 }
 0x236   : > { %v12579_v38 = vpop.f32.mrb[111].mxu1 }
 0x237   : > { %v12457_v37 = vpop.f32.mrb[136].mxu0  ;;  %v14869_v40 = vadd.f32 %v12568_v23, %v4125_v45  ;;  %v12580_v25 = vadd.f32 %v12579_v38, %v12578_v20 }
 0x238   : > { %v12458_v47 = vpop.f32.mrb[137].mxu0 }
 0x239   : > { %v12459_v56 = vadd.f32 %v12458_v47, %v12457_v37  ;;  %v12460_v63 = vpop.f32.mrb[138].mxu0 }
 0x23a   : > { %v12461_v26 = vpop.f32.mrb[139].mxu0 }
 0x23b   : > { %v4130_v6 = vadd.f32 %v12459_v56, %v14640_v60  ;;  %v12462_v27 = vadd.f32 %v12461_v26, %v12460_v63  ;;  %v5157_v63 = vshrl.u32 %v5117_v29, 16 }
 0x23d   : > { %v4133_v9 = vadd.f32 %v12462_v27, %v14643_v54  ;;  %v14873_v53 = vadd.f32 %v12571_v35, %v4130_v6 }
 0x23f   : > { %v12463_v36 = vpop.f32.mrb[140].mxu0  ;;  %v14875_v0 = vadd.f32 %v12574_v39, %v4133_v9 }
 0x240   : > { %v12464_v3 = vpop.f32.mrb[141].mxu0 }
 0x241   : > { %v12465_v23 = vadd.f32 %v12464_v3, %v12463_v36  ;;  %v12466_v7 = vpop.f32.mrb[142].mxu0 }
 0x242   : > { %v12467_v11 = vpop.f32.mrb[143].mxu0 }
 0x243   : > { %v4138_v44 = vadd.f32 %v12465_v23, %v14649_v42  ;;  %v12468_v28 = vadd.f32 %v12467_v11, %v12466_v7  ;;  %v13483_v42 = vld [vmem:[%s16721_s3 + $0x128] sm:$0xff]  }
 0x244   : > { %12840 = vmatpush3.bf16.msra.mxu1 %v13483_v42 }
 0x245   : > { %v4141_v60 = vadd.f32 %v12468_v28, %v14654_v46  ;;  %v14882_v51 = vadd.f32 %v12577_v59, %v4138_v44  ;;  %v5116_v46 = vld [vmem:[#allocation3] sm:$0xf0]  ;;  %v5159_v44 = vrot.slane %v5157_v63, 4 }
 0x246   : > { %v5149_v47 = vshrl.u32 %v5116_v46, 16  ;;  %v5152_v56 = vshll.u32 %v5116_v46, 16 }
 0x247   : > { %v13119_v54 = vpop.f32.mrb[144].mxu0  ;;  %v14884_v35 = vadd.f32 %v12580_v25, %v4141_v60  ;;  %v5160_v25 = vshll.u32 %v5117_v29, 16 }
 0x248   : > { %v4348_v39 = vadd.f32 %v13119_v54, %v14730_v8  ;;  %v4339_v33 = vpop.f32.mrb[145].mxu0  ;;  %v5151_v3 = vrot.slane %v5149_v47, 4  ;;  %v5154_v11 = vrot.slane %v5152_v56, 5 }
 0x249   : > { %v4340_v18 = vadd.f32 %v4339_v33, %v14709_v15  ;;  %v13120_v34 = vpop.f32.mrb[146].mxu0  ;;  %v5162_v28 = vrot.slane %v5160_v25, 5 }
 0x24a   : > { %v4351_v45 = vadd.f32 %v13120_v34, %v14737_v31  ;;  %v4342_v12 = vpop.f32.mrb[147].mxu0  ;;  %v4509_v37 = vmax.f32 %v4348_v39, 0.0  ;;  %v5155_v42 = vor.u32 %v5154_v11, %v5151_v3 }
 0x24b   : > { %v4343_v2 = vadd.f32 %v4342_v12, %v14711_v61  ;;  %v4507_v20 = vmax.f32 %v4340_v18, 0.0  ;;  %v5163_v18 = vor.u32 %v5162_v28, %v5159_v44 }
 0x24c   : > { %v4510_v59 = vmax.f32 %v4351_v45, 0.0 }
 0x24d   : > { %v4508_v8 = vmax.f32 %v4343_v2, 0.0  ;;  %v14906_v56 = vsel %vm996_vm2, %v5155_v42, %v5163_v18 }
 0x24e   : > { %v4540_v38 = vpack.c.bf16 %v4510_v59, %v4509_v37 }
 0x24f   : > { %v4539_v26 = vpack.c.bf16 %v4508_v8, %v4507_v20  ;;  %v13123_v15 = vpop.f32.mrb[148].mxu0 }
 0x250   : > { %v4572_v6 = vrot.slane %v4540_v38, 4  ;;  %v4364_v31 = vadd.f32 %v13123_v15, %v14779_v10  ;;  %v4355_v27 = vpop.f32.mrb[149].mxu0  ;;  %v13485_v15 = vld [vmem:[%s16721_s3 + $0x130] sm:$0xff]  }
 0x251   : > { %v4571_v9 = vrot.slane %v4539_v26, 4  ;;  %v4356_v36 = vadd.f32 %v4355_v27, %v14752_v21  ;;  %v13124_v61 = vpop.f32.mrb[150].mxu0  ;;  %v13484_v21 = vld [vmem:[%s16721_s3 + $0x170] sm:$0xff]  }
 0x252   : > { %4606 = vst [vmem:[#allocation3 + $0x28] ss:$-4 sps:$4 sm:$0xff] %v4572_v6   ;;  %v4367_v23 = vadd.f32 %v13124_v61, %v14782_v19  ;;  %v4358_v7 = vpop.f32.mrb[151].mxu0  ;;  %v4513_v60 = vmax.f32 %v4364_v31, 0.0  ;;  %12841 = vmatprep.subr.bf16.mxu1 %v13484_v21 }
 0x253   : > { %4604 = vst [vmem:[#allocation3 + $0x18] ss:$-4 sps:$4 sm:$0xff] %v4571_v9   ;;  %v4359_v13 = vadd.f32 %v4358_v7, %v14757_v43  ;;  %v4511_v39 = vmax.f32 %v4356_v36, 0.0  ;;  %12842 = vmatpush3.bf16.msra.mxu1 %v13485_v15 }
 0x254   : > { %v4514_v54 = vmax.f32 %v4367_v23, 0.0 }
 0x255   : > { %v4512_v10 = vmax.f32 %v4359_v13, 0.0 }
 0x256   : > { %v4542_v33 = vpack.c.bf16 %v4514_v54, %v4513_v60 }
 0x257   : > { %v4541_v34 = vpack.c.bf16 %v4512_v10, %v4511_v39  ;;  %v13127_v19 = vpop.f32.mrb[152].mxu0 }
 0x258   : > { %v4574_v45 = vrot.slane %v4542_v33, 4  ;;  %v4380_v12 = vadd.f32 %v13127_v19, %v14798_v17  ;;  %v4371_v46 = vpop.f32.mrb[153].mxu0 }
 0x259   : > { %v4573_v2 = vrot.slane %v4541_v34, 4  ;;  %v4372_v43 = vadd.f32 %v4371_v46, %v14789_v41  ;;  %v13128_v29 = vpop.f32.mrb[154].mxu0  ;;  %v14902_v37 = vld [vmem:[#allocation3 + $0x20] sm:$0xf0] }
 0x25a   : > { %4610 = vst [vmem:[#allocation3 + $0x48] ss:$-4 sps:$4 sm:$0xff] %v4574_v45   ;;  %v4517_v59 = vmax.f32 %v4380_v12, 0.0  ;;  %v4383_v20 = vadd.f32 %v13128_v29, %v14800_v32  ;;  %v4374_v8 = vpop.f32.mrb[155].mxu0  ;;  %v4974_v47 = vld [vmem:[#allocation3 + $0x10] sm:$0xf0] }
 0x25b   : > { %v4975_v38 = vld [vmem:[#allocation3 + $0x18] sm:$0xf]  ;;  %4608 = vst [vmem:[#allocation3 + $0x38] ss:$-4 sps:$4 sm:$0xff] %v4573_v2   ;;  %v4515_v17 = vmax.f32 %v4372_v43, 0.0  ;;  %v4375_v63 = vadd.f32 %v4374_v8, %v14791_v24  ;;  %v5039_v25 = vrot.slane %v4974_v47, 4 }
 0x25c   : > { %v5040_v26 = vrot.slane %v4975_v38, 4  ;;  %v4638_v41 = vld [vmem:[#allocation3 + $0x10] sm:$0xf8]  ;;  %v4518_v6 = vmax.f32 %v4383_v20, 0.0  ;;  %v4639_v31 = vld [vmem:[#allocation3 + $0x18] sm:$0xf] }
 0x25d   : > { %v4686_v32 = vshrl.u32 %v4638_v41, 16  ;;  %v4689_v27 = vshll.u32 %v4638_v41, 16  ;;  %v5042_v9 = vrot.slane %v14902_v37, 4  ;;  %v4516_v36 = vmax.f32 %v4375_v63, 0.0  ;;  %v5452_v7 = vld [vmem:[#allocation3 + $0x10] sm:$0xf8] }
 0x25e   : > { %v5041_v61 = vsel %vm883_vm0, %v5039_v25, %v5040_v26  ;;  %v4694_v3 = vshrl.u32 %v4639_v31, 16  ;;  %v4697_v23 = vshll.u32 %v4639_v31, 16  ;;  %v4544_v24 = vpack.c.bf16 %v4518_v6, %v4517_v59  ;;  %v5453_v10 = vld [vmem:[#allocation3 + $0x18] sm:$0xf]  ;;  %v4977_v45 = vld [vmem:[#allocation3 + $0x28] sm:$0xf] }
 0x25f   : > { %7852 = vmatprep.mubr.bf16.mxu1 %v5041_v61  ;;  %v4688_v11 = vrot.slane %v4686_v32, 3  ;;  %v4691_v44 = vrot.slane %v4689_v27, 4  ;;  %v5485_v28 = vshrl.u32 %v5452_v7, 16  ;;  %v4543_v13 = vpack.c.bf16 %v4516_v36, %v4515_v17  ;;  %v13131_v60 = vpop.f32.mrb[156].mxu0  ;;  %v5454_v37 = vld [vmem:[#allocation3 + $0x20] sm:$0xf8] }
 0x260   : > { %v4696_v54 = vrot.slane %v4694_v3, 3  ;;  %v4699_v39 = vrot.slane %v4697_v23, 4  ;;  %v5488_v33 = vshll.u32 %v5452_v7, 16  ;;  %v4576_v42 = vrot.slane %v4544_v24, 4  ;;  %v4387_v21 = vpop.f32.mrb[157].mxu0 }
 0x261   : > { %v4396_v18 = vadd.f32 %v13131_v60, %v14813_v55  ;;  %v4692_v34 = vor.u32 %v4691_v44, %v4688_v11  ;;  %v5487_v19 = vrot.slane %v5485_v28, 3  ;;  %v4575_v12 = vrot.slane %v4543_v13, 4  ;;  %v13132_v2 = vpop.f32.mrb[158].mxu0  ;;  %v5455_v17 = vld [vmem:[#allocation3 + $0x28] sm:$0xf]  ;;  %v13487_v60 = vld [vmem:[%s16721_s3 + $0x180] sm:$0xff]  }
 0x262   : > { %v4388_v46 = vadd.f32 %v4387_v21, %v14807_v48  ;;  %v4700_v43 = vor.u32 %v4699_v39, %v4696_v54  ;;  %v5490_v29 = vrot.slane %v5488_v33, 4  ;;  %4614 = vst [vmem:[#allocation3 + $0x68] ss:$-4 sps:$4 sm:$0xff] %v4576_v42   ;;  %v4399_v20 = vadd.f32 %v13132_v2, %v14815_v5  ;;  %v4390_v8 = vpop.f32.mrb[159].mxu0  ;;  %v13486_v48 = vld [vmem:[%s16721_s3 + $0x1c0] sm:$0xff]  }
 0x263   : > { %v4521_v59 = vmax.f32 %v4396_v18, 0.0  ;;  %v5493_v47 = vshrl.u32 %v5453_v10, 16  ;;  %v5496_v38 = vshll.u32 %v5453_v10, 16  ;;  %4612 = vst [vmem:[#allocation3 + $0x58] ss:$-4 sps:$4 sm:$0xff] %v4575_v12   ;;  %v4391_v63 = vadd.f32 %v4390_v8, %v14809_v14  ;;  %12941 = vmatprep.subr.bf16.mxu0 %v13486_v48  ;;  %v13488_v18 = vld [vmem:[%s16721_s3 + $0x1c8] sm:$0xff]  }
 0x264   : > { %v4519_v55 = vmax.f32 %v4388_v46, 0.0  ;;  %v4701_v25 = vsel %vm514_vm1, %v4692_v34, %v4700_v43  ;;  %v5491_v26 = vor.u32 %v5490_v29, %v5487_v19  ;;  %v4522_v41 = vmax.f32 %v4399_v20, 0.0  ;;  %v4640_v7 = vld [vmem:[#allocation3 + $0x20] sm:$0xf8]  ;;  %v4978_v46 = vld [vmem:[#allocation3 + $0x30] sm:$0xf0] }
 0x265   : > { %7853 = vmatmul.mubr.bf16.gmra.mrb[116].mxu1 %v4701_v25  ;;  %v5495_v15 = vrot.slane %v5493_v47, 3  ;;  %v5498_v6 = vrot.slane %v5496_v38, 4  ;;  %v5043_v5 = vrot.slane %v4977_v45, 4  ;;  %v4520_v31 = vmax.f32 %v4391_v63, 0.0  ;;  %v13490_v20 = vld [vmem:[%s16721_s3 + $0x178] sm:$0xff]  }
 0x266   : > { %v5502_v32 = vshrl.u32 %v5454_v37, 16  ;;  %v5505_v27 = vshll.u32 %v5454_v37, 16  ;;  %v5510_v36 = vshrl.u32 %v5455_v17, 16  ;;  %v4546_v61 = vpack.c.bf16 %v4522_v41, %v4521_v59  ;;  %v4979_v59 = vld [vmem:[#allocation3 + $0x38] sm:$0xf]  ;;  %12843 = vmatprep.subr.bf16.mxu1 %v13490_v20 }
 0x267   : > { %v5499_v3 = vor.u32 %v5498_v6, %v5495_v15  ;;  %v5044_v14 = vsel %vm883_vm0, %v5042_v9, %v5043_v5  ;;  %v5513_v23 = vshll.u32 %v5455_v17, 16  ;;  %v4545_v24 = vpack.c.bf16 %v4520_v31, %v4519_v55  ;;  %v13135_v13 = vpop.f32.mrb[160].mxu0  ;;  %v4641_v9 = vld [vmem:[#allocation3 + $0x28] sm:$0xf]  ;;  %v5118_v17 = vld [vmem:[#allocation3 + $0x10] sm:$0xf0] }
 0x268   : > { %7860 = vmatprep.mubr.bf16.mxu1 %v5044_v14  ;;  %v5504_v11 = vrot.slane %v5502_v32, 3  ;;  %v5507_v44 = vrot.slane %v5505_v27, 4  ;;  %v5512_v28 = vrot.slane %v5510_v36, 3  ;;  %v4578_v54 = vrot.slane %v4546_v61, 4  ;;  %v4403_v42 = vpop.f32.mrb[161].mxu0 }
 0x269   : > { %v5500_v39 = vsel %vm514_vm1, %v5491_v26, %v5499_v3  ;;  %v5515_v10 = vrot.slane %v5513_v23, 4  ;;  %v4412_v33 = vadd.f32 %v13135_v13, %v14831_v1  ;;  %v4577_v21 = vrot.slane %v4545_v24, 4  ;;  %v13136_v45 = vpop.f32.mrb[162].mxu0  ;;  %v5119_v26 = vld [vmem:[#allocation3 + $0x18] sm:$0x1f] }
 0x26a   : > { %8005 = vmatprep.mubr.bf16.mxu0 %v5500_v39  ;;  %v5508_v34 = vor.u32 %v5507_v44, %v5504_v11  ;;  %v4404_v19 = vadd.f32 %v4403_v42, %v14822_v22  ;;  %v4703_v12 = vshrl.u32 %v4640_v7, 16  ;;  %4618 = vst [vmem:[#allocation3 + $0x88] ss:$-4 sps:$4 sm:$0xff] %v4578_v54   ;;  %v4415_v1 = vadd.f32 %v13136_v45, %v14833_v49  ;;  %v4406_v29 = vpop.f32.mrb[163].mxu0  ;;  %v5456_v36 = vld [vmem:[#allocation3 + $0x30] sm:$0xf8] }
 0x26b   : > { %8006 = vmatmul.mubr.bf16.vlgmr.msra.gmra.mrb[176].mxu0 %v14906_v56  ;;  %v5516_v2 = vor.u32 %v5515_v10, %v5512_v28  ;;  %v4525_v43 = vmax.f32 %v4412_v33, 0.0  ;;  %v4706_v37 = vshll.u32 %v4640_v7, 16  ;;  %4616 = vst [vmem:[#allocation3 + $0x78] ss:$-4 sps:$4 sm:$0xff] %v4577_v21   ;;  %v4407_v22 = vadd.f32 %v4406_v29, %v14824_v57  ;;  %v13489_v56 = vld [vmem:[%s16721_s3 + $0x188] sm:$0xff]   ;;  %v13491_v57 = vld [vmem:[%s16721_s3 + $0x138] sm:$0xff]  }
 0x26c   : > { %v4523_v8 = vmax.f32 %v4404_v19, 0.0  ;;  %v4705_v47 = vrot.slane %v4703_v12, 3  ;;  %v4711_v38 = vshrl.u32 %v4641_v9, 16  ;;  %12942 = vmatpush3.bf16.msra.mxu0 %v13487_v60  ;;  %v4526_v55 = vmax.f32 %v4415_v1, 0.0  ;;  %12844 = vmatpush3.bf16.msra.mxu1 %v13491_v57  ;;  %v5457_v7 = vld [vmem:[#allocation3 + $0x38] sm:$0xf] }
 0x26d   : > { %v5517_v49 = vsel %vm514_vm1, %v5508_v34, %v5516_v2  ;;  %v4708_v63 = vrot.slane %v4706_v37, 4  ;;  %v4714_v25 = vshll.u32 %v4641_v9, 16  ;;  %12943 = vmatprep.subr.bf16.mxu0 %v13488_v18  ;;  %v4524_v48 = vmax.f32 %v4407_v22, 0.0  ;;  %v13492_v11 = vld [vmem:[%s16721_s3 + $0x1d0] sm:$0xff]  }
 0x26e   : > { %8013 = vmatprep.mubr.bf16.mxu0 %v5517_v49  ;;  %v4713_v41 = vrot.slane %v4711_v38, 3  ;;  %v5045_v15 = vrot.slane %v4978_v46, 4  ;;  %v5046_v6 = vrot.slane %v4979_v59, 4  ;;  %v4548_v5 = vpack.c.bf16 %v4526_v55, %v4525_v43  ;;  %v13493_v18 = vld [vmem:[%s16721_s3 + $0x190] sm:$0xff]   ;;  %v4980_v49 = vld [vmem:[#allocation3 + $0x40] sm:$0xf0] }
 0x26f   : > { %v4709_v31 = vor.u32 %v4708_v63, %v4705_v47  ;;  %v4716_v32 = vrot.slane %v4714_v25, 4  ;;  %v5166_v27 = vshrl.u32 %v5118_v17, 16  ;;  %v4547_v61 = vpack.c.bf16 %v4524_v48, %v4523_v8  ;;  %v13139_v24 = vpop.f32.mrb[164].mxu0  ;;  %v4642_v29 = vld [vmem:[#allocation3 + $0x30] sm:$0xf8] }
 0x270   : > { %v5047_v3 = vsel %vm883_vm0, %v5045_v15, %v5046_v6  ;;  %v5169_v14 = vshll.u32 %v5118_v17, 16  ;;  %v5174_v23 = vshrl.u32 %v5119_v26, 16  ;;  %12944 = vmatpush3.bf16.msra.mxu0 %v13489_v56  ;;  %v4580_v44 = vrot.slane %v4548_v5, 4  ;;  %v4419_v54 = vpop.f32.mrb[165].mxu0  ;;  %v4643_v56 = vld [vmem:[#allocation3 + $0x38] sm:$0xf] }
 0x271   : > { %v4717_v28 = vor.u32 %v4716_v32, %v4713_v41  ;;  %v5168_v13 = vrot.slane %v5166_v27, 4  ;;  %v5177_v60 = vshll.u32 %v5119_v26, 16  ;;  %v4579_v39 = vrot.slane %v4547_v61, 4  ;;  %v13140_v9 = vpop.f32.mrb[166].mxu0  ;;  %12945 = vmatprep.subr.bf16.mxu0 %v13492_v11  ;;  %v4981_v26 = vld [vmem:[#allocation3 + $0x48] sm:$0xf] }
 0x272   : > { %v5171_v10 = vrot.slane %v5169_v14, 5  ;;  %v5176_v33 = vrot.slane %v5174_v23, 4  ;;  %v5519_v42 = vshrl.u32 %v5456_v36, 16  ;;  %4622 = vst [vmem:[#allocation3 + $0xa8] ss:$-4 sps:$4 sm:$0xff] %v4580_v44   ;;  %v5522_v19 = vshll.u32 %v5456_v36, 16 }
 0x273   : > { %v4718_v21 = vsel %vm514_vm1, %v4709_v31, %v4717_v28  ;;  %v5179_v34 = vrot.slane %v5177_v60, 5  ;;  %v5527_v45 = vshrl.u32 %v5457_v7, 16  ;;  %v4422_v12 = vpop.f32.mrb[167].mxu0  ;;  %4620 = vst [vmem:[#allocation3 + $0x98] ss:$-4 sps:$4 sm:$0xff] %v4579_v39   ;;  %v5530_v43 = vshll.u32 %v5457_v7, 16 }
 0x274   : > { %7861 = vmatmul.mubr.bf16.gmra.mrb[120].mxu1 %v4718_v21  ;;  %v5172_v46 = vor.u32 %v5171_v10, %v5168_v13  ;;  %v5521_v2 = vrot.slane %v5519_v42, 3  ;;  %v4428_v1 = vadd.f32 %v13139_v24, %v14849_v16  ;;  %12946 = vmatpush3.bf16.msra.mxu0 %v13493_v18  ;;  %v5524_v59 = vrot.slane %v5522_v19, 4  ;;  %v13494_v27 = vld [vmem:[%s16721_s3 + $0x1d8] sm:$0xff]   ;;  %v5121_v23 = vld [vmem:[#allocation3 + $0x28] sm:$0x1f]  ;;  %v13496_v18 = vld [vmem:[%s16721_s3 + $0x1e0] sm:$0xff]  }
 0x275   : > { %7868 = vmatprep.mubr.bf16.mxu1 %v5047_v3  ;;  %v5180_v37 = vor.u32 %v5179_v34, %v5176_v33  ;;  %v5529_v20 = vrot.slane %v5527_v45, 3  ;;  %v4420_v8 = vadd.f32 %v4419_v54, %v14837_v58  ;;  %v5532_v22 = vrot.slane %v5530_v43, 4  ;;  %v5120_v58 = vld [vmem:[#allocation3 + $0x20] sm:$0xf0]  ;;  %12947 = vmatprep.subr.bf16.mxu0 %v13494_v27  ;;  %v13495_v54 = vld [vmem:[%s16721_s3 + $0x198] sm:$0xff]  }
 0x276   : > { %v4529_v47 = vmax.f32 %v4428_v1, 0.0  ;;  %v4431_v38 = vadd.f32 %v13140_v9, %v14851_v50  ;;  %v4423_v17 = vadd.f32 %v4422_v12, %v14839_v62  ;;  %v5525_v63 = vor.u32 %v5524_v59, %v5521_v2  ;;  %v5458_v7 = vld [vmem:[#allocation3 + $0x40] sm:$0xf8]  ;;  %v5459_v9 = vld [vmem:[#allocation3 + $0x48] sm:$0xf] }
 0x277   : > { %v5181_v55 = vsel %vm996_vm2, %v5172_v46, %v5180_v37  ;;  %v4527_v16 = vmax.f32 %v4420_v8, 0.0  ;;  %v4720_v25 = vshrl.u32 %v4642_v29, 16  ;;  %v5533_v57 = vor.u32 %v5532_v22, %v5529_v20  ;;  %v13143_v6 = vpop.f32.mrb[168].mxu0  ;;  %v13497_v20 = vld [vmem:[%s16721_s3 + $0x1a0] sm:$0xff]  }
 0x278   : > { %8014 = vmatmul.mubr.bf16.gmra.mrb[180].mxu0 %v5181_v55  ;;  %v4530_v48 = vmax.f32 %v4431_v38, 0.0  ;;  %v4528_v41 = vmax.f32 %v4423_v17, 0.0  ;;  %v4723_v15 = vshll.u32 %v4642_v29, 16  ;;  %v4728_v31 = vshrl.u32 %v4643_v56, 16  ;;  %v4435_v62 = vpop.f32.mrb[169].mxu0 }
 0x279   : > { %v4722_v5 = vrot.slane %v4720_v25, 3  ;;  %v4731_v50 = vshll.u32 %v4643_v56, 16  ;;  %v5048_v32 = vrot.slane %v4980_v49, 4  ;;  %v5534_v36 = vsel %vm514_vm1, %v5525_v63, %v5533_v57  ;;  %v13144_v24 = vpop.f32.mrb[170].mxu0  ;;  %12948 = vmatpush3.bf16.msra.mxu0 %v13495_v54  ;;  %v4644_v17 = vld [vmem:[#allocation3 + $0x40] sm:$0xf8] }
 0x27a   : > { %v4550_v61 = vpack.c.bf16 %v4530_v48, %v4529_v47  ;;  %v4549_v3 = vpack.c.bf16 %v4528_v41, %v4527_v16  ;;  %v4725_v14 = vrot.slane %v4723_v15, 4  ;;  %8021 = vmatprep.mubr.bf16.mxu0 %v5534_v36  ;;  %v4730_v11 = vrot.slane %v4728_v31, 3  ;;  %v4438_v60 = vpop.f32.mrb[171].mxu0  ;;  %12949 = vmatprep.subr.bf16.mxu0 %v13496_v18  ;;  %v5460_v18 = vld [vmem:[#allocation3 + $0x50] sm:$0xf8] }
 0x27b   : > { %v4733_v44 = vrot.slane %v4731_v50, 4  ;;  %v5049_v28 = vrot.slane %v4981_v26, 4  ;;  %v5183_v13 = vshrl.u32 %v5120_v58, 16  ;;  %v5186_v42 = vshll.u32 %v5120_v58, 16  ;;  %v13498_v26 = vld [vmem:[%s16721_s3 + $0x1e8] sm:$0xff]  }
 0x27c   : > { %v4582_v39 = vrot.slane %v4550_v61, 4  ;;  %v4581_v10 = vrot.slane %v4549_v3, 4  ;;  %v4726_v33 = vor.u32 %v4725_v14, %v4722_v5  ;;  %v5191_v45 = vshrl.u32 %v5121_v23, 16  ;;  %v4645_v58 = vld [vmem:[#allocation3 + $0x48] sm:$0xf]  ;;  %v13500_v14 = vld [vmem:[%s16721_s3 + $0x200] sm:$0xff]  }
 0x27d   : > { %v4734_v21 = vor.u32 %v4733_v44, %v4730_v11  ;;  %v5050_v34 = vsel %vm883_vm0, %v5048_v32, %v5049_v28  ;;  %v5185_v19 = vrot.slane %v5183_v13, 4  ;;  %v5188_v12 = vrot.slane %v5186_v42, 5  ;;  %12950 = vmatpush3.bf16.msra.mxu0 %v13497_v20  ;;  %v4982_v5 = vld [vmem:[#allocation3 + $0x50] sm:$0xf0]  ;;  %13149 = vmatprep.subr.bf16.mxu1 %v13500_v14  ;;  %v5124_v14 = vld [vmem:[#allocation3 + $0x40] sm:$0xf0] }
 0x27e   : > { %4626 = vst [vmem:[#allocation3 + $0xc8] ss:$-4 sps:$4 sm:$0xff] %v4582_v39   ;;  %4624 = vst [vmem:[#allocation3 + $0xb8] ss:$-4 sps:$4 sm:$0xff] %v4581_v10   ;;  %v5194_v46 = vshll.u32 %v5121_v23, 16  ;;  %v5536_v2 = vshrl.u32 %v5458_v7, 16  ;;  %v4444_v63 = vadd.f32 %v13143_v6, %v14864_v52  ;;  %v4436_v16 = vadd.f32 %v4435_v62, %v14855_v30  ;;  %12951 = vmatprep.subr.bf16.mxu0 %v13498_v26 }
 0x27f   : > { %v5539_v43 = vshll.u32 %v5458_v7, 16  ;;  %v4735_v1 = vsel %vm514_vm1, %v4726_v33, %v4734_v21  ;;  %v5193_v29 = vrot.slane %v5191_v45, 4  ;;  %v5544_v37 = vshrl.u32 %v5459_v9, 16  ;;  %v14973_v56 = vpop.f32.mrb[172].mxu0  ;;  %v13499_v30 = vld [vmem:[%s16721_s3 + $0x1a8] sm:$0xff]   ;;  %v13501_v44 = vld [vmem:[%s16721_s3 + $0x1f0] sm:$0xff]  }
 0x280   : > { %v5547_v59 = vshll.u32 %v5459_v9, 16  ;;  %7869 = vmatmul.mubr.bf16.gmra.mrb[124].mxu1 %v4735_v1  ;;  %v5189_v8 = vor.u32 %v5188_v12, %v5185_v19  ;;  %v5196_v22 = vrot.slane %v5194_v46, 5  ;;  %v5538_v47 = vrot.slane %v5536_v2, 3  ;;  %v14977_v25 = vpop.f32.mrb[173].mxu0  ;;  %v4983_v62 = vld [vmem:[#allocation3 + $0x58] sm:$0xf] }
 0x281   : > { %v5541_v38 = vrot.slane %v5539_v43, 4  ;;  %7876 = vmatprep.mubr.bf16.mxu1 %v5050_v34  ;;  %v5546_v49 = vrot.slane %v5544_v37, 3  ;;  %v4447_v41 = vadd.f32 %v13144_v24, %v14869_v40  ;;  %v4439_v15 = vadd.f32 %v4438_v60, %v14857_v4  ;;  %v14984_v31 = vpop.f32.mrb[174].mxu0  ;;  %v5122_v3 = vld [vmem:[#allocation3 + $0x30] sm:$0xf0]  ;;  %12952 = vmatpush3.bf16.msra.mxu0 %v13499_v30 }
 0x282   : > { %v5549_v55 = vrot.slane %v5547_v59, 4  ;;  %v5197_v57 = vor.u32 %v5196_v22, %v5193_v29  ;;  %v4533_v6 = vmax.f32 %v4444_v63, 0.0  ;;  %v4531_v50 = vmax.f32 %v4436_v16, 0.0  ;;  %v14989_v27 = vpop.f32.mrb[175].mxu0  ;;  %v5123_v39 = vld [vmem:[#allocation3 + $0x38] sm:$0x1f]  ;;  %12953 = vmatprep.subr.bf16.mxu0 %v13501_v44 }
 0x283   : > { %v5542_v48 = vor.u32 %v5541_v38, %v5538_v47  ;;  %v4737_v32 = vshrl.u32 %v4644_v17, 16  ;;  %v4534_v36 = vmax.f32 %v4447_v41, 0.0  ;;  %v4532_v4 = vmax.f32 %v4439_v15, 0.0  ;;  %v5461_v12 = vld [vmem:[#allocation3 + $0x58] sm:$0xf]  ;;  %v13502_v46 = vld [vmem:[%s16721_s3 + $0x1b0] sm:$0xff]  }
 0x284   : > { %v5550_v52 = vor.u32 %v5549_v55, %v5546_v49  ;;  %v5198_v40 = vsel %vm996_vm2, %v5189_v8, %v5197_v57  ;;  %v4740_v61 = vshll.u32 %v4644_v17, 16  ;;  %v4745_v24 = vshrl.u32 %v4645_v58, 16  ;;  %v13503_v49 = vld [vmem:[%s16721_s3 + $0x1f8] sm:$0xff]   ;;  %v4646_v57 = vld [vmem:[#allocation3 + $0x50] sm:$0xf8] }
 0x285   : > { %8022 = vmatmul.mubr.bf16.gmra.mrb[184].mxu0 %v5198_v40  ;;  %v4739_v7 = vrot.slane %v4737_v32, 3  ;;  %v4748_v11 = vshll.u32 %v4645_v58, 16  ;;  %v4552_v28 = vpack.c.bf16 %v4534_v36, %v4533_v6  ;;  %v4551_v13 = vpack.c.bf16 %v4532_v4, %v4531_v50  ;;  %v4647_v32 = vld [vmem:[#allocation3 + $0x58] sm:$0xf]  ;;  %v5125_v44 = vld [vmem:[#allocation3 + $0x48] sm:$0x1f] }
 0x286   : > { %v5551_v23 = vsel %vm514_vm1, %v5542_v48, %v5550_v52  ;;  %v4742_v60 = vrot.slane %v4740_v61, 4  ;;  %v5051_v54 = vrot.slane %v4982_v5, 4  ;;  %v4747_v10 = vrot.slane %v4745_v24, 3  ;;  %12954 = vmatpush3.bf16.msra.mxu0 %v13502_v46  ;;  %v13504_v48 = vld [vmem:[%s16721_s3 + $0x1b8] sm:$0xff]  }
 0x287   : > { %8029 = vmatprep.mubr.bf16.mxu0 %v5551_v23  ;;  %v4750_v33 = vrot.slane %v4748_v11, 4  ;;  %v5052_v42 = vrot.slane %v4983_v62, 4  ;;  %v5200_v9 = vshrl.u32 %v5122_v3, 16  ;;  %v4584_v21 = vrot.slane %v4552_v28, 4  ;;  %12955 = vmatprep.subr.bf16.mxu0 %v13503_v49  ;;  %v4984_v62 = vld [vmem:[#allocation3 + $0x60] sm:$0xf0] }
 0x288   : > { %v4583_v34 = vrot.slane %v4551_v13, 4  ;;  %v4743_v19 = vor.u32 %v4742_v60, %v4739_v7  ;;  %v5203_v45 = vshll.u32 %v5122_v3, 16  ;;  %v5208_v29 = vshrl.u32 %v5123_v39, 16  ;;  %v4986_v49 = vld [vmem:[#allocation3 + $0x70] sm:$0xf0] }
 0x289   : > { %v4751_v2 = vor.u32 %v4750_v33, %v4747_v10  ;;  %v5053_v43 = vsel %vm883_vm0, %v5051_v54, %v5052_v42  ;;  %v5202_v1 = vrot.slane %v5200_v9, 4  ;;  %4630 = vst [vmem:[#allocation3 + $0xe8] ss:$-4 sps:$4 sm:$0xff] %v4584_v21   ;;  %v5211_v59 = vshll.u32 %v5123_v39, 16  ;;  %v5462_v39 = vld [vmem:[#allocation3 + $0x60] sm:$0xf8] }
 0x28a   : > { %4628 = vst [vmem:[#allocation3 + $0xd8] ss:$-4 sps:$4 sm:$0xff] %v4583_v34   ;;  %v5205_v37 = vrot.slane %v5203_v45, 5  ;;  %v5553_v20 = vshrl.u32 %v5460_v18, 16  ;;  %v5556_v8 = vshll.u32 %v5460_v18, 16  ;;  %v5210_v47 = vrot.slane %v5208_v29, 4  ;;  %12956 = vmatpush3.bf16.msra.mxu0 %v13504_v48 }
 0x28b   : > { %v4752_v22 = vsel %vm514_vm1, %v4743_v19, %v4751_v2  ;;  %v5561_v38 = vshrl.u32 %v5461_v12, 16  ;;  %v5564_v17 = vshll.u32 %v5461_v12, 16  ;;  %v5213_v63 = vrot.slane %v5211_v59, 5  ;;  %v5463_v18 = vld [vmem:[#allocation3 + $0x68] sm:$0xf] }
 0x28c   : > { %7877 = vmatmul.mubr.bf16.gmra.mrb[128].mxu1 %v4752_v22  ;;  %v5206_v55 = vor.u32 %v5205_v37, %v5202_v1  ;;  %v5555_v16 = vrot.slane %v5553_v20, 3  ;;  %v5558_v26 = vrot.slane %v5556_v8, 4  ;;  %v4460_v58 = vadd.f32 %v14973_v56, %v14882_v51  ;;  %v4985_v51 = vld [vmem:[#allocation3 + $0x68] sm:$0xf]  ;;  %v4648_v1 = vld [vmem:[#allocation3 + $0x60] sm:$0xf8] }
 0x28d   : > { %7884 = vmatprep.mubr.bf16.mxu1 %v5053_v43  ;;  %v5563_v41 = vrot.slane %v5561_v38, 3  ;;  %v5566_v15 = vrot.slane %v5564_v17, 4  ;;  %v4452_v5 = vadd.f32 %v14977_v25, %v14873_v53  ;;  %v5214_v30 = vor.u32 %v5213_v63, %v5210_v47  ;;  %v4649_v8 = vld [vmem:[#allocation3 + $0x68] sm:$0xf] }
 0x28e   : > { %v5559_v52 = vor.u32 %v5558_v26, %v5555_v16  ;;  %v4463_v6 = vadd.f32 %v14984_v31, %v14884_v35  ;;  %v4455_v50 = vadd.f32 %v14989_v27, %v14875_v0  ;;  %v4537_v36 = vmax.f32 %v4460_v58, 0.0 }
 0x28f   : > { %v5567_v40 = vor.u32 %v5566_v15, %v5563_v41  ;;  %v4535_v4 = vmax.f32 %v4452_v5, 0.0  ;;  %v4754_v61 = vshrl.u32 %v4646_v57, 16  ;;  %v5215_v56 = vsel %vm996_vm2, %v5206_v55, %v5214_v30  ;;  %v5126_v5 = vld [vmem:[#allocation3 + $0x50] sm:$0xf0] }
 0x290   : > { %v4538_v53 = vmax.f32 %v4463_v6, 0.0  ;;  %v4536_v25 = vmax.f32 %v4455_v50, 0.0  ;;  %v4757_v3 = vshll.u32 %v4646_v57, 16  ;;  %8030 = vmatmul.mubr.bf16.gmra.mrb[188].mxu0 %v5215_v56  ;;  %v4762_v23 = vshrl.u32 %v4647_v32, 16  ;;  %v4987_v57 = vld [vmem:[#allocation3 + $0x78] sm:$0xf] }
 0x291   : > { %v5568_v35 = vsel %vm514_vm1, %v5559_v52, %v5567_v40  ;;  %v4756_v31 = vrot.slane %v4754_v61, 3  ;;  %v4765_v0 = vshll.u32 %v4647_v32, 16  ;;  %v5054_v11 = vrot.slane %v4984_v62, 4  ;;  %v5127_v32 = vld [vmem:[#allocation3 + $0x58] sm:$0x1f] }
 0x292   : > { %8037 = vmatprep.mubr.bf16.mxu0 %v5568_v35  ;;  %v4554_v27 = vpack.c.bf16 %v4538_v53, %v4537_v36  ;;  %v4553_v7 = vpack.c.bf16 %v4536_v25, %v4535_v4  ;;  %v4759_v24 = vrot.slane %v4757_v3, 4  ;;  %v4764_v28 = vrot.slane %v4762_v23, 3  ;;  %v5464_v61 = vld [vmem:[#allocation3 + $0x70] sm:$0xf8]  ;;  %v5465_v3 = vld [vmem:[#allocation3 + $0x78] sm:$0xf] }
 0x293   : > { %v4767_v13 = vrot.slane %v4765_v0, 4  ;;  %v5055_v60 = vrot.slane %v4985_v51, 4  ;;  %v5217_v54 = vshrl.u32 %v5124_v14, 16  ;;  %v5220_v9 = vshll.u32 %v5124_v14, 16  ;;  %v4650_v0 = vld [vmem:[#allocation3 + $0x70] sm:$0xf8] }
 0x294   : > { %v4586_v10 = vrot.slane %v4554_v27, 4  ;;  %v4585_v33 = vrot.slane %v4553_v7, 4  ;;  %v4760_v42 = vor.u32 %v4759_v24, %v4756_v31  ;;  %v5225_v45 = vshrl.u32 %v5125_v44, 16 }
 0x295   : > { %v4768_v21 = vor.u32 %v4767_v13, %v4764_v28  ;;  %v5056_v34 = vsel %vm883_vm0, %v5054_v11, %v5055_v60  ;;  %v5219_v19 = vrot.slane %v5217_v54, 4  ;;  %v5222_v12 = vrot.slane %v5220_v9, 5 }
 0x296   : > { %4634 = vst [vmem:[#allocation3 + $0x108] ss:$-4 sps:$4 sm:$0xff] %v4586_v10   ;;  %4632 = vst [vmem:[#allocation3 + $0xf8] ss:$-4 sps:$4 sm:$0xff] %v4585_v33   ;;  %v5228_v46 = vshll.u32 %v5125_v44, 16  ;;  %v5570_v2 = vshrl.u32 %v5462_v39, 16 }
 0x297   : > { %v5573_v43 = vshll.u32 %v5462_v39, 16  ;;  %v4769_v29 = vsel %vm514_vm1, %v4760_v42, %v4768_v21  ;;  %v5227_v37 = vrot.slane %v5225_v45, 4  ;;  %v5578_v59 = vshrl.u32 %v5463_v18, 16  ;;  %v4651_v44 = vld [vmem:[#allocation3 + $0x78] sm:$0xf] }
 0x298   : > { %v5581_v20 = vshll.u32 %v5463_v18, 16  ;;  %7885 = vmatmul.mubr.bf16.gmra.mrb[132].mxu1 %v4769_v29  ;;  %v5223_v22 = vor.u32 %v5222_v12, %v5219_v19  ;;  %v5230_v47 = vrot.slane %v5228_v46, 5  ;;  %v5572_v38 = vrot.slane %v5570_v2, 3  ;;  %v4988_v39 = vld [vmem:[#allocation3 + $0x80] sm:$0xf0] }
 0x299   : > { %v5575_v17 = vrot.slane %v5573_v43, 4  ;;  %7892 = vmatprep.mubr.bf16.mxu1 %v5056_v34  ;;  %v5580_v55 = vrot.slane %v5578_v59, 3  ;;  %v4771_v16 = vshrl.u32 %v4648_v1, 16  ;;  %v4774_v26 = vshll.u32 %v4648_v1, 16  ;;  %v4989_v18 = vld [vmem:[#allocation3 + $0x88] sm:$0xf] }
 0x29a   : > { %v5583_v63 = vrot.slane %v5581_v20, 4  ;;  %v5231_v48 = vor.u32 %v5230_v47, %v5227_v37  ;;  %v4779_v15 = vshrl.u32 %v4649_v8, 16  ;;  %v4782_v58 = vshll.u32 %v4649_v8, 16  ;;  %v5128_v12 = vld [vmem:[#allocation3 + $0x60] sm:$0xf0] }
 0x29b   : > { %v5576_v41 = vor.u32 %v5575_v17, %v5572_v38  ;;  %v4773_v52 = vrot.slane %v4771_v16, 3  ;;  %v4776_v6 = vrot.slane %v4774_v26, 4  ;;  %v5057_v50 = vrot.slane %v4986_v49, 4  ;;  %v5129_v29 = vld [vmem:[#allocation3 + $0x68] sm:$0x1f] }
 0x29c   : > { %v5584_v30 = vor.u32 %v5583_v63, %v5580_v55  ;;  %v5232_v62 = vsel %vm996_vm2, %v5223_v22, %v5231_v48  ;;  %v4781_v40 = vrot.slane %v4779_v15, 3  ;;  %v4784_v36 = vrot.slane %v4782_v58, 4  ;;  %v5466_v49 = vld [vmem:[#allocation3 + $0x80] sm:$0xf8] }
 0x29d   : > { %v5058_v4 = vrot.slane %v4987_v57, 4  ;;  %8038 = vmatmul.mubr.bf16.gmra.mrb[192].mxu0 %v5232_v62  ;;  %v4777_v56 = vor.u32 %v4776_v6, %v4773_v52  ;;  %v5234_v53 = vshrl.u32 %v5126_v5, 16  ;;  %v5237_v25 = vshll.u32 %v5126_v5, 16  ;;  %v5467_v57 = vld [vmem:[#allocation3 + $0x88] sm:$0xf] }
 0x29e   : > { %v5585_v51 = vsel %vm514_vm1, %v5576_v41, %v5584_v30  ;;  %v4785_v14 = vor.u32 %v4784_v36, %v4781_v40  ;;  %v5242_v31 = vshrl.u32 %v5127_v32, 16  ;;  %v5245_v23 = vshll.u32 %v5127_v32, 16  ;;  %v4652_v5 = vld [vmem:[#allocation3 + $0x80] sm:$0xf8]  ;;  %v4653_v32 = vld [vmem:[#allocation3 + $0x88] sm:$0xf] }
 0x29f   : > { %8045 = vmatprep.mubr.bf16.mxu0 %v5585_v51  ;;  %v5059_v35 = vsel %vm883_vm0, %v5057_v50, %v5058_v4  ;;  %v5236_v27 = vrot.slane %v5234_v53, 4  ;;  %v5239_v7 = vrot.slane %v5237_v25, 5  ;;  %v5587_v24 = vshrl.u32 %v5464_v61, 16 }
 0x2a0   : > { %v5590_v11 = vshll.u32 %v5464_v61, 16  ;;  %v4786_v28 = vsel %vm514_vm1, %v4777_v56, %v4785_v14  ;;  %v5244_v13 = vrot.slane %v5242_v31, 4  ;;  %v5247_v60 = vrot.slane %v5245_v23, 5  ;;  %v4990_v61 = vld [vmem:[#allocation3 + $0x90] sm:$0xf0] }
 0x2a1   : > { %v5595_v54 = vshrl.u32 %v5465_v3, 16  ;;  %7893 = vmatmul.mubr.bf16.gmra.mrb[136].mxu1 %v4786_v28  ;;  %v5240_v10 = vor.u32 %v5239_v7, %v5236_v27  ;;  %v5589_v33 = vrot.slane %v5587_v24, 3  ;;  %v5598_v9 = vshll.u32 %v5465_v3, 16  ;;  %v4991_v3 = vld [vmem:[#allocation3 + $0x98] sm:$0xf] }
 0x2a2   : > { %v5592_v42 = vrot.slane %v5590_v11, 4  ;;  %7900 = vmatprep.mubr.bf16.mxu1 %v5059_v35  ;;  %v5248_v21 = vor.u32 %v5247_v60, %v5244_v13  ;;  %v4788_v19 = vshrl.u32 %v4650_v0, 16  ;;  %v4791_v45 = vshll.u32 %v4650_v0, 16  ;;  %v5130_v0 = vld [vmem:[#allocation3 + $0x70] sm:$0xf0] }
 0x2a3   : > { %v5597_v34 = vrot.slane %v5595_v54, 3  ;;  %v5600_v2 = vrot.slane %v5598_v9, 4  ;;  %v4796_v43 = vshrl.u32 %v4651_v44, 16  ;;  %v4799_v1 = vshll.u32 %v4651_v44, 16  ;;  %v5131_v44 = vld [vmem:[#allocation3 + $0x78] sm:$0x1f] }
 0x2a4   : > { %v5593_v46 = vor.u32 %v5592_v42, %v5589_v33  ;;  %v5249_v37 = vsel %vm996_vm2, %v5240_v10, %v5248_v21  ;;  %v4790_v59 = vrot.slane %v4788_v19, 3  ;;  %v4793_v20 = vrot.slane %v4791_v45, 4  ;;  %v5468_v9 = vld [vmem:[#allocation3 + $0x90] sm:$0xf8]  ;;  %v5469_v45 = vld [vmem:[#allocation3 + $0x98] sm:$0xf] }
 0x2a5   : > { %v5060_v8 = vrot.slane %v4988_v39, 4  ;;  %8046 = vmatmul.mubr.bf16.gmra.mrb[196].mxu0 %v5249_v37  ;;  %v5601_v22 = vor.u32 %v5600_v2, %v5597_v34  ;;  %v4798_v47 = vrot.slane %v4796_v43, 3  ;;  %v4801_v38 = vrot.slane %v4799_v1, 4  ;;  %v4654_v1 = vld [vmem:[#allocation3 + $0x90] sm:$0xf8] }
 0x2a6   : > { %v5061_v17 = vrot.slane %v4989_v18, 4  ;;  %v4794_v55 = vor.u32 %v4793_v20, %v4790_v59  ;;  %v5251_v63 = vshrl.u32 %v5128_v12, 16  ;;  %v5254_v16 = vshll.u32 %v5128_v12, 16 }
 0x2a7   : > { %v5259_v26 = vshrl.u32 %v5129_v29, 16  ;;  %v5602_v48 = vsel %vm514_vm1, %v5593_v46, %v5601_v22  ;;  %v4802_v41 = vor.u32 %v4801_v38, %v4798_v47  ;;  %v5262_v58 = vshll.u32 %v5129_v29, 16 }
 0x2a8   : > { %v5062_v15 = vsel %vm883_vm0, %v5060_v8, %v5061_v17  ;;  %8053 = vmatprep.mubr.bf16.mxu0 %v5602_v48  ;;  %v5253_v30 = vrot.slane %v5251_v63, 4  ;;  %v5256_v52 = vrot.slane %v5254_v16, 5  ;;  %v5604_v50 = vshrl.u32 %v5466_v49, 16  ;;  %v4655_v8 = vld [vmem:[#allocation3 + $0x98] sm:$0xf] }
 0x2a9   : > { %v5261_v6 = vrot.slane %v5259_v26, 4  ;;  %v4803_v62 = vsel %vm514_vm1, %v4794_v55, %v4802_v41  ;;  %v5264_v40 = vrot.slane %v5262_v58, 5  ;;  %v5607_v36 = vshll.u32 %v5466_v49, 16  ;;  %v4992_v49 = vld [vmem:[#allocation3 + $0xa0] sm:$0xf0] }
 0x2aa   : > { %v5612_v4 = vshrl.u32 %v5467_v57, 16  ;;  %7901 = vmatmul.mubr.bf16.gmra.mrb[140].mxu1 %v4803_v62  ;;  %v5257_v51 = vor.u32 %v5256_v52, %v5253_v30  ;;  %v5606_v56 = vrot.slane %v5604_v50, 3  ;;  %v5615_v53 = vshll.u32 %v5467_v57, 16  ;;  %v4993_v57 = vld [vmem:[#allocation3 + $0xa8] sm:$0xf] }
 0x2ab   : > { %v4805_v25 = vshrl.u32 %v4652_v5, 16  ;;  %7908 = vmatprep.mubr.bf16.mxu1 %v5062_v15  ;;  %v5265_v14 = vor.u32 %v5264_v40, %v5261_v6  ;;  %v5609_v35 = vrot.slane %v5607_v36, 4  ;;  %v4808_v23 = vshll.u32 %v4652_v5, 16  ;;  %v5132_v5 = vld [vmem:[#allocation3 + $0x80] sm:$0xf0] }
 0x2ac   : > { %v5614_v31 = vrot.slane %v5612_v4, 3  ;;  %v5617_v27 = vrot.slane %v5615_v53, 4  ;;  %v4813_v24 = vshrl.u32 %v4653_v32, 16  ;;  %v4816_v11 = vshll.u32 %v4653_v32, 16  ;;  %v5133_v32 = vld [vmem:[#allocation3 + $0x88] sm:$0x1f] }
 0x2ad   : > { %v4807_v7 = vrot.slane %v4805_v25, 3  ;;  %v5266_v28 = vsel %vm996_vm2, %v5257_v51, %v5265_v14  ;;  %v5610_v13 = vor.u32 %v5609_v35, %v5606_v56  ;;  %v4810_v60 = vrot.slane %v4808_v23, 4  ;;  %v5470_v25 = vld [vmem:[#allocation3 + $0xa0] sm:$0xf8]  ;;  %v5471_v23 = vld [vmem:[#allocation3 + $0xa8] sm:$0xf] }
 0x2ae   : > { %v5063_v54 = vrot.slane %v4990_v61, 4  ;;  %8054 = vmatmul.mubr.bf16.gmra.mrb[200].mxu0 %v5266_v28  ;;  %v5618_v39 = vor.u32 %v5617_v27, %v5614_v31  ;;  %v4815_v10 = vrot.slane %v4813_v24, 3  ;;  %v4818_v33 = vrot.slane %v4816_v11, 4  ;;  %v4656_v11 = vld [vmem:[#allocation3 + $0xa0] sm:$0xf8] }
 0x2af   : > { %v5064_v42 = vrot.slane %v4991_v3, 4  ;;  %v4811_v18 = vor.u32 %v4810_v60, %v4807_v7  ;;  %v5268_v21 = vshrl.u32 %v5130_v0, 16  ;;  %v5271_v34 = vshll.u32 %v5130_v0, 16 }
 0x2b0   : > { %v5276_v19 = vshrl.u32 %v5131_v44, 16  ;;  %v5619_v12 = vsel %vm514_vm1, %v5610_v13, %v5618_v39  ;;  %v4819_v46 = vor.u32 %v4818_v33, %v4815_v10  ;;  %v5279_v43 = vshll.u32 %v5131_v44, 16 }
 0x2b1   : > { %v5065_v2 = vsel %vm883_vm0, %v5063_v54, %v5064_v42  ;;  %8061 = vmatprep.mubr.bf16.mxu0 %v5619_v12  ;;  %v5270_v29 = vrot.slane %v5268_v21, 4  ;;  %v5273_v37 = vrot.slane %v5271_v34, 5  ;;  %v5621_v20 = vshrl.u32 %v5468_v9, 16  ;;  %v4657_v54 = vld [vmem:[#allocation3 + $0xa8] sm:$0xf] }
 0x2b2   : > { %v5278_v59 = vrot.slane %v5276_v19, 4  ;;  %v4820_v22 = vsel %vm514_vm1, %v4811_v18, %v4819_v46  ;;  %v5281_v47 = vrot.slane %v5279_v43, 5  ;;  %v5624_v38 = vshll.u32 %v5468_v9, 16  ;;  %v4994_v9 = vld [vmem:[#allocation3 + $0xb0] sm:$0xf0] }
 0x2b3   : > { %v5629_v17 = vshrl.u32 %v5469_v45, 16  ;;  %7909 = vmatmul.mubr.bf16.gmra.mrb[144].mxu1 %v4820_v22  ;;  %v5274_v55 = vor.u32 %v5273_v37, %v5270_v29  ;;  %v5623_v63 = vrot.slane %v5621_v20, 3  ;;  %v5632_v16 = vshll.u32 %v5469_v45, 16  ;;  %v4995_v45 = vld [vmem:[#allocation3 + $0xb8] sm:$0xf] }
 0x2b4   : > { %v4822_v26 = vshrl.u32 %v4654_v1, 16  ;;  %7916 = vmatprep.mubr.bf16.mxu1 %v5065_v2  ;;  %v5282_v48 = vor.u32 %v5281_v47, %v5278_v59  ;;  %v5626_v41 = vrot.slane %v5624_v38, 4  ;;  %v4825_v58 = vshll.u32 %v4654_v1, 16  ;;  %v5134_v1 = vld [vmem:[#allocation3 + $0x90] sm:$0xf0] }
 0x2b5   : > { %v5631_v15 = vrot.slane %v5629_v17, 3  ;;  %v5634_v30 = vrot.slane %v5632_v16, 4  ;;  %v4830_v6 = vshrl.u32 %v4655_v8, 16  ;;  %v4833_v50 = vshll.u32 %v4655_v8, 16  ;;  %v5135_v8 = vld [vmem:[#allocation3 + $0x98] sm:$0x1f] }
 0x2b6   : > { %v4824_v52 = vrot.slane %v4822_v26, 3  ;;  %v5283_v62 = vsel %vm996_vm2, %v5274_v55, %v5282_v48  ;;  %v5627_v40 = vor.u32 %v5626_v41, %v5623_v63  ;;  %v4827_v36 = vrot.slane %v4825_v58, 4  ;;  %v5472_v26 = vld [vmem:[#allocation3 + $0xb0] sm:$0xf8]  ;;  %v5473_v58 = vld [vmem:[#allocation3 + $0xb8] sm:$0xf] }
 0x2b7   : > { %v5066_v4 = vrot.slane %v4992_v49, 4  ;;  %8062 = vmatmul.mubr.bf16.gmra.mrb[204].mxu0 %v5283_v62  ;;  %v5635_v61 = vor.u32 %v5634_v30, %v5631_v15  ;;  %v4832_v51 = vrot.slane %v4830_v6, 3  ;;  %v4835_v56 = vrot.slane %v4833_v50, 4  ;;  %v4658_v50 = vld [vmem:[#allocation3 + $0xb0] sm:$0xf8] }
 0x2b8   : > { %v5067_v53 = vrot.slane %v4993_v57, 4  ;;  %v4828_v3 = vor.u32 %v4827_v36, %v4824_v52  ;;  %v5285_v14 = vshrl.u32 %v5132_v5, 16  ;;  %v5288_v35 = vshll.u32 %v5132_v5, 16 }
 0x2b9   : > { %v5293_v31 = vshrl.u32 %v5133_v32, 16  ;;  %v5636_v0 = vsel %vm514_vm1, %v5627_v40, %v5635_v61  ;;  %v4836_v27 = vor.u32 %v4835_v56, %v4832_v51  ;;  %v5296_v24 = vshll.u32 %v5133_v32, 16 }
 0x2ba   : > { %v5068_v7 = vsel %vm883_vm0, %v5066_v4, %v5067_v53  ;;  %8069 = vmatprep.mubr.bf16.mxu0 %v5636_v0  ;;  %v5287_v44 = vrot.slane %v5285_v14, 4  ;;  %v5290_v28 = vrot.slane %v5288_v35, 5  ;;  %v5638_v60 = vshrl.u32 %v5470_v25, 16  ;;  %v4659_v4 = vld [vmem:[#allocation3 + $0xb8] sm:$0xf] }
 0x2bb   : > { %v5295_v13 = vrot.slane %v5293_v31, 4  ;;  %v4837_v39 = vsel %vm514_vm1, %v4828_v3, %v4836_v27  ;;  %v5298_v10 = vrot.slane %v5296_v24, 5  ;;  %v5641_v33 = vshll.u32 %v5470_v25, 16  ;;  %v4996_v25 = vld [vmem:[#allocation3 + $0xc0] sm:$0xf0] }
 0x2bc   : > { %v5646_v42 = vshrl.u32 %v5471_v23, 16  ;;  %7917 = vmatmul.mubr.bf16.gmra.mrb[148].mxu1 %v4837_v39  ;;  %v5291_v18 = vor.u32 %v5290_v28, %v5287_v44  ;;  %v5640_v21 = vrot.slane %v5638_v60, 3  ;;  %v5649_v34 = vshll.u32 %v5471_v23, 16  ;;  %v4997_v23 = vld [vmem:[#allocation3 + $0xc8] sm:$0xf] }
 0x2bd   : > { %v4839_v19 = vshrl.u32 %v4656_v11, 16  ;;  %7924 = vmatprep.mubr.bf16.mxu1 %v5068_v7  ;;  %v5299_v12 = vor.u32 %v5298_v10, %v5295_v13  ;;  %v5643_v46 = vrot.slane %v5641_v33, 4  ;;  %v4842_v43 = vshll.u32 %v4656_v11, 16  ;;  %v5136_v11 = vld [vmem:[#allocation3 + $0xa0] sm:$0xf0] }
 0x2be   : > { %v5648_v2 = vrot.slane %v5646_v42, 3  ;;  %v5651_v29 = vrot.slane %v5649_v34, 4  ;;  %v4847_v59 = vshrl.u32 %v4657_v54, 16  ;;  %v4850_v20 = vshll.u32 %v4657_v54, 16  ;;  %v5137_v54 = vld [vmem:[#allocation3 + $0xa8] sm:$0x1f] }
 0x2bf   : > { %v4841_v37 = vrot.slane %v4839_v19, 3  ;;  %v5300_v22 = vsel %vm996_vm2, %v5291_v18, %v5299_v12  ;;  %v5644_v47 = vor.u32 %v5643_v46, %v5640_v21  ;;  %v4844_v38 = vrot.slane %v4842_v43, 4  ;;  %v5474_v19 = vld [vmem:[#allocation3 + $0xc0] sm:$0xf8]  ;;  %v5475_v43 = vld [vmem:[#allocation3 + $0xc8] sm:$0xf] }
 0x2c0   : > { %v5069_v17 = vrot.slane %v4994_v9, 4  ;;  %8070 = vmatmul.mubr.bf16.gmra.mrb[208].mxu0 %v5300_v22  ;;  %v5652_v49 = vor.u32 %v5651_v29, %v5648_v2  ;;  %v4849_v55 = vrot.slane %v4847_v59, 3  ;;  %v4852_v63 = vrot.slane %v4850_v20, 4  ;;  %v4660_v20 = vld [vmem:[#allocation3 + $0xc0] sm:$0xf8] }
 0x2c1   : > { %v5070_v16 = vrot.slane %v4995_v45, 4  ;;  %v4845_v57 = vor.u32 %v4844_v38, %v4841_v37  ;;  %v5302_v48 = vshrl.u32 %v5134_v1, 16  ;;  %v5305_v41 = vshll.u32 %v5134_v1, 16 }
 0x2c2   : > { %v5310_v15 = vshrl.u32 %v5135_v8, 16  ;;  %v5653_v5 = vsel %vm514_vm1, %v5644_v47, %v5652_v49  ;;  %v4853_v30 = vor.u32 %v4852_v63, %v4849_v55  ;;  %v5313_v6 = vshll.u32 %v5135_v8, 16  ;;  %v15045_v8 = vpop.f32.mrb[112].mxu1  ;;  %v4661_v49 = vld [vmem:[#allocation3 + $0xc8] sm:$0xf] }
 0x2c3   : > { %v5071_v52 = vsel %vm883_vm0, %v5069_v17, %v5070_v16  ;;  %8077 = vmatprep.mubr.bf16.mxu0 %v5653_v5  ;;  %v5304_v32 = vrot.slane %v5302_v48, 4  ;;  %v5307_v62 = vrot.slane %v5305_v41, 5  ;;  %v5655_v36 = vshrl.u32 %v5472_v26, 16  ;;  %v4999_v5 = vld [vmem:[#allocation3 + $0xd8] sm:$0xf] }
 0x2c4   : > { %v5312_v40 = vrot.slane %v5310_v15, 4  ;;  %v4854_v61 = vsel %vm514_vm1, %v4845_v57, %v4853_v30  ;;  %v5315_v51 = vrot.slane %v5313_v6, 5  ;;  %v5658_v56 = vshll.u32 %v5472_v26, 16  ;;  %v4998_v57 = vld [vmem:[#allocation3 + $0xd0] sm:$0xf0] }
 0x2c5   : > { %v5663_v53 = vshrl.u32 %v5473_v58, 16  ;;  %7925 = vmatmul.mubr.bf16.gmra.mrb[152].mxu1 %v4854_v61  ;;  %v5308_v3 = vor.u32 %v5307_v62, %v5304_v32  ;;  %v5657_v14 = vrot.slane %v5655_v36, 3  ;;  %v5666_v35 = vshll.u32 %v5473_v58, 16  ;;  %v5138_v32 = vld [vmem:[#allocation3 + $0xb0] sm:$0xf0] }
 0x2c6   : > { %v4856_v31 = vshrl.u32 %v4658_v50, 16  ;;  %7932 = vmatprep.mubr.bf16.mxu1 %v5071_v52  ;;  %v5316_v0 = vor.u32 %v5315_v51, %v5312_v40  ;;  %v5660_v27 = vrot.slane %v5658_v56, 4  ;;  %v4859_v24 = vshll.u32 %v4658_v50, 16  ;;  %v5139_v61 = vld [vmem:[#allocation3 + $0xb8] sm:$0x1f] }
 0x2c7   : > { %v5665_v7 = vrot.slane %v5663_v53, 3  ;;  %v5668_v44 = vrot.slane %v5666_v35, 4  ;;  %v4864_v13 = vshrl.u32 %v4659_v4, 16  ;;  %v4867_v60 = vshll.u32 %v4659_v4, 16 }
 0x2c8   : > { %v4858_v28 = vrot.slane %v4856_v31, 3  ;;  %v5317_v39 = vsel %vm996_vm2, %v5308_v3, %v5316_v0  ;;  %v5661_v10 = vor.u32 %v5660_v27, %v5657_v14  ;;  %v4861_v33 = vrot.slane %v4859_v24, 4  ;;  %v15049_v0 = vpop.f32.mrb[113].mxu1 }
 0x2c9   : > { %v5072_v42 = vrot.slane %v4996_v25, 4  ;;  %8078 = vmatmul.mubr.bf16.gmra.mrb[212].mxu0 %v5317_v39  ;;  %v5669_v9 = vor.u32 %v5668_v44, %v5665_v7  ;;  %v4866_v18 = vrot.slane %v4864_v13, 3  ;;  %v4869_v21 = vrot.slane %v4867_v60, 4  ;;  %v5477_v44 = vld [vmem:[#allocation3 + $0xd8] sm:$0xf] }
 0x2ca   : > { %v5073_v34 = vrot.slane %v4997_v23, 4  ;;  %v4862_v45 = vor.u32 %v4861_v33, %v4858_v28  ;;  %v5319_v12 = vshrl.u32 %v5136_v11, 16  ;;  %v5322_v46 = vshll.u32 %v5136_v11, 16  ;;  %v5476_v23 = vld [vmem:[#allocation3 + $0xd0] sm:$0xf8]  ;;  %v15051_v28 = vpop.f32.mrb[114].mxu1 }
 0x2cb   : > { %v5327_v2 = vshrl.u32 %v5137_v54, 16  ;;  %v5670_v1 = vsel %vm514_vm1, %v5661_v10, %v5669_v9  ;;  %v4870_v29 = vor.u32 %v4869_v21, %v4866_v18  ;;  %v5330_v59 = vshll.u32 %v5137_v54, 16  ;;  %v4662_v10 = vld [vmem:[#allocation3 + $0xd0] sm:$0xf8]  ;;  %v15055_v33 = vpop.f32.mrb[115].mxu1 }
 0x2cc   : > { %v5074_v37 = vsel %vm883_vm0, %v5072_v42, %v5073_v34  ;;  %8085 = vmatprep.mubr.bf16.mxu0 %v5670_v1  ;;  %v5321_v22 = vrot.slane %v5319_v12, 4  ;;  %v5324_v47 = vrot.slane %v5322_v46, 5  ;;  %v5672_v17 = vshrl.u32 %v5474_v19, 16  ;;  %v4663_v34 = vld [vmem:[#allocation3 + $0xd8] sm:$0xf] }
 0x2cd   : > { %v5329_v38 = vrot.slane %v5327_v2, 4  ;;  %v4871_v55 = vsel %vm514_vm1, %v4862_v45, %v4870_v29  ;;  %v5332_v63 = vrot.slane %v5330_v59, 5  ;;  %v5675_v16 = vshll.u32 %v5474_v19, 16  ;;  %v5000_v2 = vld [vmem:[#allocation3 + $0xe0] sm:$0xf0] }
 0x2ce   : > { %v5680_v26 = vshrl.u32 %v5475_v43, 16  ;;  %7933 = vmatmul.mubr.bf16.gmra.mrb[156].mxu1 %v4871_v55  ;;  %v5325_v48 = vor.u32 %v5324_v47, %v5321_v22  ;;  %v5674_v41 = vrot.slane %v5672_v17, 3  ;;  %v5683_v15 = vshll.u32 %v5475_v43, 16  ;;  %v5001_v59 = vld [vmem:[#allocation3 + $0xe8] sm:$0xf] }
 0x2cf   : > { %v4873_v58 = vshrl.u32 %v4660_v20, 16  ;;  %7940 = vmatprep.mubr.bf16.mxu1 %v5074_v37  ;;  %v5333_v30 = vor.u32 %v5332_v63, %v5329_v38  ;;  %v5677_v52 = vrot.slane %v5675_v16, 4  ;;  %v4876_v50 = vshll.u32 %v4660_v20, 16  ;;  %v5140_v17 = vld [vmem:[#allocation3 + $0xc0] sm:$0xf0] }
 0x2d0   : > { %v5682_v6 = vrot.slane %v5680_v26, 3  ;;  %v5685_v62 = vrot.slane %v5683_v15, 4  ;;  %v4881_v36 = vshrl.u32 %v4661_v49, 16  ;;  %v4884_v4 = vshll.u32 %v4661_v49, 16  ;;  %v5141_v26 = vld [vmem:[#allocation3 + $0xc8] sm:$0x1f] }
 0x2d1   : > { %v4875_v40 = vrot.slane %v4873_v58, 3  ;;  %v5334_v51 = vsel %vm996_vm2, %v5325_v48, %v5333_v30  ;;  %v5678_v56 = vor.u32 %v5677_v52, %v5674_v41  ;;  %v4878_v53 = vrot.slane %v4876_v50, 4 }
 0x2d2   : > { %v5075_v25 = vrot.slane %v4998_v57, 4  ;;  %8086 = vmatmul.mubr.bf16.gmra.mrb[216].mxu0 %v5334_v51  ;;  %v5686_v3 = vor.u32 %v5685_v62, %v5682_v6  ;;  %v4883_v14 = vrot.slane %v4881_v36, 3  ;;  %v4886_v35 = vrot.slane %v4884_v4, 4  ;;  %v5478_v6 = vld [vmem:[#allocation3 + $0xe0] sm:$0xf8] }
 0x2d3   : > { %v5076_v31 = vrot.slane %v4999_v5, 4  ;;  %v4879_v27 = vor.u32 %v4878_v53, %v4875_v40  ;;  %v5336_v7 = vshrl.u32 %v5138_v32, 16  ;;  %v5339_v24 = vshll.u32 %v5138_v32, 16  ;;  %v5479_v36 = vld [vmem:[#allocation3 + $0xe8] sm:$0xf] }
 0x2d4   : > { %v5344_v11 = vshrl.u32 %v5139_v61, 16  ;;  %v5687_v13 = vsel %vm514_vm1, %v5678_v56, %v5686_v3  ;;  %v4887_v60 = vor.u32 %v4886_v35, %v4883_v14  ;;  %v5347_v39 = vshll.u32 %v5139_v61, 16  ;;  %v4664_v53 = vld [vmem:[#allocation3 + $0xe0] sm:$0xf8] }
 0x2d5   : > { %v5077_v54 = vsel %vm883_vm0, %v5075_v25, %v5076_v31  ;;  %8093 = vmatprep.mubr.bf16.mxu0 %v5687_v13  ;;  %v5338_v42 = vrot.slane %v5336_v7, 4  ;;  %v5341_v9 = vrot.slane %v5339_v24, 5  ;;  %v5689_v21 = vshrl.u32 %v5476_v23, 16  ;;  %v4665_v31 = vld [vmem:[#allocation3 + $0xe8] sm:$0xf] }
 0x2d6   : > { %v5346_v18 = vrot.slane %v5344_v11, 4  ;;  %v4888_v19 = vsel %vm514_vm1, %v4879_v27, %v4887_v60  ;;  %v5349_v45 = vrot.slane %v5347_v39, 5  ;;  %v5692_v12 = vshll.u32 %v5476_v23, 16  ;;  %v5002_v11 = vld [vmem:[#allocation3 + $0xf0] sm:$0xf0] }
 0x2d7   : > { %v5697_v46 = vshrl.u32 %v5477_v44, 16  ;;  %7941 = vmatmul.mubr.bf16.gmra.mrb[160].mxu1 %v4888_v19  ;;  %v5342_v43 = vor.u32 %v5341_v9, %v5338_v42  ;;  %v5691_v1 = vrot.slane %v5689_v21, 3  ;;  %v5700_v29 = vshll.u32 %v5477_v44, 16  ;;  %v5003_v39 = vld [vmem:[#allocation3 + $0xf8] sm:$0xf] }
 0x2d8   : > { %v4890_v37 = vshrl.u32 %v4662_v10, 16  ;;  %7948 = vmatprep.mubr.bf16.mxu1 %v5077_v54  ;;  %v5350_v20 = vor.u32 %v5349_v45, %v5346_v18  ;;  %v5694_v22 = vrot.slane %v5692_v12, 4  ;;  %v4893_v38 = vshll.u32 %v4662_v10, 16  ;;  %v5142_v21 = vld [vmem:[#allocation3 + $0xd0] sm:$0xf0] }
 0x2d9   : > { %v5699_v47 = vrot.slane %v5697_v46, 3  ;;  %v5702_v49 = vrot.slane %v5700_v29, 4  ;;  %v4898_v63 = vshrl.u32 %v4663_v34, 16  ;;  %v4901_v16 = vshll.u32 %v4663_v34, 16  ;;  %v5143_v46 = vld [vmem:[#allocation3 + $0xd8] sm:$0x1f] }
 0x2da   : > { %v4892_v55 = vrot.slane %v4890_v37, 3  ;;  %v5351_v57 = vsel %vm996_vm2, %v5342_v43, %v5350_v20  ;;  %v5695_v48 = vor.u32 %v5694_v22, %v5691_v1  ;;  %v4895_v41 = vrot.slane %v4893_v38, 4 }
 0x2db   : > { %v5078_v15 = vrot.slane %v5000_v2, 4  ;;  %8094 = vmatmul.mubr.bf16.gmra.mrb[220].mxu0 %v5351_v57  ;;  %v5703_v58 = vor.u32 %v5702_v49, %v5699_v47  ;;  %v4900_v5 = vrot.slane %v4898_v63, 3  ;;  %v4903_v30 = vrot.slane %v4901_v16, 4  ;;  %v5480_v47 = vld [vmem:[#allocation3 + $0xf0] sm:$0xf8] }
 0x2dc   : > { %v5079_v52 = vrot.slane %v5001_v59, 4  ;;  %v4896_v50 = vor.u32 %v4895_v41, %v4892_v55  ;;  %v5353_v32 = vshrl.u32 %v5140_v17, 16  ;;  %v5356_v62 = vshll.u32 %v5140_v17, 16  ;;  %v5481_v63 = vld [vmem:[#allocation3 + $0xf8] sm:$0xf] }
 0x2dd   : > { %v5361_v40 = vshrl.u32 %v5141_v26, 16  ;;  %v5704_v4 = vsel %vm514_vm1, %v5695_v48, %v5703_v58  ;;  %v4904_v61 = vor.u32 %v4903_v30, %v4900_v5  ;;  %v5364_v56 = vshll.u32 %v5141_v26, 16  ;;  %v4666_v41 = vld [vmem:[#allocation3 + $0xf0] sm:$0xf8] }
 0x2de   : > { %v5080_v51 = vsel %vm883_vm0, %v5078_v15, %v5079_v52  ;;  %8101 = vmatprep.mubr.bf16.mxu0 %v5704_v4  ;;  %v5355_v25 = vrot.slane %v5353_v32, 4  ;;  %v5358_v3 = vrot.slane %v5356_v62, 5  ;;  %v5706_v35 = vshrl.u32 %v5478_v6, 16  ;;  %v4667_v62 = vld [vmem:[#allocation3 + $0xf8] sm:$0xf] }
 0x2df   : > { %v5363_v14 = vrot.slane %v5361_v40, 4  ;;  %v4905_v23 = vsel %vm514_vm1, %v4896_v50, %v4904_v61  ;;  %v5366_v27 = vrot.slane %v5364_v56, 5  ;;  %v5709_v7 = vshll.u32 %v5478_v6, 16 }
 0x2e0   : > { %v5714_v24 = vshrl.u32 %v5479_v36, 16  ;;  %7949 = vmatmul.mubr.bf16.gmra.mrb[164].mxu1 %v4905_v23  ;;  %v5359_v44 = vor.u32 %v5358_v3, %v5355_v25  ;;  %v5708_v13 = vrot.slane %v5706_v35, 3  ;;  %v5717_v60 = vshll.u32 %v5479_v36, 16 }
 0x2e1   : > { %v4907_v54 = vshrl.u32 %v4664_v53, 16  ;;  %7956 = vmatprep.mubr.bf16.mxu1 %v5080_v51  ;;  %v5367_v10 = vor.u32 %v5366_v27, %v5363_v14  ;;  %v5711_v42 = vrot.slane %v5709_v7, 4  ;;  %v4910_v18 = vshll.u32 %v4664_v53, 16  ;;  %v5144_v51 = vld [vmem:[#allocation3 + $0xe0] sm:$0xf0] }
 0x2e2   : > { %v5716_v9 = vrot.slane %v5714_v24, 3  ;;  %v5719_v34 = vrot.slane %v5717_v60, 4  ;;  %v4915_v45 = vshrl.u32 %v4665_v31, 16  ;;  %v4918_v12 = vshll.u32 %v4665_v31, 16  ;;  %v5145_v27 = vld [vmem:[#allocation3 + $0xe8] sm:$0x1f] }
 0x2e3   : > { %v4909_v19 = vrot.slane %v4907_v54, 3  ;;  %v5368_v2 = vsel %vm996_vm2, %v5359_v44, %v5367_v10  ;;  %v5712_v43 = vor.u32 %v5711_v42, %v5708_v13  ;;  %v4912_v1 = vrot.slane %v4910_v18, 4  ;;  %v5932_v13 = vld [vmem:[#allocation3 + $0x10] sm:$0xf0]  ;;  %v5933_v42 = vld [vmem:[#allocation3 + $0x18] sm:$0x1f] }
 0x2e4   : > { %v5081_v29 = vrot.slane %v5002_v11, 4  ;;  %8102 = vmatmul.mubr.bf16.gmra.mrb[224].mxu0 %v5368_v2  ;;  %v5720_v37 = vor.u32 %v5719_v34, %v5716_v9  ;;  %v4917_v59 = vrot.slane %v4915_v45, 3  ;;  %v4920_v20 = vrot.slane %v4918_v12, 4  ;;  %v5482_v2 = vld [vmem:[#allocation3 + $0x100] sm:$0xf8] }
 0x2e5   : > { %v5082_v22 = vrot.slane %v5003_v39, 4  ;;  %v4913_v38 = vor.u32 %v4912_v1, %v4909_v19  ;;  %v5370_v17 = vshrl.u32 %v5142_v21, 16  ;;  %v5373_v49 = vshll.u32 %v5142_v21, 16 }
 0x2e6   : > { %v5378_v55 = vshrl.u32 %v5143_v46, 16  ;;  %v5721_v16 = vsel %vm514_vm1, %v5712_v43, %v5720_v37  ;;  %v4921_v26 = vor.u32 %v4920_v20, %v4917_v59  ;;  %v5381_v48 = vshll.u32 %v5143_v46, 16  ;;  %v5483_v59 = vld [vmem:[#allocation3 + $0x108] sm:$0xf] }
 0x2e7   : > { %v5083_v57 = vsel %vm883_vm0, %v5081_v29, %v5082_v22  ;;  %8109 = vmatprep.mubr.bf16.mxu0 %v5721_v16  ;;  %v5372_v15 = vrot.slane %v5370_v17, 4  ;;  %v5375_v58 = vrot.slane %v5373_v49, 5  ;;  %v5723_v30 = vshrl.u32 %v5480_v47, 16  ;;  %v5788_v17 = vld [vmem:[#allocation3 + $0x10] sm:$0xf0] }
 0x2e8   : > { %v5380_v5 = vrot.slane %v5378_v55, 4  ;;  %v4922_v52 = vsel %vm514_vm1, %v4913_v38, %v4921_v26  ;;  %v5383_v6 = vrot.slane %v5381_v48, 5  ;;  %v5726_v50 = vshll.u32 %v5480_v47, 16  ;;  %v5789_v49 = vld [vmem:[#allocation3 + $0x18] sm:$0xf] }
 0x2e9   : > { %v5731_v32 = vshrl.u32 %v5481_v63, 16  ;;  %7957 = vmatmul.mubr.bf16.gmra.mrb[168].mxu1 %v4922_v52  ;;  %v5376_v40 = vor.u32 %v5375_v58, %v5372_v15  ;;  %v5725_v36 = vrot.slane %v5723_v30, 3  ;;  %v5734_v4 = vshll.u32 %v5481_v63, 16 }
 0x2ea   : > { %v4924_v61 = vshrl.u32 %v4666_v41, 16  ;;  %7964 = vmatprep.mubr.bf16.mxu1 %v5083_v57  ;;  %v5384_v56 = vor.u32 %v5383_v6, %v5380_v5  ;;  %v5728_v53 = vrot.slane %v5726_v50, 4  ;;  %v4927_v3 = vshll.u32 %v4666_v41, 16  ;;  %v5146_v57 = vld [vmem:[#allocation3 + $0xf0] sm:$0xf0] }
 0x2eb   : > { %v5733_v25 = vrot.slane %v5731_v32, 3  ;;  %v5736_v14 = vrot.slane %v5734_v4, 4  ;;  %v4932_v31 = vshrl.u32 %v4667_v62, 16  ;;  %v4935_v23 = vshll.u32 %v4667_v62, 16  ;;  %v5147_v5 = vld [vmem:[#allocation3 + $0xf8] sm:$0x1f] }
 0x2ec   : > { %v4926_v35 = vrot.slane %v4924_v61, 3  ;;  %v5385_v7 = vsel %vm996_vm2, %v5376_v40, %v5384_v56  ;;  %v5729_v24 = vor.u32 %v5728_v53, %v5725_v36  ;;  %v4929_v11 = vrot.slane %v4927_v3, 4  ;;  %v5934_v4 = vld [vmem:[#allocation3 + $0x20] sm:$0xf0] }
 0x2ed   : > { %v5387_v44 = vshrl.u32 %v5144_v51, 16  ;;  %8110 = vmatmul.mubr.bf16.gmra.mrb[228].mxu0 %v5385_v7  ;;  %v5737_v60 = vor.u32 %v5736_v14, %v5733_v25  ;;  %v4934_v54 = vrot.slane %v4932_v31, 3  ;;  %v4937_v39 = vrot.slane %v4935_v23, 4  ;;  %v5935_v25 = vld [vmem:[#allocation3 + $0x28] sm:$0x1f] }
 0x2ee   : > { %v5390_v10 = vshll.u32 %v5144_v51, 16  ;;  %v4930_v9 = vor.u32 %v4929_v11, %v4926_v35  ;;  %v5395_v21 = vshrl.u32 %v5145_v27, 16  ;;  %v5398_v34 = vshll.u32 %v5145_v27, 16  ;;  %v6605_v23 = vld [vmem:[#allocation3 + $0x20] sm:$0xf0] }
 0x2ef   : > { %v5389_v18 = vrot.slane %v5387_v44, 4  ;;  %v5738_v19 = vsel %vm514_vm1, %v5729_v24, %v5737_v60  ;;  %v4938_v45 = vor.u32 %v4937_v39, %v4934_v54  ;;  %v5965_v46 = vshrl.u32 %v5932_v13, 16  ;;  %v6606_v27 = vld [vmem:[#allocation3 + $0x28] sm:$0xf] }
 0x2f0   : > { %v5392_v12 = vrot.slane %v5390_v10, 5  ;;  %8117 = vmatprep.mubr.bf16.mxu0 %v5738_v19  ;;  %v5397_v43 = vrot.slane %v5395_v21, 4  ;;  %v5400_v1 = vrot.slane %v5398_v34, 5  ;;  %v5968_v29 = vshll.u32 %v5932_v13, 16  ;;  %v5790_v13 = vld [vmem:[#allocation3 + $0x20] sm:$0xf0] }
 0x2f1   : > { %v5973_v37 = vshrl.u32 %v5933_v42, 16  ;;  %v4939_v20 = vsel %vm514_vm1, %v4930_v9, %v4938_v45  ;;  %v5967_v47 = vrot.slane %v5965_v46, 4  ;;  %v5976_v38 = vshll.u32 %v5933_v42, 16  ;;  %v13505_v60 = vld [vmem:[%s16721_s3 + $0x208] sm:$0xff]   ;;  %v5936_v45 = vld [vmem:[#allocation3 + $0x30] sm:$0xf0] }
 0x2f2   : > { %v5393_v22 = vor.u32 %v5392_v12, %v5389_v18  ;;  %7965 = vmatmul.mubr.bf16.gmra.mrb[172].mxu1 %v4939_v20  ;;  %v5401_v55 = vor.u32 %v5400_v1, %v5397_v43  ;;  %v5970_v63 = vrot.slane %v5968_v29, 5  ;;  %v5740_v26 = vshrl.u32 %v5482_v2, 16  ;;  %v5791_v9 = vld [vmem:[#allocation3 + $0x28] sm:$0xf]  ;;  %v13521_v43 = vld [vmem:[%s16721_s3 + $0x200] sm:$0xff]  }
 0x2f3   : > { %v5975_v16 = vrot.slane %v5973_v37, 4  ;;  %v5978_v48 = vrot.slane %v5976_v38, 5  ;;  %v5743_v41 = vshll.u32 %v5482_v2, 16  ;;  %v5748_v15 = vshrl.u32 %v5483_v59, 16  ;;  %v5937_v29 = vld [vmem:[#allocation3 + $0x38] sm:$0x1f] }
 0x2f4   : > { %v5751_v58 = vshll.u32 %v5483_v59, 16  ;;  %v5402_v30 = vsel %vm996_vm2, %v5393_v22, %v5401_v55  ;;  %v5971_v52 = vor.u32 %v5970_v63, %v5967_v47  ;;  %v5742_v6 = vrot.slane %v5740_v26, 3  ;;  %v13506_v37 = vld [vmem:[%s16721_s3 + $0x210] sm:$0xff]   ;;  %v6269_v38 = vld [vmem:[#allocation3 + $0x20] sm:$0xf8] }
 0x2f5   : > { %v5852_v50 = vrot.slane %v5788_v17, 4  ;;  %8118 = vmatmul.mubr.bf16.gmra.mrb[232].mxu0 %v5402_v30  ;;  %v5979_v32 = vor.u32 %v5978_v48, %v5975_v16  ;;  %v5745_v62 = vrot.slane %v5743_v41, 4  ;;  %v5750_v40 = vrot.slane %v5748_v15, 3  ;;  %v6270_v16 = vld [vmem:[#allocation3 + $0x28] sm:$0xf] }
 0x2f6   : > { %v5753_v36 = vrot.slane %v5751_v58, 4  ;;  %v5853_v61 = vrot.slane %v5789_v49, 4  ;;  %v5404_v51 = vshrl.u32 %v5146_v57, 16  ;;  %v5407_v56 = vshll.u32 %v5146_v57, 16  ;;  %v6607_v15 = vld [vmem:[#allocation3 + $0x30] sm:$0xf0] }
 0x2f7   : > { %v5412_v53 = vshrl.u32 %v5147_v5, 16  ;;  %v5980_v3 = vsel %vm996_vm2, %v5971_v52, %v5979_v32  ;;  %v5746_v14 = vor.u32 %v5745_v62, %v5742_v6  ;;  %v5415_v31 = vshll.u32 %v5147_v5, 16  ;;  %v6608_v58 = vld [vmem:[#allocation3 + $0x38] sm:$0xf] }
 0x2f8   : > { %v5754_v35 = vor.u32 %v5753_v36, %v5750_v40  ;;  %8166 = vmatprep.mubr.bf16.mxu1 %v5980_v3  ;;  %v5854_v7 = vsel %vm883_vm0, %v5852_v50, %v5853_v61  ;;  %v5406_v24 = vrot.slane %v5404_v51, 4  ;;  %v5409_v11 = vrot.slane %v5407_v56, 5  ;;  %v5792_v50 = vld [vmem:[#allocation3 + $0x30] sm:$0xf0]  ;;  %v13507_v61 = vld [vmem:[%s16721_s3 + $0x218] sm:$0xff]  }
 0x2f9   : > { %v5414_v44 = vrot.slane %v5412_v53, 4  ;;  %v5417_v39 = vrot.slane %v5415_v31, 5  ;;  %v5982_v10 = vshrl.u32 %v5934_v4, 16  ;;  %v5985_v42 = vshll.u32 %v5934_v4, 16  ;;  %v5793_v4 = vld [vmem:[#allocation3 + $0x38] sm:$0xf] }
 0x2fa   : > { %v5755_v54 = vsel %vm514_vm1, %v5746_v14, %v5754_v35  ;;  %8167 = vmatmul.mubr.bf16.vlgmr.msra.gmra.mrb[176].mxu1 %v5854_v7  ;;  %v5410_v18 = vor.u32 %v5409_v11, %v5406_v24  ;;  %v5990_v21 = vshrl.u32 %v5935_v25, 16  ;;  %v5993_v34 = vshll.u32 %v5935_v25, 16  ;;  %v5938_v3 = vld [vmem:[#allocation3 + $0x40] sm:$0xf0] }
 0x2fb   : > { %8125 = vmatprep.mubr.bf16.mxu0 %v5755_v54  ;;  %v6669_v19 = vrot.slane %v6605_v23, 4  ;;  %v5418_v12 = vor.u32 %v5417_v39, %v5414_v44  ;;  %v5984_v46 = vrot.slane %v5982_v10, 4  ;;  %v5987_v2 = vrot.slane %v5985_v42, 5  ;;  %13150 = vmatpush3.bf16.msra.mxu1 %v13521_v43  ;;  %v6272_v42 = vld [vmem:[#allocation3 + $0x38] sm:$0xf] }
 0x2fc   : > { %v6670_v1 = vrot.slane %v6606_v27, 4  ;;  %v5992_v59 = vrot.slane %v5990_v21, 4  ;;  %v5995_v20 = vrot.slane %v5993_v34, 5  ;;  %v5855_v22 = vrot.slane %v5790_v13, 4  ;;  %13151 = vmatprep.subr.bf16.mxu1 %v13505_v60  ;;  %v5939_v27 = vld [vmem:[#allocation3 + $0x48] sm:$0x1f] }
 0x2fd   : > { %v5856_v47 = vrot.slane %v5791_v9, 4  ;;  %v5419_v17 = vsel %vm996_vm2, %v5410_v18, %v5418_v12  ;;  %v5988_v49 = vor.u32 %v5987_v2, %v5984_v46  ;;  %v5999_v63 = vshrl.u32 %v5936_v45, 16  ;;  %v6271_v13 = vld [vmem:[#allocation3 + $0x30] sm:$0xf8]  ;;  %v13508_v9 = vld [vmem:[%s16721_s3 + $0x220] sm:$0xff]  }
 0x2fe   : > { %v6671_v55 = vsel %vm883_vm0, %v6669_v19, %v6670_v1  ;;  %8126 = vmatmul.mubr.bf16.gmra.mrb[236].mxu0 %v5419_v17  ;;  %v5996_v26 = vor.u32 %v5995_v20, %v5992_v59  ;;  %v6002_v48 = vshll.u32 %v5936_v45, 16  ;;  %v6007_v41 = vshrl.u32 %v5937_v29, 16  ;;  %v6609_v45 = vld [vmem:[#allocation3 + $0x40] sm:$0xf0]  ;;  %v6610_v12 = vld [vmem:[#allocation3 + $0x48] sm:$0xf] }
 0x2ff   : > { %v5857_v57 = vsel %vm883_vm0, %v5855_v22, %v5856_v47  ;;  %8327 = vmatprep.mubr.bf16.mxu0 %v6671_v55  ;;  %v6001_v5 = vrot.slane %v5999_v63, 4  ;;  %v6010_v30 = vshll.u32 %v5937_v29, 16  ;;  %v6302_v52 = vshrl.u32 %v6269_v38, 16  ;;  %13152 = vmatpush3.bf16.msra.mxu1 %v13505_v60  ;;  %v5794_v29 = vld [vmem:[#allocation3 + $0x40] sm:$0xf0] }
 0x300   : > { %v6305_v6 = vshll.u32 %v6269_v38, 16  ;;  %v5997_v32 = vsel %vm996_vm2, %v5988_v49, %v5996_v26  ;;  %v6004_v62 = vrot.slane %v6002_v48, 5  ;;  %v6009_v40 = vrot.slane %v6007_v41, 4  ;;  %13153 = vmatprep.subr.bf16.mxu1 %v13506_v37  ;;  %v5795_v47 = vld [vmem:[#allocation3 + $0x48] sm:$0xf] }
 0x301   : > { %v6310_v36 = vshrl.u32 %v6270_v16, 16  ;;  %8174 = vmatprep.mubr.bf16.mxu1 %v5997_v32  ;;  %v6012_v51 = vrot.slane %v6010_v30, 5  ;;  %v6304_v56 = vrot.slane %v6302_v52, 3  ;;  %v6313_v25 = vshll.u32 %v6270_v16, 16  ;;  %v5940_v63 = vld [vmem:[#allocation3 + $0x50] sm:$0xf0] }
 0x302   : > { %v6307_v53 = vrot.slane %v6305_v6, 4  ;;  %8175 = vmatmul.mubr.bf16.gmra.mrb[180].mxu1 %v5857_v57  ;;  %v6005_v14 = vor.u32 %v6004_v62, %v6001_v5  ;;  %v6672_v31 = vrot.slane %v6607_v15, 4  ;;  %v6673_v23 = vrot.slane %v6608_v58, 4  ;;  %v13509_v16 = vld [vmem:[%s16721_s3 + $0x228] sm:$0xff]   ;;  %v5941_v15 = vld [vmem:[#allocation3 + $0x58] sm:$0x1f] }
 0x303   : > { %v6312_v35 = vrot.slane %v6310_v36, 3  ;;  %v6013_v7 = vor.u32 %v6012_v51, %v6009_v40  ;;  %v6315_v11 = vrot.slane %v6313_v25, 4  ;;  %v5858_v44 = vrot.slane %v5792_v50, 4  ;;  %13154 = vmatpush3.bf16.msra.mxu1 %v13506_v37  ;;  %v6273_v52 = vld [vmem:[#allocation3 + $0x40] sm:$0xf8]  ;;  %v13510_v25 = vld [vmem:[%s16721_s3 + $0x230] sm:$0xff]  }
 0x304   : > { %v6308_v24 = vor.u32 %v6307_v53, %v6304_v56  ;;  %v6674_v60 = vsel %vm883_vm0, %v6672_v31, %v6673_v23  ;;  %v5859_v54 = vrot.slane %v5793_v4, 4  ;;  %v6016_v39 = vshrl.u32 %v5938_v3, 16  ;;  %13155 = vmatprep.subr.bf16.mxu1 %v13507_v61  ;;  %v6274_v40 = vld [vmem:[#allocation3 + $0x48] sm:$0xf]  ;;  %v6611_v36 = vld [vmem:[#allocation3 + $0x50] sm:$0xf0] }
 0x305   : > { %v6019_v10 = vshll.u32 %v5938_v3, 16  ;;  %v6014_v18 = vsel %vm996_vm2, %v6005_v14, %v6013_v7  ;;  %v6316_v21 = vor.u32 %v6315_v11, %v6312_v35  ;;  %v6024_v34 = vshrl.u32 %v5939_v27, 16  ;;  %v6612_v53 = vld [vmem:[#allocation3 + $0x58] sm:$0xf]  ;;  %v5796_v23 = vld [vmem:[#allocation3 + $0x50] sm:$0xf0] }
 0x306   : > { %v6027_v19 = vshll.u32 %v5939_v27, 16  ;;  %8182 = vmatprep.mubr.bf16.mxu1 %v6014_v18  ;;  %v5860_v46 = vsel %vm883_vm0, %v5858_v44, %v5859_v54  ;;  %v6018_v2 = vrot.slane %v6016_v39, 4  ;;  %v6319_v1 = vshrl.u32 %v6271_v13, 16  ;;  %v5797_v44 = vld [vmem:[#allocation3 + $0x58] sm:$0xf] }
 0x307   : > { %v6021_v43 = vrot.slane %v6019_v10, 5  ;;  %v6317_v37 = vsel %vm514_vm1, %v6308_v24, %v6316_v21  ;;  %v6026_v59 = vrot.slane %v6024_v34, 4  ;;  %v6322_v22 = vshll.u32 %v6271_v13, 16  ;;  %13156 = vmatpush3.bf16.msra.mxu1 %v13507_v61  ;;  %v5942_v10 = vld [vmem:[#allocation3 + $0x60] sm:$0xf0] }
 0x308   : > { %v6029_v20 = vrot.slane %v6027_v19, 5  ;;  %8328 = vmatmul.mubr.bf16.vlgmr.msra.gmra.mrb[240].mxu0 %v6317_v37  ;;  %v6321_v17 = vrot.slane %v6319_v1, 3  ;;  %v6327_v49 = vshrl.u32 %v6272_v42, 16  ;;  %v6330_v55 = vshll.u32 %v6272_v42, 16  ;;  %13157 = vmatprep.subr.bf16.mxu1 %v13508_v9  ;;  %v5943_v34 = vld [vmem:[#allocation3 + $0x68] sm:$0x1f] }
 0x309   : > { %v6022_v38 = vor.u32 %v6021_v43, %v6018_v2  ;;  %8335 = vmatprep.mubr.bf16.mxu0 %v6674_v60  ;;  %v6324_v57 = vrot.slane %v6322_v22, 4  ;;  %v6675_v48 = vrot.slane %v6609_v45, 4  ;;  %v6676_v41 = vrot.slane %v6610_v12, 4  ;;  %v13511_v19 = vld [vmem:[%s16721_s3 + $0x238] sm:$0xff]   ;;  %v6275_v43 = vld [vmem:[#allocation3 + $0x50] sm:$0xf8] }
 0x30a   : > { %v6030_v26 = vor.u32 %v6029_v20, %v6026_v59  ;;  %8183 = vmatmul.mubr.bf16.gmra.mrb[184].mxu1 %v5860_v46  ;;  %v6329_v58 = vrot.slane %v6327_v49, 3  ;;  %v6332_v5 = vrot.slane %v6330_v55, 4  ;;  %v5861_v30 = vrot.slane %v5794_v29, 4  ;;  %v6276_v20 = vld [vmem:[#allocation3 + $0x58] sm:$0xf] }
 0x30b   : > { %v6325_v50 = vor.u32 %v6324_v57, %v6321_v17  ;;  %v5862_v32 = vrot.slane %v5795_v47, 4  ;;  %v6033_v62 = vshrl.u32 %v5940_v63, 16  ;;  %13158 = vmatpush3.bf16.msra.mxu1 %v13508_v9  ;;  %v6677_v61 = vsel %vm883_vm0, %v6675_v48, %v6676_v41  ;;  %v6613_v49 = vld [vmem:[#allocation3 + $0x60] sm:$0xf0]  ;;  %v6614_v55 = vld [vmem:[#allocation3 + $0x68] sm:$0xf] }
 0x30c   : > { %v6031_v6 = vsel %vm996_vm2, %v6022_v38, %v6030_v26  ;;  %v6333_v4 = vor.u32 %v6332_v5, %v6329_v58  ;;  %v6036_v51 = vshll.u32 %v5940_v63, 16  ;;  %v6041_v56 = vshrl.u32 %v5941_v15, 16  ;;  %13159 = vmatprep.subr.bf16.mxu1 %v13509_v16  ;;  %v5798_v57 = vld [vmem:[#allocation3 + $0x60] sm:$0xf0] }
 0x30d   : > { %8190 = vmatprep.mubr.bf16.mxu1 %v6031_v6  ;;  %v6035_v3 = vrot.slane %v6033_v62, 4  ;;  %v6044_v14 = vshll.u32 %v5941_v15, 16  ;;  %v6336_v35 = vshrl.u32 %v6273_v52, 16  ;;  %v6339_v31 = vshll.u32 %v6273_v52, 16  ;;  %v13512_v48 = vld [vmem:[%s16723_s5] sm:$0xff]  }
 0x30e   : > { %v6334_v27 = vsel %vm514_vm1, %v6325_v50, %v6333_v4  ;;  %v6038_v7 = vrot.slane %v6036_v51, 5  ;;  %v6043_v24 = vrot.slane %v6041_v56, 4  ;;  %v6344_v11 = vshrl.u32 %v6274_v40, 16  ;;  %v5944_v62 = vld [vmem:[#allocation3 + $0x70] sm:$0xf0] }
 0x30f   : > { %v6046_v13 = vrot.slane %v6044_v14, 5  ;;  %v6338_v60 = vrot.slane %v6336_v35, 3  ;;  %v6341_v54 = vrot.slane %v6339_v31, 4  ;;  %v6347_v39 = vshll.u32 %v6274_v40, 16  ;;  %13160 = vmatpush3.bf16.msra.mxu1 %v13509_v16  ;;  %v5945_v51 = vld [vmem:[#allocation3 + $0x78] sm:$0x1f] }
 0x310   : > { %8336 = vmatmul.mubr.bf16.gmra.mrb[244].mxu0 %v6334_v27  ;;  %v5863_v42 = vsel %vm883_vm0, %v5861_v30, %v5862_v32  ;;  %v6039_v9 = vor.u32 %v6038_v7, %v6035_v3  ;;  %v6346_v18 = vrot.slane %v6344_v11, 3  ;;  %v6678_v21 = vrot.slane %v6611_v36, 4  ;;  %13161 = vmatprep.subr.bf16.mxu1 %v13510_v25  ;;  %v5799_v30 = vld [vmem:[#allocation3 + $0x68] sm:$0xf]  ;;  %v6277_v14 = vld [vmem:[#allocation3 + $0x60] sm:$0xf8] }
 0x311   : > { %8343 = vmatprep.mubr.bf16.mxu0 %v6677_v61  ;;  %v6047_v45 = vor.u32 %v6046_v13, %v6043_v24  ;;  %v6342_v12 = vor.u32 %v6341_v54, %v6338_v60  ;;  %v6349_v46 = vrot.slane %v6347_v39, 4  ;;  %v6679_v2 = vrot.slane %v6612_v53, 4  ;;  %v6278_v7 = vld [vmem:[#allocation3 + $0x68] sm:$0xf]  ;;  %v6615_v60 = vld [vmem:[#allocation3 + $0x70] sm:$0xf0] }
 0x312   : > { %8191 = vmatmul.mubr.bf16.gmra.mrb[188].mxu1 %v5863_v42  ;;  %v5864_v1 = vrot.slane %v5796_v23, 4  ;;  %v5865_v29 = vrot.slane %v5797_v44, 4  ;;  %v6050_v37 = vshrl.u32 %v5942_v10, 16  ;;  %v6053_v59 = vshll.u32 %v5942_v10, 16 }
 0x313   : > { %v6048_v22 = vsel %vm996_vm2, %v6039_v9, %v6047_v45  ;;  %v6350_v47 = vor.u32 %v6349_v46, %v6346_v18  ;;  %v6058_v38 = vshrl.u32 %v5943_v34, 16  ;;  %v6061_v17 = vshll.u32 %v5943_v34, 16  ;;  %13162 = vmatpush3.bf16.msra.mxu1 %v13510_v25  ;;  %v6616_v9 = vld [vmem:[#allocation3 + $0x78] sm:$0xf]  ;;  %v5800_v45 = vld [vmem:[#allocation3 + $0x70] sm:$0xf0] }
 0x314   : > { %8198 = vmatprep.mubr.bf16.mxu1 %v6048_v22  ;;  %v6052_v63 = vrot.slane %v6050_v37, 4  ;;  %v6055_v16 = vrot.slane %v6053_v59, 5  ;;  %v6353_v26 = vshrl.u32 %v6275_v43, 16  ;;  %13163 = vmatprep.subr.bf16.mxu1 %v13511_v19  ;;  %v6680_v41 = vsel %vm883_vm0, %v6678_v21, %v6679_v2  ;;  %v5801_v22 = vld [vmem:[#allocation3 + $0x78] sm:$0xf] }
 0x315   : > { %v6060_v15 = vrot.slane %v6058_v38, 4  ;;  %v6063_v58 = vrot.slane %v6061_v17, 5  ;;  %v6356_v5 = vshll.u32 %v6275_v43, 16  ;;  %v6361_v50 = vshrl.u32 %v6276_v20, 16 }
 0x316   : > { %v6056_v52 = vor.u32 %v6055_v16, %v6052_v63  ;;  %v6355_v6 = vrot.slane %v6353_v26, 3  ;;  %v6364_v32 = vshll.u32 %v6276_v20, 16  ;;  %v6351_v40 = vsel %vm514_vm1, %v6342_v12, %v6350_v47  ;;  %v5947_v47 = vld [vmem:[#allocation3 + $0x88] sm:$0x1f]  ;;  %v6279_v63 = vld [vmem:[#allocation3 + $0x70] sm:$0xf8] }
 0x317   : > { %v5866_v36 = vsel %vm883_vm0, %v5864_v1, %v5865_v29  ;;  %v6064_v4 = vor.u32 %v6063_v58, %v6060_v15  ;;  %v6358_v61 = vrot.slane %v6356_v5, 4  ;;  %13164 = vmatpush3.bf16.msra.mxu1 %v13511_v19  ;;  %v6363_v56 = vrot.slane %v6361_v50, 3  ;;  %v5946_v1 = vld [vmem:[#allocation3 + $0x80] sm:$0xf0] }
 0x318   : > { %8344 = vmatmul.mubr.bf16.gmra.mrb[248].mxu0 %v6351_v40  ;;  %v6366_v53 = vrot.slane %v6364_v32, 4  ;;  %v6681_v25 = vrot.slane %v6613_v49, 4  ;;  %v6682_v3 = vrot.slane %v6614_v55, 4  ;;  %13197 = vmatprep.subr.bf16.mxu1 %v13512_v48  ;;  %v5867_v31 = vrot.slane %v5798_v57, 4 }
 0x319   : > { %8351 = vmatprep.mubr.bf16.mxu0 %v6680_v41  ;;  %v6065_v35 = vsel %vm996_vm2, %v6056_v52, %v6064_v4  ;;  %v5868_v23 = vrot.slane %v5799_v30, 4  ;;  %v6067_v27 = vshrl.u32 %v5944_v62, 16  ;;  %v6359_v24 = vor.u32 %v6358_v61, %v6355_v6  ;;  %v6280_v41 = vld [vmem:[#allocation3 + $0x78] sm:$0xf]  ;;  %v6617_v52 = vld [vmem:[#allocation3 + $0x80] sm:$0xf0] }
 0x31a   : > { %8199 = vmatmul.mubr.bf16.gmra.mrb[192].mxu1 %v5866_v36  ;;  %v6367_v11 = vor.u32 %v6366_v53, %v6363_v56  ;;  %v6070_v44 = vshll.u32 %v5944_v62, 16  ;;  %v6075_v13 = vshrl.u32 %v5945_v51, 16  ;;  %v6078_v39 = vshll.u32 %v5945_v51, 16  ;;  %v6618_v6 = vld [vmem:[#allocation3 + $0x88] sm:$0xf] }
 0x31b   : > { %8206 = vmatprep.mubr.bf16.mxu1 %v6065_v35  ;;  %v6069_v54 = vrot.slane %v6067_v27, 4  ;;  %v6370_v10 = vshrl.u32 %v6277_v14, 16  ;;  %v6373_v42 = vshll.u32 %v6277_v14, 16  ;;  %v6683_v18 = vsel %vm883_vm0, %v6681_v25, %v6682_v3  ;;  %v5802_v36 = vld [vmem:[#allocation3 + $0x80] sm:$0xf0] }
 0x31c   : > { %v6072_v21 = vrot.slane %v6070_v44, 5  ;;  %v6077_v34 = vrot.slane %v6075_v13, 4  ;;  %v6378_v19 = vshrl.u32 %v6278_v7, 16  ;;  %v6080_v12 = vrot.slane %v6078_v39, 5  ;;  %v5803_v53 = vld [vmem:[#allocation3 + $0x88] sm:$0xf] }
 0x31d   : > { %v6372_v46 = vrot.slane %v6370_v10, 3  ;;  %v6375_v2 = vrot.slane %v6373_v42, 4  ;;  %v6381_v43 = vshll.u32 %v6278_v7, 16  ;;  %v6368_v29 = vsel %vm514_vm1, %v6359_v24, %v6367_v11  ;;  %v5949_v11 = vld [vmem:[#allocation3 + $0x98] sm:$0x1f] }
 0x31e   : > { %v5869_v37 = vsel %vm883_vm0, %v5867_v31, %v5868_v23  ;;  %v6073_v59 = vor.u32 %v6072_v21, %v6069_v54  ;;  %v6380_v20 = vrot.slane %v6378_v19, 3  ;;  %v6081_v38 = vor.u32 %v6080_v12, %v6077_v34  ;;  %v5948_v31 = vld [vmem:[#allocation3 + $0x90] sm:$0xf0]  ;;  %v6281_v39 = vld [vmem:[#allocation3 + $0x80] sm:$0xf8] }
 0x31f   : > { %v6383_v17 = vrot.slane %v6381_v43, 4  ;;  %v6684_v49 = vrot.slane %v6615_v60, 4  ;;  %v6685_v55 = vrot.slane %v6616_v9, 4  ;;  %v6376_v16 = vor.u32 %v6375_v2, %v6372_v46  ;;  %v6282_v21 = vld [vmem:[#allocation3 + $0x88] sm:$0xf] }
 0x320   : > { %8352 = vmatmul.mubr.bf16.gmra.mrb[252].mxu0 %v6368_v29  ;;  %v5870_v26 = vrot.slane %v5800_v45, 4  ;;  %v6084_v57 = vshrl.u32 %v5946_v1, 16  ;;  %v6087_v48 = vshll.u32 %v5946_v1, 16  ;;  %v5871_v58 = vrot.slane %v5801_v22, 4  ;;  %v6619_v46 = vld [vmem:[#allocation3 + $0x90] sm:$0xf0] }
 0x321   : > { %8359 = vmatprep.mubr.bf16.mxu0 %v6683_v18  ;;  %v6384_v15 = vor.u32 %v6383_v17, %v6380_v20  ;;  %v6092_v5 = vshrl.u32 %v5947_v47, 16  ;;  %v6095_v30 = vshll.u32 %v5947_v47, 16  ;;  %v6082_v50 = vsel %vm996_vm2, %v6073_v59, %v6081_v38  ;;  %v6620_v2 = vld [vmem:[#allocation3 + $0x98] sm:$0xf]  ;;  %v5804_v59 = vld [vmem:[#allocation3 + $0x90] sm:$0xf0] }
 0x322   : > { %8207 = vmatmul.mubr.bf16.gmra.mrb[196].mxu1 %v5869_v37  ;;  %v6086_v32 = vrot.slane %v6084_v57, 4  ;;  %v6089_v62 = vrot.slane %v6087_v48, 5  ;;  %v6387_v40 = vshrl.u32 %v6279_v63, 16  ;;  %v6686_v4 = vsel %vm883_vm0, %v6684_v49, %v6685_v55  ;;  %v5805_v17 = vld [vmem:[#allocation3 + $0x98] sm:$0xf] }
 0x323   : > { %8214 = vmatprep.mubr.bf16.mxu1 %v6082_v50  ;;  %v6094_v61 = vrot.slane %v6092_v5, 4  ;;  %v6097_v51 = vrot.slane %v6095_v30, 5  ;;  %v6390_v56 = vshll.u32 %v6279_v63, 16  ;;  %v6395_v14 = vshrl.u32 %v6280_v41, 16  ;;  %v6283_v50 = vld [vmem:[#allocation3 + $0x90] sm:$0xf8] }
 0x324   : > { %v6090_v25 = vor.u32 %v6089_v62, %v6086_v32  ;;  %v6389_v3 = vrot.slane %v6387_v40, 3  ;;  %v6398_v35 = vshll.u32 %v6280_v41, 16  ;;  %v6385_v23 = vsel %vm514_vm1, %v6376_v16, %v6384_v15 }
 0x325   : > { %v5872_v27 = vsel %vm883_vm0, %v5870_v26, %v5871_v58  ;;  %v6098_v7 = vor.u32 %v6097_v51, %v6094_v61  ;;  %v6392_v24 = vrot.slane %v6390_v56, 4  ;;  %v6397_v44 = vrot.slane %v6395_v14, 3  ;;  %v5950_v26 = vld [vmem:[#allocation3 + $0xa0] sm:$0xf0]  ;;  %v5951_v58 = vld [vmem:[#allocation3 + $0xa8] sm:$0x1f] }
 0x326   : > { %v6400_v13 = vrot.slane %v6398_v35, 4  ;;  %v6687_v60 = vrot.slane %v6617_v52, 4  ;;  %v6688_v54 = vrot.slane %v6618_v6, 4  ;;  %v5873_v42 = vrot.slane %v5802_v36, 4 }
 0x327   : > { %v6099_v10 = vsel %vm996_vm2, %v6090_v25, %v6098_v7  ;;  %v5874_v9 = vrot.slane %v5803_v53, 4  ;;  %v6101_v18 = vshrl.u32 %v5948_v31, 16  ;;  %v6393_v34 = vor.u32 %v6392_v24, %v6389_v3  ;;  %v6621_v25 = vld [vmem:[#allocation3 + $0xa0] sm:$0xf0]  ;;  %v6622_v3 = vld [vmem:[#allocation3 + $0xa8] sm:$0xf] }
 0x328   : > { %8360 = vmatmul.mubr.bf16.gmra.mrb[0].mxu0 %v6385_v23  ;;  %v6401_v19 = vor.u32 %v6400_v13, %v6397_v44  ;;  %v6104_v45 = vshll.u32 %v5948_v31, 16  ;;  %v6109_v12 = vshrl.u32 %v5949_v11, 16  ;;  %v6112_v1 = vshll.u32 %v5949_v11, 16  ;;  %v5807_v13 = vld [vmem:[#allocation3 + $0xa8] sm:$0xf] }
 0x329   : > { %8367 = vmatprep.mubr.bf16.mxu0 %v6686_v4  ;;  %v6103_v43 = vrot.slane %v6101_v18, 4  ;;  %v6404_v29 = vshrl.u32 %v6281_v39, 16  ;;  %v6407_v37 = vshll.u32 %v6281_v39, 16  ;;  %v6689_v20 = vsel %vm883_vm0, %v6687_v60, %v6688_v54  ;;  %v6284_v4 = vld [vmem:[#allocation3 + $0x98] sm:$0xf] }
 0x32a   : > { %8215 = vmatmul.mubr.bf16.gmra.mrb[200].mxu1 %v5872_v27  ;;  %v6106_v22 = vrot.slane %v6104_v45, 5  ;;  %v6111_v47 = vrot.slane %v6109_v12, 4  ;;  %v6412_v38 = vshrl.u32 %v6282_v21, 16  ;;  %v6114_v49 = vrot.slane %v6112_v1, 5  ;;  %v5806_v27 = vld [vmem:[#allocation3 + $0xa0] sm:$0xf0] }
 0x32b   : > { %8222 = vmatprep.mubr.bf16.mxu1 %v6099_v10  ;;  %v6406_v55 = vrot.slane %v6404_v29, 3  ;;  %v6409_v63 = vrot.slane %v6407_v37, 4  ;;  %v6415_v16 = vshll.u32 %v6282_v21, 16  ;;  %v5875_v57 = vsel %vm883_vm0, %v5873_v42, %v5874_v9  ;;  %v5952_v42 = vld [vmem:[#allocation3 + $0xb0] sm:$0xf0] }
 0x32c   : > { %v6414_v48 = vrot.slane %v6412_v38, 3  ;;  %v6690_v41 = vrot.slane %v6619_v46, 4  ;;  %v6691_v15 = vrot.slane %v6620_v2, 4  ;;  %v6402_v5 = vsel %vm514_vm1, %v6393_v34, %v6401_v19  ;;  %v5953_v19 = vld [vmem:[#allocation3 + $0xb8] sm:$0x1f] }
 0x32d   : > { %v6107_v30 = vor.u32 %v6106_v22, %v6103_v43  ;;  %v6115_v52 = vor.u32 %v6114_v49, %v6111_v47  ;;  %v6417_v6 = vrot.slane %v6415_v16, 4  ;;  %v6410_v32 = vor.u32 %v6409_v63, %v6406_v55  ;;  %v6285_v43 = vld [vmem:[#allocation3 + $0xa0] sm:$0xf8]  ;;  %v6623_v49 = vld [vmem:[#allocation3 + $0xb0] sm:$0xf0] }
 0x32e   : > { %v5876_v62 = vrot.slane %v5804_v59, 4  ;;  %v6118_v40 = vshrl.u32 %v5950_v26, 16  ;;  %v6121_v36 = vshll.u32 %v5950_v26, 16  ;;  %v5877_v51 = vrot.slane %v5805_v17, 4  ;;  %v6624_v55 = vld [vmem:[#allocation3 + $0xb8] sm:$0xf] }
 0x32f   : > { %v6418_v61 = vor.u32 %v6417_v6, %v6414_v48  ;;  %v6126_v56 = vshrl.u32 %v5951_v58, 16  ;;  %v6129_v53 = vshll.u32 %v5951_v58, 16  ;;  %v6692_v14 = vsel %vm883_vm0, %v6690_v41, %v6691_v15  ;;  %v15133_v48 = vld [vmem:[#allocation3 + $0xb0] sm:$0xf0] }
 0x330   : > { %8368 = vmatmul.mubr.bf16.gmra.mrb[4].mxu0 %v6402_v5  ;;  %v6120_v35 = vrot.slane %v6118_v40, 4  ;;  %v6123_v31 = vrot.slane %v6121_v36, 5  ;;  %v6421_v23 = vshrl.u32 %v6283_v50, 16  ;;  %v6116_v7 = vsel %vm996_vm2, %v6107_v30, %v6115_v52  ;;  %v15136_v30 = vld [vmem:[#allocation3 + $0xb8] sm:$0xf] }
 0x331   : > { %8375 = vmatprep.mubr.bf16.mxu0 %v6689_v20  ;;  %v6128_v24 = vrot.slane %v6126_v56, 4  ;;  %v6131_v11 = vrot.slane %v6129_v53, 5  ;;  %v6424_v44 = vshll.u32 %v6283_v50, 16  ;;  %v6429_v39 = vshrl.u32 %v6284_v4, 16  ;;  %v6286_v20 = vld [vmem:[#allocation3 + $0xa8] sm:$0xf] }
 0x332   : > { %8223 = vmatmul.mubr.bf16.gmra.mrb[204].mxu1 %v5875_v57  ;;  %v6124_v60 = vor.u32 %v6123_v31, %v6120_v35  ;;  %v6423_v54 = vrot.slane %v6421_v23, 3  ;;  %v6432_v10 = vshll.u32 %v6284_v4, 16  ;;  %v6419_v9 = vsel %vm514_vm1, %v6410_v32, %v6418_v61  ;;  %v5954_v52 = vld [vmem:[#allocation3 + $0xc0] sm:$0xf0]  ;;  %v5955_v53 = vld [vmem:[#allocation3 + $0xc8] sm:$0x1f] }
 0x333   : > { %8230 = vmatprep.mubr.bf16.mxu1 %v6116_v7  ;;  %v5878_v18 = vsel %vm883_vm0, %v5876_v62, %v5877_v51  ;;  %v6132_v21 = vor.u32 %v6131_v11, %v6128_v24  ;;  %v6426_v34 = vrot.slane %v6424_v44, 4  ;;  %v6431_v45 = vrot.slane %v6429_v39, 3  ;;  %v6287_v23 = vld [vmem:[#allocation3 + $0xb0] sm:$0xf8] }
 0x334   : > { %v6434_v12 = vrot.slane %v6432_v10, 4  ;;  %v6693_v46 = vrot.slane %v6621_v25, 4  ;;  %v6694_v2 = vrot.slane %v6622_v3, 4  ;;  %v5879_v29 = vrot.slane %v5806_v27, 4  ;;  %v6288_v10 = vld [vmem:[#allocation3 + $0xb8] sm:$0xf] }
 0x335   : > { %v6133_v1 = vsel %vm996_vm2, %v6124_v60, %v6132_v21  ;;  %v5880_v37 = vrot.slane %v5807_v13, 4  ;;  %v6135_v59 = vshrl.u32 %v5952_v42, 16  ;;  %v6427_v22 = vor.u32 %v6426_v34, %v6423_v54  ;;  %v6625_v34 = vld [vmem:[#allocation3 + $0xc0] sm:$0xf0] }
 0x336   : > { %v6435_v47 = vor.u32 %v6434_v12, %v6431_v45  ;;  %v6138_v38 = vshll.u32 %v5952_v42, 16  ;;  %v6143_v17 = vshrl.u32 %v5953_v19, 16  ;;  %v6146_v16 = vshll.u32 %v5953_v19, 16 }
 0x337   : > { %v6137_v63 = vrot.slane %v6135_v59, 4  ;;  %v6438_v26 = vshrl.u32 %v6285_v43, 16  ;;  %v6441_v57 = vshll.u32 %v6285_v43, 16  ;;  %v6695_v41 = vsel %vm883_vm0, %v6693_v46, %v6694_v2  ;;  %v15162_v43 = vld [vmem:[%s16722_s4] ss:$0 sm:$0xff] }
 0x338   : > { %8376 = vmatmul.mubr.bf16.gmra.mrb[8].mxu0 %v6419_v9  ;;  %v6140_v15 = vrot.slane %v6138_v38, 5  ;;  %v6145_v58 = vrot.slane %v6143_v17, 4  ;;  %v6446_v5 = vshrl.u32 %v6286_v20, 16  ;;  %v15138_v6 = vpop.f32.mrb[116].mxu1  ;;  %v6148_v50 = vrot.slane %v6146_v16, 5 }
 0x339   : > { %8383 = vmatprep.mubr.bf16.mxu0 %v6692_v14  ;;  %v15140_v32 = vrot.slane %v6438_v26, 3  ;;  %v6443_v62 = vrot.slane %v6441_v57, 4  ;;  %v6449_v40 = vshll.u32 %v6286_v20, 16  ;;  %v15142_v36 = vpop.f32.mrb[117].mxu1  ;;  %v5881_v4 = vsel %vm883_vm0, %v5879_v29, %v5880_v37  ;;  %v5956_v16 = vld [vmem:[#allocation3 + $0xd0] sm:$0xf0] }
 0x33a   : > { %8231 = vmatmul.mubr.bf16.gmra.mrb[208].mxu1 %v5878_v18  ;;  %v6141_v61 = vor.u32 %v6140_v15, %v6137_v63  ;;  %v6696_v51 = vrot.slane %v6623_v49, 4  ;;  %v6697_v56 = vrot.slane %v6624_v55, 4  ;;  %v15145_v25 = vpop.f32.mrb[118].mxu1  ;;  %v6436_v3 = vsel %vm514_vm1, %v6427_v22, %v6435_v47  ;;  %v15166_v47 = vld [vmem:[#allocation3 + $0xc0] sm:$0xf0] }
 0x33b   : > { %8238 = vmatprep.mubr.bf16.mxu1 %v6133_v1  ;;  %v6149_v14 = vor.u32 %v6148_v50, %v6145_v58  ;;  %v6448_v35 = vrot.slane %v6446_v5, 3  ;;  %v6451_v31 = vrot.slane %v6449_v40, 4  ;;  %v15148_v27 = vpop.f32.mrb[119].mxu1  ;;  %v6444_v7 = vor.u32 %v6443_v62, %v15140_v32  ;;  %v6626_v1 = vld [vmem:[#allocation3 + $0xc8] sm:$0xf] }
 0x33c   : > { %v5882_v24 = vrot.slane %v15133_v48, 4  ;;  %v6152_v11 = vshrl.u32 %v5954_v52, 16  ;;  %v6155_v44 = vshll.u32 %v5954_v52, 16  ;;  %v15153_v13 = vsel %vm883_vm0, %v6696_v51, %v6697_v56  ;;  %v5957_v5 = vld [vmem:[#allocation3 + $0xd8] sm:$0x1f] }
 0x33d   : > { %v5883_v60 = vrot.slane %v15136_v30, 4  ;;  %v6160_v54 = vshrl.u32 %v5955_v53, 16  ;;  %v6163_v39 = vshll.u32 %v5955_v53, 16  ;;  %v6150_v42 = vsel %vm996_vm2, %v6141_v61, %v6149_v14  ;;  %v6289_v50 = vld [vmem:[#allocation3 + $0xc0] sm:$0xf8] }
 0x33e   : > { %v6154_v9 = vrot.slane %v6152_v11, 4  ;;  %v6157_v18 = vrot.slane %v6155_v44, 5  ;;  %v6455_v21 = vshrl.u32 %v6287_v23, 16  ;;  %v15157_v19 = vpop.f32.mrb[176].mxu0  ;;  %v6452_v45 = vor.u32 %v6451_v31, %v6448_v35  ;;  %v6627_v53 = vld [vmem:[#allocation3 + $0xd0] sm:$0xf0] }
 0x33f   : > { %v6162_v12 = vrot.slane %v6160_v54, 4  ;;  %v6165_v46 = vrot.slane %v6163_v39, 5  ;;  %v6458_v2 = vshll.u32 %v6287_v23, 16  ;;  %v15164_v29 = vpop.f32.mrb[177].mxu0  ;;  %v6463_v20 = vshrl.u32 %v6288_v10, 16 }
 0x340   : > { %8384 = vmatmul.mubr.bf16.gmra.mrb[12].mxu0 %v6436_v3  ;;  %v6158_v37 = vor.u32 %v6157_v18, %v6154_v9  ;;  %v6457_v59 = vrot.slane %v6455_v21, 3  ;;  %v6466_v22 = vshll.u32 %v6288_v10, 16  ;;  %v15168_v38 = vpop.f32.mrb[178].mxu0  ;;  %v12623_v55 = vadd.f32 %v15049_v0, %v15045_v8  ;;  %v5811_v0 = vld [vmem:[#allocation3 + $0xc8] sm:$0xf] }
 0x341   : > { %8391 = vmatprep.mubr.bf16.mxu0 %v6695_v41  ;;  %v6166_v17 = vor.u32 %v6165_v46, %v6162_v12  ;;  %v6460_v49 = vrot.slane %v6458_v2, 4  ;;  %v6699_v63 = vrot.slane %v6625_v34, 4  ;;  %v15172_v26 = vpop.f32.mrb[179].mxu0  ;;  %v6465_v57 = vrot.slane %v6463_v20, 3  ;;  %v6628_v23 = vld [vmem:[#allocation3 + $0xd8] sm:$0xf] }
 0x342   : > { %8239 = vmatmul.mubr.bf16.gmra.mrb[212].mxu1 %v5881_v4  ;;  %v6468_v48 = vrot.slane %v6466_v22, 4  ;;  %v6700_v15 = vrot.slane %v6626_v1, 4  ;;  %v12626_v58 = vadd.f32 %v15055_v33, %v15051_v28  ;;  %v6453_v41 = vsel %vm514_vm1, %v6444_v7, %v6452_v45  ;;  %v6290_v28 = vld [vmem:[#allocation3 + $0xc8] sm:$0xf]  ;;  %v15194_v12 = vld [vmem:[#allocation3 + $0xd0] sm:$0xf0] }
 0x343   : > { %8246 = vmatprep.mubr.bf16.mxu1 %v6150_v42  ;;  %v5884_v30 = vsel %vm883_vm0, %v5882_v24, %v5883_v60  ;;  %v6167_v52 = vsel %vm996_vm2, %v6158_v37, %v6166_v17  ;;  %v6461_v8 = vor.u32 %v6460_v49, %v6457_v59  ;;  %v7847_v62 = vadd.f32 %v12623_v55, %v15162_v43  ;;  %v5958_v20 = vld [vmem:[#allocation3 + $0xe0] sm:$0xf0]  ;;  %v5959_v55 = vld [vmem:[#allocation3 + $0xe8] sm:$0x1f] }
 0x344   : > { %v6469_v32 = vor.u32 %v6468_v48, %v6465_v57  ;;  %v15181_v40 = vsel %vm883_vm0, %v6699_v63, %v6700_v15  ;;  %v5885_v4 = vrot.slane %v15166_v47, 4  ;;  %v6169_v33 = vshrl.u32 %v5956_v16, 16  ;;  %v5813_v48 = vld [vmem:[#allocation3 + $0xd8] sm:$0xf]  ;;  %v6291_v15 = vld [vmem:[#allocation3 + $0xd0] sm:$0xf8] }
 0x345   : > { %v6172_v61 = vshll.u32 %v5956_v16, 16  ;;  %v6177_v51 = vshrl.u32 %v5957_v5, 16  ;;  %v6180_v56 = vshll.u32 %v5957_v5, 16  ;;  %v7850_v3 = vadd.f32 %v12626_v58, %v15162_v43 }
 0x346   : > { %v5886_v14 = vrot.slane %v5811_v0, 4  ;;  %v6472_v35 = vshrl.u32 %v6289_v50, 16  ;;  %v6475_v31 = vshll.u32 %v6289_v50, 16  ;;  %v6171_v7 = vrot.slane %v6169_v33, 4  ;;  %v6629_v50 = vld [vmem:[#allocation3 + $0xe0] sm:$0xf0] }
 0x347   : > { %v6174_v24 = vrot.slane %v6172_v61, 5  ;;  %v6179_v11 = vrot.slane %v6177_v51, 4  ;;  %v6182_v44 = vrot.slane %v6180_v56, 5  ;;  %v15185_v60 = vpop.f32.mrb[120].mxu1  ;;  %v6480_v10 = vshrl.u32 %v6290_v28, 16 }
 0x348   : > { %8392 = vmatmul.mubr.bf16.gmra.mrb[16].mxu0 %v6453_v41  ;;  %v15187_v54 = vrot.slane %v6472_v35, 3  ;;  %v15189_v39 = vrot.slane %v6475_v31, 4  ;;  %v6483_v42 = vshll.u32 %v6290_v28, 16  ;;  %v15191_v9 = vpop.f32.mrb[121].mxu1  ;;  %v6702_v34 = vrot.slane %v6627_v53, 4 }
 0x349   : > { %8399 = vmatprep.mubr.bf16.mxu0 %v15153_v13  ;;  %v6175_v18 = vor.u32 %v6174_v24, %v6171_v7  ;;  %v6183_v21 = vor.u32 %v6182_v44, %v6179_v11  ;;  %v6703_v45 = vrot.slane %v6628_v23, 4  ;;  %v15196_v46 = vpop.f32.mrb[122].mxu1  ;;  %v6470_v2 = vsel %vm514_vm1, %v6461_v8, %v6469_v32  ;;  %v6630_v33 = vld [vmem:[#allocation3 + $0xe8] sm:$0xf] }
 0x34a   : > { %8247 = vmatmul.mubr.bf16.gmra.mrb[216].mxu1 %v5884_v30  ;;  %v6482_v1 = vrot.slane %v6480_v10, 3  ;;  %v6485_v37 = vrot.slane %v6483_v42, 4  ;;  %v12629_v59 = vadd.f32 %v15142_v36, %v15138_v6  ;;  %v12637_v22 = vpop.f32.mrb[123].mxu1  ;;  %v5887_v13 = vsel %vm883_vm0, %v5885_v4, %v5886_v14  ;;  %v5814_v10 = vld [vmem:[#allocation3 + $0xe0] sm:$0xf0] }
 0x34b   : > { %8254 = vmatprep.mubr.bf16.mxu1 %v6167_v52  ;;  %v6478_v47 = vor.u32 %v15189_v39, %v15187_v54  ;;  %v12735_v17 = vadd.f32 %v15164_v29, %v15157_v19  ;;  %v12632_v49 = vadd.f32 %v15148_v27, %v15145_v25  ;;  %v12739_v63 = vpop.f32.mrb[180].mxu0  ;;  %v6184_v16 = vsel %vm996_vm2, %v6175_v18, %v6183_v21  ;;  %v6292_v29 = vld [vmem:[#allocation3 + $0xd8] sm:$0xf] }
 0x34c   : > { %v6486_v57 = vor.u32 %v6485_v37, %v6482_v1  ;;  %v15210_v6 = vsel %vm883_vm0, %v6702_v34, %v6703_v45  ;;  %v12738_v36 = vadd.f32 %v15172_v26, %v15168_v38  ;;  %v12740_v58 = vpop.f32.mrb[181].mxu0  ;;  %v7855_v5 = vadd.f32 %v12629_v59, %v15162_v43  ;;  %v5960_v45 = vld [vmem:[#allocation3 + $0xf0] sm:$0xf0] }
 0x34d   : > { %v15215_v19 = vadd.f32 %v12735_v17, %v7847_v62  ;;  %v5888_v25 = vrot.slane %v15194_v12, 4  ;;  %v6186_v27 = vshrl.u32 %v5958_v20, 16  ;;  %v12742_v41 = vpop.f32.mrb[182].mxu0  ;;  %v7858_v30 = vadd.f32 %v12632_v49, %v15162_v43  ;;  %v5961_v12 = vld [vmem:[#allocation3 + $0xf8] sm:$0x1f] }
 0x34e   : > { %v15219_v52 = vadd.f32 %v12738_v36, %v7850_v3  ;;  %v6189_v8 = vshll.u32 %v5958_v20, 16  ;;  %v6194_v0 = vshrl.u32 %v5959_v55, 16  ;;  %v12743_v38 = vpop.f32.mrb[183].mxu0  ;;  %v5889_v26 = vrot.slane %v5813_v48, 4  ;;  %v6293_v20 = vld [vmem:[#allocation3 + $0xe0] sm:$0xf8] }
 0x34f   : > { %v6188_v32 = vrot.slane %v6186_v27, 4  ;;  %v6197_v4 = vshll.u32 %v5959_v55, 16  ;;  %v6489_v28 = vshrl.u32 %v6291_v15, 16  ;;  %v6492_v51 = vshll.u32 %v6291_v15, 16  ;;  %v6294_v49 = vld [vmem:[#allocation3 + $0xe8] sm:$0xf] }
 0x350   : > { %8400 = vmatmul.mubr.bf16.gmra.mrb[20].mxu0 %v6470_v2  ;;  %v6191_v62 = vrot.slane %v6189_v8, 5  ;;  %v6196_v61 = vrot.slane %v6194_v0, 4  ;;  %v6497_v56 = vshrl.u32 %v6292_v29, 16  ;;  %v6500_v3 = vshll.u32 %v6292_v29, 16  ;;  %v6631_v55 = vld [vmem:[#allocation3 + $0xf0] sm:$0xf0] }
 0x351   : > { %8407 = vmatprep.mubr.bf16.mxu0 %v15181_v40  ;;  %v6199_v53 = vrot.slane %v6197_v4, 5  ;;  %v15222_v14 = vrot.slane %v6489_v28, 3  ;;  %v6705_v35 = vrot.slane %v6629_v50, 4  ;;  %v6494_v23 = vrot.slane %v6492_v51, 4  ;;  %v6632_v15 = vld [vmem:[#allocation3 + $0xf8] sm:$0xf] }
 0x352   : > { %8255 = vmatmul.mubr.bf16.gmra.mrb[220].mxu1 %v5887_v13  ;;  %v6192_v31 = vor.u32 %v6191_v62, %v6188_v32  ;;  %v6499_v7 = vrot.slane %v6497_v56, 3  ;;  %v6706_v24 = vrot.slane %v6630_v33, 4  ;;  %v6502_v44 = vrot.slane %v6500_v3, 4 }
 0x353   : > { %8262 = vmatprep.mubr.bf16.mxu1 %v6184_v16  ;;  %v6200_v11 = vor.u32 %v6199_v53, %v6196_v61  ;;  %v12635_v54 = vadd.f32 %v15191_v9, %v15185_v60  ;;  %v12741_v39 = vadd.f32 %v12740_v58, %v12739_v63  ;;  %v12639_v42 = vpop.f32.mrb[124].mxu1  ;;  %v6487_v40 = vsel %vm514_vm1, %v6478_v47, %v6486_v57  ;;  %v5815_v9 = vld [vmem:[#allocation3 + $0xe8] sm:$0xf] }
 0x354   : > { %v5890_v18 = vsel %vm883_vm0, %v5888_v25, %v5889_v26  ;;  %v12638_v21 = vadd.f32 %v12637_v22, %v15196_v46  ;;  %v12744_v34 = vadd.f32 %v12743_v38, %v12742_v41  ;;  %v12640_v2 = vpop.f32.mrb[125].mxu1  ;;  %v6495_v37 = vor.u32 %v6494_v23, %v15222_v14 }
 0x355   : > { %v6201_v1 = vsel %vm996_vm2, %v6192_v31, %v6200_v11  ;;  %v15232_v59 = vsel %vm883_vm0, %v6705_v35, %v6706_v24  ;;  %v15234_v60 = vadd.f32 %v12741_v39, %v7855_v5  ;;  %v12642_v13 = vpop.f32.mrb[126].mxu1  ;;  %v6503_v47 = vor.u32 %v6502_v44, %v6499_v7  ;;  %v5816_v35 = vld [vmem:[#allocation3 + $0xf0] sm:$0xf0]  ;;  %v5962_v11 = vld [vmem:[#allocation3 + $0x100] sm:$0xf0] }
 0x356   : > { %v7863_v17 = vadd.f32 %v12635_v54, %v15162_v43  ;;  %v7866_v46 = vadd.f32 %v12638_v21, %v15162_v43  ;;  %v15238_v22 = vadd.f32 %v12744_v34, %v7858_v30  ;;  %v12643_v63 = vpop.f32.mrb[127].mxu1  ;;  %v5891_v16 = vrot.slane %v5814_v10, 4  ;;  %v5963_v44 = vld [vmem:[#allocation3 + $0x108] sm:$0x1f]  ;;  %v6295_v21 = vld [vmem:[#allocation3 + $0xf0] sm:$0xf8] }
 0x357   : > { %v6203_v57 = vshrl.u32 %v5960_v45, 16  ;;  %v6206_v36 = vshll.u32 %v5960_v45, 16  ;;  %v6211_v48 = vshrl.u32 %v5961_v12, 16  ;;  %v5892_v58 = vrot.slane %v5815_v9, 4 }
 0x358   : > { %8408 = vmatmul.mubr.bf16.gmra.mrb[24].mxu0 %v6487_v40  ;;  %v6214_v5 = vshll.u32 %v5961_v12, 16  ;;  %v6506_v25 = vshrl.u32 %v6293_v20, 16  ;;  %v6509_v27 = vshll.u32 %v6293_v20, 16  ;;  %v12745_v29 = vpop.f32.mrb[184].mxu0  ;;  %v6514_v0 = vshrl.u32 %v6294_v49, 16 }
 0x359   : > { %8415 = vmatprep.mubr.bf16.mxu0 %v15210_v6  ;;  %v6205_v41 = vrot.slane %v6203_v57, 4  ;;  %v6208_v8 = vrot.slane %v6206_v36, 5  ;;  %v6213_v30 = vrot.slane %v6211_v48, 4  ;;  %v12746_v50 = vpop.f32.mrb[185].mxu0  ;;  %v6517_v4 = vshll.u32 %v6294_v49, 16 }
 0x35a   : > { %8263 = vmatmul.mubr.bf16.gmra.mrb[224].mxu1 %v5890_v18  ;;  %v6216_v38 = vrot.slane %v6214_v5, 5  ;;  %v15241_v26 = vrot.slane %v6506_v25, 3  ;;  %v15243_v32 = vrot.slane %v6509_v27, 4  ;;  %v12748_v28 = vpop.f32.mrb[186].mxu0  ;;  %v6516_v62 = vrot.slane %v6514_v0, 3 }
 0x35b   : > { %8270 = vmatprep.mubr.bf16.mxu1 %v6201_v1  ;;  %v6209_v33 = vor.u32 %v6208_v8, %v6205_v41  ;;  %v6708_v61 = vrot.slane %v6631_v55, 4  ;;  %v6709_v51 = vrot.slane %v6632_v15, 4  ;;  %v12749_v56 = vpop.f32.mrb[187].mxu0  ;;  %v6504_v6 = vsel %vm514_vm1, %v6495_v37, %v6503_v47  ;;  %v5817_v18 = vld [vmem:[#allocation3 + $0xf8] sm:$0xf] }
 0x35c   : > { %v6217_v53 = vor.u32 %v6216_v38, %v6213_v30  ;;  %v6519_v14 = vrot.slane %v6517_v4, 4  ;;  %v12641_v3 = vadd.f32 %v12640_v2, %v12639_v42  ;;  %v5893_v31 = vsel %vm883_vm0, %v5891_v16, %v5892_v58  ;;  %v6296_v2 = vld [vmem:[#allocation3 + $0xf8] sm:$0xf]  ;;  %v6633_v1 = vld [vmem:[#allocation3 + $0x100] sm:$0xf0] }
 0x35d   : > { %v12747_v23 = vadd.f32 %v12746_v50, %v12745_v29  ;;  %v12644_v7 = vadd.f32 %v12643_v63, %v12642_v13  ;;  %v12750_v24 = vadd.f32 %v12749_v56, %v12748_v28  ;;  %v6512_v39 = vor.u32 %v15243_v32, %v15241_v26  ;;  %v6634_v49 = vld [vmem:[#allocation3 + $0x108] sm:$0xf]  ;;  %v15266_v38 = vld [vmem:[#allocation3 + $0x100] sm:$0xf0] }
 0x35e   : > { %v6218_v54 = vsel %vm996_vm2, %v6209_v33, %v6217_v53  ;;  %v6520_v10 = vor.u32 %v6519_v14, %v6516_v62  ;;  %v15251_v40 = vsel %vm883_vm0, %v6708_v61, %v6709_v51  ;;  %v7871_v42 = vadd.f32 %v12641_v3, %v15162_v43  ;;  %v6297_v62 = vld [vmem:[#allocation3 + $0x100] sm:$0xf8]  ;;  %v5819_v14 = vld [vmem:[#allocation3 + $0x108] sm:$0xf] }
 0x35f   : > { %v15254_v34 = vadd.f32 %v12747_v23, %v7863_v17  ;;  %v15256_v45 = vadd.f32 %v12750_v24, %v7866_v46  ;;  %v5894_v12 = vrot.slane %v5816_v35, 4  ;;  %v12645_v37 = vpop.f32.mrb[128].mxu1  ;;  %v7874_v9 = vadd.f32 %v12644_v7, %v15162_v43  ;;  %v6298_v3 = vld [vmem:[#allocation3 + $0x108] sm:$0xf] }
 0x360   : > { %8416 = vmatmul.mubr.bf16.gmra.mrb[28].mxu0 %v6504_v6  ;;  %v6220_v20 = vshrl.u32 %v5962_v11, 16  ;;  %v6223_v13 = vshll.u32 %v5962_v11, 16  ;;  %v6228_v47 = vshrl.u32 %v5963_v44, 16  ;;  %v12646_v55 = vpop.f32.mrb[129].mxu1  ;;  %v5895_v63 = vrot.slane %v5817_v18, 4 }
 0x361   : > { %8423 = vmatprep.mubr.bf16.mxu0 %v15232_v59  ;;  %v6231_v16 = vshll.u32 %v5963_v44, 16  ;;  %v6523_v17 = vshrl.u32 %v6295_v21, 16  ;;  %v6526_v57 = vshll.u32 %v6295_v21, 16  ;;  %v12648_v46 = vpop.f32.mrb[130].mxu1  ;;  %v6531_v58 = vshrl.u32 %v6296_v2, 16 }
 0x362   : > { %8271 = vmatmul.mubr.bf16.gmra.mrb[228].mxu1 %v5893_v31  ;;  %v6222_v36 = vrot.slane %v6220_v20, 4  ;;  %v6225_v48 = vrot.slane %v6223_v13, 5  ;;  %v6230_v15 = vrot.slane %v6228_v47, 4  ;;  %v12649_v5 = vpop.f32.mrb[131].mxu1  ;;  %v6534_v41 = vshll.u32 %v6296_v2, 16 }
 0x363   : > { %8278 = vmatprep.mubr.bf16.mxu1 %v6218_v54  ;;  %v6233_v25 = vrot.slane %v6231_v16, 5  ;;  %v15260_v27 = vrot.slane %v6523_v17, 3  ;;  %v15262_v29 = vrot.slane %v6526_v57, 4  ;;  %v15264_v59 = vrot.slane %v6531_v58, 3  ;;  %v12751_v50 = vpop.f32.mrb[188].mxu0 }
 0x364   : > { %v6226_v8 = vor.u32 %v6225_v48, %v6222_v36  ;;  %v6711_v30 = vrot.slane %v6633_v1, 4  ;;  %v6712_v0 = vrot.slane %v6634_v49, 4  ;;  %v6521_v26 = vsel %vm514_vm1, %v6512_v39, %v6520_v10  ;;  %v12752_v33 = vpop.f32.mrb[189].mxu0  ;;  %v6749_v11 = vld [vmem:[#allocation3 + $0x20] sm:$0xf0] }
 0x365   : > { %v6234_v32 = vor.u32 %v6233_v25, %v6230_v15  ;;  %v6536_v4 = vrot.slane %v6534_v41, 4  ;;  %v12647_v28 = vadd.f32 %v12646_v55, %v12645_v37  ;;  %v5896_v61 = vsel %vm883_vm0, %v5894_v12, %v5895_v63  ;;  %v12754_v53 = vpop.f32.mrb[190].mxu0  ;;  %v6750_v18 = vld [vmem:[#allocation3 + $0x28] sm:$0x1f]  ;;  %v6635_v21 = vld [vmem:[#allocation3 + $0x110] sm:$0xf0] }
 0x366   : > { %v6529_v51 = vor.u32 %v15262_v29, %v15260_v27  ;;  %v12753_v56 = vadd.f32 %v12752_v33, %v12751_v50  ;;  %v12650_v6 = vadd.f32 %v12649_v5, %v12648_v46  ;;  %v6713_v23 = vsel %vm883_vm0, %v6711_v30, %v6712_v0  ;;  %v12755_v7 = vpop.f32.mrb[191].mxu0  ;;  %v6636_v20 = vld [vmem:[#allocation3 + $0x118] sm:$0xf]  ;;  %v6751_v55 = vld [vmem:[#allocation3 + $0x30] sm:$0xf0] }
 0x367   : > { %v6235_v35 = vsel %vm996_vm2, %v6226_v8, %v6234_v32  ;;  %v6537_v31 = vor.u32 %v6536_v4, %v15264_v59  ;;  %v5897_v24 = vrot.slane %v15266_v38, 4  ;;  %v15277_v44 = vadd.f32 %v12647_v28, %v15162_v43  ;;  %v6752_v0 = vld [vmem:[#allocation3 + $0x38] sm:$0x1f]  ;;  %v6299_v28 = vld [vmem:[#allocation3 + $0x110] sm:$0xf8] }
 0x368   : > { %8424 = vmatmul.mubr.bf16.gmra.mrb[32].mxu0 %v6521_v26  ;;  %v15279_v54 = vadd.f32 %v12753_v56, %v7871_v42  ;;  %v12756_v39 = vadd.f32 %v12755_v7, %v12754_v53  ;;  %v6540_v10 = vshrl.u32 %v6297_v62, 16  ;;  %v15283_v12 = vadd.f32 %v12650_v6, %v15162_v43  ;;  %v6300_v53 = vld [vmem:[#allocation3 + $0x118] sm:$0xf] }
 0x369   : > { %8431 = vmatprep.mubr.bf16.mxu0 %v15251_v40  ;;  %v5898_v2 = vrot.slane %v5819_v14, 4  ;;  %v6543_v1 = vshll.u32 %v6297_v62, 16  ;;  %v6548_v37 = vshrl.u32 %v6298_v3, 16  ;;  %v6551_v49 = vshll.u32 %v6298_v3, 16 }
 0x36a   : > { %8279 = vmatmul.mubr.bf16.gmra.mrb[232].mxu1 %v5896_v61  ;;  %v15285_v13 = vadd.f32 %v12756_v39, %v7874_v9  ;;  %v6542_v47 = vrot.slane %v6540_v10, 3  ;;  %v6782_v42 = vshrl.u32 %v6749_v11, 16  ;;  %v6785_v17 = vshll.u32 %v6749_v11, 16 }
 0x36b   : > { %8286 = vmatprep.mubr.bf16.mxu1 %v6235_v35  ;;  %v6545_v63 = vrot.slane %v6543_v1, 4  ;;  %v6550_v16 = vrot.slane %v6548_v37, 3  ;;  %v6790_v57 = vshrl.u32 %v6750_v18, 16  ;;  %v12651_v40 = vpop.f32.mrb[132].mxu1  ;;  %v6553_v46 = vrot.slane %v6551_v49, 4 }
 0x36c   : > { %v6784_v36 = vrot.slane %v6782_v42, 4  ;;  %v6793_v48 = vshll.u32 %v6750_v18, 16  ;;  %v12652_v15 = vpop.f32.mrb[133].mxu1  ;;  %v6714_v58 = vrot.slane %v6635_v21, 4  ;;  %v6787_v25 = vrot.slane %v6785_v17, 5 }
 0x36d   : > { %v6546_v5 = vor.u32 %v6545_v63, %v6542_v47  ;;  %v6792_v27 = vrot.slane %v6790_v57, 4  ;;  %v15287_v9 = vadd.f32 %v12652_v15, %v12651_v40  ;;  %v12654_v29 = vpop.f32.mrb[134].mxu1  ;;  %v6554_v41 = vor.u32 %v6553_v46, %v6550_v16  ;;  %v6753_v18 = vld [vmem:[#allocation3 + $0x40] sm:$0xf0] }
 0x36e   : > { %v6795_v8 = vrot.slane %v6793_v48, 5  ;;  %v12655_v59 = vpop.f32.mrb[135].mxu1  ;;  %v6715_v30 = vrot.slane %v6636_v20, 4  ;;  %v6799_v50 = vshrl.u32 %v6751_v55, 16  ;;  %v6538_v38 = vsel %vm514_vm1, %v6529_v51, %v6537_v31  ;;  %v6754_v20 = vld [vmem:[#allocation3 + $0x48] sm:$0x1f] }
 0x36f   : > { %v6788_v26 = vor.u32 %v6787_v25, %v6784_v36  ;;  %v15290_v32 = vadd.f32 %v12655_v59, %v12654_v29  ;;  %v6802_v4 = vshll.u32 %v6751_v55, 16  ;;  %v5899_v33 = vsel %vm883_vm0, %v5897_v24, %v5898_v2  ;;  %v6755_v25 = vld [vmem:[#allocation3 + $0x50] sm:$0xf0] }
 0x370   : > { %8432 = vmatmul.mubr.bf16.gmra.mrb[36].mxu0 %v6538_v38  ;;  %v6555_v62 = vsel %vm514_vm1, %v6546_v5, %v6554_v41  ;;  %v6796_v61 = vor.u32 %v6795_v8, %v6792_v27  ;;  %v12757_v56 = vpop.f32.mrb[192].mxu0  ;;  %v6801_v6 = vrot.slane %v6799_v50, 4  ;;  %v6716_v3 = vsel %vm883_vm0, %v6714_v58, %v6715_v30 }
 0x371   : > { %8439 = vmatprep.mubr.bf16.mxu0 %v6713_v23  ;;  %v12758_v14 = vpop.f32.mrb[193].mxu0  ;;  %v6804_v35 = vrot.slane %v6802_v4, 5  ;;  %v6807_v51 = vshrl.u32 %v6752_v0, 16  ;;  %v6810_v31 = vshll.u32 %v6752_v0, 16  ;;  %v6557_v10 = vshrl.u32 %v6299_v28, 16 }
 0x372   : > { %8287 = vmatmul.mubr.bf16.gmra.mrb[236].mxu1 %v5899_v33  ;;  %v6797_v7 = vsel %vm996_vm2, %v6788_v26, %v6796_v61  ;;  %v12759_v11 = vadd.f32 %v12758_v14, %v12757_v56  ;;  %v12760_v39 = vpop.f32.mrb[194].mxu0  ;;  %v6560_v24 = vshll.u32 %v6299_v28, 16  ;;  %v6565_v23 = vshrl.u32 %v6300_v53, 16  ;;  %v6756_v33 = vld [vmem:[#allocation3 + $0x58] sm:$0x1f] }
 0x373   : > { %13165 = vmatprep.mubr.bf16.mxu1 %v6797_v7  ;;  %v12761_v21 = vpop.f32.mrb[195].mxu0  ;;  %v6805_v2 = vor.u32 %v6804_v35, %v6801_v6  ;;  %v6809_v1 = vrot.slane %v6807_v51, 4  ;;  %v6812_v37 = vrot.slane %v6810_v31, 5  ;;  %v6559_v42 = vrot.slane %v6557_v10, 3  ;;  %v6757_v51 = vld [vmem:[#allocation3 + $0x60] sm:$0xf0] }
 0x374   : > { %v15297_v47 = vadd.f32 %v12759_v11, %v15277_v44  ;;  %v12762_v49 = vadd.f32 %v12761_v21, %v12760_v39  ;;  %v6562_v55 = vrot.slane %v6560_v24, 4  ;;  %v12657_v63 = vpop.f32.mrb[136].mxu1  ;;  %v6567_v17 = vrot.slane %v6565_v23, 3  ;;  %v13522_v7 = vld [vmem:[%s16723_s5] sm:$0xff]  }
 0x375   : > { %v6813_v16 = vor.u32 %v6812_v37, %v6809_v1  ;;  %v6568_v57 = vshll.u32 %v6300_v53, 16  ;;  %v6816_v40 = vshrl.u32 %v6753_v18, 16  ;;  %v12658_v46 = vpop.f32.mrb[137].mxu1  ;;  %v6819_v15 = vshll.u32 %v6753_v18, 16 }
 0x376   : > { %v15300_v36 = vadd.f32 %v12762_v49, %v15283_v12  ;;  %v6563_v48 = vor.u32 %v6562_v55, %v6559_v42  ;;  %v6824_v58 = vshrl.u32 %v6754_v20, 16  ;;  %v12660_v5 = vpop.f32.mrb[138].mxu1  ;;  %v6827_v41 = vshll.u32 %v6754_v20, 16  ;;  %v13513_v12 = vld [vmem:[%s16723_s5 + $0x8] sm:$0xff]   ;;  %v6759_v42 = vld [vmem:[#allocation3 + $0x70] sm:$0xf0] }
 0x377   : > { %v6814_v44 = vsel %vm996_vm2, %v6805_v2, %v6813_v16  ;;  %v6570_v27 = vrot.slane %v6568_v57, 4  ;;  %v6818_v29 = vrot.slane %v6816_v40, 4  ;;  %v12661_v8 = vpop.f32.mrb[139].mxu1  ;;  %v6821_v59 = vrot.slane %v6819_v15, 5  ;;  %v13514_v2 = vld [vmem:[%s16723_s5 + $0x10] sm:$0xff]  }
 0x378   : > { %8440 = vmatmul.mubr.bf16.gmra.mrb[40].mxu0 %v6555_v62  ;;  %v6826_v30 = vrot.slane %v6824_v58, 4  ;;  %v12659_v0 = vadd.f32 %v12658_v46, %v12657_v63  ;;  %v12763_v50 = vpop.f32.mrb[196].mxu0  ;;  %v15303_v38 = vadd.f32 %v12661_v8, %v12660_v5  ;;  %v6829_v4 = vrot.slane %v6827_v41, 5  ;;  %v6760_v5 = vld [vmem:[#allocation3 + $0x78] sm:$0x1f] }
 0x379   : > { %8447 = vmatprep.mubr.bf16.mxu0 %v6716_v3  ;;  %v6571_v26 = vor.u32 %v6570_v27, %v6567_v17  ;;  %v12764_v28 = vpop.f32.mrb[197].mxu0  ;;  %v6833_v61 = vshrl.u32 %v6755_v25, 16  ;;  %v6836_v56 = vshll.u32 %v6755_v25, 16  ;;  %v7887_v62 = vadd.f32 %v15287_v9, %v15162_v43  ;;  %v6758_v9 = vld [vmem:[#allocation3 + $0x68] sm:$0x1f] }
 0x37a   : > { %v7890_v6 = vadd.f32 %v15290_v32, %v15162_v43  ;;  %13166 = vmatmul.mubr.bf16.vlgmr.msra.gmra.mrb[240].mxu1 %v6814_v44  ;;  %v6822_v53 = vor.u32 %v6821_v59, %v6818_v29  ;;  %v12765_v14 = vadd.f32 %v12764_v28, %v12763_v50  ;;  %v12766_v35 = vpop.f32.mrb[198].mxu0  ;;  %v6830_v3 = vor.u32 %v6829_v4, %v6826_v30  ;;  %v6761_v4 = vld [vmem:[#allocation3 + $0x80] sm:$0xf0] }
 0x37b   : > { %v6572_v31 = vsel %vm514_vm1, %v6563_v48, %v6571_v26  ;;  %13198 = vmatpush3.bf16.msra.mxu1 %v13522_v7  ;;  %v12767_v11 = vpop.f32.mrb[199].mxu0  ;;  %v6835_v39 = vrot.slane %v6833_v61, 4  ;;  %v6838_v10 = vrot.slane %v6836_v56, 5  ;;  %v6841_v18 = vshrl.u32 %v6756_v33, 16 }
 0x37c   : > { %v15316_v24 = vadd.f32 %v12765_v14, %v7887_v62  ;;  %v12768_v32 = vadd.f32 %v12767_v11, %v12766_v35  ;;  %v6844_v21 = vshll.u32 %v6756_v33, 16  ;;  %13199 = vmatprep.subr.bf16.mxu1 %v13513_v12  ;;  %v6831_v1 = vsel %vm996_vm2, %v6822_v53, %v6830_v3 }
 0x37d   : > { %v6839_v37 = vor.u32 %v6838_v10, %v6835_v39  ;;  %v6850_v23 = vshrl.u32 %v6757_v51, 16  ;;  %v6853_v20 = vshll.u32 %v6757_v51, 16  ;;  %v12663_v49 = vpop.f32.mrb[140].mxu1  ;;  %13169 = vmatprep.mubr.bf16.mxu1 %v6831_v1  ;;  %v6843_v63 = vrot.slane %v6841_v18, 4  ;;  %v6762_v51 = vld [vmem:[#allocation3 + $0x88] sm:$0x1f] }
 0x37e   : > { %v15322_v55 = vadd.f32 %v12768_v32, %v7890_v6  ;;  %v6846_v16 = vrot.slane %v6844_v21, 5  ;;  %v6858_v17 = vshrl.u32 %v6758_v9, 16  ;;  %v12664_v57 = vpop.f32.mrb[141].mxu1  ;;  %v6861_v48 = vshll.u32 %v6758_v9, 16  ;;  %v6763_v10 = vld [vmem:[#allocation3 + $0x90] sm:$0xf0] }
 0x37f   : > { %v6852_v40 = vrot.slane %v6850_v23, 4  ;;  %v6855_v46 = vrot.slane %v6853_v20, 5  ;;  %13200 = vmatpush3.bf16.msra.mxu1 %v13513_v12  ;;  %v12665_v15 = vadd.f32 %v12664_v57, %v12663_v49  ;;  %v12666_v58 = vpop.f32.mrb[142].mxu1  ;;  %v6867_v29 = vshrl.u32 %v6759_v42, 16  ;;  %v13515_v12 = vld [vmem:[%s16723_s5 + $0x18] sm:$0xff]   ;;  %v13516_v1 = vld [vmem:[%s16723_s5 + $0x20] sm:$0xff]  }
 0x380   : > { %8448 = vmatmul.mubr.bf16.gmra.mrb[44].mxu0 %v6572_v31  ;;  %v6847_v25 = vor.u32 %v6846_v16, %v6843_v63  ;;  %v6860_v44 = vrot.slane %v6858_v17, 4  ;;  %v12667_v27 = vpop.f32.mrb[143].mxu1  ;;  %v6870_v41 = vshll.u32 %v6759_v42, 16  ;;  %13201 = vmatprep.subr.bf16.mxu1 %v13514_v2  ;;  %v7895_v8 = vadd.f32 %v12659_v0, %v15162_v43 }
 0x381   : > { %v6856_v59 = vor.u32 %v6855_v46, %v6852_v40  ;;  %v6863_v30 = vrot.slane %v6861_v48, 5  ;;  %v12769_v50 = vpop.f32.mrb[200].mxu0  ;;  %v12668_v26 = vadd.f32 %v12667_v27, %v12666_v58  ;;  %v6869_v61 = vrot.slane %v6867_v29, 4 }
 0x382   : > { %v6848_v28 = vsel %vm996_vm2, %v6839_v37, %v6847_v25  ;;  %v12770_v33 = vpop.f32.mrb[201].mxu0  ;;  %v6872_v56 = vrot.slane %v6870_v41, 5  ;;  %v6875_v62 = vshrl.u32 %v6760_v5, 16  ;;  %v7898_v6 = vadd.f32 %v15303_v38, %v15162_v43  ;;  %v6764_v38 = vld [vmem:[#allocation3 + $0x98] sm:$0x1f] }
 0x383   : > { %13170 = vmatmul.mubr.bf16.gmra.mrb[244].mxu1 %v6848_v28  ;;  %v6864_v0 = vor.u32 %v6863_v30, %v6860_v44  ;;  %v12771_v53 = vadd.f32 %v12770_v33, %v12769_v50  ;;  %v12772_v14 = vpop.f32.mrb[202].mxu0  ;;  %v6878_v35 = vshll.u32 %v6760_v5, 16  ;;  %v6884_v11 = vshrl.u32 %v6761_v4, 16  ;;  %v6765_v25 = vld [vmem:[#allocation3 + $0xa0] sm:$0xf0] }
 0x384   : > { %v12773_v31 = vpop.f32.mrb[203].mxu0  ;;  %v6873_v3 = vor.u32 %v6872_v56, %v6869_v61  ;;  %v6877_v7 = vrot.slane %v6875_v62, 4  ;;  %v6887_v39 = vshll.u32 %v6761_v4, 16  ;;  %13202 = vmatpush3.bf16.msra.mxu1 %v13514_v2  ;;  %v6892_v20 = vshrl.u32 %v6762_v51, 16  ;;  %v6766_v61 = vld [vmem:[#allocation3 + $0xa8] sm:$0x1f] }
 0x385   : > { %v6865_v9 = vsel %vm996_vm2, %v6856_v59, %v6864_v0  ;;  %v15332_v32 = vadd.f32 %v12771_v53, %v7895_v8  ;;  %v12774_v18 = vadd.f32 %v12773_v31, %v12772_v14  ;;  %v6880_v21 = vrot.slane %v6878_v35, 5  ;;  %13203 = vmatprep.subr.bf16.mxu1 %v13515_v12  ;;  %v13517_v59 = vld [vmem:[%s16723_s5 + $0x28] sm:$0xff]   ;;  %v6767_v0 = vld [vmem:[#allocation3 + $0xb0] sm:$0xf0] }
 0x386   : > { %13173 = vmatprep.mubr.bf16.mxu1 %v6865_v9  ;;  %v6886_v37 = vrot.slane %v6884_v11, 4  ;;  %v6889_v23 = vrot.slane %v6887_v39, 5  ;;  %v6895_v49 = vshll.u32 %v6762_v51, 16  ;;  %v12669_v42 = vpop.f32.mrb[144].mxu1  ;;  %v6901_v17 = vshrl.u32 %v6763_v10, 16 }
 0x387   : > { %v15337_v2 = vadd.f32 %v12774_v18, %v7898_v6  ;;  %v6881_v63 = vor.u32 %v6880_v21, %v6877_v7  ;;  %v12670_v16 = vpop.f32.mrb[145].mxu1  ;;  %v6904_v57 = vshll.u32 %v6763_v10, 16  ;;  %v6894_v46 = vrot.slane %v6892_v20, 4 }
 0x388   : > { %v6890_v40 = vor.u32 %v6889_v23, %v6886_v37  ;;  %v6897_v48 = vrot.slane %v6895_v49, 5  ;;  %v15339_v58 = vadd.f32 %v12670_v16, %v12669_v42  ;;  %v12672_v5 = vpop.f32.mrb[146].mxu1  ;;  %13204 = vmatpush3.bf16.msra.mxu1 %v13515_v12  ;;  %v7903_v44 = vadd.f32 %v12665_v15, %v15162_v43  ;;  %v6769_v37 = vld [vmem:[#allocation3 + $0xc0] sm:$0xf0] }
 0x389   : > { %v12673_v27 = vpop.f32.mrb[147].mxu1  ;;  %v6903_v29 = vrot.slane %v6901_v17, 4  ;;  %v6906_v41 = vrot.slane %v6904_v57, 5  ;;  %v6909_v8 = vshrl.u32 %v6764_v38, 16  ;;  %13205 = vmatprep.subr.bf16.mxu1 %v13516_v1  ;;  %v6882_v30 = vsel %vm996_vm2, %v6873_v3, %v6881_v63  ;;  %v6768_v3 = vld [vmem:[#allocation3 + $0xb8] sm:$0x1f] }
 0x38a   : > { %v6898_v50 = vor.u32 %v6897_v48, %v6894_v46  ;;  %v12775_v4 = vpop.f32.mrb[204].mxu0  ;;  %v12674_v28 = vadd.f32 %v12673_v27, %v12672_v5  ;;  %v6912_v33 = vshll.u32 %v6764_v38, 16  ;;  %v7906_v12 = vadd.f32 %v12668_v26, %v15162_v43  ;;  %v13518_v26 = vld [vmem:[%s16723_s5 + $0x30] sm:$0xff]   ;;  %v6770_v63 = vld [vmem:[#allocation3 + $0xc8] sm:$0x1f] }
 0x38b   : > { %13174 = vmatmul.mubr.bf16.gmra.mrb[248].mxu1 %v6882_v30  ;;  %v12776_v15 = vpop.f32.mrb[205].mxu0  ;;  %v6911_v56 = vrot.slane %v6909_v8, 4  ;;  %v6918_v62 = vshrl.u32 %v6765_v25, 16  ;;  %v6921_v6 = vshll.u32 %v6765_v25, 16  ;;  %v6907_v51 = vor.u32 %v6906_v41, %v6903_v29  ;;  %v6771_v29 = vld [vmem:[#allocation3 + $0xd0] sm:$0xf0] }
 0x38c   : > { %v6899_v53 = vsel %vm996_vm2, %v6890_v40, %v6898_v50  ;;  %v12777_v14 = vadd.f32 %v12776_v15, %v12775_v4  ;;  %v12778_v35 = vpop.f32.mrb[206].mxu0  ;;  %v6914_v31 = vrot.slane %v6912_v33, 5  ;;  %13206 = vmatpush3.bf16.msra.mxu1 %v13516_v1  ;;  %v6926_v10 = vshrl.u32 %v6766_v61, 16  ;;  %v13519_v41 = vld [vmem:[%s16723_s5 + $0x38] sm:$0xff]  }
 0x38d   : > { %13177 = vmatprep.mubr.bf16.mxu1 %v6899_v53  ;;  %v12779_v7 = vpop.f32.mrb[207].mxu0  ;;  %v6920_v11 = vrot.slane %v6918_v62, 4  ;;  %v6923_v39 = vrot.slane %v6921_v6, 5  ;;  %v6929_v43 = vshll.u32 %v6766_v61, 16  ;;  %13207 = vmatprep.subr.bf16.mxu1 %v13517_v59  ;;  %v6935_v38 = vshrl.u32 %v6767_v0, 16 }
 0x38e   : > { %v15351_v9 = vadd.f32 %v12777_v14, %v7903_v44  ;;  %v12780_v18 = vadd.f32 %v12779_v7, %v12778_v35  ;;  %v6915_v21 = vor.u32 %v6914_v31, %v6911_v56  ;;  %v6928_v20 = vrot.slane %v6926_v10, 4  ;;  %v6772_v6 = vld [vmem:[#allocation3 + $0xd8] sm:$0x1f] }
 0x38f   : > { %v6924_v23 = vor.u32 %v6923_v39, %v6920_v11  ;;  %v6931_v1 = vrot.slane %v6929_v43, 5  ;;  %v12675_v49 = vpop.f32.mrb[148].mxu1  ;;  %v6938_v42 = vshll.u32 %v6767_v0, 16  ;;  %v6937_v40 = vrot.slane %v6935_v38, 4 }
 0x390   : > { %v15353_v16 = vadd.f32 %v12780_v18, %v7906_v12  ;;  %v6916_v17 = vsel %vm996_vm2, %v6907_v51, %v6915_v21  ;;  %v12676_v57 = vpop.f32.mrb[149].mxu1  ;;  %v6943_v46 = vshrl.u32 %v6768_v3, 16  ;;  %13208 = vmatpush3.bf16.msra.mxu1 %v13517_v59  ;;  %v6946_v27 = vshll.u32 %v6768_v3, 16  ;;  %v15364_v59 = vld [vmem:[%s16722_s4] ss:$0 sm:$0xff] }
 0x391   : > { %v6932_v48 = vor.u32 %v6931_v1, %v6928_v20  ;;  %v15356_v5 = vadd.f32 %v12676_v57, %v12675_v49  ;;  %v12678_v25 = vpop.f32.mrb[150].mxu1  ;;  %v6940_v44 = vrot.slane %v6938_v42, 5  ;;  %13209 = vmatprep.subr.bf16.mxu1 %v13518_v26  ;;  %v6952_v50 = vshrl.u32 %v6769_v37, 16  ;;  %v6773_v21 = vld [vmem:[#allocation3 + $0xe0] sm:$0xf0] }
 0x392   : > { %v12679_v8 = vpop.f32.mrb[151].mxu1  ;;  %v6945_v30 = vrot.slane %v6943_v46, 4  ;;  %v6955_v4 = vshll.u32 %v6769_v37, 16  ;;  %v6960_v33 = vshrl.u32 %v6770_v63, 16  ;;  %v7911_v61 = vadd.f32 %v15364_v59, %v15339_v58  ;;  %v6774_v1 = vld [vmem:[#allocation3 + $0xe8] sm:$0x1f] }
 0x393   : > { %v7914_v12 = vadd.f32 %v15364_v59, %v12674_v28  ;;  %13178 = vmatmul.mubr.bf16.gmra.mrb[252].mxu1 %v6916_v17  ;;  %v6933_v15 = vsel %vm996_vm2, %v6924_v23, %v6932_v48  ;;  %v12781_v56 = vpop.f32.mrb[208].mxu0  ;;  %v15370_v62 = vadd.f32 %v12679_v8, %v12678_v25  ;;  %v6941_v53 = vor.u32 %v6940_v44, %v6937_v40 }
 0x394   : > { %13181 = vmatprep.mubr.bf16.mxu1 %v6933_v15  ;;  %v12782_v0 = vpop.f32.mrb[209].mxu0  ;;  %v6948_v14 = vrot.slane %v6946_v27, 5  ;;  %v6954_v35 = vrot.slane %v6952_v50, 4  ;;  %v6957_v51 = vrot.slane %v6955_v4, 5  ;;  %13210 = vmatpush3.bf16.msra.mxu1 %v13518_v26  ;;  %v6962_v7 = vrot.slane %v6960_v33, 4 }
 0x395   : > { %v12783_v31 = vadd.f32 %v12782_v0, %v12781_v56  ;;  %v12784_v3 = vpop.f32.mrb[210].mxu0  ;;  %v6963_v58 = vshll.u32 %v6770_v63, 16  ;;  %v6969_v11 = vshrl.u32 %v6771_v29, 16  ;;  %13211 = vmatprep.subr.bf16.mxu1 %v13519_v41  ;;  %v6972_v43 = vshll.u32 %v6771_v29, 16  ;;  %v6775_v50 = vld [vmem:[#allocation3 + $0xf0] sm:$0xf0] }
 0x396   : > { %v12785_v28 = vpop.f32.mrb[211].mxu0  ;;  %v6949_v39 = vor.u32 %v6948_v14, %v6945_v30  ;;  %v6958_v10 = vor.u32 %v6957_v51, %v6954_v35  ;;  %v6977_v18 = vshrl.u32 %v6772_v6, 16  ;;  %v6980_v63 = vshll.u32 %v6772_v6, 16 }
 0x397   : > { %v15372_v38 = vadd.f32 %v12783_v31, %v7911_v61  ;;  %v12786_v37 = vadd.f32 %v12785_v28, %v12784_v3  ;;  %v6965_v23 = vrot.slane %v6963_v58, 5  ;;  %v6971_v20 = vrot.slane %v6969_v11, 4 }
 0x398   : > { %v6950_v26 = vsel %vm996_vm2, %v6941_v53, %v6949_v39  ;;  %v12681_v49 = vpop.f32.mrb[152].mxu1  ;;  %v6974_v42 = vrot.slane %v6972_v43, 5  ;;  %v6979_v17 = vrot.slane %v6977_v18, 4  ;;  %13212 = vmatpush3.bf16.msra.mxu1 %v13519_v41  ;;  %v6986_v48 = vshrl.u32 %v6773_v21, 16 }
 0x399   : > { %v15375_v57 = vadd.f32 %v12786_v37, %v7914_v12  ;;  %v6966_v40 = vor.u32 %v6965_v23, %v6962_v7  ;;  %v12682_v46 = vpop.f32.mrb[153].mxu1  ;;  %v6989_v25 = vshll.u32 %v6773_v21, 16  ;;  %v6982_v8 = vrot.slane %v6980_v63, 5  ;;  %v6776_v12 = vld [vmem:[#allocation3 + $0xf8] sm:$0x1f] }
 0x39a   : > { %v15377_v44 = vadd.f32 %v12682_v46, %v12681_v49  ;;  %v12684_v27 = vpop.f32.mrb[154].mxu1  ;;  %v6975_v29 = vor.u32 %v6974_v42, %v6971_v20  ;;  %v6994_v30 = vshrl.u32 %v6774_v1, 16  ;;  %v6988_v61 = vrot.slane %v6986_v48, 4  ;;  %v6777_v7 = vld [vmem:[#allocation3 + $0x100] sm:$0xf0] }
 0x39b   : > { %13182 = vmatmul.mubr.bf16.gmra.mrb[0].mxu1 %v6950_v26  ;;  %v6967_v4 = vsel %vm996_vm2, %v6958_v10, %v6966_v40  ;;  %v12685_v33 = vpop.f32.mrb[155].mxu1  ;;  %v6991_v15 = vrot.slane %v6989_v25, 5  ;;  %v6997_v41 = vshll.u32 %v6774_v1, 16  ;;  %v6983_v0 = vor.u32 %v6982_v8, %v6979_v17  ;;  %v6778_v23 = vld [vmem:[#allocation3 + $0x108] sm:$0x1f] }
 0x39c   : > { %13185 = vmatprep.mubr.bf16.mxu1 %v6967_v4  ;;  %v12787_v56 = vpop.f32.mrb[212].mxu0  ;;  %v12686_v6 = vadd.f32 %v12685_v33, %v12684_v27  ;;  %v6996_v53 = vrot.slane %v6994_v30, 4  ;;  %v7003_v31 = vshrl.u32 %v6775_v50, 16  ;;  %v7006_v3 = vshll.u32 %v6775_v50, 16  ;;  %v6779_v42 = vld [vmem:[#allocation3 + $0x110] sm:$0xf0] }
 0x39d   : > { %v12788_v14 = vpop.f32.mrb[213].mxu0  ;;  %v6992_v35 = vor.u32 %v6991_v15, %v6988_v61  ;;  %v6999_v51 = vrot.slane %v6997_v41, 5  ;;  %v7919_v58 = vadd.f32 %v15364_v59, %v15356_v5  ;;  %v7011_v39 = vshrl.u32 %v6776_v12, 16  ;;  %v6780_v48 = vld [vmem:[#allocation3 + $0x118] sm:$0x1f] }
 0x39e   : > { %v12789_v11 = vadd.f32 %v12788_v14, %v12787_v56  ;;  %v12790_v28 = vpop.f32.mrb[214].mxu0  ;;  %v7922_v10 = vadd.f32 %v15364_v59, %v15370_v62  ;;  %v6984_v18 = vsel %vm996_vm2, %v6975_v29, %v6983_v0  ;;  %v7014_v37 = vshll.u32 %v6776_v12, 16 }
 0x39f   : > { %v12791_v43 = vpop.f32.mrb[215].mxu0  ;;  %v7000_v21 = vor.u32 %v6999_v51, %v6996_v53  ;;  %v7005_v26 = vrot.slane %v7003_v31, 4  ;;  %v7020_v49 = vshrl.u32 %v6777_v7, 16  ;;  %v7008_v63 = vrot.slane %v7006_v3, 5 }
 0x3a0   : > { %v15385_v20 = vadd.f32 %v12789_v11, %v7919_v58  ;;  %v12792_v1 = vadd.f32 %v12791_v43, %v12790_v28  ;;  %v7013_v40 = vrot.slane %v7011_v39, 4  ;;  %v7023_v46 = vshll.u32 %v6777_v7, 16 }
 0x3a1   : > { %v7001_v5 = vsel %vm996_vm2, %v6992_v35, %v7000_v21  ;;  %v12687_v17 = vpop.f32.mrb[156].mxu1  ;;  %v7016_v27 = vrot.slane %v7014_v37, 5  ;;  %v7028_v29 = vshrl.u32 %v6778_v23, 16  ;;  %v7031_v8 = vshll.u32 %v6778_v23, 16 }
 0x3a2   : > { %v15388_v62 = vadd.f32 %v12792_v1, %v7922_v10  ;;  %v12688_v25 = vpop.f32.mrb[157].mxu1  ;;  %v7022_v4 = vrot.slane %v7020_v49, 4  ;;  %v7025_v33 = vrot.slane %v7023_v46, 5  ;;  %v7037_v61 = vshrl.u32 %v6779_v42, 16 }
 0x3a3   : > { %13186 = vmatmul.mubr.bf16.gmra.mrb[4].mxu1 %v6984_v18  ;;  %v12689_v30 = vadd.f32 %v12688_v25, %v12687_v17  ;;  %v12690_v50 = vpop.f32.mrb[158].mxu1  ;;  %v7030_v41 = vrot.slane %v7028_v29, 4  ;;  %v7033_v12 = vrot.slane %v7031_v8, 5  ;;  %v7040_v56 = vshll.u32 %v6779_v42, 16  ;;  %v8617_v25 = vld [vmem:[%s13721_s11] sm:$0xff] }
 0x3a4   : > { %13189 = vmatprep.mubr.bf16.mxu1 %v7001_v5  ;;  %v12691_v15 = vpop.f32.mrb[159].mxu1  ;;  %v7045_v0 = vshrl.u32 %v6780_v48, 16  ;;  %v7927_v35 = vadd.f32 %v15364_v59, %v15377_v44  ;;  %v7009_v31 = vor.u32 %v7008_v63, %v7005_v26  ;;  %v7017_v3 = vor.u32 %v7016_v27, %v7013_v40  ;;  %v8618_v27 = vld [vmem:[%s13721_s11 + $0x8] sm:$0xff] }
 0x3a5   : > { %v12793_v53 = vpop.f32.mrb[216].mxu0  ;;  %v12692_v14 = vadd.f32 %v12691_v15, %v12690_v50  ;;  %v7026_v11 = vor.u32 %v7025_v33, %v7022_v4  ;;  %v7034_v28 = vor.u32 %v7033_v12, %v7030_v41  ;;  %v7048_v39 = vshll.u32 %v6780_v48, 16 }
 0x3a6   : > { %v12794_v51 = vpop.f32.mrb[217].mxu0  ;;  %v7039_v43 = vrot.slane %v7037_v61, 4  ;;  %v7042_v18 = vrot.slane %v7040_v56, 5  ;;  %v7047_v21 = vrot.slane %v7045_v0, 4  ;;  %v7930_v37 = vadd.f32 %v15364_v59, %v12686_v6 }
 0x3a7   : > { %v12795_v7 = vadd.f32 %v12794_v51, %v12793_v53  ;;  %v12796_v58 = vpop.f32.mrb[218].mxu0  ;;  %v7050_v44 = vrot.slane %v7048_v39, 5  ;;  %v7018_v26 = vsel %vm996_vm2, %v7009_v31, %v7017_v3  ;;  %v7035_v5 = vsel %vm996_vm2, %v7026_v11, %v7034_v28  ;;  %v8620_v3 = vld [vmem:[%s13721_s11 + $0x18] sm:$0xff]  ;;  %v8621_v11 = vld [vmem:[%s13721_s11 + $0x20] sm:$0xff]  ;;  %v8622_v28 = vld [vmem:[%s13721_s11 + $0x28] sm:$0xff] }
 0x3a8   : > { %v12797_v10 = vpop.f32.mrb[219].mxu0  ;;  %v7043_v46 = vor.u32 %v7042_v18, %v7039_v43  ;;  %v7935_v4 = vadd.f32 %v15364_v59, %v12689_v30  ;;  %v8649_v41 = vpack.c.bf16 %v8618_v27, %v8617_v25  ;;  %v7938_v56 = vadd.f32 %v15364_v59, %v12692_v14  ;;  %v8619_v30 = vld [vmem:[%s13721_s11 + $0x10] sm:$0xff]  ;;  %v8625_v27 = vld [vmem:[%s13721_s11 + $0x40] sm:$0xff] }
 0x3a9   : > { %v15393_v23 = vadd.f32 %v12795_v7, %v7927_v35  ;;  %v12798_v1 = vadd.f32 %v12797_v10, %v12796_v58  ;;  %v7051_v6 = vor.u32 %v7050_v44, %v7047_v21  ;;  %v8650_v43 = vpack.c.bf16 %v8620_v3, %v8619_v30 }
 0x3aa   : > { %v12693_v49 = vpop.f32.mrb[160].mxu1  ;;  %v8651_v21 = vpack.c.bf16 %v8622_v28, %v8621_v11  ;;  %v8628_v11 = vld [vmem:[%s13721_s11 + $0x58] sm:$0xff] }
 0x3ab   : > { %v15396_v42 = vadd.f32 %v12798_v1, %v7930_v37  ;;  %13190 = vmatmul.mubr.bf16.gmra.mrb[8].mxu1 %v7018_v26  ;;  %v12694_v17 = vpop.f32.mrb[161].mxu1  ;;  %v7052_v15 = vsel %vm996_vm2, %v7043_v46, %v7051_v6  ;;  %v8623_v46 = vld [vmem:[%s13721_s11 + $0x30] sm:$0xff]  ;;  %v8624_v6 = vld [vmem:[%s13721_s11 + $0x38] sm:$0xff] }
 0x3ac   : > { %13193 = vmatprep.mubr.bf16.mxu1 %v7035_v5  ;;  %v12695_v63 = vadd.f32 %v12694_v17, %v12693_v49  ;;  %v12696_v40 = vpop.f32.mrb[162].mxu1 }
 0x3ad   : > { %v12697_v48 = vpop.f32.mrb[163].mxu1 }
 0x3ae   : > { %v12799_v29 = vpop.f32.mrb[220].mxu0  ;;  %v12698_v8 = vadd.f32 %v12697_v48, %v12696_v40  ;;  %v7943_v37 = vadd.f32 %v15364_v59, %v12695_v63 }
 0x3af   : > { %v12800_v50 = vpop.f32.mrb[221].mxu0 }
 0x3b0   : > { %v12801_v33 = vadd.f32 %v12800_v50, %v12799_v29  ;;  %v12802_v61 = vpop.f32.mrb[222].mxu0  ;;  %v7946_v49 = vadd.f32 %v15364_v59, %v12698_v8  ;;  %v8626_v29 = vld [vmem:[%s13721_s11 + $0x48] sm:$0xff] }
 0x3b1   : > { %v12803_v12 = vpop.f32.mrb[223].mxu0 }
 0x3b2   : > { %v15404_v0 = vadd.f32 %v12801_v33, %v7935_v4  ;;  %v12804_v53 = vadd.f32 %v12803_v12, %v12802_v61  ;;  %v8652_v33 = vpack.c.bf16 %v8624_v6, %v8623_v46 }
 0x3b3   : > { %13194 = vmatmul.mubr.bf16.gmra.mrb[12].mxu1 %v7052_v15  ;;  %v12699_v35 = vpop.f32.mrb[164].mxu1  ;;  %v8653_v15 = vpack.c.bf16 %v8626_v29, %v8625_v27 }
 0x3b4   : > { %v15406_v51 = vadd.f32 %v12804_v53, %v7938_v56  ;;  %v12700_v31 = vpop.f32.mrb[165].mxu1  ;;  %13213 = vmatprep.mubr.bf16.mxu1 %v8649_v41 }
 0x3b5   : > { %v12701_v7 = vadd.f32 %v12700_v31, %v12699_v35  ;;  %v12702_v58 = vpop.f32.mrb[166].mxu1 }
 0x3b6   : > { %v12703_v39 = vpop.f32.mrb[167].mxu1 }
 0x3b7   : > { %v12805_v10 = vpop.f32.mrb[224].mxu0  ;;  %v12704_v14 = vadd.f32 %v12703_v39, %v12702_v58  ;;  %v7951_v12 = vadd.f32 %v15364_v59, %v12701_v7  ;;  %v8627_v58 = vld [vmem:[%s13721_s11 + $0x50] sm:$0xff]  ;;  %v8629_v39 = vld [vmem:[%s13721_s11 + $0x60] sm:$0xff] }
 0x3b8   : > { %v12806_v18 = vpop.f32.mrb[225].mxu0 }
 0x3b9   : > { %v12807_v1 = vadd.f32 %v12806_v18, %v12805_v10  ;;  %v12808_v44 = vpop.f32.mrb[226].mxu0  ;;  %v7954_v31 = vadd.f32 %v15364_v59, %v12704_v14  ;;  %v8630_v10 = vld [vmem:[%s13721_s11 + $0x68] sm:$0xff] }
 0x3ba   : > { %v12809_v26 = vpop.f32.mrb[227].mxu0  ;;  %v8655_v14 = vpack.c.bf16 %v8630_v10, %v8629_v39 }
 0x3bb   : > { %v15414_v5 = vadd.f32 %v12807_v1, %v7943_v37  ;;  %v12810_v17 = vadd.f32 %v12809_v26, %v12808_v44  ;;  %13214 = vmatmul.mubr.bf16.vlgmr.msra.gmra.mrb[240].mxu1 %v8650_v43  ;;  %v8654_v37 = vpack.c.bf16 %v8628_v11, %v8627_v58 }
 0x3bc   : > { %v12705_v40 = vpop.f32.mrb[168].mxu1  ;;  %13217 = vmatprep.mubr.bf16.mxu1 %v8651_v21 }
 0x3bd   : > { %v15418_v48 = vadd.f32 %v12810_v17, %v7946_v49  ;;  %v12706_v25 = vpop.f32.mrb[169].mxu1 }
 0x3be   : > { %v12707_v50 = vadd.f32 %v12706_v25, %v12705_v40  ;;  %v12708_v63 = vpop.f32.mrb[170].mxu1 }
 0x3bf   : > { %v12709_v4 = vpop.f32.mrb[171].mxu1 }
 0x3c0   : > { %v12811_v8 = vpop.f32.mrb[228].mxu0  ;;  %v12710_v61 = vadd.f32 %v12709_v4, %v12708_v63  ;;  %v7959_v17 = vadd.f32 %v15364_v59, %v12707_v50  ;;  %v8631_v63 = vld [vmem:[%s13721_s11 + $0x70] sm:$0xff]  ;;  %v8632_v4 = vld [vmem:[%s13721_s11 + $0x78] sm:$0xff] }
 0x3c1   : > { %v12812_v41 = vpop.f32.mrb[229].mxu0 }
 0x3c2   : > { %v12813_v56 = vadd.f32 %v12812_v41, %v12811_v8  ;;  %v12814_v53 = vpop.f32.mrb[230].mxu0  ;;  %v7962_v25 = vadd.f32 %v15364_v59, %v12710_v61  ;;  %v8633_v8 = vld [vmem:[%s13721_s11 + $0x80] sm:$0xff] }
 0x3c3   : > { %v12815_v35 = vpop.f32.mrb[231].mxu0  ;;  %13218 = vmatmul.mubr.bf16.gmra.mrb[244].mxu1 %v8652_v33 }
 0x3c4   : > { %v15424_v30 = vadd.f32 %v12813_v56, %v7951_v12  ;;  %v12816_v3 = vadd.f32 %v12815_v35, %v12814_v53  ;;  %13221 = vmatprep.mubr.bf16.mxu1 %v8653_v15  ;;  %v8634_v15 = vld [vmem:[%s13721_s11 + $0x88] sm:$0xff]  ;;  %v8656_v53 = vpack.c.bf16 %v8632_v4, %v8631_v63 }
 0x3c5   : > { %v12711_v28 = vpop.f32.mrb[172].mxu1 }
 0x3c6   : > { %v15430_v43 = vadd.f32 %v12816_v3, %v7954_v31  ;;  %v12712_v18 = vpop.f32.mrb[173].mxu1  ;;  %v8657_v31 = vpack.c.bf16 %v8634_v15, %v8633_v8  ;;  %v8639_v15 = vld [vmem:[%s13721_s11 + $0xb0] sm:$0xff] }
 0x3c7   : > { %v12713_v21 = vadd.f32 %v12712_v18, %v12711_v28  ;;  %v12714_v7 = vpop.f32.mrb[174].mxu1 }
 0x3c8   : > { %v12817_v1 = vpop.f32.mrb[232].mxu0  ;;  %v12715_v44 = vpop.f32.mrb[175].mxu1 }
 0x3c9   : > { %v12818_v26 = vpop.f32.mrb[233].mxu0  ;;  %v12716_v49 = vadd.f32 %v12715_v44, %v12714_v7  ;;  %v7967_v28 = vadd.f32 %v15364_v59, %v12713_v21 }
 0x3ca   : > { %v12819_v40 = vadd.f32 %v12818_v26, %v12817_v1  ;;  %v12820_v46 = vpop.f32.mrb[234].mxu0  ;;  %v8636_v1 = vld [vmem:[%s13721_s11 + $0x98] sm:$0xff] }
 0x3cb   : > { %v12821_v6 = vpop.f32.mrb[235].mxu0  ;;  %13222 = vmatmul.mubr.bf16.gmra.mrb[248].mxu1 %v8654_v37  ;;  %v8635_v37 = vld [vmem:[%s13721_s11 + $0x90] sm:$0xff]  ;;  %v7970_v44 = vadd.f32 %v15364_v59, %v12716_v49 }
 0x3cc   : > { %v15434_v27 = vadd.f32 %v12819_v40, %v7959_v17  ;;  %v12822_v29 = vadd.f32 %v12821_v6, %v12820_v46  ;;  %13225 = vmatprep.mubr.bf16.mxu1 %v8655_v14  ;;  %v8637_v17 = vld [vmem:[%s13721_s11 + $0xa0] sm:$0xff]  ;;  %v8638_v40 = vld [vmem:[%s13721_s11 + $0xa8] sm:$0xff] }
 0x3cd   : > { %v12845_v33 = vpop.f32.mrb[176].mxu1  ;;  %v8659_v63 = vpack.c.bf16 %v8638_v40, %v8637_v17  ;;  %v8643_v17 = vld [vmem:[%s13721_s11 + $0xd0] sm:$0xff]  ;;  %v8644_v40 = vld [vmem:[%s13721_s11 + $0xd8] sm:$0xff] }
 0x3ce   : > { %v15440_v41 = vadd.f32 %v12822_v29, %v7962_v25  ;;  %v12846_v12 = vpop.f32.mrb[177].mxu1  ;;  %v8658_v25 = vpack.c.bf16 %v8636_v1, %v8635_v37 }
 0x3cf   : > { %v12847_v56 = vadd.f32 %v12846_v12, %v12845_v33  ;;  %v12848_v50 = vpop.f32.mrb[178].mxu1  ;;  %v8640_v12 = vld [vmem:[%s13721_s11 + $0xb8] sm:$0xff] }
 0x3d0   : > { %v12849_v35 = vpop.f32.mrb[179].mxu1 }
 0x3d1   : > { %v12823_v61 = vpop.f32.mrb[236].mxu0  ;;  %v15443_v3 = vadd.f32 %v12847_v56, %v15215_v19  ;;  %v12850_v58 = vadd.f32 %v12849_v35, %v12848_v50  ;;  %v8641_v35 = vld [vmem:[%s13721_s11 + $0xc0] sm:$0xff] }
 0x3d2   : > { %v12824_v11 = vpop.f32.mrb[237].mxu0 }
 0x3d3   : > { %v12825_v39 = vadd.f32 %v12824_v11, %v12823_v61  ;;  %v12826_v10 = vpop.f32.mrb[238].mxu0  ;;  %v8172_v18 = vadd.f32 %v12850_v58, %v15219_v52  ;;  %13226 = vmatmul.mubr.bf16.gmra.mrb[252].mxu1 %v8656_v53 }
 0x3d4   : > { %v12827_v7 = vpop.f32.mrb[239].mxu0  ;;  %13229 = vmatprep.mubr.bf16.mxu1 %v8657_v31  ;;  %v8642_v31 = vld [vmem:[%s13721_s11 + $0xc8] sm:$0xff] }
 0x3d5   : > { %v15450_v14 = vadd.f32 %v12825_v39, %v7967_v28  ;;  %v12828_v19 = vadd.f32 %v12827_v7, %v12826_v10  ;;  %v12851_v26 = vpop.f32.mrb[180].mxu1  ;;  %v8660_v39 = vpack.c.bf16 %v8640_v12, %v8639_v15  ;;  %v8661_v10 = vpack.c.bf16 %v8642_v31, %v8641_v35 }
 0x3d6   : > { %v12852_v21 = vpop.f32.mrb[181].mxu1 }
 0x3d7   : > { %v15454_v46 = vadd.f32 %v12828_v19, %v7970_v44  ;;  %v12853_v6 = vadd.f32 %v12852_v21, %v12851_v26  ;;  %v12854_v52 = vpop.f32.mrb[182].mxu1 }
 0x3d8   : > { %v12855_v29 = vpop.f32.mrb[183].mxu1 }
 0x3d9   : > { %v8177_v59 = vadd.f32 %v12853_v6, %v15234_v60  ;;  %v12856_v49 = vadd.f32 %v12855_v29, %v12854_v52  ;;  %v8646_v29 = vld [vmem:[%s13721_s11 + $0xe8] sm:$0xff] }
 0x3db   : > { %v12957_v4 = vpop.f32.mrb[240].mxu0  ;;  %v8180_v33 = vadd.f32 %v12856_v49, %v15238_v22  ;;  %13230 = vmatmul.mubr.bf16.gmra.mrb[0].mxu1 %v8658_v25  ;;  %v8645_v25 = vld [vmem:[%s13721_s11 + $0xe0] sm:$0xff] }
 0x3dc   : > { %v12958_v8 = vpop.f32.mrb[241].mxu0  ;;  %13233 = vmatprep.mubr.bf16.mxu1 %v8659_v63  ;;  %v8663_v12 = vpack.c.bf16 %v8646_v29, %v8645_v25 }
 0x3dd   : > { %v15460_v56 = vadd.f32 %v12958_v8, %v12957_v4  ;;  %v12960_v50 = vpop.f32.mrb[242].mxu0  ;;  %v12857_v53 = vpop.f32.mrb[184].mxu1  ;;  %v8662_v8 = vpack.c.bf16 %v8644_v40, %v8643_v17 }
 0x3de   : > { %v12961_v61 = vpop.f32.mrb[243].mxu0  ;;  %v12858_v58 = vpop.f32.mrb[185].mxu1 }
 0x3df   : > { %v12962_v60 = vadd.f32 %v12961_v61, %v12960_v50  ;;  %v12859_v11 = vadd.f32 %v12858_v58, %v12857_v53  ;;  %v12860_v28 = vpop.f32.mrb[186].mxu1 }
 0x3e0   : > { %v12861_v22 = vpop.f32.mrb[187].mxu1 }
 0x3e1   : > { %v15464_v7 = vadd.f32 %v12962_v60, %v8172_v18  ;;  %v8185_v37 = vadd.f32 %v12859_v11, %v15254_v34  ;;  %v12862_v1 = vadd.f32 %v12861_v22, %v12860_v28  ;;  %v8647_v60 = vld [vmem:[%s13721_s11 + $0xf0] sm:$0xff]  ;;  %v8648_v11 = vld [vmem:[%s13721_s11 + $0xf8] sm:$0xff] }
 0x3e3   : > { %v12963_v44 = vpop.f32.mrb[244].mxu0  ;;  %v8188_v19 = vadd.f32 %v12862_v1, %v15256_v45  ;;  %13234 = vmatmul.mubr.bf16.gmra.mrb[4].mxu1 %v8660_v39 }
 0x3e4   : > { %v12964_v26 = vpop.f32.mrb[245].mxu0  ;;  %13237 = vmatprep.mubr.bf16.mxu1 %v8661_v10 }
 0x3e5   : > { %v12965_v21 = vadd.f32 %v12964_v26, %v12963_v44  ;;  %v12966_v6 = vpop.f32.mrb[246].mxu0  ;;  %v12863_v52 = vpop.f32.mrb[188].mxu1 }
 0x3e6   : > { %v12967_v63 = vpop.f32.mrb[247].mxu0  ;;  %v12864_v49 = vpop.f32.mrb[189].mxu1 }
 0x3e7   : > { %v12968_v18 = vadd.f32 %v12967_v63, %v12966_v6  ;;  %v12865_v34 = vadd.f32 %v12864_v49, %v12863_v52  ;;  %v12866_v4 = vpop.f32.mrb[190].mxu1  ;;  %v15472_v15 = vadd.f32 %v12965_v21, %v8177_v59 }
 0x3e8   : > { %v12867_v45 = vpop.f32.mrb[191].mxu1 }
 0x3e9   : > { %v15474_v50 = vadd.f32 %v12968_v18, %v8180_v33  ;;  %v8193_v53 = vadd.f32 %v12865_v34, %v15279_v54  ;;  %v12868_v35 = vadd.f32 %v12867_v45, %v12866_v4  ;;  %v8664_v54 = vpack.c.bf16 %v8648_v11, %v8647_v60 }
 0x3eb   : > { %v12969_v31 = vpop.f32.mrb[248].mxu0  ;;  %v8196_v61 = vadd.f32 %v12868_v35, %v15285_v13  ;;  %13238 = vmatmul.mubr.bf16.gmra.mrb[8].mxu1 %v8662_v8 }
 0x3ec   : > { %v12970_v58 = vpop.f32.mrb[249].mxu0  ;;  %13241 = vmatprep.mubr.bf16.mxu1 %v8663_v12 }
 0x3ed   : > { %v12971_v28 = vadd.f32 %v12970_v58, %v12969_v31  ;;  %v12972_v39 = vpop.f32.mrb[250].mxu0  ;;  %v12869_v22 = vpop.f32.mrb[192].mxu1 }
 0x3ee   : > { %v12973_v59 = vpop.f32.mrb[251].mxu0  ;;  %v12870_v10 = vpop.f32.mrb[193].mxu1 }
 0x3ef   : > { %v15480_v1 = vadd.f32 %v12971_v28, %v8185_v37  ;;  %v12974_v33 = vadd.f32 %v12973_v59, %v12972_v39  ;;  %v12871_v44 = vadd.f32 %v12870_v10, %v12869_v22  ;;  %v12872_v26 = vpop.f32.mrb[194].mxu1 }
 0x3f0   : > { %v12873_v17 = vpop.f32.mrb[195].mxu1 }
 0x3f1   : > { %v15482_v40 = vadd.f32 %v12974_v33, %v8188_v19  ;;  %v8201_v13 = vadd.f32 %v12871_v44, %v15297_v47  ;;  %v12874_v21 = vadd.f32 %v12873_v17, %v12872_v26 }
 0x3f3   : > { %v12975_v6 = vpop.f32.mrb[252].mxu0  ;;  %v8204_v52 = vadd.f32 %v12874_v21, %v15300_v36  ;;  %13242 = vmatmul.mubr.bf16.gmra.mrb[12].mxu1 %v8664_v54 }
 0x3f4   : > { %v12976_v25 = vpop.f32.mrb[253].mxu0 }
 0x3f5   : > { %v12977_v29 = vadd.f32 %v12976_v25, %v12975_v6  ;;  %v12978_v63 = vpop.f32.mrb[254].mxu0  ;;  %v12875_v49 = vpop.f32.mrb[196].mxu1 }
 0x3f6   : > { %v12979_v37 = vpop.f32.mrb[255].mxu0  ;;  %v12876_v18 = vpop.f32.mrb[197].mxu1 }
 0x3f7   : > { %v15486_v34 = vadd.f32 %v12977_v29, %v8193_v53  ;;  %v12980_v4 = vadd.f32 %v12979_v37, %v12978_v63  ;;  %v12877_v8 = vadd.f32 %v12876_v18, %v12875_v49  ;;  %v12878_v45 = vpop.f32.mrb[198].mxu1 }
 0x3f8   : > { %v12879_v19 = vpop.f32.mrb[199].mxu1 }
 0x3f9   : > { %v15488_v12 = vadd.f32 %v12980_v4, %v8196_v61  ;;  %v8209_v47 = vadd.f32 %v12877_v8, %v15316_v24  ;;  %v12880_v35 = vadd.f32 %v12879_v19, %v12878_v45 }
 0x3fb   : > { %v12981_v31 = vpop.f32.mrb[0].mxu0  ;;  %v8212_v36 = vadd.f32 %v12880_v35, %v15322_v55 }
 0x3fc   : > { %v12982_v58 = vpop.f32.mrb[1].mxu0 }
 0x3fd   : > { %v12983_v60 = vadd.f32 %v12982_v58, %v12981_v31  ;;  %v12984_v11 = vpop.f32.mrb[2].mxu0  ;;  %v12881_v28 = vpop.f32.mrb[200].mxu1 }
 0x3fe   : > { %v12985_v39 = vpop.f32.mrb[3].mxu0  ;;  %v12882_v22 = vpop.f32.mrb[201].mxu1 }
 0x3ff   : > { %v15492_v53 = vadd.f32 %v12983_v60, %v8201_v13  ;;  %v12986_v59 = vadd.f32 %v12985_v39, %v12984_v11  ;;  %v12883_v10 = vadd.f32 %v12882_v22, %v12881_v28  ;;  %v12884_v33 = vpop.f32.mrb[202].mxu1 }
 0x400   : > { %v12885_v44 = vpop.f32.mrb[203].mxu1 }
 0x401   : > { %v15494_v61 = vadd.f32 %v12986_v59, %v8204_v52  ;;  %v8217_v24 = vadd.f32 %v12883_v10, %v15332_v32  ;;  %v12886_v26 = vadd.f32 %v12885_v44, %v12884_v33 }
 0x403   : > { %v12987_v54 = vpop.f32.mrb[4].mxu0  ;;  %v8220_v55 = vadd.f32 %v12886_v26, %v15337_v2 }
 0x404   : > { %v12988_v17 = vpop.f32.mrb[5].mxu0 }
 0x405   : > { %v12989_v21 = vadd.f32 %v12988_v17, %v12987_v54  ;;  %v12990_v6 = vpop.f32.mrb[6].mxu0  ;;  %v12887_v25 = vpop.f32.mrb[204].mxu1 }
 0x406   : > { %v12991_v29 = vpop.f32.mrb[7].mxu0  ;;  %v12888_v63 = vpop.f32.mrb[205].mxu1 }
 0x407   : > { %v15498_v13 = vadd.f32 %v12989_v21, %v8209_v47  ;;  %v12992_v49 = vadd.f32 %v12991_v29, %v12990_v6  ;;  %v12889_v37 = vadd.f32 %v12888_v63, %v12887_v25  ;;  %v12890_v18 = vpop.f32.mrb[206].mxu1 }
 0x408   : > { %v12891_v4 = vpop.f32.mrb[207].mxu1 }
 0x409   : > { %v15500_v52 = vadd.f32 %v12992_v49, %v8212_v36  ;;  %v8225_v32 = vadd.f32 %v12889_v37, %v15351_v9  ;;  %v12892_v8 = vadd.f32 %v12891_v4, %v12890_v18 }
 0x40b   : > { %v12993_v45 = vpop.f32.mrb[8].mxu0  ;;  %v8228_v2 = vadd.f32 %v12892_v8, %v15353_v16 }
 0x40c   : > { %v12994_v19 = vpop.f32.mrb[9].mxu0 }
 0x40d   : > { %v12995_v35 = vadd.f32 %v12994_v19, %v12993_v45  ;;  %v12996_v31 = vpop.f32.mrb[10].mxu0  ;;  %v12893_v58 = vpop.f32.mrb[208].mxu1 }
 0x40e   : > { %v12997_v60 = vpop.f32.mrb[11].mxu0  ;;  %v12894_v11 = vpop.f32.mrb[209].mxu1 }
 0x40f   : > { %v15504_v47 = vadd.f32 %v12995_v35, %v8217_v24  ;;  %v12998_v28 = vadd.f32 %v12997_v60, %v12996_v31  ;;  %v12895_v39 = vadd.f32 %v12894_v11, %v12893_v58  ;;  %v12896_v22 = vpop.f32.mrb[210].mxu1 }
 0x410   : > { %v12897_v59 = vpop.f32.mrb[211].mxu1 }
 0x411   : > { %v15506_v36 = vadd.f32 %v12998_v28, %v8220_v55  ;;  %v8233_v9 = vadd.f32 %v12895_v39, %v15372_v38  ;;  %v12898_v10 = vadd.f32 %v12897_v59, %v12896_v22 }
 0x413   : > { %v12999_v33 = vpop.f32.mrb[12].mxu0  ;;  %v8236_v16 = vadd.f32 %v12898_v10, %v15375_v57 }
 0x414   : > { %v13000_v44 = vpop.f32.mrb[13].mxu0 }
 0x415   : > { %v13001_v26 = vadd.f32 %v13000_v44, %v12999_v33  ;;  %v13002_v54 = vpop.f32.mrb[14].mxu0  ;;  %v12899_v17 = vpop.f32.mrb[212].mxu1 }
 0x416   : > { %v13003_v21 = vpop.f32.mrb[15].mxu0  ;;  %v12900_v6 = vpop.f32.mrb[213].mxu1 }
 0x417   : > { %v15510_v24 = vadd.f32 %v13001_v26, %v8225_v32  ;;  %v13004_v25 = vadd.f32 %v13003_v21, %v13002_v54  ;;  %v12901_v29 = vadd.f32 %v12900_v6, %v12899_v17  ;;  %v12902_v63 = vpop.f32.mrb[214].mxu1 }
 0x418   : > { %v12903_v49 = vpop.f32.mrb[215].mxu1 }
 0x419   : > { %v15512_v55 = vadd.f32 %v13004_v25, %v8228_v2  ;;  %v8241_v38 = vadd.f32 %v12901_v29, %v15385_v20  ;;  %v12904_v37 = vadd.f32 %v12903_v49, %v12902_v63 }
 0x41b   : > { %v13005_v18 = vpop.f32.mrb[16].mxu0  ;;  %v8244_v57 = vadd.f32 %v12904_v37, %v15388_v62 }
 0x41c   : > { %v13006_v4 = vpop.f32.mrb[17].mxu0 }
 0x41d   : > { %v13007_v8 = vadd.f32 %v13006_v4, %v13005_v18  ;;  %v13008_v45 = vpop.f32.mrb[18].mxu0  ;;  %v12905_v19 = vpop.f32.mrb[216].mxu1 }
 0x41e   : > { %v13009_v35 = vpop.f32.mrb[19].mxu0  ;;  %v12906_v31 = vpop.f32.mrb[217].mxu1 }
 0x41f   : > { %v15516_v32 = vadd.f32 %v13007_v8, %v8233_v9  ;;  %v13010_v58 = vadd.f32 %v13009_v35, %v13008_v45  ;;  %v12907_v60 = vadd.f32 %v12906_v31, %v12905_v19  ;;  %v12908_v11 = vpop.f32.mrb[218].mxu1  ;;  %v15524_v9 = vadd.f32 %v15460_v56, %v15443_v3 }
 0x420   : > { %v12909_v28 = vpop.f32.mrb[219].mxu1 }
 0x421   : > { %v15518_v2 = vadd.f32 %v13010_v58, %v8236_v16  ;;  %v8249_v20 = vadd.f32 %v12907_v60, %v15393_v23  ;;  %v12910_v39 = vadd.f32 %v12909_v28, %v12908_v11 }
 0x423   : > { %16759 = vst [vmem:[#allocation5_spill] sm:$0xff] %v15518_v2  ;;  %v13011_v22 = vpop.f32.mrb[20].mxu0  ;;  %v8252_v62 = vadd.f32 %v12910_v39, %v15396_v42 }
 0x424   : > { %v13012_v59 = vpop.f32.mrb[21].mxu0 }
 0x425   : > { %v13013_v10 = vadd.f32 %v13012_v59, %v13011_v22  ;;  %v13014_v33 = vpop.f32.mrb[22].mxu0  ;;  %v12911_v44 = vpop.f32.mrb[220].mxu1 }
 0x426   : > { %v13015_v26 = vpop.f32.mrb[23].mxu0  ;;  %v12912_v54 = vpop.f32.mrb[221].mxu1 }
 0x427   : > { %v15526_v17 = vadd.f32 %v13013_v10, %v8241_v38  ;;  %v13016_v16 = vadd.f32 %v13015_v26, %v13014_v33  ;;  %v12913_v21 = vadd.f32 %v12912_v54, %v12911_v44  ;;  %v12914_v6 = vpop.f32.mrb[222].mxu1 }
 0x428   : > { %v12915_v23 = vpop.f32.mrb[223].mxu1 }
 0x429   : > { %v15528_v25 = vadd.f32 %v13016_v16, %v8244_v57  ;;  %v8257_v42 = vadd.f32 %v12913_v21, %v15404_v0  ;;  %v12916_v29 = vadd.f32 %v12915_v23, %v12914_v6 }
 0x42b   : > { %v13017_v63 = vpop.f32.mrb[24].mxu0  ;;  %v8260_v49 = vadd.f32 %v12916_v29, %v15406_v51 }
 0x42c   : > { %v13018_v37 = vpop.f32.mrb[25].mxu0 }
 0x42d   : > { %v13019_v18 = vadd.f32 %v13018_v37, %v13017_v63  ;;  %v13020_v3 = vpop.f32.mrb[26].mxu0  ;;  %v12917_v56 = vpop.f32.mrb[224].mxu1 }
 0x42e   : > { %v13021_v4 = vpop.f32.mrb[27].mxu0  ;;  %v12918_v8 = vpop.f32.mrb[225].mxu1 }
 0x42f   : > { %v15532_v38 = vadd.f32 %v13019_v18, %v8249_v20  ;;  %v13022_v45 = vadd.f32 %v13021_v4, %v13020_v3  ;;  %v12919_v19 = vadd.f32 %v12918_v8, %v12917_v56  ;;  %v12920_v35 = vpop.f32.mrb[226].mxu1 }
 0x430   : > { %v12921_v31 = vpop.f32.mrb[227].mxu1 }
 0x431   : > { %16760 = vst [vmem:[#allocation6_spill] sm:$0xff] %v15532_v38  ;;  %v15534_v57 = vadd.f32 %v13022_v45, %v8252_v62  ;;  %v8265_v0 = vadd.f32 %v12919_v19, %v15414_v5  ;;  %v12922_v58 = vadd.f32 %v12921_v31, %v12920_v35 }
 0x433   : > { %16761 = vst [vmem:[#allocation7_spill] sm:$0xff] %v15534_v57  ;;  %v13023_v60 = vpop.f32.mrb[28].mxu0  ;;  %v8268_v51 = vadd.f32 %v12922_v58, %v15418_v48 }
 0x434   : > { %v13024_v11 = vpop.f32.mrb[29].mxu0 }
 0x435   : > { %v13025_v28 = vadd.f32 %v13024_v11, %v13023_v60  ;;  %v13026_v39 = vpop.f32.mrb[30].mxu0  ;;  %v12923_v22 = vpop.f32.mrb[228].mxu1 }
 0x436   : > { %v13027_v59 = vpop.f32.mrb[31].mxu0  ;;  %v12924_v10 = vpop.f32.mrb[229].mxu1 }
 0x437   : > { %v15538_v20 = vadd.f32 %v13025_v28, %v8257_v42  ;;  %v13028_v33 = vadd.f32 %v13027_v59, %v13026_v39  ;;  %v12925_v44 = vadd.f32 %v12924_v10, %v12923_v22  ;;  %v12926_v26 = vpop.f32.mrb[230].mxu1 }
 0x438   : > { %v12927_v54 = vpop.f32.mrb[231].mxu1 }
 0x439   : > { %16762 = vst [vmem:[#allocation8_spill] sm:$0xff] %v15538_v20  ;;  %v15540_v62 = vadd.f32 %v13028_v33, %v8260_v49  ;;  %v8273_v5 = vadd.f32 %v12925_v44, %v15424_v30  ;;  %v12928_v16 = vadd.f32 %v12927_v54, %v12926_v26 }
 0x43b   : > { %16763 = vst [vmem:[#allocation9_spill] sm:$0xff] %v15540_v62  ;;  %v13029_v21 = vpop.f32.mrb[32].mxu0  ;;  %v8276_v48 = vadd.f32 %v12928_v16, %v15430_v43 }
 0x43c   : > { %v13030_v6 = vpop.f32.mrb[33].mxu0 }
 0x43d   : > { %v13031_v23 = vadd.f32 %v13030_v6, %v13029_v21  ;;  %v13032_v29 = vpop.f32.mrb[34].mxu0  ;;  %v12929_v63 = vpop.f32.mrb[232].mxu1 }
 0x43e   : > { %v13033_v37 = vpop.f32.mrb[35].mxu0  ;;  %v12930_v18 = vpop.f32.mrb[233].mxu1 }
 0x43f   : > { %v15544_v42 = vadd.f32 %v13031_v23, %v8265_v0  ;;  %v13034_v3 = vadd.f32 %v13033_v37, %v13032_v29  ;;  %v12931_v56 = vadd.f32 %v12930_v18, %v12929_v63  ;;  %v12932_v4 = vpop.f32.mrb[234].mxu1 }
 0x440   : > { %v12933_v8 = vpop.f32.mrb[235].mxu1 }
 0x441   : > { %16764 = vst [vmem:[#allocation10_spill] sm:$0xff] %v15544_v42  ;;  %v15546_v49 = vadd.f32 %v13034_v3, %v8268_v51  ;;  %v8281_v30 = vadd.f32 %v12931_v56, %v15434_v27  ;;  %v12934_v45 = vadd.f32 %v12933_v8, %v12932_v4  ;;  %v8965_v8 = vlaneseq }
 0x443   : > { %16765 = vst [vmem:[#allocation11_spill] sm:$0xff] %v15546_v49  ;;  %v13035_v19 = vpop.f32.mrb[36].mxu0  ;;  %v8284_v43 = vadd.f32 %v12934_v45, %v15440_v41  ;;  %v13536_v45 = vmov 1966171168  }
 0x444   : > { %v13036_v35 = vpop.f32.mrb[37].mxu0 }
 0x445   : > { %v13037_v31 = vadd.f32 %v13036_v35, %v13035_v19  ;;  %v13038_v58 = vpop.f32.mrb[38].mxu0  ;;  %v12935_v60 = vpop.f32.mrb[236].mxu1  ;;  %v10780_v19 = vunpack.c.l.s4 %v13536_v45  ;;  %v8966_v35 = vshrl.u32 %v8965_v8, 7 }
 0x446   : > { %v13039_v11 = vpop.f32.mrb[39].mxu0  ;;  %v12936_v28 = vpop.f32.mrb[237].mxu1 }
 0x447   : > { %v15550_v0 = vadd.f32 %v13037_v31, %v8273_v5  ;;  %v13040_v39 = vadd.f32 %v13039_v11, %v13038_v58  ;;  %v12937_v22 = vadd.f32 %v12936_v28, %v12935_v60  ;;  %v12938_v59 = vpop.f32.mrb[238].mxu1  ;;  %v10781_v31 = vunpack.c.0.s8 %v10780_v19 }
 0x448   : > { %v12939_v10 = vpop.f32.mrb[239].mxu1 }
 0x449   : > { %16766 = vst [vmem:[#allocation12_spill] sm:$0xff] %v15550_v0  ;;  %v15552_v51 = vadd.f32 %v13040_v39, %v8276_v48  ;;  %v8289_v27 = vadd.f32 %v12937_v22, %v15450_v14  ;;  %v12940_v33 = vadd.f32 %v12939_v10, %v12938_v59  ;;  %v15571_v39 = vsub.s32 %v10781_v31, %v8966_v35 }
 0x44b   : > { %16767 = vst [vmem:[#allocation13_spill] sm:$0xff] %v15552_v51  ;;  %v13041_v44 = vpop.f32.mrb[40].mxu0  ;;  %v8292_v41 = vadd.f32 %v12940_v33, %v15454_v46  ;;  %v13535_v46 = vmov 1983009808  }
 0x44c   : > { %v13042_v26 = vpop.f32.mrb[41].mxu0  ;;  %v8963_v4 = vunpack.c.l.s4 %v13535_v46 }
 0x44d   : > { %v13043_v54 = vadd.f32 %v13042_v26, %v13041_v44  ;;  %v13044_v16 = vpop.f32.mrb[42].mxu0 }
 0x44e   : > { %v13045_v21 = vpop.f32.mrb[43].mxu0 }
 0x44f   : > { %v15556_v6 = vadd.f32 %v13043_v54, %v8281_v30  ;;  %v13046_v5 = vadd.f32 %v13045_v21, %v13044_v16  ;;  %v8964_v30 = vunpack.c.0.s8 %v8963_v4 }
 0x451   : > { %16768 = vst [vmem:[#allocation14_spill] sm:$0xff] %v15556_v6  ;;  %v15558_v23 = vadd.f32 %v13046_v5, %v8284_v43  ;;  %v12106_v43 = vld [vmem:[%s16724_s6] ss:$0 sm:$0xff]  ;;  %v15567_v58 = vsub.s32 %v8964_v30, %v8966_v35 }
 0x452   : > { %v13265_v60 = vadd.f32 %v12106_v43, %v15474_v50  ;;  %v13267_v28 = vadd.f32 %v12106_v43, %v15464_v7  ;;  %v15574_v22 = vadd.f32 %v12106_v43, %v15486_v34  ;;  %v15577_v59 = vadd.f32 %v12106_v43, %v15480_v1 }
 0x453   : > { %16769 = vst [vmem:[#allocation15_spill] sm:$0xff] %v15558_v23  ;;  %v13047_v29 = vpop.f32.mrb[44].mxu0  ;;  %v15581_v33 = vadd.f32 %v12106_v43, %v15488_v12  ;;  %v15584_v44 = vadd.f32 %v12106_v43, %v15482_v40  ;;  %v15587_v50 = vadd.f32 %v12106_v43, %v15492_v53  ;;  %v15591_v34 = vadd.f32 %v12106_v43, %v15498_v13 }
 0x454   : > { %v13048_v63 = vpop.f32.mrb[45].mxu0  ;;  %v15594_v1 = vadd.f32 %v12106_v43, %v15500_v52  ;;  %v15600_v40 = vadd.f32 %v12106_v43, %v15504_v47  ;;  %v15603_v53 = vadd.f32 %v12106_v43, %v15506_v36  ;;  %v15608_v13 = vadd.f32 %v12106_v43, %v15510_v24 }
 0x455   : > { %v13049_v37 = vadd.f32 %v13048_v63, %v13047_v29  ;;  %v13050_v48 = vpop.f32.mrb[46].mxu0  ;;  %v15611_v52 = vadd.f32 %v12106_v43, %v15512_v55 }
 0x456   : > { %v13051_v18 = vpop.f32.mrb[47].mxu0 }
 0x457   : > { %v15560_v3 = vadd.f32 %v13049_v37, %v8289_v27  ;;  %v13052_v14 = vadd.f32 %v13051_v18, %v13050_v48 }
 0x459   : > { %16770 = vst [vmem:[#allocation16_spill] sm:$0xff] %v15560_v3  ;;  %v15562_v56 = vadd.f32 %v13052_v14, %v8292_v41 }
 0x45b   : > { %16771 = vst [vmem:[#allocation17_spill] sm:$0xff] %v15562_v56 }
 0x48e   : > { %v13215_v11 = vpop.f32.mrb[240].mxu1 }
 0x48f   : > { %v13261_v10 = vadd.f32 %v13215_v11, %v15472_v15  ;;  %v8770_v27 = vpop.f32.mrb[241].mxu1  ;;  %v15597_v15 = vadd.f32 %v12106_v43, %v15494_v61 }
 0x490   : > { %v13263_v7 = vadd.f32 %v8770_v27, %v15524_v9  ;;  %v13216_v41 = vpop.f32.mrb[242].mxu1 }
 0x491   : > { %v13262_v12 = vadd.f32 %v13261_v10, %v12106_v43  ;;  %v13266_v26 = vadd.f32 %v13265_v60, %v13216_v41  ;;  %v8773_v54 = vpop.f32.mrb[243].mxu1 }
 0x492   : > { %v13264_v9 = vadd.f32 %v13263_v7, %v12106_v43  ;;  %v15605_v16 = vadd.f32 %v13267_v28, %v8773_v54 }
 0x493   : > { %v8995_v61 = vcombine.high %v13262_v12, %v13262_v12  ;;  %v9002_v21 = vrot.slane %v13262_v12, %v15567_v58  ;;  %v9012_v5 = vcombine.high %v13266_v26, %v13266_v26  ;;  %v15615_v29 = vrot.slane %v13266_v26, %v15567_v58 }
 0x494   : > { %v8961_v47 = vcombine.high %v13264_v9, %v13264_v9  ;;  %v8968_v36 = vrot.slane %v13264_v9, %v15567_v58  ;;  %v15622_v24 = vrot.slane %v15605_v16, %v15567_v58 }
 0x495   : > { %v9009_v55 = vrot.slane %v8995_v61, %v15567_v58  ;;  %v9010_v37 = vcombine.high %v9002_v21, %v9002_v21  ;;  %v9690_v48 = vsel %vm9633_vm3, %v9002_v21, 0.0  ;;  %v15627_v18 = vrot.slane %v9012_v5, %v15567_v58 }
 0x496   : > { %v9691_v14 = vrot.slane %v9690_v48, 4  ;;  %v8975_v46 = vrot.slane %v8961_v47, %v15567_v58  ;;  %v8976_v4 = vcombine.high %v8968_v36, %v8968_v36  ;;  %v9634_v8 = vsel %vm9633_vm3, %v8968_v36, 0.0  ;;  %v15631_v45 = vpop.f32.mrb[244].mxu1 }
 0x497   : > { %v9011_v19 = vcombine.high %v9009_v55, %v9009_v55  ;;  %v9697_v30 = vsel %vm9633_vm3, %v9010_v37, 0.0  ;;  %v9704_v35 = vsel %vm9633_vm3, %v9009_v55, 0.0  ;;  %v9635_v31 = vrot.slane %v9634_v8, 4  ;;  %v15635_v43 = vpop.f32.mrb[245].mxu1 }
 0x498   : > { %v9692_v60 = vadd.f32 %v9691_v14, %v9690_v48  ;;  %v9698_v11 = vrot.slane %v9697_v30, 4  ;;  %v9705_v28 = vrot.slane %v9704_v35, 4  ;;  %v8977_v10 = vcombine.high %v8975_v46, %v8975_v46  ;;  %v15637_v27 = vpop.f32.mrb[246].mxu1 }
 0x499   : > { %v9711_v7 = vsel %vm9633_vm3, %v9011_v19, 0.0  ;;  %v9636_v41 = vadd.f32 %v9635_v31, %v9634_v8  ;;  %v9641_v12 = vsel %vm9633_vm3, %v8976_v4, 0.0  ;;  %v9648_v26 = vsel %vm9633_vm3, %v8975_v46, 0.0  ;;  %v15642_v54 = vpop.f32.mrb[247].mxu1 }
 0x49a   : > { %v9693_v9 = vrot.slane %v9692_v60, 2  ;;  %v9699_v61 = vadd.f32 %v9698_v11, %v9697_v30  ;;  %v9706_v21 = vadd.f32 %v9705_v28, %v9704_v35  ;;  %v9712_v5 = vrot.slane %v9711_v7, 4 }
 0x49b   : > { %v9637_v47 = vrot.slane %v9636_v41, 2  ;;  %v9642_v36 = vrot.slane %v9641_v12, 4  ;;  %v9649_v55 = vrot.slane %v9648_v26, 4  ;;  %v9655_v37 = vsel %vm9633_vm3, %v8977_v10, 0.0 }
 0x49c   : > { %v9694_v48 = vadd.f32 %v9693_v9, %v9692_v60  ;;  %v9700_v14 = vrot.slane %v9699_v61, 2  ;;  %v9707_v19 = vrot.slane %v9706_v21, 2  ;;  %v9713_v8 = vadd.f32 %v9712_v5, %v9711_v7 }
 0x49d   : > { %v9638_v31 = vadd.f32 %v9637_v47, %v9636_v41  ;;  %v9643_v4 = vadd.f32 %v9642_v36, %v9641_v12  ;;  %v9650_v63 = vadd.f32 %v9649_v55, %v9648_v26  ;;  %v9656_v46 = vrot.slane %v9655_v37, 4 }
 0x49e   : > { %v9695_v23 = vrot.slane %v9694_v48, 1  ;;  %v9701_v56 = vadd.f32 %v9700_v14, %v9699_v61  ;;  %v9708_v30 = vadd.f32 %v9707_v19, %v9706_v21  ;;  %v9714_v35 = vrot.slane %v9713_v8, 2  ;;  %v15645_v11 = vpop.f32.mrb[248].mxu1 }
 0x49f   : > { %v9639_v28 = vrot.slane %v9638_v31, 1  ;;  %v9644_v6 = vrot.slane %v9643_v4, 2  ;;  %v9651_v3 = vrot.slane %v9650_v63, 2  ;;  %v9657_v49 = vadd.f32 %v9656_v46, %v9655_v37  ;;  %v15647_v10 = vpop.f32.mrb[249].mxu1 }
 0x4a0   : > { %v9696_v60 = vadd.f32 %v9695_v23, %v9694_v48  ;;  %v9702_v9 = vrot.slane %v9701_v56, 1  ;;  %v9709_v7 = vrot.slane %v9708_v30, 1  ;;  %v9715_v41 = vadd.f32 %v9714_v35, %v9713_v8  ;;  %v15649_v12 = vpop.f32.mrb[250].mxu1 }
 0x4a1   : > { %v9640_v26 = vadd.f32 %v9639_v28, %v9638_v31  ;;  %v9645_v5 = vadd.f32 %v9644_v6, %v9643_v4  ;;  %v9652_v47 = vadd.f32 %v9651_v3, %v9650_v63  ;;  %v9658_v61 = vrot.slane %v9657_v49, 2 }
 0x4a2   : > { %v9703_v21 = vadd.f32 %v9702_v9, %v9701_v56  ;;  %v9710_v36 = vadd.f32 %v9709_v7, %v9708_v30  ;;  %v9716_v55 = vrot.slane %v9715_v41, 1  ;;  %v9027_v14 = vcombine.high %v15615_v29, %v15615_v29 }
 0x4a3   : > { %v9646_v19 = vrot.slane %v9645_v5, 1  ;;  %v9653_v37 = vrot.slane %v9652_v47, 1  ;;  %v9659_v46 = vadd.f32 %v9658_v61, %v9657_v49  ;;  %v9028_v23 = vcombine.high %v15627_v18, %v15627_v18 }
 0x4a4   : > { %v9717_v48 = vadd.f32 %v9716_v55, %v9715_v41  ;;  %v10672_v8 = vsel %vm10658_vm4, %v9703_v21, %v9696_v60  ;;  %v9718_v6 = vsel %vm9633_vm3, %v15615_v29, 0.0  ;;  %v9725_v3 = vsel %vm9633_vm3, %v9027_v14, 0.0  ;;  %v15664_v29 = vpop.f32.mrb[251].mxu1 }
 0x4a5   : > { %v10673_v56 = vsel %vm10660_vm5, %v9710_v36, %v10672_v8  ;;  %v9647_v63 = vadd.f32 %v9646_v19, %v9645_v5  ;;  %v9654_v31 = vadd.f32 %v9653_v37, %v9652_v47  ;;  %v9660_v4 = vrot.slane %v9659_v46, 1 }
 0x4a6   : > { %v9719_v30 = vrot.slane %v9718_v6, 4  ;;  %v9726_v35 = vrot.slane %v9725_v3, 4  ;;  %v9732_v49 = vsel %vm9633_vm3, %v15627_v18, 0.0  ;;  %v9739_v28 = vsel %vm9633_vm3, %v9028_v23, 0.0 }
 0x4a7   : > { %v9661_v9 = vadd.f32 %v9660_v4, %v9659_v46  ;;  %v10659_v60 = vsel %vm10658_vm4, %v9647_v63, %v9640_v26  ;;  %v9733_v7 = vrot.slane %v9732_v49, 4  ;;  %v9740_v41 = vrot.slane %v9739_v28, 4 }
 0x4a8   : > { %v10661_v61 = vsel %vm10660_vm5, %v9654_v31, %v10659_v60  ;;  %v9720_v5 = vadd.f32 %v9719_v30, %v9718_v6  ;;  %v9727_v47 = vadd.f32 %v9726_v35, %v9725_v3  ;;  %v10674_v21 = vsel %vm10662_vm6, %v9717_v48, %v10673_v56 }
 0x4a9   : > { %v9734_v36 = vadd.f32 %v9733_v7, %v9732_v49  ;;  %v9741_v55 = vadd.f32 %v9740_v41, %v9739_v28  ;;  %v16772_v18 = vcombine.high %v15605_v16, %v15605_v16  ;;  %v8993_v14 = vcombine.high %v15622_v24, %v15622_v24 }
 0x4aa   : > { %v9721_v19 = vrot.slane %v9720_v5, 2  ;;  %v9728_v37 = vrot.slane %v9727_v47, 2  ;;  %v9662_v46 = vsel %vm9633_vm3, %v15622_v24, 0.0  ;;  %v10663_v23 = vsel %vm10662_vm6, %v9661_v9, %v10661_v61 }
 0x4ab   : > { %v8992_v26 = vrot.slane %v16772_v18, %v15567_v58  ;;  %v9735_v48 = vrot.slane %v9734_v36, 2  ;;  %v9742_v8 = vrot.slane %v9741_v55, 2  ;;  %v9663_v3 = vrot.slane %v9662_v46, 4 }
 0x4ac   : > { %v9722_v56 = vadd.f32 %v9721_v19, %v9720_v5  ;;  %v9729_v63 = vadd.f32 %v9728_v37, %v9727_v47  ;;  %v9669_v16 = vsel %vm9633_vm3, %v8993_v14, 0.0 }
 0x4ad   : > { %v8994_v6 = vcombine.high %v8992_v26, %v8992_v26  ;;  %v9676_v31 = vsel %vm9633_vm3, %v8992_v26, 0.0  ;;  %v9736_v4 = vadd.f32 %v9735_v48, %v9734_v36  ;;  %v9743_v30 = vadd.f32 %v9742_v8, %v9741_v55 }
 0x4ae   : > { %v9664_v35 = vadd.f32 %v9663_v3, %v9662_v46  ;;  %v9670_v49 = vrot.slane %v9669_v16, 4  ;;  %v9723_v28 = vrot.slane %v9722_v56, 1  ;;  %v9730_v60 = vrot.slane %v9729_v63, 1 }
 0x4af   : > { %v9677_v7 = vrot.slane %v9676_v31, 4  ;;  %v9683_v24 = vsel %vm9633_vm3, %v8994_v6, 0.0  ;;  %v9737_v9 = vrot.slane %v9736_v4, 1  ;;  %v9744_v41 = vrot.slane %v9743_v30, 1 }
 0x4b0   : > { %v9665_v61 = vrot.slane %v9664_v35, 2  ;;  %v9671_v18 = vadd.f32 %v9670_v49, %v9669_v16  ;;  %v9724_v51 = vadd.f32 %v9723_v28, %v9722_v56  ;;  %v9731_v5 = vadd.f32 %v9730_v60, %v9729_v63 }
 0x4b1   : > { %v9678_v47 = vadd.f32 %v9677_v7, %v9676_v31  ;;  %v9684_v19 = vrot.slane %v9683_v24, 4  ;;  %v9738_v14 = vadd.f32 %v9737_v9, %v9736_v4  ;;  %v9745_v37 = vadd.f32 %v9744_v41, %v9743_v30 }
 0x4b2   : > { %v9666_v26 = vadd.f32 %v9665_v61, %v9664_v35  ;;  %v9672_v36 = vrot.slane %v9671_v18, 2  ;;  %v10675_v55 = vsel %vm10664_vm7, %v9724_v51, %v10674_v21  ;;  %v13270_v8 = vadd.f32 %v15574_v22, %v15631_v45 }
 0x4b3   : > { %v9679_v46 = vrot.slane %v9678_v47, 2  ;;  %v9685_v48 = vadd.f32 %v9684_v19, %v9683_v24  ;;  %v10676_v6 = vsel %vm10666_vm8, %v9731_v5, %v10675_v55  ;;  %v13272_v56 = vadd.f32 %v15577_v59, %v15635_v43 }
 0x4b4   : > { %v9667_v3 = vrot.slane %v9666_v26, 1  ;;  %v9673_v42 = vadd.f32 %v9672_v36, %v9671_v18  ;;  %v10677_v63 = vsel %vm10668_vm9, %v9738_v14, %v10676_v6  ;;  %v9063_v4 = vcombine.high %v13270_v8, %v13270_v8 }
 0x4b5   : > { %v9680_v16 = vadd.f32 %v9679_v46, %v9678_v47  ;;  %v9686_v31 = vrot.slane %v9685_v48, 2  ;;  %v10678_v30 = vsel %vm10670_vm10, %v9745_v37, %v10677_v63  ;;  %v9070_v35 = vrot.slane %v13270_v8, %v15567_v58 }
 0x4b6   : > { %v9668_v51 = vadd.f32 %v9667_v3, %v9666_v26  ;;  %v9674_v21 = vrot.slane %v9673_v42, 1  ;;  %v9077_v45 = vrot.slane %v9063_v4, %v15567_v58  ;;  %v9029_v28 = vcombine.high %v13272_v56, %v13272_v56 }
 0x4b7   : > { %v9681_v49 = vrot.slane %v9680_v16, 1  ;;  %v9687_v22 = vadd.f32 %v9686_v31, %v9685_v48  ;;  %v9078_v59 = vcombine.high %v9070_v35, %v9070_v35  ;;  %v9802_v43 = vsel %vm9633_vm3, %v9070_v35, 0.0 }
 0x4b8   : > { %v9675_v60 = vadd.f32 %v9674_v21, %v9673_v42  ;;  %v10665_v7 = vsel %vm10664_vm7, %v9668_v51, %v10663_v23  ;;  %v9079_v41 = vcombine.high %v9077_v45, %v9077_v45  ;;  %v9803_v61 = vrot.slane %v9802_v43, 4 }
 0x4b9   : > { %v9682_v24 = vadd.f32 %v9681_v49, %v9680_v16  ;;  %v9688_v9 = vrot.slane %v9687_v22, 1  ;;  %v9809_v5 = vsel %vm9633_vm3, %v9078_v59, 0.0  ;;  %v9816_v47 = vsel %vm9633_vm3, %v9077_v45, 0.0 }
 0x4ba   : > { %v10667_v18 = vsel %vm10666_vm8, %v9675_v60, %v10665_v7  ;;  %v9036_v19 = vrot.slane %v13272_v56, %v15567_v58  ;;  %v9804_v37 = vadd.f32 %v9803_v61, %v9802_v43  ;;  %v9810_v23 = vrot.slane %v9809_v5, 4 }
 0x4bb   : > { %v9689_v14 = vadd.f32 %v9688_v9, %v9687_v22  ;;  %v10669_v42 = vsel %vm10668_vm9, %v9682_v24, %v10667_v18  ;;  %v9817_v26 = vrot.slane %v9816_v47, 4  ;;  %v9823_v36 = vsel %vm9633_vm3, %v9079_v41, 0.0 }
 0x4bc   : > { %v15699_v55 = vrot.slane %v9029_v28, %v15567_v58  ;;  %v9044_v46 = vcombine.high %v9036_v19, %v9036_v19  ;;  %v9805_v8 = vrot.slane %v9804_v37, 2  ;;  %v9811_v6 = vadd.f32 %v9810_v23, %v9809_v5 }
 0x4bd   : > { %v10671_v48 = vsel %vm10670_vm10, %v9689_v14, %v10669_v42  ;;  %v9824_v3 = vrot.slane %v9823_v36, 4  ;;  %v9818_v56 = vadd.f32 %v9817_v26, %v9816_v47  ;;  %v15705_v35 = vsel %vm9633_vm3, %v9036_v19, 0.0 }
 0x4be   : > { %v10777_v63 = vcombine.low %v10671_v48, %v10678_v30  ;;  %v10778_v16 = vcombine.high %v10671_v48, %v10678_v30  ;;  %v9806_v4 = vadd.f32 %v9805_v8, %v9804_v37  ;;  %v9812_v51 = vrot.slane %v9811_v6, 2 }
 0x4bf   : > { %v9825_v21 = vadd.f32 %v9824_v3, %v9823_v36  ;;  %v9819_v45 = vrot.slane %v9818_v56, 2  ;;  %v15711_v59 = vsel %vm9633_vm3, %v9044_v46, 0.0 }
 0x4c0   : > { %v10785_v49 = vrot.slane %v10777_v63, %v15571_v39  ;;  %v10792_v22 = vrot.slane %v10778_v16, %v15571_v39  ;;  %v9807_v60 = vrot.slane %v9806_v4, 1  ;;  %v9813_v7 = vadd.f32 %v9812_v51, %v9811_v6 }
 0x4c1   : > { %v9826_v30 = vrot.slane %v9825_v21, 2  ;;  %v15717_v5 = vadd.f32 %v9819_v45, %v9818_v56 }
 0x4c2   : > { %v10793_v43 = vcombine.high %v10785_v49, %v10785_v49  ;;  %v10794_v24 = vcombine.high %v10792_v22, %v10792_v22  ;;  %v10801_v9 = vrot.slane %v10785_v49, %v15571_v39  ;;  %v10808_v41 = vrot.slane %v10792_v22, %v15571_v39 }
 0x4c3   : > { %v15715_v61 = vadd.f32 %v9807_v60, %v9806_v4  ;;  %v9814_v18 = vrot.slane %v9813_v7, 1  ;;  %v15719_v47 = vadd.f32 %v9826_v30, %v9825_v21  ;;  %v9821_v46 = vrot.slane %v15717_v5, 1 }
 0x4c4   : > { %v10815_v19 = vrot.slane %v10793_v43, %v15571_v39  ;;  %v10822_v14 = vrot.slane %v10794_v24, %v15571_v39  ;;  %v10823_v42 = vcombine.high %v10801_v9, %v10801_v9  ;;  %v10824_v37 = vcombine.high %v10808_v41, %v10808_v41 }
 0x4c5   : > { %v11241_v23 = vsel %vm9633_vm3, %v10801_v9, 0.0  ;;  %v11269_v26 = vsel %vm9633_vm3, %v10808_v41, 0.0  ;;  %v15725_v36 = vadd.f32 %v9814_v18, %v9813_v7 }
 0x4c6   : > { %v10825_v48 = vcombine.high %v10815_v19, %v10815_v19  ;;  %v10826_v8 = vcombine.high %v10822_v14, %v10822_v14  ;;  %v11242_v6 = vrot.slane %v11241_v23, 4  ;;  %v11248_v3 = vsel %vm9633_vm3, %v10815_v19, 0.0 }
 0x4c7   : > { %v11249_v63 = vrot.slane %v11248_v3, 4  ;;  %v11255_v16 = vsel %vm9633_vm3, %v10823_v42, 0.0  ;;  %v11270_v56 = vrot.slane %v11269_v26, 4  ;;  %v11276_v4 = vsel %vm9633_vm3, %v10822_v14, 0.0 }
 0x4c8   : > { %v11243_v51 = vadd.f32 %v11242_v6, %v11241_v23  ;;  %v11256_v21 = vrot.slane %v11255_v16, 4  ;;  %v11262_v49 = vsel %vm9633_vm3, %v10825_v48, 0.0  ;;  %v11277_v22 = vrot.slane %v11276_v4, 4 }
 0x4c9   : > { %v11250_v45 = vadd.f32 %v11249_v63, %v11248_v3  ;;  %v11263_v60 = vrot.slane %v11262_v49, 4  ;;  %v11271_v7 = vadd.f32 %v11270_v56, %v11269_v26  ;;  %v11283_v30 = vsel %vm9633_vm3, %v10824_v37, 0.0 }
 0x4ca   : > { %v11244_v43 = vrot.slane %v11243_v51, 2  ;;  %v11257_v24 = vadd.f32 %v11256_v21, %v11255_v16  ;;  %v11278_v9 = vadd.f32 %v11277_v22, %v11276_v4  ;;  %v11284_v41 = vrot.slane %v11283_v30, 4 }
 0x4cb   : > { %v11251_v18 = vrot.slane %v11250_v45, 2  ;;  %v11264_v19 = vadd.f32 %v11263_v60, %v11262_v49  ;;  %v11272_v42 = vrot.slane %v11271_v7, 2  ;;  %v11290_v31 = vsel %vm9633_vm3, %v10826_v8, 0.0 }
 0x4cc   : > { %v11245_v14 = vadd.f32 %v11244_v43, %v11243_v51  ;;  %v11258_v23 = vrot.slane %v11257_v24, 2  ;;  %v11279_v6 = vrot.slane %v11278_v9, 2  ;;  %v11285_v28 = vadd.f32 %v11284_v41, %v11283_v30  ;;  %v15734_v51 = vpop.f32.mrb[252].mxu1 }
 0x4cd   : > { %v11252_v48 = vadd.f32 %v11251_v18, %v11250_v45  ;;  %v11265_v0 = vrot.slane %v11264_v19, 2  ;;  %v11273_v3 = vadd.f32 %v11272_v42, %v11271_v7  ;;  %v11291_v63 = vrot.slane %v11290_v31, 4  ;;  %v15736_v7 = vpop.f32.mrb[253].mxu1 }
 0x4ce   : > { %v11246_v26 = vrot.slane %v11245_v14, 1  ;;  %v11259_v56 = vadd.f32 %v11258_v23, %v11257_v24  ;;  %v11280_v37 = vadd.f32 %v11279_v6, %v11278_v9  ;;  %v11286_v57 = vrot.slane %v11285_v28, 2 }
 0x4cf   : > { %v11253_v16 = vrot.slane %v11252_v48, 1  ;;  %v11266_v4 = vadd.f32 %v11265_v0, %v11264_v19  ;;  %v11274_v21 = vrot.slane %v11273_v3, 1  ;;  %v11292_v22 = vadd.f32 %v11291_v63, %v11290_v31 }
 0x4d0   : > { %v11247_v49 = vadd.f32 %v11246_v26, %v11245_v14  ;;  %v11260_v60 = vrot.slane %v11259_v56, 1  ;;  %v11281_v62 = vrot.slane %v11280_v37, 1  ;;  %v11287_v8 = vadd.f32 %v11286_v57, %v11285_v28 }
 0x4d1   : > { %v11254_v43 = vadd.f32 %v11253_v16, %v11252_v48  ;;  %v11267_v30 = vrot.slane %v11266_v4, 1  ;;  %v11275_v45 = vadd.f32 %v11274_v21, %v11273_v3  ;;  %v11293_v41 = vrot.slane %v11292_v22, 2 }
 0x4d2   : > { %v11261_v18 = vadd.f32 %v11260_v60, %v11259_v56  ;;  %v11282_v24 = vadd.f32 %v11281_v62, %v11280_v37  ;;  %v11288_v9 = vrot.slane %v11287_v8, 1  ;;  %v15738_v42 = vmul.f32 0.25, %v11247_v49 }
 0x4d3   : > { %v11268_v0 = vadd.f32 %v11267_v30, %v11266_v4  ;;  %v11294_v19 = vadd.f32 %v11293_v41, %v11292_v22  ;;  %v15740_v31 = vmul.f32 0.25, %v11254_v43  ;;  %v15742_v14 = vmul.f32 0.25, %v11275_v45 }
 0x4d4   : > { %v11289_v57 = vadd.f32 %v11288_v9, %v11287_v8  ;;  %v15744_v28 = vmul.f32 0.25, %v11261_v18  ;;  %v15746_v23 = vmul.f32 0.25, %v11282_v24  ;;  %v9822_v6 = vadd.f32 %v9821_v46, %v15717_v5 }
 0x4d5   : > { %v11295_v48 = vrot.slane %v11294_v19, 1  ;;  %v15749_v3 = vmul.f32 0.25, %v11268_v0  ;;  %v9828_v62 = vrot.slane %v15719_v47, 1  ;;  %v10686_v63 = vsel %vm10658_vm4, %v15725_v36, %v15715_v61 }
 0x4d6   : > { %v15755_v26 = vmul.f32 0.25, %v11289_v57  ;;  %v10687_v56 = vsel %vm10660_vm5, %v9822_v6, %v10686_v63  ;;  %v16773_v37 = vrot.slane %v15705_v35, 4  ;;  %v9754_v4 = vrot.slane %v15711_v59, 4 }
 0x4d7   : > { %v11296_v5 = vadd.f32 %v11295_v48, %v11294_v19  ;;  %v9829_v46 = vadd.f32 %v9828_v62, %v15719_v47  ;;  %v9760_v21 = vsel %vm9633_vm3, %v15699_v55, 0.0  ;;  %v16774_v22 = vcombine.high %v15699_v55, %v15699_v55  ;;  %v15781_v19 = vpop.f32.mrb[254].mxu1 }
 0x4d8   : > { %v9748_v16 = vadd.f32 %v16773_v37, %v15705_v35  ;;  %v9755_v49 = vadd.f32 %v9754_v4, %v15711_v59  ;;  %v9761_v60 = vrot.slane %v9760_v21, 4  ;;  %v13274_v35 = vadd.f32 %v15581_v33, %v15637_v27 }
 0x4d9   : > { %v9767_v61 = vsel %vm9633_vm3, %v16774_v22, 0.0  ;;  %v15770_v43 = vmul.f32 0.25, %v11296_v5  ;;  %v15775_v47 = vsel %vm10662_vm6, %v9829_v46, %v10687_v56  ;;  %v13276_v30 = vadd.f32 %v15584_v44, %v15642_v54 }
 0x4da   : > { %v9749_v36 = vrot.slane %v9748_v16, 2  ;;  %v9768_v8 = vrot.slane %v9767_v61, 4  ;;  %v9756_v55 = vrot.slane %v9755_v49, 2  ;;  %v9762_v41 = vadd.f32 %v9761_v60, %v9760_v21 }
 0x4db   : > { %v9080_v24 = vcombine.high %v13274_v35, %v13274_v35  ;;  %v9087_v59 = vrot.slane %v13274_v35, %v15567_v58  ;;  %v9046_v9 = vcombine.high %v13276_v30, %v13276_v30  ;;  %v9053_v0 = vrot.slane %v13276_v30, %v15567_v58 }
 0x4dc   : > { %v9750_v45 = vadd.f32 %v9749_v36, %v9748_v16  ;;  %v9769_v18 = vadd.f32 %v9768_v8, %v9767_v61  ;;  %v9757_v33 = vadd.f32 %v9756_v55, %v9755_v49  ;;  %v9763_v27 = vrot.slane %v9762_v41, 2 }
 0x4dd   : > { %v9094_v48 = vrot.slane %v9080_v24, %v15567_v58  ;;  %v9095_v62 = vcombine.high %v9087_v59, %v9087_v59  ;;  %v9830_v44 = vsel %vm9633_vm3, %v9087_v59, 0.0  ;;  %v9060_v54 = vrot.slane %v9046_v9, %v15567_v58 }
 0x4de   : > { %v9751_v57 = vrot.slane %v9750_v45, 1  ;;  %v9770_v6 = vrot.slane %v9769_v18, 2  ;;  %v9758_v56 = vrot.slane %v9757_v33, 1  ;;  %v9764_v37 = vadd.f32 %v9763_v27, %v9762_v41 }
 0x4df   : > { %v9096_v4 = vcombine.high %v9094_v48, %v9094_v48  ;;  %v9831_v5 = vrot.slane %v9830_v44, 4  ;;  %v9837_v46 = vsel %vm9633_vm3, %v9095_v62, 0.0  ;;  %v9844_v21 = vsel %vm9633_vm3, %v9094_v48, 0.0 }
 0x4e0   : > { %v9752_v63 = vadd.f32 %v9751_v57, %v9750_v45  ;;  %v9771_v16 = vadd.f32 %v9770_v6, %v9769_v18  ;;  %v9759_v22 = vadd.f32 %v9758_v56, %v9757_v33  ;;  %v9765_v61 = vrot.slane %v9764_v37, 1 }
 0x4e1   : > { %v9838_v49 = vrot.slane %v9837_v46, 4  ;;  %v9832_v60 = vadd.f32 %v9831_v5, %v9830_v44  ;;  %v9845_v8 = vrot.slane %v9844_v21, 4  ;;  %v9851_v35 = vsel %vm9633_vm3, %v9096_v4, 0.0 }
 0x4e2   : > { %v9772_v36 = vrot.slane %v9771_v16, 1  ;;  %v9061_v30 = vcombine.high %v9053_v0, %v9053_v0  ;;  %v9766_v55 = vadd.f32 %v9765_v61, %v9764_v37  ;;  %v10679_v41 = vsel %vm10658_vm4, %v9759_v22, %v9752_v63 }
 0x4e3   : > { %v9839_v18 = vadd.f32 %v9838_v49, %v9837_v46  ;;  %v9833_v24 = vrot.slane %v9832_v60, 2  ;;  %v9846_v59 = vadd.f32 %v9845_v8, %v9844_v21  ;;  %v9852_v9 = vrot.slane %v9851_v35, 4  ;;  %v15795_v46 = vpop.f32.mrb[255].mxu1 }
 0x4e4   : > { %v9773_v45 = vadd.f32 %v9772_v36, %v9771_v16  ;;  %v9062_v57 = vcombine.high %v9060_v54, %v9060_v54  ;;  %v10680_v27 = vsel %vm10660_vm5, %v9766_v55, %v10679_v41  ;;  %v9774_v6 = vsel %vm9633_vm3, %v9053_v0, 0.0 }
 0x4e5   : > { %v9840_v33 = vrot.slane %v9839_v18, 2  ;;  %v9781_v48 = vsel %vm9633_vm3, %v9061_v30, 0.0  ;;  %v9834_v62 = vadd.f32 %v9833_v24, %v9832_v60  ;;  %v9847_v44 = vrot.slane %v9846_v59, 2 }
 0x4e6   : > { %v9853_v56 = vadd.f32 %v9852_v9, %v9851_v35  ;;  %v9775_v4 = vrot.slane %v9774_v6, 4  ;;  %v9782_v16 = vrot.slane %v9781_v48, 4  ;;  %v9788_v63 = vsel %vm9633_vm3, %v9060_v54, 0.0 }
 0x4e7   : > { %v9841_v37 = vadd.f32 %v9840_v33, %v9839_v18  ;;  %v9795_v5 = vsel %vm9633_vm3, %v9062_v57, 0.0  ;;  %v9835_v21 = vrot.slane %v9834_v62, 1  ;;  %v9848_v22 = vadd.f32 %v9847_v44, %v9846_v59 }
 0x4e8   : > { %v9854_v61 = vrot.slane %v9853_v56, 2  ;;  %v9776_v36 = vadd.f32 %v9775_v4, %v9774_v6  ;;  %v9783_v0 = vadd.f32 %v9782_v16, %v9781_v48  ;;  %v9789_v8 = vrot.slane %v9788_v63, 4 }
 0x4e9   : > { %v9842_v49 = vrot.slane %v9841_v37, 1  ;;  %v9796_v30 = vrot.slane %v9795_v5, 4  ;;  %v9836_v60 = vadd.f32 %v9835_v21, %v9834_v62  ;;  %v9849_v55 = vrot.slane %v9848_v22, 1 }
 0x4ea   : > { %v9855_v35 = vadd.f32 %v9854_v61, %v9853_v56  ;;  %v9777_v41 = vrot.slane %v9776_v36, 2  ;;  %v9784_v24 = vrot.slane %v9783_v0, 2  ;;  %v9790_v9 = vadd.f32 %v9789_v8, %v9788_v63 }
 0x4eb   : > { %v9843_v18 = vadd.f32 %v9842_v49, %v9841_v37  ;;  %v9797_v54 = vadd.f32 %v9796_v30, %v9795_v5  ;;  %v9850_v33 = vadd.f32 %v9849_v55, %v9848_v22  ;;  %v10689_v38 = vsel %vm10664_vm7, %v9836_v60, %v15775_v47 }
 0x4ec   : > { %v9856_v57 = vrot.slane %v9855_v35, 1  ;;  %v9778_v59 = vadd.f32 %v9777_v41, %v9776_v36  ;;  %v9785_v44 = vadd.f32 %v9784_v24, %v9783_v0  ;;  %v9791_v48 = vrot.slane %v9790_v9, 2 }
 0x4ed   : > { %v10690_v6 = vsel %vm10666_vm8, %v9843_v18, %v10689_v38  ;;  %v9798_v4 = vrot.slane %v9797_v54, 2  ;;  %v10681_v37 = vsel %vm10662_vm6, %v9773_v45, %v10680_v27  ;;  %v13278_v22 = vadd.f32 %v15591_v34, %v15645_v11 }
 0x4ee   : > { %v9857_v16 = vadd.f32 %v9856_v57, %v9855_v35  ;;  %v10691_v62 = vsel %vm10668_vm9, %v9850_v33, %v10690_v6  ;;  %v9779_v56 = vrot.slane %v9778_v59, 1  ;;  %v9786_v21 = vrot.slane %v9785_v44, 1 }
 0x4ef   : > { %v9792_v63 = vadd.f32 %v9791_v48, %v9790_v9  ;;  %v9799_v5 = vadd.f32 %v9798_v4, %v9797_v54  ;;  %v13280_v38 = vadd.f32 %v15587_v50, %v15647_v10  ;;  %v15809_v36 = vadd.f32 %v15594_v1, %v15649_v12 }
 0x4f0   : > { %v10692_v47 = vsel %vm10670_vm10, %v9857_v16, %v10691_v62  ;;  %v9780_v61 = vadd.f32 %v9779_v56, %v9778_v59  ;;  %v9787_v49 = vadd.f32 %v9786_v21, %v9785_v44  ;;  %v9131_v45 = vcombine.high %v13278_v22, %v13278_v22 }
 0x4f1   : > { %v9793_v0 = vrot.slane %v9792_v63, 1  ;;  %v9800_v8 = vrot.slane %v9799_v5, 1  ;;  %v9138_v30 = vrot.slane %v13278_v22, %v15567_v58  ;;  %v9097_v60 = vcombine.high %v13280_v38, %v13280_v38 }
 0x4f2   : > { %v10682_v27 = vsel %vm10664_vm7, %v9780_v61, %v10681_v37  ;;  %v9104_v34 = vrot.slane %v13280_v38, %v15567_v58  ;;  %v9145_v50 = vrot.slane %v9131_v45, %v15567_v58 }
 0x4f3   : > { %v9794_v11 = vadd.f32 %v9793_v0, %v9792_v63  ;;  %v9801_v55 = vadd.f32 %v9800_v8, %v9799_v5  ;;  %v10683_v35 = vsel %vm10666_vm8, %v9787_v49, %v10682_v27  ;;  %v9146_v10 = vcombine.high %v9138_v30, %v9138_v30 }
 0x4f4   : > { %v9914_v1 = vsel %vm9633_vm3, %v9138_v30, 0.0  ;;  %v15818_v12 = vrot.slane %v9097_v60, %v15567_v58  ;;  %v9112_v41 = vcombine.high %v9104_v34, %v9104_v34  ;;  %v9147_v24 = vcombine.high %v9145_v50, %v9145_v50 }
 0x4f5   : > { %v10684_v18 = vsel %vm10668_vm9, %v9794_v11, %v10683_v35  ;;  %v9915_v9 = vrot.slane %v9914_v1, 4  ;;  %v9928_v54 = vsel %vm9633_vm3, %v9145_v50, 0.0  ;;  %v9921_v57 = vsel %vm9633_vm3, %v9146_v10, 0.0 }
 0x4f6   : > { %v10685_v33 = vsel %vm10670_vm10, %v9801_v55, %v10684_v18  ;;  %v9929_v59 = vrot.slane %v9928_v54, 4  ;;  %v9922_v16 = vrot.slane %v9921_v57, 4  ;;  %v9935_v56 = vsel %vm9633_vm3, %v9147_v24, 0.0 }
 0x4f7   : > { %v10827_v44 = vcombine.low %v10685_v33, %v10692_v47  ;;  %v10828_v48 = vcombine.high %v10685_v33, %v10692_v47  ;;  %v9916_v4 = vadd.f32 %v9915_v9, %v9914_v1  ;;  %v15828_v37 = vsel %vm9633_vm3, %v9104_v34, 0.0 }
 0x4f8   : > { %v9930_v62 = vadd.f32 %v9929_v59, %v9928_v54  ;;  %v15831_v21 = vsel %vm9633_vm3, %v9112_v41, 0.0  ;;  %v9923_v61 = vadd.f32 %v9922_v16, %v9921_v57  ;;  %v9936_v49 = vrot.slane %v9935_v56, 4 }
 0x4f9   : > { %v10835_v63 = vrot.slane %v10827_v44, %v15571_v39  ;;  %v10842_v5 = vrot.slane %v10828_v48, %v15571_v39  ;;  %v9917_v22 = vrot.slane %v9916_v4, 2 }
 0x4fa   : > { %v9931_v38 = vrot.slane %v9930_v62, 2  ;;  %v9924_v34 = vrot.slane %v9923_v61, 2  ;;  %v15843_v55 = vadd.f32 %v9936_v49, %v9935_v56 }
 0x4fb   : > { %v10843_v8 = vcombine.high %v10835_v63, %v10835_v63  ;;  %v10844_v45 = vcombine.high %v10842_v5, %v10842_v5  ;;  %v10851_v27 = vrot.slane %v10835_v63, %v15571_v39  ;;  %v10858_v30 = vrot.slane %v10842_v5, %v15571_v39 }
 0x4fc   : > { %v15839_v60 = vadd.f32 %v9917_v22, %v9916_v4  ;;  %v15841_v11 = vadd.f32 %v9931_v38, %v9930_v62  ;;  %v15850_v9 = vadd.f32 %v9924_v34, %v9923_v61 }
 0x4fd   : > { %v10865_v35 = vrot.slane %v10843_v8, %v15571_v39  ;;  %v10872_v50 = vrot.slane %v10844_v45, %v15571_v39  ;;  %v10873_v10 = vcombine.high %v10851_v27, %v10851_v27  ;;  %v10874_v1 = vcombine.high %v10858_v30, %v10858_v30 }
 0x4fe   : > { %v11297_v41 = vsel %vm9633_vm3, %v10851_v27, 0.0  ;;  %v11325_v18 = vsel %vm9633_vm3, %v10858_v30, 0.0 }
 0x4ff   : > { %v10875_v54 = vcombine.high %v10865_v35, %v10865_v35  ;;  %v10876_v33 = vcombine.high %v10872_v50, %v10872_v50  ;;  %v11298_v57 = vrot.slane %v11297_v41, 4  ;;  %v11304_v59 = vsel %vm9633_vm3, %v10865_v35, 0.0 }
 0x500   : > { %v11305_v44 = vrot.slane %v11304_v59, 4  ;;  %v11311_v48 = vsel %vm9633_vm3, %v10873_v10, 0.0  ;;  %v11326_v4 = vrot.slane %v11325_v18, 4  ;;  %v11332_v16 = vsel %vm9633_vm3, %v10872_v50, 0.0 }
 0x501   : > { %v11299_v62 = vadd.f32 %v11298_v57, %v11297_v41  ;;  %v11312_v56 = vrot.slane %v11311_v48, 4  ;;  %v11318_v63 = vsel %vm9633_vm3, %v10875_v54, 0.0  ;;  %v11333_v5 = vrot.slane %v11332_v16, 4 }
 0x502   : > { %v11306_v22 = vadd.f32 %v11305_v44, %v11304_v59  ;;  %v11319_v38 = vrot.slane %v11318_v63, 4  ;;  %v11327_v61 = vadd.f32 %v11326_v4, %v11325_v18  ;;  %v11339_v49 = vsel %vm9633_vm3, %v10874_v1, 0.0 }
 0x503   : > { %v11300_v8 = vrot.slane %v11299_v62, 2  ;;  %v11313_v45 = vadd.f32 %v11312_v56, %v11311_v48  ;;  %v11334_v27 = vadd.f32 %v11333_v5, %v11332_v16  ;;  %v11340_v30 = vrot.slane %v11339_v49, 4 }
 0x504   : > { %v11307_v34 = vrot.slane %v11306_v22, 2  ;;  %v11320_v35 = vadd.f32 %v11319_v38, %v11318_v63  ;;  %v11328_v10 = vrot.slane %v11327_v61, 2  ;;  %v11346_v6 = vsel %vm9633_vm3, %v10876_v33, 0.0 }
 0x505   : > { %v11301_v50 = vadd.f32 %v11300_v8, %v11299_v62  ;;  %v11314_v41 = vrot.slane %v11313_v45, 2  ;;  %v11335_v57 = vrot.slane %v11334_v27, 2  ;;  %v11341_v0 = vadd.f32 %v11340_v30, %v11339_v49 }
 0x506   : > { %v11308_v54 = vadd.f32 %v11307_v34, %v11306_v22  ;;  %v11321_v47 = vrot.slane %v11320_v35, 2  ;;  %v11329_v59 = vadd.f32 %v11328_v10, %v11327_v61  ;;  %v11347_v44 = vrot.slane %v11346_v6, 4  ;;  %v15858_v22 = vpop.f32.mrb[0].mxu1 }
 0x507   : > { %v11302_v18 = vrot.slane %v11301_v50, 1  ;;  %v11315_v4 = vadd.f32 %v11314_v41, %v11313_v45  ;;  %v11336_v1 = vadd.f32 %v11335_v57, %v11334_v27  ;;  %v11342_v24 = vrot.slane %v11341_v0, 2 }
 0x508   : > { %v11309_v48 = vrot.slane %v11308_v54, 1  ;;  %v11322_v16 = vadd.f32 %v11321_v47, %v11320_v35  ;;  %v11330_v56 = vrot.slane %v11329_v59, 1  ;;  %v11348_v5 = vadd.f32 %v11347_v44, %v11346_v6 }
 0x509   : > { %v11303_v63 = vadd.f32 %v11302_v18, %v11301_v50  ;;  %v11316_v38 = vrot.slane %v11315_v4, 1  ;;  %v11337_v20 = vrot.slane %v11336_v1, 1  ;;  %v11343_v33 = vadd.f32 %v11342_v24, %v11341_v0 }
 0x50a   : > { %v11310_v62 = vadd.f32 %v11309_v48, %v11308_v54  ;;  %v11323_v8 = vrot.slane %v11322_v16, 1  ;;  %v11331_v2 = vadd.f32 %v11330_v56, %v11329_v59  ;;  %v11349_v49 = vrot.slane %v11348_v5, 2 }
 0x50b   : > { %v11317_v61 = vadd.f32 %v11316_v38, %v11315_v4  ;;  %v11338_v30 = vadd.f32 %v11337_v20, %v11336_v1  ;;  %v11344_v34 = vrot.slane %v11343_v33, 1  ;;  %v11697_v45 = vmul.f32 0.25, %v11303_v63  ;;  %v15883_v4 = vpop.f32.mrb[1].mxu1 }
 0x50c   : > { %v11324_v27 = vadd.f32 %v11323_v8, %v11322_v16  ;;  %v11350_v10 = vadd.f32 %v11349_v49, %v11348_v5  ;;  %v11698_v41 = vmul.f32 0.25, %v11310_v62  ;;  %v11701_v47 = vmul.f32 0.25, %v11331_v2 }
 0x50d   : > { %v11345_v35 = vadd.f32 %v11344_v34, %v11343_v33  ;;  %v11699_v6 = vmul.f32 0.25, %v11317_v61  ;;  %v11702_v50 = vmul.f32 0.25, %v11338_v30  ;;  %v15862_v0 = vsel %vm10658_vm4, %v11697_v45, %v15738_v42 }
 0x50e   : > { %v11351_v24 = vrot.slane %v11350_v10, 1  ;;  %v11700_v57 = vmul.f32 0.25, %v11324_v27  ;;  %v15866_v54 = vsel %vm10658_vm4, %v11698_v41, %v15740_v31  ;;  %v15870_v20 = vsel %vm10658_vm4, %v11701_v47, %v15742_v14  ;;  %v15922_v47 = vpop.f32.mrb[2].mxu1 }
 0x50f   : > { %v11703_v59 = vmul.f32 0.25, %v11345_v35  ;;  %v15874_v2 = vsel %vm10658_vm4, %v11699_v6, %v15744_v28  ;;  %v15878_v44 = vsel %vm10658_vm4, %v11702_v50, %v15746_v23  ;;  %v16775_v42 = vrot.slane %v15839_v60, 1 }
 0x510   : > { %v11352_v31 = vadd.f32 %v11351_v24, %v11350_v10  ;;  %v15887_v14 = vsel %vm10658_vm4, %v11700_v57, %v15749_v3  ;;  %v9926_v1 = vrot.slane %v15850_v9, 1  ;;  %v9933_v28 = vrot.slane %v15841_v11, 1 }
 0x511   : > { %v9920_v18 = vadd.f32 %v16775_v42, %v15839_v60  ;;  %v15893_v48 = vsel %vm10658_vm4, %v11703_v59, %v15755_v26  ;;  %v9938_v23 = vrot.slane %v15843_v55, 2  ;;  %v16776_v60 = vrot.slane %v15828_v37, 4 }
 0x512   : > { %v16777_v56 = vrot.slane %v15831_v21, 4  ;;  %v11704_v3 = vmul.f32 0.25, %v11352_v31  ;;  %v9927_v63 = vadd.f32 %v9926_v1, %v15850_v9  ;;  %v9934_v38 = vadd.f32 %v9933_v28, %v15841_v11 }
 0x513   : > { %v9860_v16 = vadd.f32 %v16776_v60, %v15828_v37  ;;  %v9872_v33 = vsel %vm9633_vm3, %v15818_v12, 0.0  ;;  %v9939_v26 = vadd.f32 %v9938_v23, %v15843_v55  ;;  %v9148_v11 = vcombine.high %v15809_v36, %v15809_v36 }
 0x514   : > { %v9867_v5 = vadd.f32 %v16777_v56, %v15831_v21  ;;  %v9873_v49 = vrot.slane %v9872_v33, 4  ;;  %v15909_v37 = vsel %vm10658_vm4, %v11704_v3, %v15770_v43  ;;  %v10700_v61 = vsel %vm10658_vm4, %v9927_v63, %v9920_v18 }
 0x515   : > { %v9861_v62 = vrot.slane %v9860_v16, 2  ;;  %v16778_v21 = vcombine.high %v15818_v12, %v15818_v12  ;;  %v9940_v30 = vrot.slane %v9939_v26, 1  ;;  %v10701_v55 = vsel %vm10660_vm5, %v9934_v38, %v10700_v61 }
 0x516   : > { %v9868_v8 = vrot.slane %v9867_v5, 2  ;;  %v9874_v27 = vadd.f32 %v9873_v49, %v9872_v33  ;;  %v9155_v43 = vrot.slane %v15809_v36, %v15567_v58  ;;  %v9162_v41 = vrot.slane %v9148_v11, %v15567_v58 }
 0x517   : > { %v9879_v9 = vsel %vm9633_vm3, %v16778_v21, 0.0  ;;  %v9862_v34 = vadd.f32 %v9861_v62, %v9860_v16  ;;  %v9941_v12 = vadd.f32 %v9940_v30, %v9939_v26  ;;  %v13284_v50 = vadd.f32 %v15597_v15, %v15664_v29 }
 0x518   : > { %v9869_v45 = vadd.f32 %v9868_v8, %v9867_v5  ;;  %v9880_v10 = vrot.slane %v9879_v9, 4  ;;  %v9875_v24 = vrot.slane %v9874_v27, 2  ;;  %v9163_v59 = vcombine.high %v9155_v43, %v9155_v43 }
 0x519   : > { %v9863_v35 = vrot.slane %v9862_v34, 1  ;;  %v9164_v42 = vcombine.high %v9162_v41, %v9162_v41  ;;  %v9942_v1 = vsel %vm9633_vm3, %v9155_v43, 0.0  ;;  %v9956_v36 = vsel %vm9633_vm3, %v9162_v41, 0.0 }
 0x51a   : > { %v9870_v6 = vrot.slane %v9869_v45, 1  ;;  %v9881_v57 = vadd.f32 %v9880_v10, %v9879_v9  ;;  %v9876_v28 = vadd.f32 %v9875_v24, %v9874_v27  ;;  %v9943_v60 = vrot.slane %v9942_v1, 4 }
 0x51b   : > { %v9864_v18 = vadd.f32 %v9863_v35, %v9862_v34  ;;  %v9949_v16 = vsel %vm9633_vm3, %v9163_v59, 0.0  ;;  %v9957_v3 = vrot.slane %v9956_v36, 4  ;;  %v9963_v15 = vsel %vm9633_vm3, %v9164_v42, 0.0 }
 0x51c   : > { %v9871_v31 = vadd.f32 %v9870_v6, %v9869_v45  ;;  %v9882_v23 = vrot.slane %v9881_v57, 2  ;;  %v9950_v5 = vrot.slane %v9949_v16, 4  ;;  %v9877_v29 = vrot.slane %v9876_v28, 1  ;;  %v15935_v6 = vpop.f32.mrb[3].mxu1 }
 0x51d   : > { %v9944_v38 = vadd.f32 %v9943_v60, %v9942_v1  ;;  %v9964_v33 = vrot.slane %v9963_v15, 4  ;;  %v9958_v62 = vadd.f32 %v9957_v3, %v9956_v36  ;;  %v10702_v8 = vsel %vm10662_vm6, %v9941_v12, %v10701_v55 }
 0x51e   : > { %v10693_v56 = vsel %vm10658_vm4, %v9871_v31, %v9864_v18  ;;  %v9883_v63 = vadd.f32 %v9882_v23, %v9881_v57  ;;  %v9951_v26 = vadd.f32 %v9950_v5, %v9949_v16  ;;  %v9114_v49 = vcombine.high %v13284_v50, %v13284_v50 }
 0x51f   : > { %v9878_v61 = vadd.f32 %v9877_v29, %v9876_v28  ;;  %v9945_v9 = vrot.slane %v9944_v38, 2  ;;  %v9965_v11 = vadd.f32 %v9964_v33, %v9963_v15  ;;  %v9959_v34 = vrot.slane %v9958_v62, 2 }
 0x520   : > { %v9884_v21 = vrot.slane %v9883_v63, 1  ;;  %v9952_v30 = vrot.slane %v9951_v26, 2  ;;  %v9121_v45 = vrot.slane %v13284_v50, %v15567_v58  ;;  %v9128_v27 = vrot.slane %v9114_v49, %v15567_v58 }
 0x521   : > { %v10694_v43 = vsel %vm10660_vm5, %v9878_v61, %v10693_v56  ;;  %v9946_v41 = vadd.f32 %v9945_v9, %v9944_v38  ;;  %v9966_v35 = vrot.slane %v9965_v11, 2  ;;  %v9960_v55 = vadd.f32 %v9959_v34, %v9958_v62 }
 0x522   : > { %v9885_v10 = vadd.f32 %v9884_v21, %v9883_v63  ;;  %v9953_v24 = vadd.f32 %v9952_v30, %v9951_v26  ;;  %v9129_v12 = vcombine.high %v9121_v45, %v9121_v45  ;;  %v9130_v57 = vcombine.high %v9128_v27, %v9128_v27 }
 0x523   : > { %v9947_v59 = vrot.slane %v9946_v41, 1  ;;  %v9967_v42 = vadd.f32 %v9966_v35, %v9965_v11  ;;  %v9886_v18 = vsel %vm9633_vm3, %v9121_v45, 0.0  ;;  %v9900_v31 = vsel %vm9633_vm3, %v9128_v27, 0.0 }
 0x524   : > { %v9954_v50 = vrot.slane %v9953_v24, 1  ;;  %v9961_v1 = vrot.slane %v9960_v55, 1  ;;  %v9887_v36 = vrot.slane %v9886_v18, 4  ;;  %v9893_v28 = vsel %vm9633_vm3, %v9129_v12, 0.0 }
 0x525   : > { %v9948_v23 = vadd.f32 %v9947_v59, %v9946_v41  ;;  %v9968_v60 = vrot.slane %v9967_v42, 1  ;;  %v9894_v16 = vrot.slane %v9893_v28, 4  ;;  %v9901_v56 = vrot.slane %v9900_v31, 4 }
 0x526   : > { %v9955_v5 = vadd.f32 %v9954_v50, %v9953_v24  ;;  %v9962_v3 = vadd.f32 %v9961_v1, %v9960_v55  ;;  %v9888_v15 = vadd.f32 %v9887_v36, %v9886_v18  ;;  %v9907_v29 = vsel %vm9633_vm3, %v9130_v57, 0.0 }
 0x527   : > { %v9969_v63 = vadd.f32 %v9968_v60, %v9967_v42  ;;  %v10703_v38 = vsel %vm10664_vm7, %v9948_v23, %v10702_v8  ;;  %v9895_v33 = vadd.f32 %v9894_v16, %v9893_v28  ;;  %v9902_v26 = vadd.f32 %v9901_v56, %v9900_v31 }
 0x528   : > { %v10704_v62 = vsel %vm10666_vm8, %v9955_v5, %v10703_v38  ;;  %v9889_v49 = vrot.slane %v9888_v15, 2  ;;  %v9908_v61 = vrot.slane %v9907_v29, 4  ;;  %v10695_v21 = vsel %vm10662_vm6, %v9885_v10, %v10694_v43 }
 0x529   : > { %v10705_v9 = vsel %vm10668_vm9, %v9962_v3, %v10704_v62  ;;  %v9896_v11 = vrot.slane %v9895_v33, 2  ;;  %v9903_v30 = vrot.slane %v9902_v26, 2  ;;  %v13286_v34 = vadd.f32 %v15608_v13, %v15734_v51 }
 0x52a   : > { %v10706_v45 = vsel %vm10670_vm10, %v9969_v63, %v10705_v9  ;;  %v9890_v27 = vadd.f32 %v9889_v49, %v9888_v15  ;;  %v9909_v41 = vadd.f32 %v9908_v61, %v9907_v29  ;;  %v13288_v8 = vadd.f32 %v15600_v40, %v15736_v7 }
 0x52b   : > { %v9897_v35 = vadd.f32 %v9896_v11, %v9895_v33  ;;  %v9904_v24 = vadd.f32 %v9903_v30, %v9902_v26  ;;  %v9199_v55 = vcombine.high %v13286_v34, %v13286_v34  ;;  %v9206_v12 = vrot.slane %v13286_v34, %v15567_v58 }
 0x52c   : > { %v9891_v10 = vrot.slane %v9890_v27, 1  ;;  %v9910_v43 = vrot.slane %v9909_v41, 2  ;;  %v9165_v57 = vcombine.high %v13288_v8, %v13288_v8  ;;  %v9172_v59 = vrot.slane %v13288_v8, %v15567_v58 }
 0x52d   : > { %v9898_v42 = vrot.slane %v9897_v35, 1  ;;  %v9905_v18 = vrot.slane %v9904_v24, 1  ;;  %v9213_v13 = vrot.slane %v9199_v55, %v15567_v58  ;;  %v9214_v51 = vcombine.high %v9206_v12, %v9206_v12 }
 0x52e   : > { %v9892_v31 = vadd.f32 %v9891_v10, %v9890_v27  ;;  %v9911_v50 = vadd.f32 %v9910_v43, %v9909_v41  ;;  %v10026_v1 = vsel %vm9633_vm3, %v9206_v12, 0.0  ;;  %v15955_v40 = vrot.slane %v9165_v57, %v15567_v58 }
 0x52f   : > { %v9899_v7 = vadd.f32 %v9898_v42, %v9897_v35  ;;  %v9906_v36 = vadd.f32 %v9905_v18, %v9904_v24  ;;  %v9215_v28 = vcombine.high %v9213_v13, %v9213_v13  ;;  %v10027_v23 = vrot.slane %v10026_v1, 4 }
 0x530   : > { %v9912_v60 = vrot.slane %v9911_v50, 1  ;;  %v10696_v16 = vsel %vm10664_vm7, %v9892_v31, %v10695_v21  ;;  %v10033_v56 = vsel %vm9633_vm3, %v9214_v51, 0.0  ;;  %v10040_v5 = vsel %vm9633_vm3, %v9213_v13, 0.0 }
 0x531   : > { %v10697_v3 = vsel %vm10666_vm8, %v9899_v7, %v10696_v16  ;;  %v10028_v15 = vadd.f32 %v10027_v23, %v10026_v1  ;;  %v10034_v29 = vrot.slane %v10033_v56, 4  ;;  %v10041_v63 = vrot.slane %v10040_v5, 4 }
 0x532   : > { %v9913_v38 = vadd.f32 %v9912_v60, %v9911_v50  ;;  %v10698_v33 = vsel %vm10668_vm9, %v9906_v36, %v10697_v3  ;;  %v10047_v26 = vsel %vm9633_vm3, %v9215_v28, 0.0  ;;  %v9180_v62 = vcombine.high %v9172_v59, %v9172_v59 }
 0x533   : > { %v10029_v49 = vrot.slane %v10028_v15, 2  ;;  %v10035_v61 = vadd.f32 %v10034_v29, %v10033_v56  ;;  %v10042_v9 = vadd.f32 %v10041_v63, %v10040_v5  ;;  %v10048_v11 = vrot.slane %v10047_v26, 4 }
 0x534   : > { %v10699_v21 = vsel %vm10670_vm10, %v9913_v38, %v10698_v33  ;;  %v9181_v30 = vcombine.high %v15955_v40, %v15955_v40  ;;  %v9970_v34 = vsel %vm9633_vm3, %v9172_v59, 0.0  ;;  %v9977_v27 = vsel %vm9633_vm3, %v9180_v62, 0.0 }
 0x535   : > { %v10877_v41 = vcombine.low %v10699_v21, %v10706_v45  ;;  %v10878_v8 = vcombine.high %v10699_v21, %v10706_v45  ;;  %v10030_v35 = vadd.f32 %v10029_v49, %v10028_v15  ;;  %v10036_v24 = vrot.slane %v10035_v61, 2 }
 0x536   : > { %v10043_v55 = vrot.slane %v10042_v9, 2  ;;  %v10049_v12 = vadd.f32 %v10048_v11, %v10047_v26  ;;  %v9971_v10 = vrot.slane %v9970_v34, 4  ;;  %v9978_v43 = vrot.slane %v9977_v27, 4 }
 0x537   : > { %v10885_v57 = vrot.slane %v10877_v41, %v15571_v39  ;;  %v10892_v42 = vrot.slane %v10878_v8, %v15571_v39  ;;  %v10031_v18 = vrot.slane %v10030_v35, 1  ;;  %v10037_v13 = vadd.f32 %v10036_v24, %v10035_v61 }
 0x538   : > { %v10044_v51 = vadd.f32 %v10043_v55, %v10042_v9  ;;  %v10050_v31 = vrot.slane %v10049_v12, 2  ;;  %v15970_v50 = vadd.f32 %v9971_v10, %v9970_v34  ;;  %v15972_v59 = vadd.f32 %v9978_v43, %v9977_v27 }
 0x539   : > { %v10893_v1 = vcombine.high %v10885_v57, %v10885_v57  ;;  %v10894_v45 = vcombine.high %v10892_v42, %v10892_v42  ;;  %v10901_v7 = vrot.slane %v10885_v57, %v15571_v39  ;;  %v10908_v36 = vrot.slane %v10892_v42, %v15571_v39 }
 0x53a   : > { %v15976_v28 = vadd.f32 %v10031_v18, %v10030_v35  ;;  %v10038_v23 = vrot.slane %v10037_v13, 1  ;;  %v10045_v60 = vrot.slane %v10044_v51, 1  ;;  %v15978_v16 = vadd.f32 %v10050_v31, %v10049_v12 }
 0x53b   : > { %v10915_v56 = vrot.slane %v10893_v1, %v15571_v39  ;;  %v10922_v5 = vrot.slane %v10894_v45, %v15571_v39  ;;  %v10923_v3 = vcombine.high %v10901_v7, %v10901_v7  ;;  %v10924_v15 = vcombine.high %v10908_v36, %v10908_v36 }
 0x53c   : > { %v11353_v29 = vsel %vm9633_vm3, %v10901_v7, 0.0  ;;  %v11381_v63 = vsel %vm9633_vm3, %v10908_v36, 0.0  ;;  %v15984_v38 = vadd.f32 %v10038_v23, %v10037_v13  ;;  %v15986_v33 = vadd.f32 %v10045_v60, %v10044_v51 }
 0x53d   : > { %v10925_v26 = vcombine.high %v10915_v56, %v10915_v56  ;;  %v10926_v62 = vcombine.high %v10922_v5, %v10922_v5  ;;  %v11354_v49 = vrot.slane %v11353_v29, 4  ;;  %v11360_v61 = vsel %vm9633_vm3, %v10915_v56, 0.0 }
 0x53e   : > { %v11361_v9 = vrot.slane %v11360_v61, 4  ;;  %v11367_v11 = vsel %vm9633_vm3, %v10923_v3, 0.0  ;;  %v11382_v21 = vrot.slane %v11381_v63, 4  ;;  %v11388_v34 = vsel %vm9633_vm3, %v10922_v5, 0.0 }
 0x53f   : > { %v11355_v27 = vadd.f32 %v11354_v49, %v11353_v29  ;;  %v11368_v41 = vrot.slane %v11367_v11, 4  ;;  %v11374_v8 = vsel %vm9633_vm3, %v10925_v26, 0.0  ;;  %v11389_v35 = vrot.slane %v11388_v34, 4 }
 0x540   : > { %v11362_v24 = vadd.f32 %v11361_v9, %v11360_v61  ;;  %v11375_v55 = vrot.slane %v11374_v8, 4  ;;  %v11383_v12 = vadd.f32 %v11382_v21, %v11381_v63  ;;  %v11395_v10 = vsel %vm9633_vm3, %v10924_v15, 0.0 }
 0x541   : > { %v11356_v43 = vrot.slane %v11355_v27, 2  ;;  %v11369_v57 = vadd.f32 %v11368_v41, %v11367_v11  ;;  %v11390_v42 = vadd.f32 %v11389_v35, %v11388_v34  ;;  %v11396_v18 = vrot.slane %v11395_v10, 4 }
 0x542   : > { %v11363_v13 = vrot.slane %v11362_v24, 2  ;;  %v11376_v51 = vadd.f32 %v11375_v55, %v11374_v8  ;;  %v11384_v31 = vrot.slane %v11383_v12, 2  ;;  %v11402_v1 = vsel %vm9633_vm3, %v10926_v62, 0.0 }
 0x543   : > { %v11357_v45 = vadd.f32 %v11356_v43, %v11355_v27  ;;  %v11370_v7 = vrot.slane %v11369_v57, 2  ;;  %v11391_v36 = vrot.slane %v11390_v42, 2  ;;  %v11397_v23 = vadd.f32 %v11396_v18, %v11395_v10 }
 0x544   : > { %v11364_v60 = vadd.f32 %v11363_v13, %v11362_v24  ;;  %v11377_v56 = vrot.slane %v11376_v51, 2  ;;  %v11385_v5 = vadd.f32 %v11384_v31, %v11383_v12  ;;  %v11403_v3 = vrot.slane %v11402_v1, 4  ;;  %v15994_v31 = vpop.f32.mrb[4].mxu1 }
 0x545   : > { %v11358_v29 = vrot.slane %v11357_v45, 1  ;;  %v11371_v63 = vadd.f32 %v11370_v7, %v11369_v57  ;;  %v11392_v15 = vadd.f32 %v11391_v36, %v11390_v42  ;;  %v11398_v26 = vrot.slane %v11397_v23, 2  ;;  %v16000_v36 = vpop.f32.mrb[5].mxu1 }
 0x546   : > { %v11365_v49 = vrot.slane %v11364_v60, 1  ;;  %v11378_v61 = vadd.f32 %v11377_v56, %v11376_v51  ;;  %v11386_v9 = vrot.slane %v11385_v5, 1  ;;  %v11404_v11 = vadd.f32 %v11403_v3, %v11402_v1 }
 0x547   : > { %v11359_v21 = vadd.f32 %v11358_v29, %v11357_v45  ;;  %v11372_v34 = vrot.slane %v11371_v63, 1  ;;  %v11393_v41 = vrot.slane %v11392_v15, 1  ;;  %v11399_v62 = vadd.f32 %v11398_v26, %v11397_v23 }
 0x548   : > { %v11366_v27 = vadd.f32 %v11365_v49, %v11364_v60  ;;  %v11379_v8 = vrot.slane %v11378_v61, 1  ;;  %v11387_v35 = vadd.f32 %v11386_v9, %v11385_v5  ;;  %v11405_v55 = vrot.slane %v11404_v11, 2 }
 0x549   : > { %v11373_v24 = vadd.f32 %v11372_v34, %v11371_v63  ;;  %v11394_v10 = vadd.f32 %v11393_v41, %v11392_v15  ;;  %v11400_v12 = vrot.slane %v11399_v62, 1  ;;  %v11705_v43 = vmul.f32 0.25, %v11359_v21 }
 0x54a   : > { %v11380_v18 = vadd.f32 %v11379_v8, %v11378_v61  ;;  %v11406_v57 = vadd.f32 %v11405_v55, %v11404_v11  ;;  %v11706_v42 = vmul.f32 0.25, %v11366_v27  ;;  %v11709_v13 = vmul.f32 0.25, %v11387_v35  ;;  %v16054_v27 = vpop.f32.mrb[6].mxu1 }
 0x54b   : > { %v11401_v51 = vadd.f32 %v11400_v12, %v11399_v62  ;;  %v11707_v1 = vmul.f32 0.25, %v11373_v24  ;;  %v11710_v45 = vmul.f32 0.25, %v11394_v10  ;;  %v15998_v7 = vsel %vm10660_vm5, %v11705_v43, %v15862_v0 }
 0x54c   : > { %v11407_v23 = vrot.slane %v11406_v57, 1  ;;  %v11708_v60 = vmul.f32 0.25, %v11380_v18  ;;  %v16004_v56 = vsel %vm10660_vm5, %v11706_v42, %v15866_v54  ;;  %v16008_v5 = vsel %vm10660_vm5, %v11709_v13, %v15870_v20 }
 0x54d   : > { %v11711_v3 = vmul.f32 0.25, %v11401_v51  ;;  %v16012_v29 = vsel %vm10660_vm5, %v11707_v1, %v15874_v2  ;;  %v16016_v0 = vsel %vm10660_vm5, %v11710_v45, %v15878_v44  ;;  %v10052_v63 = vrot.slane %v15978_v16, 1 }
 0x54e   : > { %v11408_v15 = vadd.f32 %v11407_v23, %v11406_v57  ;;  %v16021_v54 = vsel %vm10660_vm5, %v11708_v60, %v15887_v14  ;;  %v10714_v20 = vsel %vm10658_vm4, %v15984_v38, %v15976_v28  ;;  %v9973_v26 = vrot.slane %v15970_v50, 2 }
 0x54f   : > { %v16029_v2 = vsel %vm10660_vm5, %v11711_v3, %v15893_v48  ;;  %v10053_v44 = vadd.f32 %v10052_v63, %v15978_v16  ;;  %v10715_v49 = vsel %vm10660_vm5, %v15986_v33, %v10714_v20  ;;  %v9980_v61 = vrot.slane %v15972_v59, 2 }
 0x550   : > { %v11712_v9 = vmul.f32 0.25, %v11408_v15  ;;  %v9974_v14 = vadd.f32 %v9973_v26, %v15970_v50  ;;  %v9984_v11 = vsel %vm9633_vm3, %v15955_v40, 0.0  ;;  %v9991_v28 = vsel %vm9633_vm3, %v9181_v30, 0.0 }
 0x551   : > { %v9981_v48 = vadd.f32 %v9980_v61, %v15972_v59  ;;  %v9985_v38 = vrot.slane %v9984_v11, 4  ;;  %v9992_v16 = vrot.slane %v9991_v28, 4  ;;  %v13290_v33 = vadd.f32 %v15611_v52, %v15781_v19 }
 0x552   : > { %v16047_v21 = vsel %vm10660_vm5, %v11712_v9, %v15909_v37  ;;  %v9975_v50 = vrot.slane %v9974_v14, 1  ;;  %v16050_v34 = vsel %vm10662_vm6, %v10053_v44, %v10715_v49  ;;  %v13292_v40 = vadd.f32 %v15603_v53, %v15795_v46 }
 0x553   : > { %v9982_v41 = vrot.slane %v9981_v48, 1  ;;  %v9986_v30 = vadd.f32 %v9985_v38, %v9984_v11  ;;  %v9993_v62 = vadd.f32 %v9992_v16, %v9991_v28  ;;  %v9216_v59 = vcombine.high %v13290_v33, %v13290_v33 }
 0x554   : > { %v9976_v8 = vadd.f32 %v9975_v50, %v9974_v14  ;;  %v9223_v52 = vrot.slane %v13290_v33, %v15567_v58  ;;  %v9182_v19 = vcombine.high %v13292_v40, %v13292_v40  ;;  %v9189_v37 = vrot.slane %v13292_v40, %v15567_v58 }
 0x555   : > { %v9983_v35 = vadd.f32 %v9982_v41, %v9981_v48  ;;  %v9987_v55 = vrot.slane %v9986_v30, 2  ;;  %v9994_v24 = vrot.slane %v9993_v62, 2  ;;  %v9230_v10 = vrot.slane %v9216_v59, %v15567_v58 }
 0x556   : > { %v9231_v12 = vcombine.high %v9223_v52, %v9223_v52  ;;  %v10054_v53 = vsel %vm9633_vm3, %v9223_v52, 0.0  ;;  %v9196_v46 = vrot.slane %v9182_v19, %v15567_v58  ;;  %v9197_v43 = vcombine.high %v9189_v37, %v9189_v37 }
 0x557   : > { %v9988_v18 = vadd.f32 %v9987_v55, %v9986_v30  ;;  %v9995_v57 = vadd.f32 %v9994_v24, %v9993_v62  ;;  %v10707_v42 = vsel %vm10658_vm4, %v9983_v35, %v9976_v8  ;;  %v9232_v13 = vcombine.high %v9230_v10, %v9230_v10  ;;  %v16070_v55 = vpop.f32.mrb[7].mxu1 }
 0x558   : > { %v10055_v51 = vrot.slane %v10054_v53, 4  ;;  %v10061_v1 = vsel %vm9633_vm3, %v9231_v12, 0.0  ;;  %v10068_v45 = vsel %vm9633_vm3, %v9230_v10, 0.0  ;;  %v9198_v23 = vcombine.high %v9196_v46, %v9196_v46 }
 0x559   : > { %v9989_v60 = vrot.slane %v9988_v18, 1  ;;  %v9996_v3 = vrot.slane %v9995_v57, 1  ;;  %v10062_v63 = vrot.slane %v10061_v1, 4  ;;  %v10069_v15 = vrot.slane %v10068_v45, 4 }
 0x55a   : > { %v10056_v20 = vadd.f32 %v10055_v51, %v10054_v53  ;;  %v10075_v26 = vsel %vm9633_vm3, %v9232_v13, 0.0  ;;  %v9998_v44 = vsel %vm9633_vm3, %v9189_v37, 0.0  ;;  %v10005_v49 = vsel %vm9633_vm3, %v9197_v43, 0.0 }
 0x55b   : > { %v9990_v61 = vadd.f32 %v9989_v60, %v9988_v18  ;;  %v9997_v9 = vadd.f32 %v9996_v3, %v9995_v57  ;;  %v10063_v14 = vadd.f32 %v10062_v63, %v10061_v1  ;;  %v10070_v11 = vadd.f32 %v10069_v15, %v10068_v45 }
 0x55c   : > { %v10057_v28 = vrot.slane %v10056_v20, 2  ;;  %v10076_v48 = vrot.slane %v10075_v26, 4  ;;  %v9999_v38 = vrot.slane %v9998_v44, 4  ;;  %v10006_v16 = vrot.slane %v10005_v49, 4 }
 0x55d   : > { %v10708_v33 = vsel %vm10660_vm5, %v9990_v61, %v10707_v42  ;;  %v10064_v50 = vrot.slane %v10063_v14, 2  ;;  %v10071_v40 = vrot.slane %v10070_v11, 2  ;;  %v10012_v41 = vsel %vm9633_vm3, %v9196_v46, 0.0 }
 0x55e   : > { %v10058_v30 = vadd.f32 %v10057_v28, %v10056_v20  ;;  %v10077_v62 = vadd.f32 %v10076_v48, %v10075_v26  ;;  %v10000_v59 = vadd.f32 %v9999_v38, %v9998_v44  ;;  %v10007_v8 = vadd.f32 %v10006_v16, %v10005_v49 }
 0x55f   : > { %v10065_v52 = vadd.f32 %v10064_v50, %v10063_v14  ;;  %v10072_v19 = vadd.f32 %v10071_v40, %v10070_v11  ;;  %v10013_v37 = vrot.slane %v10012_v41, 4  ;;  %v10019_v35 = vsel %vm9633_vm3, %v9198_v23, 0.0  ;;  %v16080_v40 = vld [vmem:[%s16724_s6] ss:$0 sm:$0xff] }
 0x560   : > { %v10059_v24 = vrot.slane %v10058_v30, 1  ;;  %v10078_v10 = vrot.slane %v10077_v62, 2  ;;  %v10001_v12 = vrot.slane %v10000_v59, 2  ;;  %v10008_v53 = vrot.slane %v10007_v8, 2 }
 0x561   : > { %v10066_v43 = vrot.slane %v10065_v52, 1  ;;  %v10073_v18 = vrot.slane %v10072_v19, 1  ;;  %v10014_v57 = vadd.f32 %v10013_v37, %v10012_v41  ;;  %v10020_v42 = vrot.slane %v10019_v35, 4 }
 0x562   : > { %v10060_v46 = vadd.f32 %v10059_v24, %v10058_v30  ;;  %v10079_v13 = vadd.f32 %v10078_v10, %v10077_v62  ;;  %v10002_v51 = vadd.f32 %v10001_v12, %v10000_v59  ;;  %v10009_v1 = vadd.f32 %v10008_v53, %v10007_v8  ;;  %v16779_v62 = vld [vmem:[#allocation5_spill] sm:$0xff]  ;;  %v16780_v24 = vld [vmem:[#allocation8_spill] sm:$0xff] }
 0x563   : > { %v10067_v45 = vadd.f32 %v10066_v43, %v10065_v52  ;;  %v10074_v60 = vadd.f32 %v10073_v18, %v10072_v19  ;;  %v10015_v3 = vrot.slane %v10014_v57, 2  ;;  %v10021_v63 = vadd.f32 %v10020_v42, %v10019_v35 }
 0x564   : > { %v10080_v15 = vrot.slane %v10079_v13, 1  ;;  %v10717_v23 = vsel %vm10664_vm7, %v10060_v46, %v16050_v34  ;;  %v10003_v20 = vrot.slane %v10002_v51, 1  ;;  %v10010_v26 = vrot.slane %v10009_v1, 1 }
 0x565   : > { %v10718_v44 = vsel %vm10666_vm8, %v10067_v45, %v10717_v23  ;;  %v10016_v49 = vadd.f32 %v10015_v3, %v10014_v57  ;;  %v10022_v61 = vrot.slane %v10021_v63, 2  ;;  %v10709_v14 = vsel %vm10662_vm6, %v9997_v9, %v10708_v33 }
 0x566   : > { %v10081_v11 = vadd.f32 %v10080_v15, %v10079_v13  ;;  %v10719_v28 = vsel %vm10668_vm9, %v10074_v60, %v10718_v44  ;;  %v10004_v48 = vadd.f32 %v10003_v20, %v10002_v51  ;;  %v10011_v38 = vadd.f32 %v10010_v26, %v10009_v1 }
 0x567   : > { %v10017_v16 = vrot.slane %v10016_v49, 1  ;;  %v10023_v50 = vadd.f32 %v10022_v61, %v10021_v63  ;;  %v13293_v34 = vadd.f32 %v16080_v40, %v15526_v17  ;;  %v13295_v41 = vadd.f32 %v16080_v40, %v15516_v32 }
 0x568   : > { %v10720_v9 = vsel %vm10670_vm10, %v10081_v11, %v10719_v28  ;;  %v10710_v33 = vsel %vm10664_vm7, %v10004_v48, %v10709_v14  ;;  %v13297_v30 = vadd.f32 %v16080_v40, %v15528_v25  ;;  %v13299_v59 = vadd.f32 %v16080_v40, %v16779_v62 }
 0x569   : > { %v10018_v8 = vadd.f32 %v10017_v16, %v10016_v49  ;;  %v10024_v52 = vrot.slane %v10023_v50, 1  ;;  %v10711_v19 = vsel %vm10666_vm8, %v10011_v38, %v10710_v33  ;;  %v13294_v37 = vadd.f32 %v13293_v34, %v15858_v22 }
 0x56a   : > { %v13296_v17 = vadd.f32 %v13295_v41, %v15883_v4  ;;  %v16096_v32 = vadd.f32 %v13297_v30, %v15922_v47  ;;  %v16099_v35 = vadd.f32 %v13299_v59, %v15935_v6  ;;  %v16103_v25 = vadd.f32 %v16080_v40, %v16780_v24 }
 0x56b   : > { %v10025_v10 = vadd.f32 %v10024_v52, %v10023_v50  ;;  %v10712_v12 = vsel %vm10668_vm9, %v10018_v8, %v10711_v19  ;;  %v9267_v53 = vcombine.high %v13294_v37, %v13294_v37  ;;  %v9274_v43 = vrot.slane %v13294_v37, %v15567_v58 }
 0x56c   : > { %v9233_v18 = vcombine.high %v13296_v17, %v13296_v17  ;;  %v16108_v22 = vrot.slane %v13296_v17, %v15567_v58  ;;  %v9284_v4 = vcombine.high %v16096_v32, %v16096_v32  ;;  %v16114_v47 = vrot.slane %v16096_v32, %v15567_v58 }
 0x56d   : > { %v10713_v6 = vsel %vm10670_vm10, %v10025_v10, %v10712_v12  ;;  %v9281_v57 = vrot.slane %v9267_v53, %v15567_v58  ;;  %v9282_v42 = vcombine.high %v9274_v43, %v9274_v43  ;;  %v10138_v46 = vsel %vm9633_vm3, %v9274_v43, 0.0 }
 0x56e   : > { %v10927_v13 = vcombine.low %v10713_v6, %v10720_v9  ;;  %v10928_v51 = vcombine.high %v10713_v6, %v10720_v9  ;;  %v10139_v1 = vrot.slane %v10138_v46, 4  ;;  %v16120_v45 = vrot.slane %v9233_v18, %v15567_v58 }
 0x56f   : > { %v9283_v60 = vcombine.high %v9281_v57, %v9281_v57  ;;  %v10145_v3 = vsel %vm9633_vm3, %v9282_v42, 0.0  ;;  %v10152_v63 = vsel %vm9633_vm3, %v9281_v57, 0.0  ;;  %v9248_v15 = vcombine.high %v16108_v22, %v16108_v22 }
 0x570   : > { %v10935_v23 = vrot.slane %v10927_v13, %v15571_v39  ;;  %v10942_v20 = vrot.slane %v10928_v51, %v15571_v39  ;;  %v10140_v26 = vadd.f32 %v10139_v1, %v10138_v46  ;;  %v10146_v44 = vrot.slane %v10145_v3, 4 }
 0x571   : > { %v10153_v49 = vrot.slane %v10152_v63, 4  ;;  %v16129_v61 = vsel %vm9633_vm3, %v9283_v60, 0.0  ;;  %v9249_v14 = vcombine.high %v16120_v45, %v16120_v45  ;;  %v16135_v11 = vsel %vm9633_vm3, %v16108_v22, 0.0 }
 0x572   : > { %v10943_v28 = vcombine.high %v10935_v23, %v10935_v23  ;;  %v10944_v48 = vcombine.high %v10942_v20, %v10942_v20  ;;  %v10951_v38 = vrot.slane %v10935_v23, %v15571_v39  ;;  %v10958_v16 = vrot.slane %v10942_v20, %v15571_v39 }
 0x573   : > { %v10141_v50 = vrot.slane %v10140_v26, 2  ;;  %v16139_v34 = vadd.f32 %v10146_v44, %v10145_v3  ;;  %v16141_v41 = vadd.f32 %v10153_v49, %v10152_v63  ;;  %v10160_v9 = vrot.slane %v16129_v61, 4 }
 0x574   : > { %v10965_v33 = vrot.slane %v10943_v28, %v15571_v39  ;;  %v10972_v30 = vrot.slane %v10944_v48, %v15571_v39  ;;  %v10973_v62 = vcombine.high %v10951_v38, %v10951_v38  ;;  %v10974_v59 = vcombine.high %v10958_v16, %v10958_v16 }
 0x575   : > { %v11409_v8 = vsel %vm9633_vm3, %v10951_v38, 0.0  ;;  %v11437_v52 = vsel %vm9633_vm3, %v10958_v16, 0.0  ;;  %v16148_v19 = vadd.f32 %v10141_v50, %v10140_v26  ;;  %v10148_v37 = vrot.slane %v16139_v34, 2 }
 0x576   : > { %v10975_v17 = vcombine.high %v10965_v33, %v10965_v33  ;;  %v10976_v24 = vcombine.high %v10972_v30, %v10972_v30  ;;  %v11410_v10 = vrot.slane %v11409_v8, 4  ;;  %v11416_v12 = vsel %vm9633_vm3, %v10965_v33, 0.0 }
 0x577   : > { %v11417_v53 = vrot.slane %v11416_v12, 4  ;;  %v11423_v43 = vsel %vm9633_vm3, %v10973_v62, 0.0  ;;  %v11438_v18 = vrot.slane %v11437_v52, 4  ;;  %v11444_v6 = vsel %vm9633_vm3, %v10972_v30, 0.0 }
 0x578   : > { %v11411_v57 = vadd.f32 %v11410_v10, %v11409_v8  ;;  %v11424_v42 = vrot.slane %v11423_v43, 4  ;;  %v11430_v46 = vsel %vm9633_vm3, %v10975_v17, 0.0  ;;  %v11445_v13 = vrot.slane %v11444_v6, 4 }
 0x579   : > { %v11418_v51 = vadd.f32 %v11417_v53, %v11416_v12  ;;  %v11431_v1 = vrot.slane %v11430_v46, 4  ;;  %v11439_v60 = vadd.f32 %v11438_v18, %v11437_v52  ;;  %v11451_v3 = vsel %vm9633_vm3, %v10974_v59, 0.0 }
 0x57a   : > { %v11412_v63 = vrot.slane %v11411_v57, 2  ;;  %v11425_v23 = vadd.f32 %v11424_v42, %v11423_v43  ;;  %v11446_v20 = vadd.f32 %v11445_v13, %v11444_v6  ;;  %v11452_v26 = vrot.slane %v11451_v3, 4 }
 0x57b   : > { %v11419_v44 = vrot.slane %v11418_v51, 2  ;;  %v11432_v49 = vadd.f32 %v11431_v1, %v11430_v46  ;;  %v11440_v28 = vrot.slane %v11439_v60, 2  ;;  %v11458_v48 = vsel %vm9633_vm3, %v10976_v24, 0.0 }
 0x57c   : > { %v11413_v38 = vadd.f32 %v11412_v63, %v11411_v57  ;;  %v11426_v16 = vrot.slane %v11425_v23, 2  ;;  %v11447_v50 = vrot.slane %v11446_v20, 2  ;;  %v11453_v33 = vadd.f32 %v11452_v26, %v11451_v3 }
 0x57d   : > { %v11420_v30 = vadd.f32 %v11419_v44, %v11418_v51  ;;  %v11433_v62 = vrot.slane %v11432_v49, 2  ;;  %v11441_v8 = vadd.f32 %v11440_v28, %v11439_v60  ;;  %v11459_v17 = vrot.slane %v11458_v48, 4 }
 0x57e   : > { %v11414_v52 = vrot.slane %v11413_v38, 1  ;;  %v11427_v10 = vadd.f32 %v11426_v16, %v11425_v23  ;;  %v11448_v59 = vadd.f32 %v11447_v50, %v11446_v20  ;;  %v11454_v12 = vrot.slane %v11453_v33, 2 }
 0x57f   : > { %v11421_v53 = vrot.slane %v11420_v30, 1  ;;  %v11434_v43 = vadd.f32 %v11433_v62, %v11432_v49  ;;  %v11442_v18 = vrot.slane %v11441_v8, 1  ;;  %v11460_v6 = vadd.f32 %v11459_v17, %v11458_v48 }
 0x580   : > { %v11415_v42 = vadd.f32 %v11414_v52, %v11413_v38  ;;  %v11428_v46 = vrot.slane %v11427_v10, 1  ;;  %v11449_v13 = vrot.slane %v11448_v59, 1  ;;  %v11455_v24 = vadd.f32 %v11454_v12, %v11453_v33  ;;  %v16161_v38 = vpop.f32.mrb[8].mxu1 }
 0x581   : > { %v11422_v57 = vadd.f32 %v11421_v53, %v11420_v30  ;;  %v11435_v1 = vrot.slane %v11434_v43, 1  ;;  %v11443_v63 = vadd.f32 %v11442_v18, %v11441_v8  ;;  %v11461_v3 = vrot.slane %v11460_v6, 2  ;;  %v16171_v52 = vpop.f32.mrb[9].mxu1 }
 0x582   : > { %v11429_v51 = vadd.f32 %v11428_v46, %v11427_v10  ;;  %v11450_v26 = vadd.f32 %v11449_v13, %v11448_v59  ;;  %v11456_v60 = vrot.slane %v11455_v24, 1  ;;  %v11713_v44 = vmul.f32 0.25, %v11415_v42 }
 0x583   : > { %v11436_v28 = vadd.f32 %v11435_v1, %v11434_v43  ;;  %v11462_v23 = vadd.f32 %v11461_v3, %v11460_v6  ;;  %v11714_v20 = vmul.f32 0.25, %v11422_v57  ;;  %v11717_v16 = vmul.f32 0.25, %v11443_v63 }
 0x584   : > { %v11457_v50 = vadd.f32 %v11456_v60, %v11455_v24  ;;  %v11715_v49 = vmul.f32 0.25, %v11429_v51  ;;  %v11718_v62 = vmul.f32 0.25, %v11450_v26  ;;  %v16159_v48 = vsel %vm10662_vm6, %v11713_v44, %v15998_v7 }
 0x585   : > { %v11463_v33 = vrot.slane %v11462_v23, 1  ;;  %v11716_v30 = vmul.f32 0.25, %v11436_v28  ;;  %v16165_v8 = vsel %vm10662_vm6, %v11714_v20, %v16004_v56  ;;  %v16169_v17 = vsel %vm10662_vm6, %v11717_v16, %v16008_v5 }
 0x586   : > { %v11719_v10 = vmul.f32 0.25, %v11457_v50  ;;  %v16175_v59 = vsel %vm10662_vm6, %v11715_v49, %v16012_v29  ;;  %v16179_v7 = vsel %vm10662_vm6, %v11718_v62, %v16016_v0  ;;  %v10143_v12 = vrot.slane %v16148_v19, 1 }
 0x587   : > { %v11464_v53 = vadd.f32 %v11463_v33, %v11462_v23  ;;  %v16184_v56 = vsel %vm10662_vm6, %v11716_v30, %v16021_v54  ;;  %v10149_v5 = vadd.f32 %v10148_v37, %v16139_v34  ;;  %v10155_v43 = vrot.slane %v16141_v41, 2 }
 0x588   : > { %v16192_v29 = vsel %vm10662_vm6, %v11719_v10, %v16029_v2  ;;  %v10144_v0 = vadd.f32 %v10143_v12, %v16148_v19  ;;  %v10161_v18 = vadd.f32 %v10160_v9, %v16129_v61  ;;  %v10083_v6 = vrot.slane %v16135_v11, 4 }
 0x589   : > { %v11720_v54 = vmul.f32 0.25, %v11464_v53  ;;  %v10150_v42 = vrot.slane %v10149_v5, 1  ;;  %v10156_v46 = vadd.f32 %v10155_v43, %v16141_v41  ;;  %v10089_v34 = vsel %vm9633_vm3, %v9248_v15, 0.0 }
 0x58a   : > { %v10162_v37 = vrot.slane %v10161_v18, 2  ;;  %v10084_v2 = vadd.f32 %v10083_v6, %v16135_v11  ;;  %v10090_v13 = vrot.slane %v10089_v34, 4  ;;  %v10096_v19 = vsel %vm9633_vm3, %v16120_v45, 0.0 }
 0x58b   : > { %v16209_v61 = vsel %vm10662_vm6, %v11720_v54, %v16047_v21  ;;  %v10151_v9 = vadd.f32 %v10150_v42, %v10149_v5  ;;  %v10157_v24 = vrot.slane %v10156_v46, 1  ;;  %v10097_v57 = vrot.slane %v10096_v19, 4 }
 0x58c   : > { %v10163_v41 = vadd.f32 %v10162_v37, %v10161_v18  ;;  %v10085_v1 = vrot.slane %v10084_v2, 2  ;;  %v10091_v63 = vadd.f32 %v10090_v13, %v10089_v34  ;;  %v10103_v22 = vsel %vm9633_vm3, %v9249_v14, 0.0  ;;  %v16223_v14 = vpop.f32.mrb[10].mxu1 }
 0x58d   : > { %v10158_v15 = vadd.f32 %v10157_v24, %v10156_v46  ;;  %v10728_v11 = vsel %vm10658_vm4, %v10151_v9, %v10144_v0  ;;  %v10098_v3 = vadd.f32 %v10097_v57, %v10096_v19  ;;  %v10104_v51 = vrot.slane %v10103_v22, 4 }
 0x58e   : > { %v10164_v26 = vrot.slane %v10163_v41, 1  ;;  %v10086_v60 = vadd.f32 %v10085_v1, %v10084_v2  ;;  %v10092_v21 = vrot.slane %v10091_v63, 2  ;;  %v9298_v44 = vrot.slane %v9284_v4, %v15567_v58 }
 0x58f   : > { %v10729_v28 = vsel %vm10660_vm5, %v10158_v15, %v10728_v11  ;;  %v10099_v23 = vrot.slane %v10098_v3, 2  ;;  %v10105_v20 = vadd.f32 %v10104_v51, %v10103_v22  ;;  %v9299_v45 = vcombine.high %v16114_v47, %v16114_v47 }
 0x590   : > { %v10165_v16 = vadd.f32 %v10164_v26, %v10163_v41  ;;  %v10087_v50 = vrot.slane %v10086_v60, 1  ;;  %v10093_v49 = vadd.f32 %v10092_v21, %v10091_v63  ;;  %v9300_v62 = vcombine.high %v9298_v44, %v9298_v44 }
 0x591   : > { %v10100_v33 = vadd.f32 %v10099_v23, %v10098_v3  ;;  %v10106_v30 = vrot.slane %v10105_v20, 2  ;;  %v10166_v10 = vsel %vm9633_vm3, %v16114_v47, 0.0  ;;  %v10173_v32 = vsel %vm9633_vm3, %v9299_v45, 0.0 }
 0x592   : > { %v10088_v4 = vadd.f32 %v10087_v50, %v10086_v60  ;;  %v10094_v12 = vrot.slane %v10093_v49, 1  ;;  %v10167_v53 = vrot.slane %v10166_v10, 4  ;;  %v10174_v5 = vrot.slane %v10173_v32, 4 }
 0x593   : > { %v10101_v43 = vrot.slane %v10100_v33, 1  ;;  %v10107_v0 = vadd.f32 %v10106_v30, %v10105_v20  ;;  %v10180_v18 = vsel %vm9633_vm3, %v9298_v44, 0.0  ;;  %v10187_v6 = vsel %vm9633_vm3, %v9300_v62, 0.0 }
 0x594   : > { %v10095_v54 = vadd.f32 %v10094_v12, %v10093_v49  ;;  %v10168_v42 = vadd.f32 %v10167_v53, %v10166_v10  ;;  %v10175_v46 = vadd.f32 %v10174_v5, %v10173_v32  ;;  %v10181_v34 = vrot.slane %v10180_v18, 4 }
 0x595   : > { %v10102_v37 = vadd.f32 %v10101_v43, %v10100_v33  ;;  %v10108_v2 = vrot.slane %v10107_v0, 1  ;;  %v10188_v13 = vrot.slane %v10187_v6, 4  ;;  %v10730_v47 = vsel %vm10662_vm6, %v10165_v16, %v10729_v28  ;;  %v16241_v28 = vpop.f32.mrb[11].mxu1 }
 0x596   : > { %v10721_v19 = vsel %vm10658_vm4, %v10095_v54, %v10088_v4  ;;  %v10169_v9 = vrot.slane %v10168_v42, 2  ;;  %v10176_v24 = vrot.slane %v10175_v46, 2  ;;  %v10182_v57 = vadd.f32 %v10181_v34, %v10180_v18 }
 0x597   : > { %v10109_v41 = vadd.f32 %v10108_v2, %v10107_v0  ;;  %v10722_v1 = vsel %vm10660_vm5, %v10102_v37, %v10721_v19  ;;  %v10189_v63 = vadd.f32 %v10188_v13, %v10187_v6  ;;  %v9250_v22 = vcombine.high %v16099_v35, %v16099_v35 }
 0x598   : > { %v10170_v15 = vadd.f32 %v10169_v9, %v10168_v42  ;;  %v10177_v11 = vadd.f32 %v10176_v24, %v10175_v46  ;;  %v10183_v3 = vrot.slane %v10182_v57, 2  ;;  %v9257_v51 = vrot.slane %v16099_v35, %v15567_v58 }
 0x599   : > { %v10190_v26 = vrot.slane %v10189_v63, 2  ;;  %v9264_v60 = vrot.slane %v9250_v22, %v15567_v58  ;;  %v10723_v21 = vsel %vm10662_vm6, %v10109_v41, %v10722_v1  ;;  %v13302_v44 = vadd.f32 %v16103_v25, %v15994_v31  ;;  %v16781_v1 = vld [vmem:[#allocation6_spill] sm:$0xff] }
 0x59a   : > { %v10171_v23 = vrot.slane %v10170_v15, 1  ;;  %v10178_v20 = vrot.slane %v10177_v11, 1  ;;  %v10184_v45 = vadd.f32 %v10183_v3, %v10182_v57  ;;  %v9265_v16 = vcombine.high %v9257_v51, %v9257_v51 }
 0x59b   : > { %v10191_v50 = vadd.f32 %v10190_v26, %v10189_v63  ;;  %v9266_v49 = vcombine.high %v9264_v60, %v9264_v60  ;;  %v10110_v62 = vsel %vm9633_vm3, %v9257_v51, 0.0  ;;  %v10124_v35 = vsel %vm9633_vm3, %v9264_v60, 0.0 }
 0x59c   : > { %v10172_v33 = vadd.f32 %v10171_v23, %v10170_v15  ;;  %v10179_v30 = vadd.f32 %v10178_v20, %v10177_v11  ;;  %v10185_v10 = vrot.slane %v10184_v45, 1  ;;  %v10111_v32 = vrot.slane %v10110_v62, 4 }
 0x59d   : > { %v10192_v4 = vrot.slane %v10191_v50, 1  ;;  %v10117_v12 = vsel %vm9633_vm3, %v9265_v16, 0.0  ;;  %v10125_v31 = vrot.slane %v10124_v35, 4  ;;  %v10131_v25 = vsel %vm9633_vm3, %v9266_v49, 0.0 }
 0x59e   : > { %v10186_v53 = vadd.f32 %v10185_v10, %v10184_v45  ;;  %v10731_v5 = vsel %vm10664_vm7, %v10172_v33, %v10730_v47  ;;  %v10112_v43 = vadd.f32 %v10111_v32, %v10110_v62  ;;  %v10118_v0 = vrot.slane %v10117_v12, 4 }
 0x59f   : > { %v10193_v18 = vadd.f32 %v10192_v4, %v10191_v50  ;;  %v10732_v6 = vsel %vm10666_vm8, %v10179_v30, %v10731_v5  ;;  %v10126_v54 = vadd.f32 %v10125_v31, %v10124_v35  ;;  %v10132_v42 = vrot.slane %v10131_v25, 4 }
 0x5a0   : > { %v10733_v46 = vsel %vm10668_vm9, %v10186_v53, %v10732_v6  ;;  %v10113_v34 = vrot.slane %v10112_v43, 2  ;;  %v10119_v37 = vadd.f32 %v10118_v0, %v10117_v12  ;;  %v9335_v2 = vcombine.high %v13302_v44, %v13302_v44 }
 0x5a1   : > { %v10734_v13 = vsel %vm10670_vm10, %v10193_v18, %v10733_v46  ;;  %v10127_v19 = vrot.slane %v10126_v54, 2  ;;  %v10133_v9 = vadd.f32 %v10132_v42, %v10131_v25  ;;  %v9342_v24 = vrot.slane %v13302_v44, %v15567_v58  ;;  %v16782_v42 = vld [vmem:[#allocation9_spill] sm:$0xff] }
 0x5a2   : > { %v10114_v57 = vadd.f32 %v10113_v34, %v10112_v43  ;;  %v10120_v47 = vrot.slane %v10119_v37, 2  ;;  %v9349_v41 = vrot.slane %v9335_v2, %v15567_v58  ;;  %v13303_v63 = vadd.f32 %v16080_v40, %v16781_v1 }
 0x5a3   : > { %v10128_v22 = vadd.f32 %v10127_v19, %v10126_v54  ;;  %v10134_v15 = vrot.slane %v10133_v9, 2  ;;  %v9350_v11 = vcombine.high %v9342_v24, %v9342_v24  ;;  %v10250_v3 = vsel %vm9633_vm3, %v9342_v24, 0.0 }
 0x5a4   : > { %v10115_v51 = vrot.slane %v10114_v57, 1  ;;  %v10121_v26 = vadd.f32 %v10120_v47, %v10119_v37  ;;  %v9351_v60 = vcombine.high %v9349_v41, %v9349_v41  ;;  %v10251_v23 = vrot.slane %v10250_v3, 4 }
 0x5a5   : > { %v10129_v20 = vrot.slane %v10128_v22, 1  ;;  %v10135_v45 = vadd.f32 %v10134_v15, %v10133_v9  ;;  %v10257_v44 = vsel %vm9633_vm3, %v9350_v11, 0.0  ;;  %v10264_v16 = vsel %vm9633_vm3, %v9349_v41, 0.0 }
 0x5a6   : > { %v10116_v50 = vadd.f32 %v10115_v51, %v10114_v57  ;;  %v10122_v49 = vrot.slane %v10121_v26, 1  ;;  %v10252_v62 = vadd.f32 %v10251_v23, %v10250_v3  ;;  %v10258_v35 = vrot.slane %v10257_v44, 4 }
 0x5a7   : > { %v10130_v33 = vadd.f32 %v10129_v20, %v10128_v22  ;;  %v10136_v30 = vrot.slane %v10135_v45, 1  ;;  %v10265_v10 = vrot.slane %v10264_v16, 4  ;;  %v10271_v32 = vsel %vm9633_vm3, %v9351_v60, 0.0 }
 0x5a8   : > { %v10123_v4 = vadd.f32 %v10122_v49, %v10121_v26  ;;  %v10724_v12 = vsel %vm10664_vm7, %v10116_v50, %v10723_v21  ;;  %v10253_v31 = vrot.slane %v10252_v62, 2  ;;  %v10259_v25 = vadd.f32 %v10258_v35, %v10257_v44 }
 0x5a9   : > { %v10137_v53 = vadd.f32 %v10136_v30, %v10135_v45  ;;  %v10266_v5 = vadd.f32 %v10265_v10, %v10264_v16  ;;  %v10272_v43 = vrot.slane %v10271_v32, 4  ;;  %v13304_v0 = vadd.f32 %v13303_v63, %v16000_v36 }
 0x5aa   : > { %v10725_v18 = vsel %vm10666_vm8, %v10123_v4, %v10724_v12  ;;  %v10254_v6 = vadd.f32 %v10253_v31, %v10252_v62  ;;  %v10260_v54 = vrot.slane %v10259_v25, 2  ;;  %v16264_v46 = vadd.f32 %v16080_v40, %v16782_v42 }
 0x5ab   : > { %v10726_v34 = vsel %vm10668_vm9, %v10130_v33, %v10725_v18  ;;  %v10267_v37 = vrot.slane %v10266_v5, 2  ;;  %v10273_v2 = vadd.f32 %v10272_v43, %v10271_v32  ;;  %v9301_v21 = vcombine.high %v13304_v0, %v13304_v0 }
 0x5ac   : > { %v10727_v19 = vsel %vm10670_vm10, %v10137_v53, %v10726_v34  ;;  %v10255_v9 = vrot.slane %v10254_v6, 1  ;;  %v10261_v24 = vadd.f32 %v10260_v54, %v10259_v25  ;;  %v9308_v57 = vrot.slane %v13304_v0, %v15567_v58 }
 0x5ad   : > { %v10977_v36 = vcombine.low %v10727_v19, %v10734_v13  ;;  %v10978_v47 = vcombine.high %v10727_v19, %v10734_v13  ;;  %v10268_v41 = vadd.f32 %v10267_v37, %v10266_v5  ;;  %v10274_v1 = vrot.slane %v10273_v2, 2 }
 0x5ae   : > { %v10256_v63 = vadd.f32 %v10255_v9, %v10254_v6  ;;  %v10262_v22 = vrot.slane %v10261_v24, 1  ;;  %v16270_v15 = vrot.slane %v9301_v21, %v15567_v58  ;;  %v9316_v11 = vcombine.high %v9308_v57, %v9308_v57 }
 0x5af   : > { %v10985_v3 = vrot.slane %v10977_v36, %v15571_v39  ;;  %v10992_v51 = vrot.slane %v10978_v47, %v15571_v39  ;;  %v10269_v26 = vrot.slane %v10268_v41, 1  ;;  %v10275_v60 = vadd.f32 %v10274_v1, %v10273_v2 }
 0x5b0   : > { %v10263_v23 = vadd.f32 %v10262_v22, %v10261_v24  ;;  %v9317_v20 = vcombine.high %v16270_v15, %v16270_v15  ;;  %v16277_v13 = vsel %vm9633_vm3, %v9308_v57, 0.0  ;;  %v16280_v45 = vsel %vm9633_vm3, %v9316_v11, 0.0 }
 0x5b1   : > { %v10993_v44 = vcombine.high %v10985_v3, %v10985_v3  ;;  %v10994_v16 = vcombine.high %v10992_v51, %v10992_v51  ;;  %v11001_v50 = vrot.slane %v10985_v3, %v15571_v39  ;;  %v11008_v49 = vrot.slane %v10992_v51, %v15571_v39 }
 0x5b2   : > { %v10270_v62 = vadd.f32 %v10269_v26, %v10268_v41  ;;  %v10276_v35 = vrot.slane %v10275_v60, 1  ;;  %v10742_v33 = vsel %vm10658_vm4, %v10263_v23, %v10256_v63  ;;  %v10195_v30 = vrot.slane %v16277_v13, 4 }
 0x5b3   : > { %v11015_v10 = vrot.slane %v10993_v44, %v15571_v39  ;;  %v11022_v32 = vrot.slane %v10994_v16, %v15571_v39  ;;  %v11023_v4 = vcombine.high %v11001_v50, %v11001_v50  ;;  %v11024_v12 = vcombine.high %v11008_v49, %v11008_v49 }
 0x5b4   : > { %v11465_v31 = vsel %vm9633_vm3, %v11001_v50, 0.0  ;;  %v11493_v25 = vsel %vm9633_vm3, %v11008_v49, 0.0  ;;  %v16290_v53 = vadd.f32 %v10276_v35, %v10275_v60  ;;  %v16293_v5 = vsel %vm10660_vm5, %v10270_v62, %v10742_v33 }
 0x5b5   : > { %v11025_v43 = vcombine.high %v11015_v10, %v11015_v10  ;;  %v11026_v0 = vcombine.high %v11022_v32, %v11022_v32  ;;  %v11466_v18 = vrot.slane %v11465_v31, 4  ;;  %v11472_v6 = vsel %vm9633_vm3, %v11015_v10, 0.0 }
 0x5b6   : > { %v11473_v54 = vrot.slane %v11472_v6, 4  ;;  %v11479_v42 = vsel %vm9633_vm3, %v11023_v4, 0.0  ;;  %v11494_v34 = vrot.slane %v11493_v25, 4  ;;  %v11500_v37 = vsel %vm9633_vm3, %v11022_v32, 0.0 }
 0x5b7   : > { %v11467_v2 = vadd.f32 %v11466_v18, %v11465_v31  ;;  %v11480_v21 = vrot.slane %v11479_v42, 4  ;;  %v11486_v19 = vsel %vm9633_vm3, %v11025_v43, 0.0  ;;  %v11501_v9 = vrot.slane %v11500_v37, 4 }
 0x5b8   : > { %v11474_v24 = vadd.f32 %v11473_v54, %v11472_v6  ;;  %v11487_v57 = vrot.slane %v11486_v19, 4  ;;  %v11495_v36 = vadd.f32 %v11494_v34, %v11493_v25  ;;  %v11507_v47 = vsel %vm9633_vm3, %v11024_v12, 0.0 }
 0x5b9   : > { %v11468_v41 = vrot.slane %v11467_v2, 2  ;;  %v11481_v1 = vadd.f32 %v11480_v21, %v11479_v42  ;;  %v11502_v63 = vadd.f32 %v11501_v9, %v11500_v37  ;;  %v11508_v22 = vrot.slane %v11507_v47, 4 }
 0x5ba   : > { %v11475_v11 = vrot.slane %v11474_v24, 2  ;;  %v11488_v3 = vadd.f32 %v11487_v57, %v11486_v19  ;;  %v11496_v51 = vrot.slane %v11495_v36, 2  ;;  %v11514_v26 = vsel %vm9633_vm3, %v11026_v0, 0.0  ;;  %v16301_v57 = vpop.f32.mrb[12].mxu1 }
 0x5bb   : > { %v11469_v60 = vadd.f32 %v11468_v41, %v11467_v2  ;;  %v11482_v23 = vrot.slane %v11481_v1, 2  ;;  %v11503_v44 = vrot.slane %v11502_v63, 2  ;;  %v11509_v16 = vadd.f32 %v11508_v22, %v11507_v47 }
 0x5bc   : > { %v11476_v50 = vadd.f32 %v11475_v11, %v11474_v24  ;;  %v11489_v49 = vrot.slane %v11488_v3, 2  ;;  %v11497_v62 = vadd.f32 %v11496_v51, %v11495_v36  ;;  %v11515_v35 = vrot.slane %v11514_v26, 4 }
 0x5bd   : > { %v11470_v33 = vrot.slane %v11469_v60, 1  ;;  %v11483_v10 = vadd.f32 %v11482_v23, %v11481_v1  ;;  %v11504_v32 = vadd.f32 %v11503_v44, %v11502_v63  ;;  %v11510_v4 = vrot.slane %v11509_v16, 2  ;;  %v16303_v63 = vpop.f32.mrb[13].mxu1 }
 0x5be   : > { %v11477_v12 = vrot.slane %v11476_v50, 1  ;;  %v11490_v31 = vadd.f32 %v11489_v49, %v11488_v3  ;;  %v11498_v25 = vrot.slane %v11497_v62, 1  ;;  %v11516_v43 = vadd.f32 %v11515_v35, %v11514_v26 }
 0x5bf   : > { %v11471_v18 = vadd.f32 %v11470_v33, %v11469_v60  ;;  %v11484_v6 = vrot.slane %v11483_v10, 1  ;;  %v11505_v54 = vrot.slane %v11504_v32, 1  ;;  %v11511_v0 = vadd.f32 %v11510_v4, %v11509_v16 }
 0x5c0   : > { %v11478_v42 = vadd.f32 %v11477_v12, %v11476_v50  ;;  %v11491_v34 = vrot.slane %v11490_v31, 1  ;;  %v11499_v37 = vadd.f32 %v11498_v25, %v11497_v62  ;;  %v11517_v2 = vrot.slane %v11516_v43, 2 }
 0x5c1   : > { %v11485_v21 = vadd.f32 %v11484_v6, %v11483_v10  ;;  %v11506_v19 = vadd.f32 %v11505_v54, %v11504_v32  ;;  %v11512_v9 = vrot.slane %v11511_v0, 1  ;;  %v11721_v24 = vmul.f32 0.25, %v11471_v18 }
 0x5c2   : > { %v11492_v36 = vadd.f32 %v11491_v34, %v11490_v31  ;;  %v11518_v47 = vadd.f32 %v11517_v2, %v11516_v43  ;;  %v11722_v41 = vmul.f32 0.25, %v11478_v42  ;;  %v11725_v1 = vmul.f32 0.25, %v11499_v37  ;;  %v16783_v31 = vld [vmem:[#allocation7_spill] sm:$0xff]  ;;  %v16364_v34 = vpop.f32.mrb[14].mxu1 }
 0x5c3   : > { %v11513_v22 = vadd.f32 %v11512_v9, %v11511_v0  ;;  %v11723_v11 = vmul.f32 0.25, %v11485_v21  ;;  %v11726_v3 = vmul.f32 0.25, %v11506_v19  ;;  %v16307_v51 = vsel %vm10664_vm7, %v11721_v24, %v16159_v48 }
 0x5c4   : > { %v11519_v26 = vrot.slane %v11518_v47, 1  ;;  %v11724_v60 = vmul.f32 0.25, %v11492_v36  ;;  %v16311_v23 = vsel %vm10664_vm7, %v11722_v41, %v16165_v8  ;;  %v16315_v44 = vsel %vm10664_vm7, %v11725_v1, %v16169_v17 }
 0x5c5   : > { %v11727_v16 = vmul.f32 0.25, %v11513_v22  ;;  %v16319_v50 = vsel %vm10664_vm7, %v11723_v11, %v16175_v59  ;;  %v16323_v49 = vsel %vm10664_vm7, %v11726_v3, %v16179_v7  ;;  %v10196_v48 = vadd.f32 %v10195_v30, %v16277_v13 }
 0x5c6   : > { %v11520_v62 = vadd.f32 %v11519_v26, %v11518_v47  ;;  %v16330_v8 = vsel %vm10664_vm7, %v11724_v60, %v16184_v56  ;;  %v10202_v17 = vrot.slane %v16280_v45, 4  ;;  %v10208_v35 = vsel %vm9633_vm3, %v16270_v15, 0.0 }
 0x5c7   : > { %v16337_v59 = vsel %vm10664_vm7, %v11727_v16, %v16192_v29  ;;  %v10197_v7 = vrot.slane %v10196_v48, 2  ;;  %v10209_v33 = vrot.slane %v10208_v35, 4  ;;  %v10215_v13 = vsel %vm9633_vm3, %v9317_v20, 0.0 }
 0x5c8   : > { %v11728_v30 = vmul.f32 0.25, %v11520_v62  ;;  %v10203_v56 = vadd.f32 %v10202_v17, %v16280_v45  ;;  %v10216_v10 = vrot.slane %v10215_v13, 4  ;;  %v13306_v32 = vadd.f32 %v16264_v46, %v16054_v27 }
 0x5c9   : > { %v10198_v4 = vadd.f32 %v10197_v7, %v10196_v48  ;;  %v10210_v12 = vadd.f32 %v10209_v33, %v10208_v35  ;;  %v16349_v29 = vsel %vm10662_vm6, %v16290_v53, %v16293_v5  ;;  %v13307_v25 = vadd.f32 %v16080_v40, %v16783_v31  ;;  %v16784_v5 = vld [vmem:[#allocation12_spill] sm:$0xff] }
 0x5ca   : > { %v16355_v15 = vsel %vm10664_vm7, %v11728_v30, %v16209_v61  ;;  %v10204_v20 = vrot.slane %v10203_v56, 2  ;;  %v10217_v45 = vadd.f32 %v10216_v10, %v10215_v13  ;;  %v9352_v43 = vcombine.high %v13306_v32, %v13306_v32 }
 0x5cb   : > { %v10199_v18 = vrot.slane %v10198_v4, 1  ;;  %v10211_v6 = vrot.slane %v10210_v12, 2  ;;  %v9359_v27 = vrot.slane %v13306_v32, %v15567_v58  ;;  %v13308_v46 = vadd.f32 %v13307_v25, %v16070_v55 }
 0x5cc   : > { %v10205_v54 = vadd.f32 %v10204_v20, %v10203_v56  ;;  %v10218_v0 = vrot.slane %v10217_v45, 2  ;;  %v9366_v53 = vrot.slane %v9352_v43, %v15567_v58  ;;  %v16362_v42 = vadd.f32 %v16080_v40, %v16784_v5 }
 0x5cd   : > { %v10200_v61 = vadd.f32 %v10199_v18, %v10198_v4  ;;  %v10212_v37 = vadd.f32 %v10211_v6, %v10210_v12  ;;  %v9367_v2 = vcombine.high %v9359_v27, %v9359_v27  ;;  %v10278_v21 = vsel %vm9633_vm3, %v9359_v27, 0.0 }
 0x5ce   : > { %v10206_v19 = vrot.slane %v10205_v54, 1  ;;  %v10219_v9 = vadd.f32 %v10218_v0, %v10217_v45  ;;  %v9368_v24 = vcombine.high %v9366_v53, %v9366_v53  ;;  %v10279_v36 = vrot.slane %v10278_v21, 4 }
 0x5cf   : > { %v10213_v55 = vrot.slane %v10212_v37, 1  ;;  %v10285_v47 = vsel %vm9633_vm3, %v9367_v2, 0.0  ;;  %v10292_v41 = vsel %vm9633_vm3, %v9366_v53, 0.0  ;;  %v9318_v1 = vcombine.high %v13308_v46, %v13308_v46 }
 0x5d0   : > { %v10207_v22 = vadd.f32 %v10206_v19, %v10205_v54  ;;  %v10220_v11 = vrot.slane %v10219_v9, 1  ;;  %v10280_v3 = vadd.f32 %v10279_v36, %v10278_v21  ;;  %v10286_v26 = vrot.slane %v10285_v47, 4  ;;  %v16377_v54 = vpop.f32.mrb[15].mxu1 }
 0x5d1   : > { %v10214_v60 = vadd.f32 %v10213_v55, %v10212_v37  ;;  %v10293_v16 = vrot.slane %v10292_v41, 4  ;;  %v10299_v48 = vsel %vm9633_vm3, %v9368_v24, 0.0  ;;  %v9325_v62 = vrot.slane %v13308_v46, %v15567_v58 }
 0x5d2   : > { %v10221_v17 = vadd.f32 %v10220_v11, %v10219_v9  ;;  %v10735_v35 = vsel %vm10658_vm4, %v10207_v22, %v10200_v61  ;;  %v10281_v7 = vrot.slane %v10280_v3, 2  ;;  %v10287_v33 = vadd.f32 %v10286_v26, %v10285_v47 }
 0x5d3   : > { %v10736_v13 = vsel %vm10660_vm5, %v10214_v60, %v10735_v35  ;;  %v10294_v30 = vadd.f32 %v10293_v16, %v10292_v41  ;;  %v10300_v56 = vrot.slane %v10299_v48, 4  ;;  %v9332_v10 = vrot.slane %v9318_v1, %v15567_v58 }
 0x5d4   : > { %v10282_v32 = vadd.f32 %v10281_v7, %v10280_v3  ;;  %v10288_v4 = vrot.slane %v10287_v33, 2  ;;  %v9333_v12 = vcombine.high %v9325_v62, %v9325_v62  ;;  %v10222_v31 = vsel %vm9633_vm3, %v9325_v62, 0.0 }
 0x5d5   : > { %v10295_v25 = vrot.slane %v10294_v30, 2  ;;  %v10301_v20 = vadd.f32 %v10300_v56, %v10299_v48  ;;  %v9334_v45 = vcombine.high %v9332_v10, %v9332_v10  ;;  %v10223_v43 = vrot.slane %v10222_v31, 4 }
 0x5d6   : > { %v10283_v18 = vrot.slane %v10282_v32, 1  ;;  %v10289_v6 = vadd.f32 %v10288_v4, %v10287_v33  ;;  %v10229_v27 = vsel %vm9633_vm3, %v9333_v12, 0.0  ;;  %v10236_v46 = vsel %vm9633_vm3, %v9332_v10, 0.0  ;;  %v16785_v4 = vld [vmem:[#allocation10_spill] sm:$0xff] }
 0x5d7   : > { %v10296_v0 = vadd.f32 %v10295_v25, %v10294_v30  ;;  %v10302_v53 = vrot.slane %v10301_v20, 2  ;;  %v10224_v5 = vadd.f32 %v10223_v43, %v10222_v31  ;;  %v10230_v61 = vrot.slane %v10229_v27, 4 }
 0x5d8   : > { %v10284_v37 = vadd.f32 %v10283_v18, %v10282_v32  ;;  %v10290_v2 = vrot.slane %v10289_v6, 1  ;;  %v10237_v21 = vrot.slane %v10236_v46, 4  ;;  %v10243_v19 = vsel %vm9633_vm3, %v9334_v45, 0.0  ;;  %v16786_v45 = vld [vmem:[#allocation13_spill] sm:$0xff] }
 0x5d9   : > { %v10297_v9 = vrot.slane %v10296_v0, 1  ;;  %v10303_v24 = vadd.f32 %v10302_v53, %v10301_v20  ;;  %v10225_v36 = vrot.slane %v10224_v5, 2  ;;  %v10231_v55 = vadd.f32 %v10230_v61, %v10229_v27 }
 0x5da   : > { %v10291_v47 = vadd.f32 %v10290_v2, %v10289_v6  ;;  %v10745_v41 = vsel %vm10664_vm7, %v10284_v37, %v16349_v29  ;;  %v10238_v1 = vadd.f32 %v10237_v21, %v10236_v46  ;;  %v10244_v22 = vrot.slane %v10243_v19, 4 }
 0x5db   : > { %v10298_v11 = vadd.f32 %v10297_v9, %v10296_v0  ;;  %v10304_v3 = vrot.slane %v10303_v24, 1  ;;  %v10226_v26 = vadd.f32 %v10225_v36, %v10224_v5  ;;  %v10232_v60 = vrot.slane %v10231_v55, 2 }
 0x5dc   : > { %v10746_v16 = vsel %vm10666_vm8, %v10291_v47, %v10745_v41  ;;  %v10239_v48 = vrot.slane %v10238_v1, 2  ;;  %v10245_v62 = vadd.f32 %v10244_v22, %v10243_v19  ;;  %v10737_v35 = vsel %vm10662_vm6, %v10221_v17, %v10736_v13 }
 0x5dd   : > { %v10305_v7 = vadd.f32 %v10304_v3, %v10303_v24  ;;  %v10747_v33 = vsel %vm10668_vm9, %v10298_v11, %v10746_v16  ;;  %v10227_v30 = vrot.slane %v10226_v26, 1  ;;  %v10233_v56 = vadd.f32 %v10232_v60, %v10231_v55 }
 0x5de   : > { %v10240_v10 = vadd.f32 %v10239_v48, %v10238_v1  ;;  %v10246_v32 = vrot.slane %v10245_v62, 2  ;;  %v13310_v29 = vadd.f32 %v16362_v42, %v16161_v38  ;;  %v13311_v12 = vadd.f32 %v16080_v40, %v16785_v4 }
 0x5df   : > { %v10748_v31 = vsel %vm10670_vm10, %v10305_v7, %v10747_v33  ;;  %v10228_v25 = vadd.f32 %v10227_v30, %v10226_v26  ;;  %v10234_v20 = vrot.slane %v10233_v56, 1  ;;  %v13313_v17 = vadd.f32 %v16080_v40, %v16786_v45 }
 0x5e0   : > { %v10241_v13 = vrot.slane %v10240_v10, 1  ;;  %v10247_v43 = vadd.f32 %v10246_v32, %v10245_v62  ;;  %v9403_v18 = vcombine.high %v13310_v29, %v13310_v29  ;;  %v9410_v6 = vrot.slane %v13310_v29, %v15567_v58 }
 0x5e1   : > { %v10235_v27 = vadd.f32 %v10234_v20, %v10233_v56  ;;  %v10738_v46 = vsel %vm10664_vm7, %v10228_v25, %v10737_v35  ;;  %v13312_v38 = vadd.f32 %v13311_v12, %v16171_v52  ;;  %v16396_v42 = vadd.f32 %v13313_v17, %v16223_v14 }
 0x5e2   : > { %v10242_v0 = vadd.f32 %v10241_v13, %v10240_v10  ;;  %v10248_v53 = vrot.slane %v10247_v43, 1  ;;  %v9417_v5 = vrot.slane %v9403_v18, %v15567_v58  ;;  %v9418_v61 = vcombine.high %v9410_v6, %v9410_v6 }
 0x5e3   : > { %v10739_v40 = vsel %vm10666_vm8, %v10235_v27, %v10738_v46  ;;  %v10362_v37 = vsel %vm9633_vm3, %v9410_v6, 0.0  ;;  %v9369_v2 = vcombine.high %v13312_v38, %v13312_v38  ;;  %v9376_v21 = vrot.slane %v13312_v38, %v15567_v58 }
 0x5e4   : > { %v10249_v19 = vadd.f32 %v10248_v53, %v10247_v43  ;;  %v10740_v9 = vsel %vm10668_vm9, %v10242_v0, %v10739_v40  ;;  %v9419_v24 = vcombine.high %v9417_v5, %v9417_v5  ;;  %v10363_v52 = vrot.slane %v10362_v37, 4 }
 0x5e5   : > { %v10369_v14 = vsel %vm9633_vm3, %v9418_v61, 0.0  ;;  %v10376_v36 = vsel %vm9633_vm3, %v9417_v5, 0.0  ;;  %v16406_v55 = vrot.slane %v9369_v2, %v15567_v58  ;;  %v9384_v47 = vcombine.high %v9376_v21, %v9376_v21 }
 0x5e6   : > { %v10741_v41 = vsel %vm10670_vm10, %v10249_v19, %v10740_v9  ;;  %v10364_v1 = vadd.f32 %v10363_v52, %v10362_v37  ;;  %v10370_v22 = vrot.slane %v10369_v14, 4  ;;  %v10377_v11 = vrot.slane %v10376_v36, 4 }
 0x5e7   : > { %v11027_v3 = vcombine.low %v10741_v41, %v10748_v31  ;;  %v11028_v26 = vcombine.high %v10741_v41, %v10748_v31  ;;  %v10383_v60 = vsel %vm9633_vm3, %v9419_v24, 0.0  ;;  %v9385_v16 = vcombine.high %v16406_v55, %v16406_v55 }
 0x5e8   : > { %v10365_v48 = vrot.slane %v10364_v1, 2  ;;  %v10371_v62 = vadd.f32 %v10370_v22, %v10369_v14  ;;  %v10378_v35 = vadd.f32 %v10377_v11, %v10376_v36  ;;  %v10384_v7 = vrot.slane %v10383_v60, 4 }
 0x5e9   : > { %v11035_v33 = vrot.slane %v11027_v3, %v15571_v39  ;;  %v11042_v30 = vrot.slane %v11028_v26, %v15571_v39  ;;  %v16415_v56 = vsel %vm9633_vm3, %v9376_v21, 0.0  ;;  %v16418_v10 = vsel %vm9633_vm3, %v9384_v47, 0.0 }
 0x5ea   : > { %v10366_v32 = vadd.f32 %v10365_v48, %v10364_v1  ;;  %v10372_v29 = vrot.slane %v10371_v62, 2  ;;  %v10379_v4 = vrot.slane %v10378_v35, 2  ;;  %v16420_v12 = vadd.f32 %v10384_v7, %v10383_v60 }
 0x5eb   : > { %v11043_v31 = vcombine.high %v11035_v33, %v11035_v33  ;;  %v11044_v25 = vcombine.high %v11042_v30, %v11042_v30  ;;  %v11051_v20 = vrot.slane %v11035_v33, %v15571_v39  ;;  %v11058_v45 = vrot.slane %v11042_v30, %v15571_v39 }
 0x5ec   : > { %v10367_v17 = vrot.slane %v10366_v32, 1  ;;  %v16424_v13 = vadd.f32 %v10372_v29, %v10371_v62  ;;  %v16426_v43 = vadd.f32 %v10379_v4, %v10378_v35  ;;  %v10386_v18 = vrot.slane %v16420_v12, 2 }
 0x5ed   : > { %v11065_v6 = vrot.slane %v11043_v31, %v15571_v39  ;;  %v11072_v27 = vrot.slane %v11044_v25, %v15571_v39  ;;  %v11073_v46 = vcombine.high %v11051_v20, %v11051_v20  ;;  %v11074_v38 = vcombine.high %v11058_v45, %v11058_v45 }
 0x5ee   : > { %v11521_v0 = vsel %vm9633_vm3, %v11051_v20, 0.0  ;;  %v11549_v53 = vsel %vm9633_vm3, %v11058_v45, 0.0  ;;  %v16433_v5 = vadd.f32 %v10367_v17, %v10366_v32  ;;  %v10374_v61 = vrot.slane %v16424_v13, 1 }
 0x5ef   : > { %v11075_v40 = vcombine.high %v11065_v6, %v11065_v6  ;;  %v11076_v37 = vcombine.high %v11072_v27, %v11072_v27  ;;  %v11522_v2 = vrot.slane %v11521_v0, 4  ;;  %v11528_v21 = vsel %vm9633_vm3, %v11065_v6, 0.0 }
 0x5f0   : > { %v11529_v19 = vrot.slane %v11528_v21, 4  ;;  %v11535_v9 = vsel %vm9633_vm3, %v11073_v46, 0.0  ;;  %v11550_v24 = vrot.slane %v11549_v53, 4  ;;  %v11556_v52 = vsel %vm9633_vm3, %v11072_v27, 0.0 }
 0x5f1   : > { %v11523_v14 = vadd.f32 %v11522_v2, %v11521_v0  ;;  %v11536_v36 = vrot.slane %v11535_v9, 4  ;;  %v11542_v47 = vsel %vm9633_vm3, %v11075_v40, 0.0  ;;  %v11557_v41 = vrot.slane %v11556_v52, 4 }
 0x5f2   : > { %v11530_v1 = vadd.f32 %v11529_v19, %v11528_v21  ;;  %v11543_v22 = vrot.slane %v11542_v47, 4  ;;  %v11551_v11 = vadd.f32 %v11550_v24, %v11549_v53  ;;  %v11563_v3 = vsel %vm9633_vm3, %v11074_v38, 0.0 }
 0x5f3   : > { %v11524_v26 = vrot.slane %v11523_v14, 2  ;;  %v11537_v60 = vadd.f32 %v11536_v36, %v11535_v9  ;;  %v11558_v48 = vadd.f32 %v11557_v41, %v11556_v52  ;;  %v11564_v62 = vrot.slane %v11563_v3, 4 }
 0x5f4   : > { %v11531_v35 = vrot.slane %v11530_v1, 2  ;;  %v11544_v7 = vadd.f32 %v11543_v22, %v11542_v47  ;;  %v11552_v33 = vrot.slane %v11551_v11, 2  ;;  %v11570_v30 = vsel %vm9633_vm3, %v11076_v37, 0.0 }
 0x5f5   : > { %v11525_v32 = vadd.f32 %v11524_v26, %v11523_v14  ;;  %v11538_v29 = vrot.slane %v11537_v60, 2  ;;  %v11559_v4 = vrot.slane %v11558_v48, 2  ;;  %v11565_v31 = vadd.f32 %v11564_v62, %v11563_v3 }
 0x5f6   : > { %v11532_v25 = vadd.f32 %v11531_v35, %v11530_v1  ;;  %v11545_v20 = vrot.slane %v11544_v7, 2  ;;  %v11553_v45 = vadd.f32 %v11552_v33, %v11551_v11  ;;  %v11571_v17 = vrot.slane %v11570_v30, 4 }
 0x5f7   : > { %v11526_v6 = vrot.slane %v11525_v32, 1  ;;  %v11539_v27 = vadd.f32 %v11538_v29, %v11537_v60  ;;  %v11560_v46 = vadd.f32 %v11559_v4, %v11558_v48  ;;  %v11566_v38 = vrot.slane %v11565_v31, 2 }
 0x5f8   : > { %v11533_v0 = vrot.slane %v11532_v25, 1  ;;  %v11546_v53 = vadd.f32 %v11545_v20, %v11544_v7  ;;  %v11554_v40 = vrot.slane %v11553_v45, 1  ;;  %v11572_v2 = vadd.f32 %v11571_v17, %v11570_v30 }
 0x5f9   : > { %v11527_v21 = vadd.f32 %v11526_v6, %v11525_v32  ;;  %v11540_v19 = vrot.slane %v11539_v27, 1  ;;  %v11561_v9 = vrot.slane %v11560_v46, 1  ;;  %v11567_v37 = vadd.f32 %v11566_v38, %v11565_v31 }
 0x5fa   : > { %v11534_v24 = vadd.f32 %v11533_v0, %v11532_v25  ;;  %v11547_v52 = vrot.slane %v11546_v53, 1  ;;  %v11555_v14 = vadd.f32 %v11554_v40, %v11553_v45  ;;  %v11573_v36 = vrot.slane %v11572_v2, 2 }
 0x5fb   : > { %v11541_v47 = vadd.f32 %v11540_v19, %v11539_v27  ;;  %v11562_v41 = vadd.f32 %v11561_v9, %v11560_v46  ;;  %v11568_v1 = vrot.slane %v11567_v37, 1  ;;  %v11729_v22 = vmul.f32 0.25, %v11527_v21 }
 0x5fc   : > { %v11548_v11 = vadd.f32 %v11547_v52, %v11546_v53  ;;  %v11574_v3 = vadd.f32 %v11573_v36, %v11572_v2  ;;  %v11730_v26 = vmul.f32 0.25, %v11534_v24  ;;  %v11733_v60 = vmul.f32 0.25, %v11555_v14 }
 0x5fd   : > { %v11569_v48 = vadd.f32 %v11568_v1, %v11567_v37  ;;  %v11731_v62 = vmul.f32 0.25, %v11541_v47  ;;  %v11734_v35 = vmul.f32 0.25, %v11562_v41  ;;  %v16444_v7 = vsel %vm10666_vm8, %v11729_v22, %v16307_v51 }
 0x5fe   : > { %v11575_v33 = vrot.slane %v11574_v3, 1  ;;  %v11732_v30 = vmul.f32 0.25, %v11548_v11  ;;  %v16448_v32 = vsel %vm10666_vm8, %v11730_v26, %v16311_v23  ;;  %v16452_v29 = vsel %vm10666_vm8, %v11733_v60, %v16315_v44 }
 0x5ff   : > { %v11735_v4 = vmul.f32 0.25, %v11569_v48  ;;  %v16456_v31 = vsel %vm10666_vm8, %v11731_v62, %v16319_v50  ;;  %v16460_v25 = vsel %vm10666_vm8, %v11734_v35, %v16323_v49  ;;  %v10375_v51 = vadd.f32 %v10374_v61, %v16424_v13 }
 0x600   : > { %v11576_v20 = vadd.f32 %v11575_v33, %v11574_v3  ;;  %v16467_v23 = vsel %vm10666_vm8, %v11732_v30, %v16330_v8  ;;  %v10381_v44 = vrot.slane %v16426_v43, 1  ;;  %v10387_v50 = vadd.f32 %v10386_v18, %v16420_v12 }
 0x601   : > { %v16475_v45 = vsel %vm10666_vm8, %v11735_v4, %v16337_v59  ;;  %v10756_v49 = vsel %vm10658_vm4, %v10375_v51, %v16433_v5  ;;  %v10307_v13 = vrot.slane %v16415_v56, 4  ;;  %v10314_v61 = vrot.slane %v16418_v10, 4 }
 0x602   : > { %v11736_v17 = vmul.f32 0.25, %v11576_v20  ;;  %v10382_v8 = vadd.f32 %v10381_v44, %v16426_v43  ;;  %v10388_v6 = vrot.slane %v10387_v50, 1  ;;  %v10320_v27 = vsel %vm9633_vm3, %v16406_v55, 0.0 }
 0x603   : > { %v10308_v12 = vadd.f32 %v10307_v13, %v16415_v56  ;;  %v10315_v18 = vadd.f32 %v10314_v61, %v16418_v10  ;;  %v10321_v59 = vrot.slane %v10320_v27, 4  ;;  %v10327_v5 = vsel %vm9633_vm3, %v9385_v16, 0.0  ;;  %v16502_v16 = vld [vmem:[%s16724_s6] ss:$0 sm:$0xff] }
 0x604   : > { %v16492_v46 = vsel %vm10666_vm8, %v11736_v17, %v16355_v15  ;;  %v10389_v38 = vadd.f32 %v10388_v6, %v10387_v50  ;;  %v10328_v43 = vrot.slane %v10327_v5, 4  ;;  %v9420_v56 = vcombine.high %v16396_v42, %v16396_v42  ;;  %v16787_v15 = vld [vmem:[#allocation11_spill] sm:$0xff] }
 0x605   : > { %v10309_v0 = vrot.slane %v10308_v12, 2  ;;  %v10316_v53 = vrot.slane %v10315_v18, 2  ;;  %v10322_v40 = vadd.f32 %v10321_v59, %v10320_v27  ;;  %v10757_v10 = vsel %vm10660_vm5, %v10382_v8, %v10756_v49 }
 0x606   : > { %v10329_v2 = vadd.f32 %v10328_v43, %v10327_v5  ;;  %v9427_v55 = vrot.slane %v16396_v42, %v15567_v58  ;;  %v13315_v21 = vadd.f32 %v16502_v16, %v16787_v15  ;;  %v9434_v24 = vrot.slane %v9420_v56, %v15567_v58 }
 0x607   : > { %v10310_v19 = vadd.f32 %v10309_v0, %v10308_v12  ;;  %v10317_v9 = vadd.f32 %v10316_v53, %v10315_v18  ;;  %v10323_v37 = vrot.slane %v10322_v40, 2  ;;  %v10758_v17 = vsel %vm10662_vm6, %v10389_v38, %v10757_v10 }
 0x608   : > { %v10330_v52 = vrot.slane %v10329_v2, 2  ;;  %v9435_v14 = vcombine.high %v9427_v55, %v9427_v55  ;;  %v10390_v36 = vsel %vm9633_vm3, %v9427_v55, 0.0  ;;  %v13316_v47 = vadd.f32 %v13315_v21, %v16241_v28 }
 0x609   : > { %v10311_v42 = vrot.slane %v10310_v19, 1  ;;  %v10318_v41 = vrot.slane %v10317_v9, 1  ;;  %v10324_v1 = vadd.f32 %v10323_v37, %v10322_v40  ;;  %v9436_v22 = vcombine.high %v9434_v24, %v9434_v24 }
 0x60a   : > { %v10331_v11 = vadd.f32 %v10330_v52, %v10329_v2  ;;  %v10391_v3 = vrot.slane %v10390_v36, 4  ;;  %v10397_v26 = vsel %vm9633_vm3, %v9435_v14, 0.0  ;;  %v10404_v60 = vsel %vm9633_vm3, %v9434_v24, 0.0 }
 0x60b   : > { %v10312_v48 = vadd.f32 %v10311_v42, %v10310_v19  ;;  %v10319_v62 = vadd.f32 %v10318_v41, %v10317_v9  ;;  %v10325_v35 = vrot.slane %v10324_v1, 1  ;;  %v10398_v33 = vrot.slane %v10397_v26, 4 }
 0x60c   : > { %v10332_v30 = vrot.slane %v10331_v11, 1  ;;  %v10392_v4 = vadd.f32 %v10391_v3, %v10390_v36  ;;  %v10405_v51 = vrot.slane %v10404_v60, 4  ;;  %v10411_v20 = vsel %vm9633_vm3, %v9436_v22, 0.0 }
 0x60d   : > { %v10326_v28 = vadd.f32 %v10325_v35, %v10324_v1  ;;  %v10749_v44 = vsel %vm10658_vm4, %v10319_v62, %v10312_v48  ;;  %v10399_v50 = vadd.f32 %v10398_v33, %v10397_v26  ;;  %v10412_v49 = vrot.slane %v10411_v20, 4 }
 0x60e   : > { %v10393_v13 = vrot.slane %v10392_v4, 2  ;;  %v10406_v61 = vadd.f32 %v10405_v51, %v10404_v60  ;;  %v9386_v8 = vcombine.high %v13316_v47, %v13316_v47  ;;  %v10333_v6 = vadd.f32 %v10332_v30, %v10331_v11  ;;  %v16788_v51 = vld [vmem:[#allocation16_spill] sm:$0xff] }
 0x60f   : > { %v10400_v27 = vrot.slane %v10399_v50, 2  ;;  %v10413_v12 = vadd.f32 %v10412_v49, %v10411_v20  ;;  %v9393_v18 = vrot.slane %v13316_v47, %v15567_v58  ;;  %v10750_v59 = vsel %vm10660_vm5, %v10326_v28, %v10749_v44  ;;  %v16789_v49 = vld [vmem:[#allocation14_spill] sm:$0xff] }
 0x610   : > { %v10394_v5 = vadd.f32 %v10393_v13, %v10392_v4  ;;  %v10407_v43 = vrot.slane %v10406_v61, 2  ;;  %v9400_v0 = vrot.slane %v9386_v8, %v15567_v58  ;;  %v13317_v20 = vadd.f32 %v16502_v16, %v16788_v51 }
 0x611   : > { %v10401_v53 = vadd.f32 %v10400_v27, %v10399_v50  ;;  %v10414_v40 = vrot.slane %v10413_v12, 2  ;;  %v9401_v56 = vcombine.high %v9393_v18, %v9393_v18  ;;  %v10334_v2 = vsel %vm9633_vm3, %v9393_v18, 0.0 }
 0x612   : > { %v10395_v55 = vrot.slane %v10394_v5, 1  ;;  %v10408_v15 = vadd.f32 %v10407_v43, %v10406_v61  ;;  %v9402_v38 = vcombine.high %v9400_v0, %v9400_v0  ;;  %v10335_v10 = vrot.slane %v10334_v2, 4  ;;  %v16790_v43 = vld [vmem:[#allocation17_spill] sm:$0xff] }
 0x613   : > { %v10402_v21 = vrot.slane %v10401_v53, 1  ;;  %v10415_v19 = vadd.f32 %v10414_v40, %v10413_v12  ;;  %v10341_v9 = vsel %vm9633_vm3, %v9401_v56, 0.0  ;;  %v10348_v37 = vsel %vm9633_vm3, %v9400_v0, 0.0 }
 0x614   : > { %v10396_v24 = vadd.f32 %v10395_v55, %v10394_v5  ;;  %v10409_v52 = vrot.slane %v10408_v15, 1  ;;  %v10336_v14 = vadd.f32 %v10335_v10, %v10334_v2  ;;  %v10342_v36 = vrot.slane %v10341_v9, 4 }
 0x615   : > { %v10403_v47 = vadd.f32 %v10402_v21, %v10401_v53  ;;  %v10416_v42 = vrot.slane %v10415_v19, 1  ;;  %v10349_v41 = vrot.slane %v10348_v37, 4  ;;  %v10355_v1 = vsel %vm9633_vm3, %v9402_v38, 0.0 }
 0x616   : > { %v10410_v22 = vadd.f32 %v10409_v52, %v10408_v15  ;;  %v10759_v11 = vsel %vm10664_vm7, %v10396_v24, %v10758_v17  ;;  %v10337_v3 = vrot.slane %v10336_v14, 2  ;;  %v10343_v26 = vadd.f32 %v10342_v36, %v10341_v9 }
 0x617   : > { %v10417_v60 = vadd.f32 %v10416_v42, %v10415_v19  ;;  %v10760_v48 = vsel %vm10666_vm8, %v10403_v47, %v10759_v11  ;;  %v10350_v62 = vadd.f32 %v10349_v41, %v10348_v37  ;;  %v10356_v35 = vrot.slane %v10355_v1, 4 }
 0x618   : > { %v10761_v33 = vsel %vm10668_vm9, %v10410_v22, %v10760_v48  ;;  %v10338_v30 = vadd.f32 %v10337_v3, %v10336_v14  ;;  %v10344_v4 = vrot.slane %v10343_v26, 2  ;;  %v13319_v13 = vadd.f32 %v16502_v16, %v16789_v49 }
 0x619   : > { %v10762_v28 = vsel %vm10670_vm10, %v10417_v60, %v10761_v33  ;;  %v10351_v44 = vrot.slane %v10350_v62, 2  ;;  %v10357_v50 = vadd.f32 %v10356_v35, %v10355_v1  ;;  %v10751_v8 = vsel %vm10662_vm6, %v10333_v6, %v10750_v59 }
 0x61a   : > { %v10339_v61 = vrot.slane %v10338_v30, 1  ;;  %v10345_v17 = vadd.f32 %v10344_v4, %v10343_v26  ;;  %v13318_v27 = vadd.f32 %v13317_v20, %v16301_v57  ;;  %v13320_v5 = vadd.f32 %v13319_v13, %v16303_v63 }
 0x61b   : > { %v10352_v12 = vadd.f32 %v10351_v44, %v10350_v62  ;;  %v10358_v18 = vrot.slane %v10357_v50, 2  ;;  %v16534_v0 = vadd.f32 %v16502_v16, %v16790_v43 }
 0x61c   : > { %v10340_v53 = vadd.f32 %v10339_v61, %v10338_v30  ;;  %v10346_v40 = vrot.slane %v10345_v17, 1  ;;  %v9471_v56 = vcombine.high %v13318_v27, %v13318_v27  ;;  %v9478_v2 = vrot.slane %v13318_v27, %v15567_v58 }
 0x61d   : > { %v10353_v55 = vrot.slane %v10352_v12, 1  ;;  %v10359_v15 = vadd.f32 %v10358_v18, %v10357_v50  ;;  %v9437_v38 = vcombine.high %v13320_v5, %v13320_v5  ;;  %v9444_v6 = vrot.slane %v13320_v5, %v15567_v58 }
 0x61e   : > { %v10347_v59 = vadd.f32 %v10346_v40, %v10345_v17  ;;  %v10752_v57 = vsel %vm10664_vm7, %v10340_v53, %v10751_v8  ;;  %v9485_v10 = vrot.slane %v9471_v56, %v15567_v58  ;;  %v9486_v63 = vcombine.high %v9478_v2, %v9478_v2 }
 0x61f   : > { %v10354_v21 = vadd.f32 %v10353_v55, %v10352_v12  ;;  %v10360_v19 = vrot.slane %v10359_v15, 1  ;;  %v10474_v9 = vsel %vm9633_vm3, %v9478_v2, 0.0  ;;  %v16542_v37 = vrot.slane %v9437_v38, %v15567_v58 }
 0x620   : > { %v10753_v24 = vsel %vm10666_vm8, %v10347_v59, %v10752_v57  ;;  %v9487_v52 = vcombine.high %v9485_v10, %v9485_v10  ;;  %v10475_v14 = vrot.slane %v10474_v9, 4  ;;  %v10481_v36 = vsel %vm9633_vm3, %v9486_v63, 0.0 }
 0x621   : > { %v10361_v47 = vadd.f32 %v10360_v19, %v10359_v15  ;;  %v10754_v42 = vsel %vm10668_vm9, %v10354_v21, %v10753_v24  ;;  %v10482_v41 = vrot.slane %v10481_v36, 4  ;;  %v10488_v1 = vsel %vm9633_vm3, %v9485_v10, 0.0 }
 0x622   : > { %v10476_v22 = vadd.f32 %v10475_v14, %v10474_v9  ;;  %v10489_v11 = vrot.slane %v10488_v1, 4  ;;  %v10495_v3 = vsel %vm9633_vm3, %v9487_v52, 0.0  ;;  %v9452_v26 = vcombine.high %v9444_v6, %v9444_v6 }
 0x623   : > { %v10755_v60 = vsel %vm10670_vm10, %v10361_v47, %v10754_v42  ;;  %v10483_v48 = vadd.f32 %v10482_v41, %v10481_v36  ;;  %v10496_v62 = vrot.slane %v10495_v3, 4  ;;  %v9453_v35 = vcombine.high %v16542_v37, %v16542_v37 }
 0x624   : > { %v11077_v33 = vcombine.low %v10755_v60, %v10762_v28  ;;  %v11078_v30 = vcombine.high %v10755_v60, %v10762_v28  ;;  %v10477_v4 = vrot.slane %v10476_v22, 2  ;;  %v10490_v51 = vadd.f32 %v10489_v11, %v10488_v1 }
 0x625   : > { %v10484_v20 = vrot.slane %v10483_v48, 2  ;;  %v10497_v44 = vadd.f32 %v10496_v62, %v10495_v3  ;;  %v16553_v50 = vsel %vm9633_vm3, %v9444_v6, 0.0  ;;  %v16556_v49 = vsel %vm9633_vm3, %v9452_v26, 0.0 }
 0x626   : > { %v11085_v13 = vrot.slane %v11077_v33, %v15571_v39  ;;  %v11092_v61 = vrot.slane %v11078_v30, %v15571_v39  ;;  %v10478_v17 = vadd.f32 %v10477_v4, %v10476_v22  ;;  %v10491_v8 = vrot.slane %v10490_v51, 2 }
 0x627   : > { %v10485_v27 = vadd.f32 %v10484_v20, %v10483_v48  ;;  %v10498_v12 = vrot.slane %v10497_v44, 2  ;;  %v10419_v28 = vrot.slane %v16553_v50, 4  ;;  %v10426_v18 = vrot.slane %v16556_v49, 4 }
 0x628   : > { %v11093_v5 = vcombine.high %v11085_v13, %v11085_v13  ;;  %v11094_v43 = vcombine.high %v11092_v61, %v11092_v61  ;;  %v11101_v53 = vrot.slane %v11085_v13, %v15571_v39  ;;  %v11108_v40 = vrot.slane %v11092_v61, %v15571_v39 }
 0x629   : > { %v10479_v56 = vrot.slane %v10478_v17, 1  ;;  %v10486_v2 = vrot.slane %v10485_v27, 1  ;;  %v16564_v55 = vadd.f32 %v10491_v8, %v10490_v51  ;;  %v16566_v15 = vadd.f32 %v10498_v12, %v10497_v44 }
 0x62a   : > { %v11115_v38 = vrot.slane %v11093_v5, %v15571_v39  ;;  %v11122_v6 = vrot.slane %v11094_v43, %v15571_v39  ;;  %v11123_v59 = vcombine.high %v11101_v53, %v11101_v53  ;;  %v11124_v57 = vcombine.high %v11108_v40, %v11108_v40 }
 0x62b   : > { %v11577_v10 = vsel %vm9633_vm3, %v11101_v53, 0.0  ;;  %v11605_v63 = vsel %vm9633_vm3, %v11108_v40, 0.0  ;;  %v16572_v21 = vadd.f32 %v10479_v56, %v10478_v17  ;;  %v16574_v19 = vadd.f32 %v10486_v2, %v10485_v27 }
 0x62c   : > { %v11125_v9 = vcombine.high %v11115_v38, %v11115_v38  ;;  %v11126_v24 = vcombine.high %v11122_v6, %v11122_v6  ;;  %v11578_v52 = vrot.slane %v11577_v10, 4  ;;  %v11584_v14 = vsel %vm9633_vm3, %v11115_v38, 0.0 }
 0x62d   : > { %v11585_v36 = vrot.slane %v11584_v14, 4  ;;  %v11591_v47 = vsel %vm9633_vm3, %v11123_v59, 0.0  ;;  %v11606_v42 = vrot.slane %v11605_v63, 4  ;;  %v11612_v41 = vsel %vm9633_vm3, %v11122_v6, 0.0 }
 0x62e   : > { %v11579_v1 = vadd.f32 %v11578_v52, %v11577_v10  ;;  %v11592_v22 = vrot.slane %v11591_v47, 4  ;;  %v11598_v11 = vsel %vm9633_vm3, %v11125_v9, 0.0  ;;  %v11613_v3 = vrot.slane %v11612_v41, 4 }
 0x62f   : > { %v11586_v26 = vadd.f32 %v11585_v36, %v11584_v14  ;;  %v11599_v60 = vrot.slane %v11598_v11, 4  ;;  %v11607_v48 = vadd.f32 %v11606_v42, %v11605_v63  ;;  %v11619_v62 = vsel %vm9633_vm3, %v11124_v57, 0.0 }
 0x630   : > { %v11580_v33 = vrot.slane %v11579_v1, 2  ;;  %v11593_v30 = vadd.f32 %v11592_v22, %v11591_v47  ;;  %v11614_v4 = vadd.f32 %v11613_v3, %v11612_v41  ;;  %v11620_v51 = vrot.slane %v11619_v62, 4 }
 0x631   : > { %v11587_v20 = vrot.slane %v11586_v26, 2  ;;  %v11600_v44 = vadd.f32 %v11599_v60, %v11598_v11  ;;  %v11608_v13 = vrot.slane %v11607_v48, 2  ;;  %v11626_v61 = vsel %vm9633_vm3, %v11126_v24, 0.0 }
 0x632   : > { %v11581_v17 = vadd.f32 %v11580_v33, %v11579_v1  ;;  %v11594_v8 = vrot.slane %v11593_v30, 2  ;;  %v11615_v27 = vrot.slane %v11614_v4, 2  ;;  %v11621_v12 = vadd.f32 %v11620_v51, %v11619_v62 }
 0x633   : > { %v11588_v5 = vadd.f32 %v11587_v20, %v11586_v26  ;;  %v11601_v43 = vrot.slane %v11600_v44, 2  ;;  %v11609_v53 = vadd.f32 %v11608_v13, %v11607_v48  ;;  %v11627_v40 = vrot.slane %v11626_v61, 4 }
 0x634   : > { %v11582_v56 = vrot.slane %v11581_v17, 1  ;;  %v11595_v2 = vadd.f32 %v11594_v8, %v11593_v30  ;;  %v11616_v38 = vadd.f32 %v11615_v27, %v11614_v4  ;;  %v11622_v6 = vrot.slane %v11621_v12, 2 }
 0x635   : > { %v11589_v59 = vrot.slane %v11588_v5, 1  ;;  %v11602_v57 = vadd.f32 %v11601_v43, %v11600_v44  ;;  %v11610_v10 = vrot.slane %v11609_v53, 1  ;;  %v11628_v63 = vadd.f32 %v11627_v40, %v11626_v61 }
 0x636   : > { %v11583_v9 = vadd.f32 %v11582_v56, %v11581_v17  ;;  %v11596_v52 = vrot.slane %v11595_v2, 1  ;;  %v11617_v14 = vrot.slane %v11616_v38, 1  ;;  %v11623_v24 = vadd.f32 %v11622_v6, %v11621_v12 }
 0x637   : > { %v11590_v36 = vadd.f32 %v11589_v59, %v11588_v5  ;;  %v11603_v47 = vrot.slane %v11602_v57, 1  ;;  %v11611_v42 = vadd.f32 %v11610_v10, %v11609_v53  ;;  %v11629_v41 = vrot.slane %v11628_v63, 2 }
 0x638   : > { %v11597_v1 = vadd.f32 %v11596_v52, %v11595_v2  ;;  %v11618_v22 = vadd.f32 %v11617_v14, %v11616_v38  ;;  %v11624_v11 = vrot.slane %v11623_v24, 1  ;;  %v11737_v3 = vmul.f32 0.25, %v11583_v9 }
 0x639   : > { %v11604_v26 = vadd.f32 %v11603_v47, %v11602_v57  ;;  %v11630_v60 = vadd.f32 %v11629_v41, %v11628_v63  ;;  %v11738_v48 = vmul.f32 0.25, %v11590_v36  ;;  %v11741_v62 = vmul.f32 0.25, %v11611_v42 }
 0x63a   : > { %v11625_v33 = vadd.f32 %v11624_v11, %v11623_v24  ;;  %v11739_v30 = vmul.f32 0.25, %v11597_v1  ;;  %v11742_v4 = vmul.f32 0.25, %v11618_v22  ;;  %v16584_v51 = vsel %vm10668_vm9, %v11737_v3, %v16444_v7 }
 0x63b   : > { %v11631_v20 = vrot.slane %v11630_v60, 1  ;;  %v11740_v44 = vmul.f32 0.25, %v11604_v26  ;;  %v16588_v13 = vsel %vm10668_vm9, %v11738_v48, %v16448_v32  ;;  %v16592_v61 = vsel %vm10668_vm9, %v11741_v62, %v16452_v29 }
 0x63c   : > { %v11743_v17 = vmul.f32 0.25, %v11625_v33  ;;  %v16596_v8 = vsel %vm10668_vm9, %v11739_v30, %v16456_v31  ;;  %v16600_v27 = vsel %vm10668_vm9, %v11742_v4, %v16460_v25  ;;  %v10493_v7 = vrot.slane %v16564_v55, 1 }
 0x63d   : > { %v11632_v12 = vadd.f32 %v11631_v20, %v11630_v60  ;;  %v16605_v32 = vsel %vm10668_vm9, %v11740_v44, %v16467_v23  ;;  %v10500_v5 = vrot.slane %v16566_v15, 1  ;;  %v10770_v29 = vsel %vm10658_vm4, %v16574_v19, %v16572_v21  ;;  %v16791_v21 = vld [vmem:[#allocation15_spill] sm:$0xff] }
 0x63e   : > { %v16613_v31 = vsel %vm10668_vm9, %v11743_v17, %v16475_v45  ;;  %v10494_v25 = vadd.f32 %v10493_v7, %v16564_v55  ;;  %v10420_v43 = vadd.f32 %v10419_v28, %v16553_v50  ;;  %v10427_v23 = vadd.f32 %v10426_v18, %v16556_v49 }
 0x63f   : > { %v11744_v53 = vmul.f32 0.25, %v11632_v12  ;;  %v10432_v40 = vsel %vm9633_vm3, %v16542_v37, 0.0  ;;  %v10439_v45 = vsel %vm9633_vm3, %v9453_v35, 0.0  ;;  %v13323_v55 = vadd.f32 %v16502_v16, %v16791_v21 }
 0x640   : > { %v10501_v19 = vadd.f32 %v10500_v5, %v16566_v15  ;;  %v10421_v56 = vrot.slane %v10420_v43, 2  ;;  %v10428_v50 = vrot.slane %v10427_v23, 2  ;;  %v10433_v28 = vrot.slane %v10432_v40, 4 }
 0x641   : > { %v16633_v49 = vsel %vm10668_vm9, %v11744_v53, %v16492_v46  ;;  %v10771_v18 = vsel %vm10660_vm5, %v10494_v25, %v10770_v29  ;;  %v10440_v2 = vrot.slane %v10439_v45, 4  ;;  %v13322_v37 = vadd.f32 %v16534_v0, %v16364_v34 }
 0x642   : > { %v10422_v38 = vadd.f32 %v10421_v56, %v10420_v43  ;;  %v10429_v35 = vadd.f32 %v10428_v50, %v10427_v23  ;;  %v10434_v6 = vadd.f32 %v10433_v28, %v10432_v40  ;;  %v13324_v16 = vadd.f32 %v13323_v55, %v16377_v54 }
 0x643   : > { %v10441_v59 = vadd.f32 %v10440_v2, %v10439_v45  ;;  %v9488_v15 = vcombine.high %v13322_v37, %v13322_v37  ;;  %v9495_v57 = vrot.slane %v13322_v37, %v15567_v58  ;;  %v10772_v46 = vsel %vm10662_vm6, %v10501_v19, %v10771_v18 }
 0x644   : > { %v10423_v10 = vrot.slane %v10422_v38, 1  ;;  %v10430_v63 = vrot.slane %v10429_v35, 1  ;;  %v10435_v9 = vrot.slane %v10434_v6, 2  ;;  %v9454_v42 = vcombine.high %v13324_v16, %v13324_v16 }
 0x645   : > { %v10442_v52 = vrot.slane %v10441_v59, 2  ;;  %v9502_v14 = vrot.slane %v9488_v15, %v15567_v58  ;;  %v9503_v24 = vcombine.high %v9495_v57, %v9495_v57  ;;  %v10502_v34 = vsel %vm9633_vm3, %v9495_v57, 0.0 }
 0x646   : > { %v10431_v0 = vadd.f32 %v10430_v63, %v10429_v35  ;;  %v10436_v36 = vadd.f32 %v10435_v9, %v10434_v6  ;;  %v10503_v47 = vrot.slane %v10502_v34, 4  ;;  %v10424_v11 = vadd.f32 %v10423_v10, %v10422_v38 }
 0x647   : > { %v10443_v54 = vadd.f32 %v10442_v52, %v10441_v59  ;;  %v9504_v41 = vcombine.high %v9502_v14, %v9502_v14  ;;  %v10509_v1 = vsel %vm9633_vm3, %v9503_v24, 0.0  ;;  %v10516_v22 = vsel %vm9633_vm3, %v9502_v14, 0.0 }
 0x648   : > { %v10437_v3 = vrot.slane %v10436_v36, 1  ;;  %v10504_v26 = vadd.f32 %v10503_v47, %v10502_v34  ;;  %v10510_v60 = vrot.slane %v10509_v1, 4  ;;  %v10517_v62 = vrot.slane %v10516_v22, 4 }
 0x649   : > { %v10444_v48 = vrot.slane %v10443_v54, 1  ;;  %v10523_v33 = vsel %vm9633_vm3, %v9504_v41, 0.0  ;;  %v9461_v30 = vrot.slane %v13324_v16, %v15567_v58  ;;  %v10763_v4 = vsel %vm10658_vm4, %v10431_v0, %v10424_v11 }
 0x64a   : > { %v10505_v20 = vrot.slane %v10504_v26, 2  ;;  %v10511_v44 = vadd.f32 %v10510_v60, %v10509_v1  ;;  %v10524_v17 = vrot.slane %v10523_v33, 4  ;;  %v10438_v7 = vadd.f32 %v10437_v3, %v10436_v36 }
 0x64b   : > { %v10518_v12 = vadd.f32 %v10517_v62, %v10516_v22  ;;  %v9468_v5 = vrot.slane %v9454_v42, %v15567_v58  ;;  %v9469_v29 = vcombine.high %v9461_v30, %v9461_v30  ;;  %v10445_v25 = vadd.f32 %v10444_v48, %v10443_v54 }
 0x64c   : > { %v10506_v43 = vadd.f32 %v10505_v20, %v10504_v26  ;;  %v10512_v23 = vrot.slane %v10511_v44, 2  ;;  %v10525_v53 = vadd.f32 %v10524_v17, %v10523_v33  ;;  %v10446_v21 = vsel %vm9633_vm3, %v9461_v30, 0.0 }
 0x64d   : > { %v10519_v40 = vrot.slane %v10518_v12, 2  ;;  %v9470_v45 = vcombine.high %v9468_v5, %v9468_v5  ;;  %v10453_v55 = vsel %vm9633_vm3, %v9469_v29, 0.0  ;;  %v10447_v28 = vrot.slane %v10446_v21, 4 }
 0x64e   : > { %v10507_v19 = vrot.slane %v10506_v43, 1  ;;  %v10513_v56 = vadd.f32 %v10512_v23, %v10511_v44  ;;  %v10526_v50 = vrot.slane %v10525_v53, 2  ;;  %v10454_v2 = vrot.slane %v10453_v55, 4 }
 0x64f   : > { %v10520_v18 = vadd.f32 %v10519_v40, %v10518_v12  ;;  %v10460_v37 = vsel %vm9633_vm3, %v9468_v5, 0.0  ;;  %v10467_v58 = vsel %vm9633_vm3, %v9470_v45, 0.0  ;;  %v10448_v16 = vadd.f32 %v10447_v28, %v10446_v21 }
 0x650   : > { %v10508_v38 = vadd.f32 %v10507_v19, %v10506_v43  ;;  %v10514_v35 = vrot.slane %v10513_v56, 1  ;;  %v10527_v6 = vadd.f32 %v10526_v50, %v10525_v53  ;;  %v10455_v15 = vadd.f32 %v10454_v2, %v10453_v55 }
 0x651   : > { %v10521_v59 = vrot.slane %v10520_v18, 1  ;;  %v10461_v57 = vrot.slane %v10460_v37, 4  ;;  %v10468_v10 = vrot.slane %v10467_v58, 4  ;;  %v10449_v14 = vrot.slane %v10448_v16, 2 }
 0x652   : > { %v10515_v63 = vadd.f32 %v10514_v35, %v10513_v56  ;;  %v10528_v9 = vrot.slane %v10527_v6, 1  ;;  %v10773_v52 = vsel %vm10664_vm7, %v10508_v38, %v10772_v46  ;;  %v10456_v34 = vrot.slane %v10455_v15, 2 }
 0x653   : > { %v10522_v24 = vadd.f32 %v10521_v59, %v10520_v18  ;;  %v10462_v0 = vadd.f32 %v10461_v57, %v10460_v37  ;;  %v10469_v36 = vadd.f32 %v10468_v10, %v10467_v58  ;;  %v10764_v47 = vsel %vm10660_vm5, %v10438_v7, %v10763_v4 }
 0x654   : > { %v10529_v42 = vadd.f32 %v10528_v9, %v10527_v6  ;;  %v10774_v54 = vsel %vm10666_vm8, %v10515_v63, %v10773_v52  ;;  %v10450_v41 = vadd.f32 %v10449_v14, %v10448_v16  ;;  %v10457_v22 = vadd.f32 %v10456_v34, %v10455_v15 }
 0x655   : > { %v10775_v1 = vsel %vm10668_vm9, %v10522_v24, %v10774_v54  ;;  %v10463_v11 = vrot.slane %v10462_v0, 2  ;;  %v10470_v3 = vrot.slane %v10469_v36, 2  ;;  %v10765_v33 = vsel %vm10662_vm6, %v10445_v25, %v10764_v47 }
 0x656   : > { %v10776_v26 = vsel %vm10670_vm10, %v10529_v42, %v10775_v1  ;;  %v10451_v60 = vrot.slane %v10450_v41, 1  ;;  %v10458_v46 = vrot.slane %v10457_v22, 1 }
 0x657   : > { %v10464_v48 = vadd.f32 %v10463_v11, %v10462_v0  ;;  %v10471_v62 = vadd.f32 %v10470_v3, %v10469_v36 }
 0x658   : > { %v10452_v30 = vadd.f32 %v10451_v60, %v10450_v41  ;;  %v10459_v20 = vadd.f32 %v10458_v46, %v10457_v22 }
 0x659   : > { %v10465_v4 = vrot.slane %v10464_v48, 1  ;;  %v10472_v44 = vrot.slane %v10471_v62, 1 }
 0x65a   : > { %v10766_v17 = vsel %vm10664_vm7, %v10452_v30, %v10765_v33 }
 0x65b   : > { %v10466_v7 = vadd.f32 %v10465_v4, %v10464_v48  ;;  %v10767_v12 = vsel %vm10666_vm8, %v10459_v20, %v10766_v17  ;;  %v10473_v5 = vadd.f32 %v10472_v44, %v10471_v62 }
 0x65d   : > { %v10768_v29 = vsel %vm10668_vm9, %v10466_v7, %v10767_v12 }
 0x65e   : > { %v10769_v43 = vsel %vm10670_vm10, %v10473_v5, %v10768_v29 }
 0x65f   : > { %v11127_v23 = vcombine.low %v10769_v43, %v10776_v26  ;;  %v11128_v53 = vcombine.high %v10769_v43, %v10776_v26 }
 0x661   : > { %v11135_v40 = vrot.slane %v11127_v23, %v15571_v39  ;;  %v11142_v25 = vrot.slane %v11128_v53, %v15571_v39 }
 0x663   : > { %v11143_v45 = vcombine.high %v11135_v40, %v11135_v40  ;;  %v11144_v21 = vcombine.high %v11142_v25, %v11142_v25  ;;  %v11151_v55 = vrot.slane %v11135_v40, %v15571_v39  ;;  %v11158_v19 = vrot.slane %v11142_v25, %v15571_v39 }
 0x665   : > { %v11165_v56 = vrot.slane %v11143_v45, %v15571_v39  ;;  %v11172_v50 = vrot.slane %v11144_v21, %v15571_v39  ;;  %v11173_v28 = vcombine.high %v11151_v55, %v11151_v55  ;;  %v11174_v18 = vcombine.high %v11158_v19, %v11158_v19 }
 0x666   : > { %v11633_v2 = vsel %vm9633_vm3, %v11151_v55, 0.0  ;;  %v11661_v37 = vsel %vm9633_vm3, %v11158_v19, 0.0 }
 0x667   : > { %v11175_v58 = vcombine.high %v11165_v56, %v11165_v56  ;;  %v11176_v38 = vcombine.high %v11172_v50, %v11172_v50  ;;  %v11634_v35 = vrot.slane %v11633_v2, 4  ;;  %v11640_v6 = vsel %vm9633_vm3, %v11165_v56, 0.0 }
 0x668   : > { %v11641_v16 = vrot.slane %v11640_v6, 4  ;;  %v11647_v59 = vsel %vm9633_vm3, %v11173_v28, 0.0  ;;  %v11662_v15 = vrot.slane %v11661_v37, 4  ;;  %v11668_v57 = vsel %vm9633_vm3, %v11172_v50, 0.0 }
 0x669   : > { %v11635_v10 = vadd.f32 %v11634_v35, %v11633_v2  ;;  %v11648_v63 = vrot.slane %v11647_v59, 4  ;;  %v11654_v39 = vsel %vm9633_vm3, %v11175_v58, 0.0  ;;  %v11669_v9 = vrot.slane %v11668_v57, 4 }
 0x66a   : > { %v11642_v52 = vadd.f32 %v11641_v16, %v11640_v6  ;;  %v11655_v14 = vrot.slane %v11654_v39, 4  ;;  %v11663_v24 = vadd.f32 %v11662_v15, %v11661_v37  ;;  %v11675_v34 = vsel %vm9633_vm3, %v11174_v18, 0.0 }
 0x66b   : > { %v11636_v0 = vrot.slane %v11635_v10, 2  ;;  %v11649_v36 = vadd.f32 %v11648_v63, %v11647_v59  ;;  %v11670_v47 = vadd.f32 %v11669_v9, %v11668_v57  ;;  %v11676_v42 = vrot.slane %v11675_v34, 4 }
 0x66c   : > { %v11643_v54 = vrot.slane %v11642_v52, 2  ;;  %v11656_v41 = vadd.f32 %v11655_v14, %v11654_v39  ;;  %v11664_v1 = vrot.slane %v11663_v24, 2  ;;  %v11682_v22 = vsel %vm9633_vm3, %v11176_v38, 0.0 }
 0x66d   : > { %v11637_v11 = vadd.f32 %v11636_v0, %v11635_v10  ;;  %v11650_v3 = vrot.slane %v11649_v36, 2  ;;  %v11671_v26 = vrot.slane %v11670_v47, 2  ;;  %v11677_v60 = vadd.f32 %v11676_v42, %v11675_v34 }
 0x66e   : > { %v11644_v46 = vadd.f32 %v11643_v54, %v11642_v52  ;;  %v11657_v48 = vrot.slane %v11656_v41, 2  ;;  %v11665_v62 = vadd.f32 %v11664_v1, %v11663_v24  ;;  %v11683_v33 = vrot.slane %v11682_v22, 4 }
 0x66f   : > { %v11638_v30 = vrot.slane %v11637_v11, 1  ;;  %v11651_v20 = vadd.f32 %v11650_v3, %v11649_v36  ;;  %v11672_v4 = vadd.f32 %v11671_v26, %v11670_v47  ;;  %v11678_v44 = vrot.slane %v11677_v60, 2 }
 0x670   : > { %v11645_v17 = vrot.slane %v11644_v46, 1  ;;  %v11658_v7 = vadd.f32 %v11657_v48, %v11656_v41  ;;  %v11666_v12 = vrot.slane %v11665_v62, 1  ;;  %v11684_v5 = vadd.f32 %v11683_v33, %v11682_v22 }
 0x671   : > { %v11639_v29 = vadd.f32 %v11638_v30, %v11637_v11  ;;  %v11652_v43 = vrot.slane %v11651_v20, 1  ;;  %v11673_v23 = vrot.slane %v11672_v4, 1  ;;  %v11679_v53 = vadd.f32 %v11678_v44, %v11677_v60 }
 0x672   : > { %v11646_v40 = vadd.f32 %v11645_v17, %v11644_v46  ;;  %v11659_v25 = vrot.slane %v11658_v7, 1  ;;  %v11667_v45 = vadd.f32 %v11666_v12, %v11665_v62  ;;  %v11685_v21 = vrot.slane %v11684_v5, 2 }
 0x673   : > { %v11653_v55 = vadd.f32 %v11652_v43, %v11651_v20  ;;  %v11674_v19 = vadd.f32 %v11673_v23, %v11672_v4  ;;  %v11680_v56 = vrot.slane %v11679_v53, 1  ;;  %v11745_v50 = vmul.f32 0.25, %v11639_v29 }
 0x674   : > { %v11660_v28 = vadd.f32 %v11659_v25, %v11658_v7  ;;  %v11686_v18 = vadd.f32 %v11685_v21, %v11684_v5  ;;  %v11746_v2 = vmul.f32 0.25, %v11646_v40  ;;  %v11749_v37 = vmul.f32 0.25, %v11667_v45 }
 0x675   : > { %v11681_v58 = vadd.f32 %v11680_v56, %v11679_v53  ;;  %v11747_v38 = vmul.f32 0.25, %v11653_v55  ;;  %v11750_v35 = vmul.f32 0.25, %v11674_v19  ;;  %v11767_v6 = vsel %vm10670_vm10, %v11745_v50, %v16584_v51 }
 0x676   : > { %v11687_v16 = vrot.slane %v11686_v18, 1  ;;  %v11748_v59 = vmul.f32 0.25, %v11660_v28  ;;  %11768 = vst [vmem:[%s16681_s9] ss:$8 sm:$0xf] %v11767_v6  ;;  %11769 = vst [vmem:[%s16681_s9] ss:$8 sm:$0xf0] %v11767_v6  ;;  %v11784_v15 = vsel %vm10670_vm10, %v11746_v2, %v16588_v13  ;;  %v11838_v57 = vsel %vm10670_vm10, %v11749_v37, %v16592_v61 }
 0x677   : > { %v11751_v10 = vmul.f32 0.25, %v11681_v58  ;;  %12115 = vst [vmem:[%s16681_s9 + $0x1] ss:$8 sm:$0xf] %v11784_v15  ;;  %v11802_v51 = vsel %vm10670_vm10, %v11747_v38, %v16596_v8  ;;  %v11856_v63 = vsel %vm10670_vm10, %v11750_v35, %v16600_v27 }
 0x678   : > { %12116 = vst [vmem:[%s16681_s9 + $0x1] ss:$8 sm:$0xf0] %v11784_v15  ;;  %12121 = vst [vmem:[%s16681_s9 + $0x4] ss:$8 sm:$0xf] %v11838_v57  ;;  %v11688_v13 = vadd.f32 %v11687_v16, %v11686_v18  ;;  %v11820_v61 = vsel %vm10670_vm10, %v11748_v59, %v16605_v32 }
 0x679   : > { %12122 = vst [vmem:[%s16681_s9 + $0x4] ss:$8 sm:$0xf0] %v11838_v57  ;;  %12117 = vst [vmem:[%s16681_s9 + $0x2] ss:$8 sm:$0xf] %v11802_v51  ;;  %v11874_v8 = vsel %vm10670_vm10, %v11751_v10, %v16613_v31 }
 0x67a   : > { %12118 = vst [vmem:[%s16681_s9 + $0x2] ss:$8 sm:$0xf0] %v11802_v51  ;;  %12123 = vst [vmem:[%s16681_s9 + $0x5] ss:$8 sm:$0xf] %v11856_v63 }
 0x67b   : > { %12124 = vst [vmem:[%s16681_s9 + $0x5] ss:$8 sm:$0xf0] %v11856_v63  ;;  %12119 = vst [vmem:[%s16681_s9 + $0x3] ss:$8 sm:$0xf] %v11820_v61 }
 0x67c   : > { %12120 = vst [vmem:[%s16681_s9 + $0x3] ss:$8 sm:$0xf0] %v11820_v61  ;;  %v11752_v39 = vmul.f32 0.25, %v11688_v13 }
 0x67d   : > { %12125 = vst [vmem:[%s16681_s9 + $0x6] ss:$8 sm:$0xf] %v11874_v8  ;;  %12126 = vst [vmem:[%s16681_s9 + $0x6] ss:$8 sm:$0xf0] %v11874_v8 }
 0x67e   : > { %v11892_v9 = vsel %vm10670_vm10, %v11752_v39, %v16633_v49 }
 0x67f   : > { %12127 = vst [vmem:[%s16681_s9 + $0x7] ss:$8 sm:$0xf] %v11892_v9  ;;  %12128 = vst [vmem:[%s16681_s9 + $0x7] ss:$8 sm:$0xf0] %v11892_v9 }
 0x680 PF: > { %s17_s24 = sadd.s32 1, %s13532_s24  }
 0x681   : > { %p14_p4 = scmp.ge.s32.totalorder %s17_s24, 4  }
 0x683   :  { %16 = sbr.rel (!%p14_p4) target bundleno = 1 (0x1), region = 91 }

</bundles_post_ra>
